<compile_context>
chip_gen: v7x
topology: tpu7x:2x2x1
jax: 0.10.0
libtpu: 0.0.40
codegen_flags: <defaults>
</compile_context>

<pallas_src>
import functools
import math

import numpy as np
import jax
import jax.numpy as jnp
from jax.experimental import pallas as pl
from jax.experimental.pallas import tpu as pltpu

_EPS = 1e-6
_HI = jax.lax.Precision.HIGHEST


# ============================================================================
# In-kernel helpers
# ============================================================================

def _silu(x):
    return x * (1.0 / (1.0 + jnp.exp(-x)))


def _gn(x, pool, gamma, beta, eps):
    """GroupNorm of channels-last x (L, C).

    `pool` is (C, C) with entries 1/(L*group_size) for channel pairs in the same
    group, so one (1,C)x(C,C) matmul produces per-channel group statistics.
    """
    s1 = jnp.sum(x, axis=0, keepdims=True)                        # (1, C)
    mean = jnp.dot(s1, pool, preferred_element_type=jnp.float32)
    xc = x - mean
    s2 = jnp.sum(xc * xc, axis=0, keepdims=True)
    var = jnp.dot(s2, pool, preferred_element_type=jnp.float32)
    inv = jax.lax.rsqrt(var + eps)
    return xc * (inv * gamma) + beta


def _edge_masks(H, W):
    """Column-validity masks for the horizontal taps of a 3x3 'same' conv."""
    L = H * W
    xi = jax.lax.broadcasted_iota(jnp.int32, (L, 1), 0) % W
    mask_l = (xi >= 1).astype(jnp.float32)        # reading column x-1 is valid
    mask_r = (xi <= W - 2).astype(jnp.float32)    # reading column x+1 is valid
    return mask_l, mask_r


def _conv3x3(h, w_ref, bias, pad_ref, masks, H, W):
    """3x3 stride-1 zero-padded conv on channels-last h (L=H*W, Cin), fully in VMEM.

    h is written once into the zero-padded scratch `pad_ref` ((L + 2*pad, Cin)); the 9
    taps are statically shifted windows of that scratch accumulated on the MXU.
    w_ref: (9, Cin, Cout) ref.  bias: (1, Cout) f32 value.
    """
    L, _ = h.shape
    Cout = w_ref.shape[2]
    pad = W + 8                                    # >= W+1, sublane-aligned interior
    mask_l, mask_r = masks

    pad_ref[...] = jnp.zeros_like(pad_ref)
    pad_ref[pl.ds(pad, L), :] = h

    acc = jnp.broadcast_to(bias, (L, Cout))
    for ky in range(3):
        for kx in range(3):
            s = (ky - 1) * W + (kx - 1)
            win = pad_ref[pl.ds(pad + s, L), :]
            if kx == 0:
                win = win * mask_l
            elif kx == 2:
                win = win * mask_r
            acc = acc + jnp.dot(win, w_ref[ky * 3 + kx],
                                preferred_element_type=jnp.float32)
    return acc


# ============================================================================
# Fused Pallas kernels
# ============================================================================

def _resnet_kernel(*refs, H, W, eps, two_x, has_skip):
    """Fused ResNetBlock for one batch element (channels-last, L = H*W)."""
    i = 0
    xa_ref = refs[i]; i += 1
    xb_ref = None
    if two_x:
        xb_ref = refs[i]; i += 1
    (cond_ref, pool1_ref, gn1_ref, w1_ref, b1_ref, wc_ref,
     pool2_ref, gn2_ref, w2_ref, b2_ref) = refs[i:i + 10]
    i += 10
    ws_ref = bs_ref = None
    if has_skip:
        ws_ref, bs_ref = refs[i], refs[i + 1]
        i += 2
    o_ref, pad1_ref, pad2_ref = refs[i], refs[i + 1], refs[i + 2]

    masks = _edge_masks(H, W)

    x = xa_ref[0].astype(jnp.float32)                            # (L, Ca)
    if two_x:
        x = jnp.concatenate([x, xb_ref[0].astype(jnp.float32)], axis=-1)

    h = _silu(_gn(x, pool1_ref[...], gn1_ref[0:1, :], gn1_ref[1:2, :], eps))
    h = _conv3x3(h, w1_ref, b1_ref[...], pad1_ref, masks, H, W)
    h = h + jnp.dot(cond_ref[0].astype(jnp.float32), wc_ref[...],
                    preferred_element_type=jnp.float32)           # (1,Cout) broadcast
    h = _silu(_gn(h, pool2_ref[...], gn2_ref[0:1, :], gn2_ref[1:2, :], eps))
    # TODO(synk): F.dropout is identity in eval mode; training-mode dropout omitted.
    h = _conv3x3(h, w2_ref, b2_ref[...], pad2_ref, masks, H, W)

    if has_skip:
        skip = jnp.dot(x, ws_ref[...], preferred_element_type=jnp.float32) + bs_ref[...]
    else:
        skip = x
    o_ref[0] = (h + skip).astype(o_ref.dtype)


def _attn_kernel(x_ref, pool_ref, gn_ref, wqkv_ref, bqkv_ref, wp_ref, bp_ref,
                 o_ref, *, eps, scale):
    """Fused AttnBlock for one batch element (channels-last, (L, C))."""
    x = x_ref[0].astype(jnp.float32)
    C = x.shape[1]
    h = _gn(x, pool_ref[...], gn_ref[0:1, :], gn_ref[1:2, :], eps)
    qkv = jnp.dot(h, wqkv_ref[...], preferred_element_type=jnp.float32) + bqkv_ref[...]
    q = qkv[:, :C]
    k = qkv[:, C:2 * C]
    v = qkv[:, 2 * C:]
    s = jax.lax.dot_general(q, k, (((1,), (1,)), ((), ())),
                            preferred_element_type=jnp.float32) * scale   # (L, L)
    m = jnp.max(s, axis=-1, keepdims=True)
    p = jnp.exp(s - m)
    w = p * pl.reciprocal(jnp.sum(p, axis=-1, keepdims=True), approx=True)
    a = jnp.dot(w, v, preferred_element_type=jnp.float32)                 # (L, C)
    out = jnp.dot(a, wp_ref[...], preferred_element_type=jnp.float32) + bp_ref[...] + x
    o_ref[0] = out.astype(o_ref.dtype)


def _conv_in_kernel(x_ref, w_ref, b_ref, o_ref, pad_ref, *, H, W):
    masks = _edge_masks(H, W)
    h = x_ref[0].astype(jnp.float32)
    y = _conv3x3(h, w_ref, b_ref[...], pad_ref, masks, H, W)
    o_ref[0] = y.astype(o_ref.dtype)


def _head_kernel(x_ref, pool_ref, gn_ref, w_ref, b_ref, tinv_ref, o_ref, pad_ref,
                 *, H, W, eps):
    """GroupNorm -> SiLU -> 3x3 conv -> divide by sigma (fused output head)."""
    masks = _edge_masks(H, W)
    x = x_ref[0].astype(jnp.float32)
    h = _silu(_gn(x, pool_ref[...], gn_ref[0:1, :], gn_ref[1:2, :], eps))
    y = _conv3x3(h, w_ref, b_ref[...], pad_ref, masks, H, W)
    o_ref[0] = (y * tinv_ref[0]).astype(o_ref.dtype)


def _cond_kernel(t_ref, w1_ref, b1_ref, w2_ref, b2_ref, o_ref):
    """Fused cond MLP: Linear -> SiLU -> Linear for the whole batch."""
    t = t_ref[...].astype(jnp.float32)
    h = _silu(jnp.dot(t, w1_ref[...], preferred_element_type=jnp.float32) + b1_ref[...])
    o_ref[...] = (jnp.dot(h, w2_ref[...], preferred_element_type=jnp.float32)
                  + b2_ref[...]).astype(o_ref.dtype)


# ============================================================================
# pallas_call wrappers
# ============================================================================

def _full_spec(a):
    n = a.ndim
    return pl.BlockSpec(a.shape, lambda b, n=n: (0,) * n)


def resnet_block_pallas(x, x2, cond3, p, *, H, W):
    B, L, Ca = x.shape
    two_x = x2 is not None
    Cb = x2.shape[-1] if two_x else 0
    Cin = Ca + Cb
    Cout = p["w1"].shape[2]
    has_skip = "ws" in p
    pad = W + 8

    kern = functools.partial(_resnet_kernel, H=H, W=W, eps=_EPS,
                             two_x=two_x, has_skip=has_skip)

    ops = [x]
    in_specs = [pl.BlockSpec((1, L, Ca), lambda b: (b, 0, 0))]
    if two_x:
        ops.append(x2)
        in_specs.append(pl.BlockSpec((1, L, Cb), lambda b: (b, 0, 0)))
    ops.append(cond3)
    in_specs.append(pl.BlockSpec((1, 1, cond3.shape[-1]), lambda b: (b, 0, 0)))
    consts = [p["pool1"], p["gn1"], p["w1"], p["b1"], p["wc"],
              p["pool2"], p["gn2"], p["w2"], p["b2"]]
    if has_skip:
        consts += [p["ws"], p["bs"]]
    ops += consts
    in_specs += [_full_spec(a) for a in consts]

    return pl.pallas_call(
        kern,
        out_shape=jax.ShapeDtypeStruct((B, L, Cout), x.dtype),
        grid=(B,),
        in_specs=in_specs,
        out_specs=pl.BlockSpec((1, L, Cout), lambda b: (b, 0, 0)),
        scratch_shapes=[pltpu.VMEM((L + 2 * pad, Cin), jnp.float32),
                        pltpu.VMEM((L + 2 * pad, Cout), jnp.float32)],
        compiler_params=pltpu.CompilerParams(dimension_semantics=("parallel",)),
    )(*ops)


def attn_block_pallas(x, p, *, H, W):
    B, L, C = x.shape
    kern = functools.partial(_attn_kernel, eps=_EPS, scale=1.0 / math.sqrt(C))
    ops = [x, p["pool"], p["gn"], p["wqkv"], p["bqkv"], p["wproj"], p["bproj"]]
    in_specs = [pl.BlockSpec((1, L, C), lambda b: (b, 0, 0))] + \
               [_full_spec(a) for a in ops[1:]]
    return pl.pallas_call(
        kern,
        out_shape=jax.ShapeDtypeStruct((B, L, C), x.dtype),
        grid=(B,),
        in_specs=in_specs,
        out_specs=pl.BlockSpec((1, L, C), lambda b: (b, 0, 0)),
        compiler_params=pltpu.CompilerParams(dimension_semantics=("parallel",)),
    )(*ops)


def conv_in_pallas(x, p, *, H, W):
    B, L, Cin = x.shape
    Cout = p["w"].shape[2]
    pad = W + 8
    kern = functools.partial(_conv_in_kernel, H=H, W=W)
    in_specs = [pl.BlockSpec((1, L, Cin), lambda b: (b, 0, 0)),
                _full_spec(p["w"]), _full_spec(p["b"])]
    return pl.pallas_call(
        kern,
        out_shape=jax.ShapeDtypeStruct((B, L, Cout), x.dtype),
        grid=(B,),
        in_specs=in_specs,
        out_specs=pl.BlockSpec((1, L, Cout), lambda b: (b, 0, 0)),
        scratch_shapes=[pltpu.VMEM((L + 2 * pad, Cin), jnp.float32)],
        compiler_params=pltpu.CompilerParams(dimension_semantics=("parallel",)),
    )(x, p["w"], p["b"])


def head_pallas(x, tinv, p, *, H, W):
    B, L, C = x.shape
    Cout = p["w"].shape[2]
    pad = W + 8
    kern = functools.partial(_head_kernel, H=H, W=W, eps=_EPS)
    in_specs = [pl.BlockSpec((1, L, C), lambda b: (b, 0, 0)),
                _full_spec(p["pool"]), _full_spec(p["gn"]),
                _full_spec(p["w"]), _full_spec(p["b"]),
                pl.BlockSpec((1, 1, 1), lambda b: (b, 0, 0))]
    return pl.pallas_call(
        kern,
        out_shape=jax.ShapeDtypeStruct((B, L, Cout), x.dtype),
        grid=(B,),
        in_specs=in_specs,
        out_specs=pl.BlockSpec((1, L, Cout), lambda b: (b, 0, 0)),
        scratch_shapes=[pltpu.VMEM((L + 2 * pad, C), jnp.float32)],
        compiler_params=pltpu.CompilerParams(dimension_semantics=("parallel",)),
    )(x, p["pool"], p["gn"], p["w"], p["b"], tinv)


def cond_map_pallas(temb, p):
    B, _ = temb.shape
    D = p["w2"].shape[1]
    ops = [temb, p["w1"], p["b1"], p["w2"], p["b2"]]
    in_specs = [_full_spec(a) for a in ops]
    return pl.pallas_call(
        _cond_kernel,
        out_shape=jax.ShapeDtypeStruct((B, D), temb.dtype),
        grid=(1,),
        in_specs=in_specs,
        out_specs=pl.BlockSpec((B, D), lambda i: (0, 0)),
        compiler_params=pltpu.CompilerParams(dimension_semantics=("arbitrary",)),
    )(*ops)


# ============================================================================
# Pallas forward pass (channels-last, spatial flattened to L = H*W)
# ============================================================================

def _timestep_embedding(t, channels):
    half = channels // 2
    freqs = jnp.exp(jnp.arange(half, dtype=jnp.float32)
                    * (-math.log(10000.0) / (half - 1)))
    ang = t[:, None] * freqs[None, :]
    return jnp.concatenate([jnp.sin(ang), jnp.cos(ang)], axis=-1)


def model_forward_pallas(pp, x, cond, *, num_blocks, channels, attention,
                         sigma_min, sigma_max):
    B, X, Y = x.shape[0], x.shape[1], x.shape[2]
    L = X * Y
    xr = jnp.stack([jnp.real(x), jnp.imag(x)], axis=-1).reshape(B, L, 18)
    xr = xr.astype(jnp.float32)
    cin_pad = pp["conv_in"]["w"].shape[1]
    if cin_pad > 18:
        xr = jnp.concatenate(
            [xr, jnp.zeros((B, L, cin_pad - 18), jnp.float32)], axis=-1)

    sigma = sigma_min ** (1.0 - cond) * sigma_max ** cond
    # torch: `timesteps *= 1000` mutates cond in place, so the final divisor is
    # sigma * 1000 — replicated faithfully.
    t = sigma.astype(jnp.float32) * 1000.0
    temb = _timestep_embedding(t, channels)

    cvec = cond_map_pallas(temb, pp["cond"])                      # (B, 4C)
    cvec3 = cvec.reshape(B, 1, 4 * channels)

    h = conv_in_pallas(xr, pp["conv_in"], H=X, W=Y)               # (B, L, C)
    skips = [h]
    for i in range(num_blocks):
        h = resnet_block_pallas(h, None, cvec3, pp["enc"][i]["res"], H=X, W=Y)
        if attention:
            h = attn_block_pallas(h, pp["enc"][i]["attn"], H=X, W=Y)
        skips.append(h)

    h = resnet_block_pallas(h, None, cvec3, pp["mid1"], H=X, W=Y)
    h = attn_block_pallas(h, pp["midattn"], H=X, W=Y)
    h = resnet_block_pallas(h, None, cvec3, pp["mid2"], H=X, W=Y)

    for i in range(num_blocks + 1):
        h = resnet_block_pallas(h, skips.pop(), cvec3, pp["dec"][i]["res"], H=X, W=Y)
        if attention:
            h = attn_block_pallas(h, pp["dec"][i]["attn"], H=X, W=Y)

    tinv = (1.0 / t).reshape(B, 1, 1)
    out = head_pallas(h, tinv, pp["head"], H=X, W=Y)              # (B, L, 18)
    out = out.reshape(B, X, Y, 3, 3, 2)
    return out[..., 0] + 1j * out[..., 1]                         # view_as_complex


# ============================================================================
# Pure-XLA reference path (torch-layout params) for validation
# ============================================================================

def _ref_conv(x, w, b):
    pad = w.shape[-1] // 2
    y = jax.lax.conv_general_dilated(
        x, jnp.transpose(w, (2, 3, 1, 0)), (1, 1),
        [(pad, pad), (pad, pad)],
        dimension_numbers=("NHWC", "HWIO", "NHWC"), precision=_HI)
    return y + b if b is not None else y


def _ref_gn(x, gamma, beta, groups, act=None):
    B, H, W, C = x.shape
    cs = C // groups
    xg = x.reshape(B, H * W, groups, cs)
    mean = jnp.mean(xg, axis=(1, 3), keepdims=True)
    var = jnp.mean((xg - mean) ** 2, axis=(1, 3), keepdims=True)
    y = ((xg - mean) / jnp.sqrt(var + _EPS)).reshape(B, H, W, C) * gamma + beta
    return jax.nn.silu(y) if act == "silu" else y


def _ref_resnet(x, cond, p):
    in_ch = x.shape[-1]
    out_ch = p["conv1"]["w"].shape[0]
    h = _ref_gn(x, p["norm1"]["gamma"], p["norm1"]["beta"], min(in_ch // 4, 32), "silu")
    h = _ref_conv(h, p["conv1"]["w"], p["conv1"]["b"])
    h = h + jnp.dot(cond, p["cond"]["w"].T, precision=_HI)[:, None, None, :]
    h = _ref_gn(h, p["norm2"]["gamma"], p["norm2"]["beta"], min(out_ch // 4, 32), "silu")
    h = _ref_conv(h, p["conv2"]["w"], p["conv2"]["b"])
    if "skip" in p:
        x = _ref_conv(x, p["skip"]["w"], p["skip"]["b"])
    return h + x


def _ref_attn(x, p):
    B, H, W, C = x.shape
    h = _ref_gn(x, p["norm"]["gamma"], p["norm"]["beta"], min(C // 4, 32))
    qkv = _ref_conv(h, p["qkv"]["w"], p["qkv"]["b"])
    # torch: reshape(B, C, 3, H*W).unbind(2) -> interleaved channel triplets.
    q = qkv[..., 0::3].reshape(B, H * W, C)
    k = qkv[..., 1::3].reshape(B, H * W, C)
    v = qkv[..., 2::3].reshape(B, H * W, C)
    s = jnp.einsum("blc,bmc->blm", q, k, precision=_HI) / math.sqrt(C)
    w = jax.nn.softmax(s, axis=-1)
    a = jnp.einsum("blm,bmc->blc", w, v, precision=_HI).reshape(B, H, W, C)
    return _ref_conv(a, p["proj"]["w"], p["proj"]["b"]) + x


def model_forward_ref(params, x, cond, *, num_blocks, channels, attention,
                      sigma_min, sigma_max):
    B, X, Y = x.shape[0], x.shape[1], x.shape[2]
    xr = jnp.stack([jnp.real(x), jnp.imag(x)], axis=-1).reshape(B, X, Y, 18)
    xr = xr.astype(jnp.float32)
    sigma = sigma_min ** (1.0 - cond) * sigma_max ** cond
    t = sigma.astype(jnp.float32) * 1000.0
    temb = _timestep_embedding(t, channels)
    cvec = jax.nn.silu(jnp.dot(temb, params["cond1"]["w"].T, precision=_HI)
                       + params["cond1"]["b"])
    cvec = jnp.dot(cvec, params["cond2"]["w"].T, precision=_HI) + params["cond2"]["b"]
    h = _ref_conv(xr, params["conv_in"]["w"], params["conv_in"]["b"])
    skips = [h]
    for i in range(num_blocks):
        h = _ref_resnet(h, cvec, params["enc"][i]["res"])
        if attention:
            h = _ref_attn(h, params["enc"][i]["attn"])
        skips.append(h)
    h = _ref_resnet(h, cvec, params["mid1"])
    h = _ref_attn(h, params["midattn"])
    h = _ref_resnet(h, cvec, params["mid2"])
    for i in range(num_blocks + 1):
        h = jnp.concatenate([h, skips.pop()], axis=-1)
        h = _ref_resnet(h, cvec, params["dec"][i]["res"])
        if attention:
            h = _ref_attn(h, params["dec"][i]["attn"])
    h = _ref_gn(h, params["out_norm"]["gamma"], params["out_norm"]["beta"],
                min(channels // 4, 32), "silu")
    out = _ref_conv(h, params["out_conv"]["w"], params["out_conv"]["b"])
    out = out / t[:, None, None, None]
    out = out.reshape(B, X, Y, 3, 3, 2)
    return out[..., 0] + 1j * out[..., 1]


# ============================================================================
# Parameters: canonical (torch-layout) init + packing into Pallas layout
# ============================================================================

def _kaiming_normal(key, shape, fan_in):
    return (1.0 / math.sqrt(fan_in)) * jax.random.normal(key, shape, dtype=jnp.float32)


def _conv_params(key, cout, cin, k):
    kw, kb = jax.random.split(key)
    return {"w": _kaiming_normal(kw, (cout, cin, k, k), cin * k * k),
            "b": 0.05 * jax.random.normal(kb, (cout,), dtype=jnp.float32)}


def _linear_params(key, cout, cin, bias=True):
    kw, kb = jax.random.split(key)
    p = {"w": _kaiming_normal(kw, (cout, cin), cin)}
    p["b"] = 0.05 * jax.random.normal(kb, (cout,), dtype=jnp.float32) if bias else None
    return p


def _gn_params(c):
    return {"gamma": jnp.ones((c,), jnp.float32), "beta": jnp.zeros((c,), jnp.float32)}


def _resnet_params(key, in_ch, out_ch, cond_dim):
    k1, k2, k3, k4 = jax.random.split(key, 4)
    p = {"norm1": _gn_params(in_ch),
         "conv1": _conv_params(k1, out_ch, in_ch, 3),
         "cond": _linear_params(k2, out_ch, cond_dim, bias=False),
         "norm2": _gn_params(out_ch),
         "conv2": _conv_params(k3, out_ch, out_ch, 3)}
    if in_ch != out_ch:
        p["skip"] = _conv_params(k4, out_ch, in_ch, 1)
    return p


def _attn_params(key, c):
    k1, k2 = jax.random.split(key)
    return {"norm": _gn_params(c),
            "qkv": _conv_params(k1, 3 * c, c, 1),
            "proj": _conv_params(k2, c, c, 1)}


def init_params(key, num_blocks, channels, attention):
    input_ch = 18
    keys = iter(jax.random.split(key, 16 + 4 * (2 * num_blocks + 2)))
    p = {
        "cond1": _linear_params(next(keys), 4 * channels, channels),
        "cond2": _linear_params(next(keys), 4 * channels, 4 * channels),
        "conv_in": _conv_params(next(keys), channels, input_ch, 3),
        "mid1": _resnet_params(next(keys), channels, channels, 4 * channels),
        "midattn": _attn_params(next(keys), channels),
        "mid2": _resnet_params(next(keys), channels, channels, 4 * channels),
        "out_norm": _gn_params(channels),
        "out_conv": _conv_params(next(keys), input_ch, channels, 3),
        "enc": [],
        "dec": [],
    }
    for _ in range(num_blocks):
        p["enc"].append({
            "res": _resnet_params(next(keys), channels, channels, 4 * channels),
            "attn": _attn_params(next(keys), channels) if attention else None})
    for _ in range(num_blocks + 1):
        p["dec"].append({
            "res": _resnet_params(next(keys), 2 * channels, channels, 4 * channels),
            "attn": _attn_params(next(keys), channels) if attention else None})
    return p


# ---- packing (torch layout -> fused-kernel layout); done once outside jit ----

def _pool_matrix(C, num_groups, L):
    cs = C // num_groups
    g = np.arange(C) // cs
    return jnp.asarray((g[:, None] == g[None, :]).astype(np.float32) / (L * cs))


def _pack_gn(p):
    return jnp.stack([p["gamma"], p["beta"]], axis=0)             # (2, C)


def _pack_conv3x3(p, cin_pad=None):
    w = p["w"]                                                    # (Cout, Cin, 3, 3)
    Cout, Cin = w.shape[0], w.shape[1]
    w9 = jnp.transpose(w, (2, 3, 1, 0)).reshape(9, Cin, Cout)
    if cin_pad is not None and cin_pad > Cin:
        w9 = jnp.concatenate(
            [w9, jnp.zeros((9, cin_pad - Cin, Cout), w9.dtype)], axis=1)
    return {"w": w9, "b": p["b"].reshape(1, Cout)}


def _pack_1x1(p):
    w = p["w"]
    Cout, Cin = w.shape[0], w.shape[1]
    return {"w": jnp.transpose(w.reshape(Cout, Cin)),             # (Cin, Cout)
            "b": p["b"].reshape(1, Cout)}


def _pack_resnet(p, L):
    in_ch, out_ch = p["conv1"]["w"].shape[1], p["conv1"]["w"].shape[0]
    g1, g2 = min(in_ch // 4, 32), min(out_ch // 4, 32)
    c1, c2 = _pack_conv3x3(p["conv1"]), _pack_conv3x3(p["conv2"])
    q = {"pool1": _pool_matrix(in_ch, g1, L), "gn1": _pack_gn(p["norm1"]),
         "w1": c1["w"], "b1": c1["b"],
         "wc": jnp.transpose(p["cond"]["w"]),                     # (cond_dim, out_ch)
         "pool2": _pool_matrix(out_ch, g2, L), "gn2": _pack_gn(p["norm2"]),
         "w2": c2["w"], "b2": c2["b"]}
    if "skip" in p:
        s = _pack_1x1(p["skip"])
        q["ws"], q["bs"] = s["w"], s["b"]
    return q


def _pack_attn(p, L):
    C = p["proj"]["w"].shape[0]
    g = min(C // 4, 32)
    qkv = _pack_1x1(p["qkv"])
    # torch output channel 3*c + t (interleaved) -> contiguous [q | k | v] blocks.
    perm = np.array([3 * c + t for t in range(3) for c in range(C)])
    pr = _pack_1x1(p["proj"])
    return {"pool": _pool_matrix(C, g, L), "gn": _pack_gn(p["norm"]),
            "wqkv": qkv["w"][:, perm], "bqkv": qkv["b"][:, perm],
            "wproj": pr["w"], "bproj": pr["b"]}


def pack_params(params, L):
    channels = params["conv_in"]["w"].shape[0]
    pp = {
        "cond": {"w1": jnp.transpose(params["cond1"]["w"]),
                 "b1": params["cond1"]["b"].reshape(1, -1),
                 "w2": jnp.transpose(params["cond2"]["w"]),
                 "b2": params["cond2"]["b"].reshape(1, -1)},
        "conv_in": _pack_conv3x3(params["conv_in"], cin_pad=32),
        "mid1": _pack_resnet(params["mid1"], L),
        "midattn": _pack_attn(params["midattn"], L),
        "mid2": _pack_resnet(params["mid2"], L),
        "head": {"pool": _pool_matrix(channels, min(channels // 4, 32), L),
                 "gn": _pack_gn(params["out_norm"]),
                 **_pack_conv3x3(params["out_conv"])},
        "enc": [], "dec": [],
    }
    for blk in params["enc"]:
        pp["enc"].append({"res": _pack_resnet(blk["res"], L),
                          "attn": _pack_attn(blk["attn"], L) if blk["attn"] else None})
    for blk in params["dec"]:
        pp["dec"].append({"res": _pack_resnet(blk["res"], L),
                          "attn": _pack_attn(blk["attn"], L) if blk["attn"] else None})
    return pp


# ============================================================================
# Main
# ============================================================================

if __name__ == "__main__":
    num_blocks = 1
    channels = 32
    attention = True
    sigma_min = 0.1
    sigma_max = 10.0

    key = jax.random.PRNGKey(0)
    kp, kx1, kx2, kc = jax.random.split(key, 4)

    B, X, Y = 2, 8, 8
    x = jax.lax.complex(jax.random.normal(kx1, (B, X, Y, 3, 3), dtype=jnp.float32),
                        jax.random.normal(kx2, (B, X, Y, 3, 3), dtype=jnp.float32))
    cond = jax.random.uniform(kc, (B,), dtype=jnp.float32)

    params = init_params(kp, num_blocks, channels, attention)
    packed = pack_params(params, L=X * Y)

    fwd_pallas = jax.jit(functools.partial(
        model_forward_pallas, num_blocks=num_blocks, channels=channels,
        attention=attention, sigma_min=sigma_min, sigma_max=sigma_max))
    fwd_ref = jax.jit(functools.partial(
        model_forward_ref, num_blocks=num_blocks, channels=channels,
        attention=attention, sigma_min=sigma_min, sigma_max=sigma_max))

    out = jax.block_until_ready(fwd_pallas(packed, x, cond))
    ref = jax.block_until_ready(fwd_ref(params, x, cond))

    assert out.shape == (B, X, Y, 3, 3)
    assert out.dtype == jnp.complex64
    assert bool(jnp.all(jnp.isfinite(jnp.real(out))) and
                jnp.all(jnp.isfinite(jnp.imag(out))))
    np.testing.assert_allclose(np.asarray(out), np.asarray(ref), rtol=1e-2, atol=1e-4)

    print("KERNEL_OK")
</pallas_src>

<mosaic_0001>
module attributes {stable_mosaic.version = 11 : i64} {
  func.func @_cond_kernel(%arg0: i32, %arg1: memref<2x32xf32, #tpu.memory_space<vmem>>, %arg2: memref<32x128xf32, #tpu.memory_space<vmem>>, %arg3: memref<1x128xf32, #tpu.memory_space<vmem>>, %arg4: memref<128x128xf32, #tpu.memory_space<vmem>>, %arg5: memref<1x128xf32, #tpu.memory_space<vmem>>, %arg6: memref<2x128xf32, #tpu.memory_space<vmem>>) attributes {dimension_semantics = [#tpu.dimension_semantics<arbitrary>], iteration_bounds = array<i64: 1>, scalar_prefetch = 0 : i64, scratch_operands = 0 : i64, tpu.core_type = #tpu.core_type<tc>, window_params = [{pipeline_mode = #tpu.pipeline_mode<synchronous>, transform_indices = @transform_0, window_bounds = array<i64: 2, 32>}, {pipeline_mode = #tpu.pipeline_mode<synchronous>, transform_indices = @transform_1, window_bounds = array<i64: 32, 128>}, {pipeline_mode = #tpu.pipeline_mode<synchronous>, transform_indices = @transform_2, window_bounds = array<i64: 1, 128>}, {pipeline_mode = #tpu.pipeline_mode<synchronous>, transform_indices = @transform_3, window_bounds = array<i64: 128, 128>}, {pipeline_mode = #tpu.pipeline_mode<synchronous>, transform_indices = @transform_4, window_bounds = array<i64: 1, 128>}, {pipeline_mode = #tpu.pipeline_mode<synchronous>, transform_indices = @transform_5, window_bounds = array<i64: 2, 128>}]} {
    %c0 = arith.constant 0 : index
    %c0_0 = arith.constant 0 : index
    %0 = vector.load %arg1[%c0, %c0_0] : memref<2x32xf32, #tpu.memory_space<vmem>>, vector<2x32xf32>
    %c0_1 = arith.constant 0 : index
    %c0_2 = arith.constant 0 : index
    %1 = vector.load %arg2[%c0_1, %c0_2] : memref<32x128xf32, #tpu.memory_space<vmem>>, vector<32x128xf32>
    %cst = arith.constant dense<0.000000e+00> : vector<2x128xf32>
    %2 = tpu.matmul %0, %1, %cst {dimension_numbers = #tpu.dot_dimension_numbers<[1], [0], [0], [1], [0, 0, 1, 1], [], []>} : vector<2x32xf32>, vector<32x128xf32>, vector<2x128xf32> -> vector<2x128xf32>
    %c0_3 = arith.constant 0 : index
    %c0_4 = arith.constant 0 : index
    %3 = vector.load %arg3[%c0_3, %c0_4] : memref<1x128xf32, #tpu.memory_space<vmem>>, vector<1x128xf32>
    %4 = vector.broadcast %3 : vector<1x128xf32> to vector<2x128xf32>
    %5 = arith.addf %2, %4 : vector<2x128xf32>
    %cst_5 = arith.constant 0.000000e+00 : f32
    %6 = vector.broadcast %cst_5 : f32 to vector<2x128xf32>
    %7 = arith.subf %6, %5 : vector<2x128xf32>
    %8 = math.exp %7 : vector<2x128xf32>
    %cst_6 = arith.constant 1.000000e+00 : f32
    %9 = vector.broadcast %cst_6 : f32 to vector<2x128xf32>
    %10 = arith.addf %9, %8 : vector<2x128xf32>
    %cst_7 = arith.constant 1.000000e+00 : f32
    %11 = vector.broadcast %cst_7 : f32 to vector<2x128xf32>
    %12 = arith.divf %11, %10 : vector<2x128xf32>
    %13 = arith.mulf %5, %12 : vector<2x128xf32>
    %c0_8 = arith.constant 0 : index
    %c0_9 = arith.constant 0 : index
    %14 = vector.load %arg4[%c0_8, %c0_9] : memref<128x128xf32, #tpu.memory_space<vmem>>, vector<128x128xf32>
    %cst_10 = arith.constant dense<0.000000e+00> : vector<2x128xf32>
    %15 = tpu.matmul %13, %14, %cst_10 {dimension_numbers = #tpu.dot_dimension_numbers<[1], [0], [0], [1], [0, 0, 1, 1], [], []>} : vector<2x128xf32>, vector<128x128xf32>, vector<2x128xf32> -> vector<2x128xf32>
    %c0_11 = arith.constant 0 : index
    %c0_12 = arith.constant 0 : index
    %16 = vector.load %arg5[%c0_11, %c0_12] : memref<1x128xf32, #tpu.memory_space<vmem>>, vector<1x128xf32>
    %17 = vector.broadcast %16 : vector<1x128xf32> to vector<2x128xf32>
    %18 = arith.addf %15, %17 : vector<2x128xf32>
    %c0_13 = arith.constant 0 : index
    %c0_14 = arith.constant 0 : index
    %19 = vector.load %arg6[%c0_13, %c0_14] : memref<2x128xf32, #tpu.memory_space<vmem>>, vector<2x128xf32>
    tpu.vector_store %arg6[%c0_13, %c0_14], %18 {strides = array<i32>} : memref<2x128xf32, #tpu.memory_space<vmem>>, vector<2x128xf32>,
    return
  }
  func.func @transform_0(%arg0: i32) -> (i32, i32) {
    %c0_i32 = arith.constant 0 : i32
    %c0_i32_0 = arith.constant 0 : i32
    %c0_i32_1 = arith.constant 0 : i32
    return %c0_i32, %c0_i32_0 : i32, i32
  }
  func.func @transform_1(%arg0: i32) -> (i32, i32) {
    %c0_i32 = arith.constant 0 : i32
    %c0_i32_0 = arith.constant 0 : i32
    %c0_i32_1 = arith.constant 0 : i32
    return %c0_i32, %c0_i32_0 : i32, i32
  }
  func.func @transform_2(%arg0: i32) -> (i32, i32) {
    %c0_i32 = arith.constant 0 : i32
    %c0_i32_0 = arith.constant 0 : i32
    %c0_i32_1 = arith.constant 0 : i32
    return %c0_i32, %c0_i32_0 : i32, i32
  }
  func.func @transform_3(%arg0: i32) -> (i32, i32) {
    %c0_i32 = arith.constant 0 : i32
    %c0_i32_0 = arith.constant 0 : i32
    %c0_i32_1 = arith.constant 0 : i32
    return %c0_i32, %c0_i32_0 : i32, i32
  }
  func.func @transform_4(%arg0: i32) -> (i32, i32) {
    %c0_i32 = arith.constant 0 : i32
    %c0_i32_0 = arith.constant 0 : i32
    %c0_i32_1 = arith.constant 0 : i32
    return %c0_i32, %c0_i32_0 : i32, i32
  }
  func.func @transform_5(%arg0: i32) -> (i32, i32) {
    %c0_i32 = arith.constant 0 : i32
    %c0_i32_0 = arith.constant 0 : i32
    %c0_i32_1 = arith.constant 0 : i32
    return %c0_i32, %c0_i32_0 : i32, i32
  }
}

module attributes {stable_mosaic.version = 11 : i64} {
  func.func @_conv_in_kernel(%arg0: i32, %arg1: memref<1x64x32xf32, #tpu.memory_space<vmem>>, %arg2: memref<9x32x32xf32, #tpu.memory_space<vmem>>, %arg3: memref<1x32xf32, #tpu.memory_space<vmem>>, %arg4: memref<1x64x32xf32, #tpu.memory_space<vmem>>, %arg5: memref<96x32xf32, #tpu.memory_space<vmem>>) attributes {dimension_semantics = [#tpu.dimension_semantics<parallel>], iteration_bounds = array<i64: 2>, scalar_prefetch = 0 : i64, scratch_operands = 1 : i64, tpu.core_type = #tpu.core_type<tc>, window_params = [{transform_indices = @transform_0, window_bounds = array<i64: 1, 64, 32>}, {pipeline_mode = #tpu.pipeline_mode<synchronous>, transform_indices = @transform_1, window_bounds = array<i64: 9, 32, 32>}, {pipeline_mode = #tpu.pipeline_mode<synchronous>, transform_indices = @transform_2, window_bounds = array<i64: 1, 32>}, {transform_indices = @transform_3, window_bounds = array<i64: 1, 64, 32>}]} {
    %0 = tpu.iota {dimensions = array<i32: 0>} : vector<64x1xi32>
    %c8_i32 = arith.constant 8 : i32
    %c0_i32 = arith.constant 0 : i32
    %1 = arith.cmpi eq, %c8_i32, %c0_i32 : i32
    %c1_i32 = arith.constant 1 : i32
    %2 = arith.select %1, %c1_i32, %c8_i32 : i32
    %3 = vector.broadcast %2 : i32 to vector<64x1xi32>
    %4 = arith.remsi %0, %3 : vector<64x1xi32>
    %c0_i32_0 = arith.constant 0 : i32
    %5 = vector.broadcast %c0_i32_0 : i32 to vector<64x1xi32>
    %6 = arith.cmpi ne, %4, %5 : vector<64x1xi32>
    %c0_i32_1 = arith.constant 0 : i32
    %7 = vector.broadcast %c0_i32_1 : i32 to vector<64x1xi32>
    %8 = arith.cmpi slt, %4, %7 : vector<64x1xi32>
    %c0_i32_2 = arith.constant 0 : i32
    %9 = arith.cmpi slt, %2, %c0_i32_2 : i32
    %10 = vector.broadcast %9 : i1 to vector<64x1xi1>
    %11 = vector.broadcast %10 : vector<64x1xi1> to vector<64x1xi1>
    %12 = arith.xori %8, %11 : vector<64x1xi1>
    %13 = arith.andi %12, %6 : vector<64x1xi1>
    %14 = vector.broadcast %2 : i32 to vector<64x1xi32>
    %15 = arith.addi %4, %14 : vector<64x1xi32>
    %16 = arith.select %13, %15, %4 : vector<64x1xi1>, vector<64x1xi32>
    %c1_i32_3 = arith.constant 1 : i32
    %17 = vector.broadcast %c1_i32_3 : i32 to vector<64x1xi32>
    %18 = arith.cmpi sge, %16, %17 : vector<64x1xi32>
    %19 = arith.extui %18 : vector<64x1xi1> to vector<64x1xi32>
    %20 = arith.sitofp %19 : vector<64x1xi32> to vector<64x1xf32>
    %c6_i32 = arith.constant 6 : i32
    %21 = vector.broadcast %c6_i32 : i32 to vector<64x1xi32>
    %22 = arith.cmpi sle, %16, %21 : vector<64x1xi32>
    %23 = arith.extui %22 : vector<64x1xi1> to vector<64x1xi32>
    %24 = arith.sitofp %23 : vector<64x1xi32> to vector<64x1xf32>
    %c0 = arith.constant 0 : index
    %c0_4 = arith.constant 0 : index
    %c0_5 = arith.constant 0 : index
    %25 = vector.load %arg1[%c0, %c0_4, %c0_5] : memref<1x64x32xf32, #tpu.memory_space<vmem>>, vector<1x64x32xf32>
    %26 = vector.shape_cast %25 : vector<1x64x32xf32> to vector<64x32xf32>
    %c0_6 = arith.constant 0 : index
    %c0_7 = arith.constant 0 : index
    %27 = vector.load %arg3[%c0_6, %c0_7] : memref<1x32xf32, #tpu.memory_space<vmem>>, vector<1x32xf32>
    %cst = arith.constant 0.000000e+00 : f32
    %28 = vector.broadcast %cst : f32 to vector<96x32xf32>
    %c0_8 = arith.constant 0 : index
    %c0_9 = arith.constant 0 : index
    %29 = vector.load %arg5[%c0_8, %c0_9] : memref<96x32xf32, #tpu.memory_space<vmem>>, vector<96x32xf32>
    tpu.vector_store %arg5[%c0_8, %c0_9], %28 {strides = array<i32>} : memref<96x32xf32, #tpu.memory_space<vmem>>, vector<96x32xf32>,
    %c16 = arith.constant 16 : index
    %c0_10 = arith.constant 0 : index
    %30 = vector.load %arg5[%c16, %c0_10] : memref<96x32xf32, #tpu.memory_space<vmem>>, vector<64x32xf32>
    tpu.vector_store %arg5[%c16, %c0_10], %26 {strides = array<i32>} : memref<96x32xf32, #tpu.memory_space<vmem>>, vector<64x32xf32>,
    %31 = vector.shape_cast %27 : vector<1x32xf32> to vector<1x32xf32>
    %32 = vector.broadcast %31 : vector<1x32xf32> to vector<64x32xf32>
    %c7 = arith.constant 7 : index
    %c0_11 = arith.constant 0 : index
    %33 = vector.load %arg5[%c7, %c0_11] : memref<96x32xf32, #tpu.memory_space<vmem>>, vector<64x32xf32>
    %34 = vector.broadcast %20 : vector<64x1xf32> to vector<64x32xf32>
    %35 = arith.mulf %33, %34 : vector<64x32xf32>
    %c0_12 = arith.constant 0 : index
    %c0_13 = arith.constant 0 : index
    %c0_14 = arith.constant 0 : index
    %36 = vector.load %arg2[%c0_12, %c0_13, %c0_14] : memref<9x32x32xf32, #tpu.memory_space<vmem>>, vector<1x32x32xf32>
    %37 = vector.shape_cast %36 : vector<1x32x32xf32> to vector<32x32xf32>
    %cst_15 = arith.constant dense<0.000000e+00> : vector<64x32xf32>
    %38 = tpu.matmul %35, %37, %cst_15 {dimension_numbers = #tpu.dot_dimension_numbers<[1], [0], [0], [1], [0, 0, 1, 1], [], []>} : vector<64x32xf32>, vector<32x32xf32>, vector<64x32xf32> -> vector<64x32xf32>
    %39 = arith.addf %32, %38 : vector<64x32xf32>
    %c8 = arith.constant 8 : index
    %c0_16 = arith.constant 0 : index
    %40 = vector.load %arg5[%c8, %c0_16] : memref<96x32xf32, #tpu.memory_space<vmem>>, vector<64x32xf32>
    %c1 = arith.constant 1 : index
    %c0_17 = arith.constant 0 : index
    %c0_18 = arith.constant 0 : index
    %41 = vector.load %arg2[%c1, %c0_17, %c0_18] : memref<9x32x32xf32, #tpu.memory_space<vmem>>, vector<1x32x32xf32>
    %42 = vector.shape_cast %41 : vector<1x32x32xf32> to vector<32x32xf32>
    %cst_19 = arith.constant dense<0.000000e+00> : vector<64x32xf32>
    %43 = tpu.matmul %40, %42, %cst_19 {dimension_numbers = #tpu.dot_dimension_numbers<[1], [0], [0], [1], [0, 0, 1, 1], [], []>} : vector<64x32xf32>, vector<32x32xf32>, vector<64x32xf32> -> vector<64x32xf32>
    %44 = arith.addf %39, %43 : vector<64x32xf32>
    %c9 = arith.constant 9 : index
    %c0_20 = arith.constant 0 : index
    %45 = vector.load %arg5[%c9, %c0_20] : memref<96x32xf32, #tpu.memory_space<vmem>>, vector<64x32xf32>
    %46 = vector.broadcast %24 : vector<64x1xf32> to vector<64x32xf32>
    %47 = arith.mulf %45, %46 : vector<64x32xf32>
    %c2 = arith.constant 2 : index
    %c0_21 = arith.constant 0 : index
    %c0_22 = arith.constant 0 : index
    %48 = vector.load %arg2[%c2, %c0_21, %c0_22] : memref<9x32x32xf32, #tpu.memory_space<vmem>>, vector<1x32x32xf32>
    %49 = vector.shape_cast %48 : vector<1x32x32xf32> to vector<32x32xf32>
    %cst_23 = arith.constant dense<0.000000e+00> : vector<64x32xf32>
    %50 = tpu.matmul %47, %49, %cst_23 {dimension_numbers = #tpu.dot_dimension_numbers<[1], [0], [0], [1], [0, 0, 1, 1], [], []>} : vector<64x32xf32>, vector<32x32xf32>, vector<64x32xf32> -> vector<64x32xf32>
    %51 = arith.addf %44, %50 : vector<64x32xf32>
    %c15 = arith.constant 15 : index
    %c0_24 = arith.constant 0 : index
    %52 = vector.load %arg5[%c15, %c0_24] : memref<96x32xf32, #tpu.memory_space<vmem>>, vector<64x32xf32>
    %53 = vector.broadcast %20 : vector<64x1xf32> to vector<64x32xf32>
    %54 = arith.mulf %52, %53 : vector<64x32xf32>
    %c3 = arith.constant 3 : index
    %c0_25 = arith.constant 0 : index
    %c0_26 = arith.constant 0 : index
    %55 = vector.load %arg2[%c3, %c0_25, %c0_26] : memref<9x32x32xf32, #tpu.memory_space<vmem>>, vector<1x32x32xf32>
    %56 = vector.shape_cast %55 : vector<1x32x32xf32> to vector<32x32xf32>
    %cst_27 = arith.constant dense<0.000000e+00> : vector<64x32xf32>
    %57 = tpu.matmul %54, %56, %cst_27 {dimension_numbers = #tpu.dot_dimension_numbers<[1], [0], [0], [1], [0, 0, 1, 1], [], []>} : vector<64x32xf32>, vector<32x32xf32>, vector<64x32xf32> -> vector<64x32xf32>
    %58 = arith.addf %51, %57 : vector<64x32xf32>
    %c16_28 = arith.constant 16 : index
    %c0_29 = arith.constant 0 : index
    %59 = vector.load %arg5[%c16_28, %c0_29] : memref<96x32xf32, #tpu.memory_space<vmem>>, vector<64x32xf32>
    %c4 = arith.constant 4 : index
    %c0_30 = arith.constant 0 : index
    %c0_31 = arith.constant 0 : index
    %60 = vector.load %arg2[%c4, %c0_30, %c0_31] : memref<9x32x32xf32, #tpu.memory_space<vmem>>, vector<1x32x32xf32>
    %61 = vector.shape_cast %60 : vector<1x32x32xf32> to vector<32x32xf32>
    %cst_32 = arith.constant dense<0.000000e+00> : vector<64x32xf32>
    %62 = tpu.matmul %59, %61, %cst_32 {dimension_numbers = #tpu.dot_dimension_numbers<[1], [0], [0], [1], [0, 0, 1, 1], [], []>} : vector<64x32xf32>, vector<32x32xf32>, vector<64x32xf32> -> vector<64x32xf32>
    %63 = arith.addf %58, %62 : vector<64x32xf32>
    %c17 = arith.constant 17 : index
    %c0_33 = arith.constant 0 : index
    %64 = vector.load %arg5[%c17, %c0_33] : memref<96x32xf32, #tpu.memory_space<vmem>>, vector<64x32xf32>
    %65 = vector.broadcast %24 : vector<64x1xf32> to vector<64x32xf32>
    %66 = arith.mulf %64, %65 : vector<64x32xf32>
    %c5 = arith.constant 5 : index
    %c0_34 = arith.constant 0 : index
    %c0_35 = arith.constant 0 : index
    %67 = vector.load %arg2[%c5, %c0_34, %c0_35] : memref<9x32x32xf32, #tpu.memory_space<vmem>>, vector<1x32x32xf32>
    %68 = vector.shape_cast %67 : vector<1x32x32xf32> to vector<32x32xf32>
    %cst_36 = arith.constant dense<0.000000e+00> : vector<64x32xf32>
    %69 = tpu.matmul %66, %68, %cst_36 {dimension_numbers = #tpu.dot_dimension_numbers<[1], [0], [0], [1], [0, 0, 1, 1], [], []>} : vector<64x32xf32>, vector<32x32xf32>, vector<64x32xf32> -> vector<64x32xf32>
    %70 = arith.addf %63, %69 : vector<64x32xf32>
    %c23 = arith.constant 23 : index
    %c0_37 = arith.constant 0 : index
    %71 = vector.load %arg5[%c23, %c0_37] : memref<96x32xf32, #tpu.memory_space<vmem>>, vector<64x32xf32>
    %72 = vector.broadcast %20 : vector<64x1xf32> to vector<64x32xf32>
    %73 = arith.mulf %71, %72 : vector<64x32xf32>
    %c6 = arith.constant 6 : index
    %c0_38 = arith.constant 0 : index
    %c0_39 = arith.constant 0 : index
    %74 = vector.load %arg2[%c6, %c0_38, %c0_39] : memref<9x32x32xf32, #tpu.memory_space<vmem>>, vector<1x32x32xf32>
    %75 = vector.shape_cast %74 : vector<1x32x32xf32> to vector<32x32xf32>
    %cst_40 = arith.constant dense<0.000000e+00> : vector<64x32xf32>
    %76 = tpu.matmul %73, %75, %cst_40 {dimension_numbers = #tpu.dot_dimension_numbers<[1], [0], [0], [1], [0, 0, 1, 1], [], []>} : vector<64x32xf32>, vector<32x32xf32>, vector<64x32xf32> -> vector<64x32xf32>
    %77 = arith.addf %70, %76 : vector<64x32xf32>
    %c24 = arith.constant 24 : index
    %c0_41 = arith.constant 0 : index
    %78 = vector.load %arg5[%c24, %c0_41] : memref<96x32xf32, #tpu.memory_space<vmem>>, vector<64x32xf32>
    %c7_42 = arith.constant 7 : index
    %c0_43 = arith.constant 0 : index
    %c0_44 = arith.constant 0 : index
    %79 = vector.load %arg2[%c7_42, %c0_43, %c0_44] : memref<9x32x32xf32, #tpu.memory_space<vmem>>, vector<1x32x32xf32>
    %80 = vector.shape_cast %79 : vector<1x32x32xf32> to vector<32x32xf32>
    %cst_45 = arith.constant dense<0.000000e+00> : vector<64x32xf32>
    %81 = tpu.matmul %78, %80, %cst_45 {dimension_numbers = #tpu.dot_dimension_numbers<[1], [0], [0], [1], [0, 0, 1, 1], [], []>} : vector<64x32xf32>, vector<32x32xf32>, vector<64x32xf32> -> vector<64x32xf32>
    %82 = arith.addf %77, %81 : vector<64x32xf32>
    %c25 = arith.constant 25 : index
    %c0_46 = arith.constant 0 : index
    %83 = vector.load %arg5[%c25, %c0_46] : memref<96x32xf32, #tpu.memory_space<vmem>>, vector<64x32xf32>
    %84 = vector.broadcast %24 : vector<64x1xf32> to vector<64x32xf32>
    %85 = arith.mulf %83, %84 : vector<64x32xf32>
    %c8_47 = arith.constant 8 : index
    %c0_48 = arith.constant 0 : index
    %c0_49 = arith.constant 0 : index
    %86 = vector.load %arg2[%c8_47, %c0_48, %c0_49] : memref<9x32x32xf32, #tpu.memory_space<vmem>>, vector<1x32x32xf32>
    %87 = vector.shape_cast %86 : vector<1x32x32xf32> to vector<32x32xf32>
    %cst_50 = arith.constant dense<0.000000e+00> : vector<64x32xf32>
    %88 = tpu.matmul %85, %87, %cst_50 {dimension_numbers = #tpu.dot_dimension_numbers<[1], [0], [0], [1], [0, 0, 1, 1], [], []>} : vector<64x32xf32>, vector<32x32xf32>, vector<64x32xf32> -> vector<64x32xf32>
    %89 = arith.addf %82, %88 : vector<64x32xf32>
    %c0_51 = arith.constant 0 : index
    %c0_52 = arith.constant 0 : index
    %c0_53 = arith.constant 0 : index
    %90 = vector.load %arg4[%c0_51, %c0_52, %c0_53] : memref<1x64x32xf32, #tpu.memory_space<vmem>>, vector<1x64x32xf32>
    %91 = vector.shape_cast %90 : vector<1x64x32xf32> to vector<64x32xf32>
    %92 = vector.shape_cast %89 : vector<64x32xf32> to vector<1x64x32xf32>
    tpu.vector_store %arg4[%c0_51, %c0_52, %c0_53], %92 {strides = array<i32>} : memref<1x64x32xf32, #tpu.memory_space<vmem>>, vector<1x64x32xf32>,
    return
  }
  func.func @transform_0(%arg0: i32) -> (i32, i32, i32) {
    %c0_i32 = arith.constant 0 : i32
    %c0_i32_0 = arith.constant 0 : i32
    %c0_i32_1 = arith.constant 0 : i32
    return %arg0, %c0_i32, %c0_i32_0 : i32, i32, i32
  }
  func.func @transform_1(%arg0: i32) -> (i32, i32, i32) {
    %c0_i32 = arith.constant 0 : i32
    %c0_i32_0 = arith.constant 0 : i32
    %c0_i32_1 = arith.constant 0 : i32
    %c0_i32_2 = arith.constant 0 : i32
    return %c0_i32, %c0_i32_0, %c0_i32_1 : i32, i32, i32
  }
  func.func @transform_2(%arg0: i32) -> (i32, i32) {
    %c0_i32 = arith.constant 0 : i32
    %c0_i32_0 = arith.constant 0 : i32
    %c0_i32_1 = arith.constant 0 : i32
    return %c0_i32, %c0_i32_0 : i32, i32
  }
  func.func @transform_3(%arg0: i32) -> (i32, i32, i32) {
    %c0_i32 = arith.constant 0 : i32
    %c0_i32_0 = arith.constant 0 : i32
    %c0_i32_1 = arith.constant 0 : i32
    return %arg0, %c0_i32, %c0_i32_0 : i32, i32, i32
  }
}

module attributes {stable_mosaic.version = 11 : i64} {
  func.func @_resnet_kernel(%arg0: i32, %arg1: memref<1x64x32xf32, #tpu.memory_space<vmem>>, %arg2: memref<1x1x128xf32, #tpu.memory_space<vmem>>, %arg3: memref<32x32xf32, #tpu.memory_space<vmem>>, %arg4: memref<2x32xf32, #tpu.memory_space<vmem>>, %arg5: memref<9x32x32xf32, #tpu.memory_space<vmem>>, %arg6: memref<1x32xf32, #tpu.memory_space<vmem>>, %arg7: memref<128x32xf32, #tpu.memory_space<vmem>>, %arg8: memref<32x32xf32, #tpu.memory_space<vmem>>, %arg9: memref<2x32xf32, #tpu.memory_space<vmem>>, %arg10: memref<9x32x32xf32, #tpu.memory_space<vmem>>, %arg11: memref<1x32xf32, #tpu.memory_space<vmem>>, %arg12: memref<1x64x32xf32, #tpu.memory_space<vmem>>, %arg13: memref<96x32xf32, #tpu.memory_space<vmem>>, %arg14: memref<96x32xf32, #tpu.memory_space<vmem>>) attributes {dimension_semantics = [#tpu.dimension_semantics<parallel>], iteration_bounds = array<i64: 2>, scalar_prefetch = 0 : i64, scratch_operands = 2 : i64, tpu.core_type = #tpu.core_type<tc>, window_params = [{transform_indices = @transform_0, window_bounds = array<i64: 1, 64, 32>}, {transform_indices = @transform_1, window_bounds = array<i64: 1, 1, 128>}, {pipeline_mode = #tpu.pipeline_mode<synchronous>, transform_indices = @transform_2, window_bounds = array<i64: 32, 32>}, {pipeline_mode = #tpu.pipeline_mode<synchronous>, transform_indices = @transform_3, window_bounds = array<i64: 2, 32>}, {pipeline_mode = #tpu.pipeline_mode<synchronous>, transform_indices = @transform_4, window_bounds = array<i64: 9, 32, 32>}, {pipeline_mode = #tpu.pipeline_mode<synchronous>, transform_indices = @transform_5, window_bounds = array<i64: 1, 32>}, {pipeline_mode = #tpu.pipeline_mode<synchronous>, transform_indices = @transform_6, window_bounds = array<i64: 128, 32>}, {pipeline_mode = #tpu.pipeline_mode<synchronous>, transform_indices = @transform_7, window_bounds = array<i64: 32, 32>}, {pipeline_mode = #tpu.pipeline_mode<synchronous>, transform_indices = @transform_8, window_bounds = array<i64: 2, 32>}, {pipeline_mode = #tpu.pipeline_mode<synchronous>, transform_indices = @transform_9, window_bounds = array<i64: 9, 32, 32>}, {pipeline_mode = #tpu.pipeline_mode<synchronous>, transform_indices = @transform_10, window_bounds = array<i64: 1, 32>}, {transform_indices = @transform_11, window_bounds = array<i64: 1, 64, 32>}]} {
    %0 = tpu.iota {dimensions = array<i32: 0>} : vector<64x1xi32>
    %c8_i32 = arith.constant 8 : i32
    %c0_i32 = arith.constant 0 : i32
    %1 = arith.cmpi eq, %c8_i32, %c0_i32 : i32
    %c1_i32 = arith.constant 1 : i32
    %2 = arith.select %1, %c1_i32, %c8_i32 : i32
    %3 = vector.broadcast %2 : i32 to vector<64x1xi32>
    %4 = arith.remsi %0, %3 : vector<64x1xi32>
    %c0_i32_0 = arith.constant 0 : i32
    %5 = vector.broadcast %c0_i32_0 : i32 to vector<64x1xi32>
    %6 = arith.cmpi ne, %4, %5 : vector<64x1xi32>
    %c0_i32_1 = arith.constant 0 : i32
    %7 = vector.broadcast %c0_i32_1 : i32 to vector<64x1xi32>
    %8 = arith.cmpi slt, %4, %7 : vector<64x1xi32>
    %c0_i32_2 = arith.constant 0 : i32
    %9 = arith.cmpi slt, %2, %c0_i32_2 : i32
    %10 = vector.broadcast %9 : i1 to vector<64x1xi1>
    %11 = vector.broadcast %10 : vector<64x1xi1> to vector<64x1xi1>
    %12 = arith.xori %8, %11 : vector<64x1xi1>
    %13 = arith.andi %12, %6 : vector<64x1xi1>
    %14 = vector.broadcast %2 : i32 to vector<64x1xi32>
    %15 = arith.addi %4, %14 : vector<64x1xi32>
    %16 = arith.select %13, %15, %4 : vector<64x1xi1>, vector<64x1xi32>
    %c1_i32_3 = arith.constant 1 : i32
    %17 = vector.broadcast %c1_i32_3 : i32 to vector<64x1xi32>
    %18 = arith.cmpi sge, %16, %17 : vector<64x1xi32>
    %19 = arith.extui %18 : vector<64x1xi1> to vector<64x1xi32>
    %20 = arith.sitofp %19 : vector<64x1xi32> to vector<64x1xf32>
    %c6_i32 = arith.constant 6 : i32
    %21 = vector.broadcast %c6_i32 : i32 to vector<64x1xi32>
    %22 = arith.cmpi sle, %16, %21 : vector<64x1xi32>
    %23 = arith.extui %22 : vector<64x1xi1> to vector<64x1xi32>
    %24 = arith.sitofp %23 : vector<64x1xi32> to vector<64x1xf32>
    %c0 = arith.constant 0 : index
    %c0_4 = arith.constant 0 : index
    %c0_5 = arith.constant 0 : index
    %25 = vector.load %arg1[%c0, %c0_4, %c0_5] : memref<1x64x32xf32, #tpu.memory_space<vmem>>, vector<1x64x32xf32>
    %26 = vector.shape_cast %25 : vector<1x64x32xf32> to vector<64x32xf32>
    %c0_6 = arith.constant 0 : index
    %c0_7 = arith.constant 0 : index
    %27 = vector.load %arg3[%c0_6, %c0_7] : memref<32x32xf32, #tpu.memory_space<vmem>>, vector<32x32xf32>
    %c0_8 = arith.constant 0 : index
    %c0_9 = arith.constant 0 : index
    %28 = vector.load %arg4[%c0_8, %c0_9] : memref<2x32xf32, #tpu.memory_space<vmem>>, vector<1x32xf32>
    %c1 = arith.constant 1 : index
    %c0_10 = arith.constant 0 : index
    %29 = vector.load %arg4[%c1, %c0_10] : memref<2x32xf32, #tpu.memory_space<vmem>>, vector<1x32xf32>
    %cst = arith.constant dense<0.000000e+00> : vector<32xf32>
    %30 = vector.multi_reduction <add>, %26, %cst [0] : vector<64x32xf32> to vector<32xf32>
    %31 = vector.shape_cast %30 : vector<32xf32> to vector<1x32xf32>
    %cst_11 = arith.constant dense<0.000000e+00> : vector<1x32xf32>
    %32 = tpu.matmul %31, %27, %cst_11 {dimension_numbers = #tpu.dot_dimension_numbers<[1], [0], [0], [1], [0, 0, 1, 1], [], []>} : vector<1x32xf32>, vector<32x32xf32>, vector<1x32xf32> -> vector<1x32xf32>
    %33 = vector.broadcast %32 : vector<1x32xf32> to vector<64x32xf32>
    %34 = arith.subf %26, %33 : vector<64x32xf32>
    %35 = arith.mulf %34, %34 : vector<64x32xf32>
    %cst_12 = arith.constant dense<0.000000e+00> : vector<32xf32>
    %36 = vector.multi_reduction <add>, %35, %cst_12 [0] : vector<64x32xf32> to vector<32xf32>
    %37 = vector.shape_cast %36 : vector<32xf32> to vector<1x32xf32>
    %cst_13 = arith.constant dense<0.000000e+00> : vector<1x32xf32>
    %38 = tpu.matmul %37, %27, %cst_13 {dimension_numbers = #tpu.dot_dimension_numbers<[1], [0], [0], [1], [0, 0, 1, 1], [], []>} : vector<1x32xf32>, vector<32x32xf32>, vector<1x32xf32> -> vector<1x32xf32>
    %cst_14 = arith.constant 9.99999997E-7 : f32
    %39 = vector.broadcast %cst_14 : f32 to vector<1x32xf32>
    %40 = arith.addf %38, %39 : vector<1x32xf32>
    %41 = math.rsqrt %40 : vector<1x32xf32>
    %42 = arith.mulf %41, %28 : vector<1x32xf32>
    %43 = vector.broadcast %42 : vector<1x32xf32> to vector<64x32xf32>
    %44 = arith.mulf %34, %43 : vector<64x32xf32>
    %45 = vector.broadcast %29 : vector<1x32xf32> to vector<64x32xf32>
    %46 = arith.addf %44, %45 : vector<64x32xf32>
    %cst_15 = arith.constant 0.000000e+00 : f32
    %47 = vector.broadcast %cst_15 : f32 to vector<64x32xf32>
    %48 = arith.subf %47, %46 : vector<64x32xf32>
    %49 = math.exp %48 : vector<64x32xf32>
    %cst_16 = arith.constant 1.000000e+00 : f32
    %50 = vector.broadcast %cst_16 : f32 to vector<64x32xf32>
    %51 = arith.addf %50, %49 : vector<64x32xf32>
    %cst_17 = arith.constant 1.000000e+00 : f32
    %52 = vector.broadcast %cst_17 : f32 to vector<64x32xf32>
    %53 = arith.divf %52, %51 : vector<64x32xf32>
    %54 = arith.mulf %46, %53 : vector<64x32xf32>
    %c0_18 = arith.constant 0 : index
    %c0_19 = arith.constant 0 : index
    %55 = vector.load %arg6[%c0_18, %c0_19] : memref<1x32xf32, #tpu.memory_space<vmem>>, vector<1x32xf32>
    %cst_20 = arith.constant 0.000000e+00 : f32
    %56 = vector.broadcast %cst_20 : f32 to vector<96x32xf32>
    %c0_21 = arith.constant 0 : index
    %c0_22 = arith.constant 0 : index
    %57 = vector.load %arg13[%c0_21, %c0_22] : memref<96x32xf32, #tpu.memory_space<vmem>>, vector<96x32xf32>
    tpu.vector_store %arg13[%c0_21, %c0_22], %56 {strides = array<i32>} : memref<96x32xf32, #tpu.memory_space<vmem>>, vector<96x32xf32>,
    %c16 = arith.constant 16 : index
    %c0_23 = arith.constant 0 : index
    %58 = vector.load %arg13[%c16, %c0_23] : memref<96x32xf32, #tpu.memory_space<vmem>>, vector<64x32xf32>
    tpu.vector_store %arg13[%c16, %c0_23], %54 {strides = array<i32>} : memref<96x32xf32, #tpu.memory_space<vmem>>, vector<64x32xf32>,
    %59 = vector.shape_cast %55 : vector<1x32xf32> to vector<1x32xf32>
    %60 = vector.broadcast %59 : vector<1x32xf32> to vector<64x32xf32>
    %c7 = arith.constant 7 : index
    %c0_24 = arith.constant 0 : index
    %61 = vector.load %arg13[%c7, %c0_24] : memref<96x32xf32, #tpu.memory_space<vmem>>, vector<64x32xf32>
    %62 = vector.broadcast %20 : vector<64x1xf32> to vector<64x32xf32>
    %63 = arith.mulf %61, %62 : vector<64x32xf32>
    %c0_25 = arith.constant 0 : index
    %c0_26 = arith.constant 0 : index
    %c0_27 = arith.constant 0 : index
    %64 = vector.load %arg5[%c0_25, %c0_26, %c0_27] : memref<9x32x32xf32, #tpu.memory_space<vmem>>, vector<1x32x32xf32>
    %65 = vector.shape_cast %64 : vector<1x32x32xf32> to vector<32x32xf32>
    %cst_28 = arith.constant dense<0.000000e+00> : vector<64x32xf32>
    %66 = tpu.matmul %63, %65, %cst_28 {dimension_numbers = #tpu.dot_dimension_numbers<[1], [0], [0], [1], [0, 0, 1, 1], [], []>} : vector<64x32xf32>, vector<32x32xf32>, vector<64x32xf32> -> vector<64x32xf32>
    %67 = arith.addf %60, %66 : vector<64x32xf32>
    %c8 = arith.constant 8 : index
    %c0_29 = arith.constant 0 : index
    %68 = vector.load %arg13[%c8, %c0_29] : memref<96x32xf32, #tpu.memory_space<vmem>>, vector<64x32xf32>
    %c1_30 = arith.constant 1 : index
    %c0_31 = arith.constant 0 : index
    %c0_32 = arith.constant 0 : index
    %69 = vector.load %arg5[%c1_30, %c0_31, %c0_32] : memref<9x32x32xf32, #tpu.memory_space<vmem>>, vector<1x32x32xf32>
    %70 = vector.shape_cast %69 : vector<1x32x32xf32> to vector<32x32xf32>
    %cst_33 = arith.constant dense<0.000000e+00> : vector<64x32xf32>
    %71 = tpu.matmul %68, %70, %cst_33 {dimension_numbers = #tpu.dot_dimension_numbers<[1], [0], [0], [1], [0, 0, 1, 1], [], []>} : vector<64x32xf32>, vector<32x32xf32>, vector<64x32xf32> -> vector<64x32xf32>
    %72 = arith.addf %67, %71 : vector<64x32xf32>
    %c9 = arith.constant 9 : index
    %c0_34 = arith.constant 0 : index
    %73 = vector.load %arg13[%c9, %c0_34] : memref<96x32xf32, #tpu.memory_space<vmem>>, vector<64x32xf32>
    %74 = vector.broadcast %24 : vector<64x1xf32> to vector<64x32xf32>
    %75 = arith.mulf %73, %74 : vector<64x32xf32>
    %c2 = arith.constant 2 : index
    %c0_35 = arith.constant 0 : index
    %c0_36 = arith.constant 0 : index
    %76 = vector.load %arg5[%c2, %c0_35, %c0_36] : memref<9x32x32xf32, #tpu.memory_space<vmem>>, vector<1x32x32xf32>
    %77 = vector.shape_cast %76 : vector<1x32x32xf32> to vector<32x32xf32>
    %cst_37 = arith.constant dense<0.000000e+00> : vector<64x32xf32>
    %78 = tpu.matmul %75, %77, %cst_37 {dimension_numbers = #tpu.dot_dimension_numbers<[1], [0], [0], [1], [0, 0, 1, 1], [], []>} : vector<64x32xf32>, vector<32x32xf32>, vector<64x32xf32> -> vector<64x32xf32>
    %79 = arith.addf %72, %78 : vector<64x32xf32>
    %c15 = arith.constant 15 : index
    %c0_38 = arith.constant 0 : index
    %80 = vector.load %arg13[%c15, %c0_38] : memref<96x32xf32, #tpu.memory_space<vmem>>, vector<64x32xf32>
    %81 = vector.broadcast %20 : vector<64x1xf32> to vector<64x32xf32>
    %82 = arith.mulf %80, %81 : vector<64x32xf32>
    %c3 = arith.constant 3 : index
    %c0_39 = arith.constant 0 : index
    %c0_40 = arith.constant 0 : index
    %83 = vector.load %arg5[%c3, %c0_39, %c0_40] : memref<9x32x32xf32, #tpu.memory_space<vmem>>, vector<1x32x32xf32>
    %84 = vector.shape_cast %83 : vector<1x32x32xf32> to vector<32x32xf32>
    %cst_41 = arith.constant dense<0.000000e+00> : vector<64x32xf32>
    %85 = tpu.matmul %82, %84, %cst_41 {dimension_numbers = #tpu.dot_dimension_numbers<[1], [0], [0], [1], [0, 0, 1, 1], [], []>} : vector<64x32xf32>, vector<32x32xf32>, vector<64x32xf32> -> vector<64x32xf32>
    %86 = arith.addf %79, %85 : vector<64x32xf32>
    %c16_42 = arith.constant 16 : index
    %c0_43 = arith.constant 0 : index
    %87 = vector.load %arg13[%c16_42, %c0_43] : memref<96x32xf32, #tpu.memory_space<vmem>>, vector<64x32xf32>
    %c4 = arith.constant 4 : index
    %c0_44 = arith.constant 0 : index
    %c0_45 = arith.constant 0 : index
    %88 = vector.load %arg5[%c4, %c0_44, %c0_45] : memref<9x32x32xf32, #tpu.memory_space<vmem>>, vector<1x32x32xf32>
    %89 = vector.shape_cast %88 : vector<1x32x32xf32> to vector<32x32xf32>
    %cst_46 = arith.constant dense<0.000000e+00> : vector<64x32xf32>
    %90 = tpu.matmul %87, %89, %cst_46 {dimension_numbers = #tpu.dot_dimension_numbers<[1], [0], [0], [1], [0, 0, 1, 1], [], []>} : vector<64x32xf32>, vector<32x32xf32>, vector<64x32xf32> -> vector<64x32xf32>
    %91 = arith.addf %86, %90 : vector<64x32xf32>
    %c17 = arith.constant 17 : index
    %c0_47 = arith.constant 0 : index
    %92 = vector.load %arg13[%c17, %c0_47] : memref<96x32xf32, #tpu.memory_space<vmem>>, vector<64x32xf32>
    %93 = vector.broadcast %24 : vector<64x1xf32> to vector<64x32xf32>
    %94 = arith.mulf %92, %93 : vector<64x32xf32>
    %c5 = arith.constant 5 : index
    %c0_48 = arith.constant 0 : index
    %c0_49 = arith.constant 0 : index
    %95 = vector.load %arg5[%c5, %c0_48, %c0_49] : memref<9x32x32xf32, #tpu.memory_space<vmem>>, vector<1x32x32xf32>
    %96 = vector.shape_cast %95 : vector<1x32x32xf32> to vector<32x32xf32>
    %cst_50 = arith.constant dense<0.000000e+00> : vector<64x32xf32>
    %97 = tpu.matmul %94, %96, %cst_50 {dimension_numbers = #tpu.dot_dimension_numbers<[1], [0], [0], [1], [0, 0, 1, 1], [], []>} : vector<64x32xf32>, vector<32x32xf32>, vector<64x32xf32> -> vector<64x32xf32>
    %98 = arith.addf %91, %97 : vector<64x32xf32>
    %c23 = arith.constant 23 : index
    %c0_51 = arith.constant 0 : index
    %99 = vector.load %arg13[%c23, %c0_51] : memref<96x32xf32, #tpu.memory_space<vmem>>, vector<64x32xf32>
    %100 = vector.broadcast %20 : vector<64x1xf32> to vector<64x32xf32>
    %101 = arith.mulf %99, %100 : vector<64x32xf32>
    %c6 = arith.constant 6 : index
    %c0_52 = arith.constant 0 : index
    %c0_53 = arith.constant 0 : index
    %102 = vector.load %arg5[%c6, %c0_52, %c0_53] : memref<9x32x32xf32, #tpu.memory_space<vmem>>, vector<1x32x32xf32>
    %103 = vector.shape_cast %102 : vector<1x32x32xf32> to vector<32x32xf32>
    %cst_54 = arith.constant dense<0.000000e+00> : vector<64x32xf32>
    %104 = tpu.matmul %101, %103, %cst_54 {dimension_numbers = #tpu.dot_dimension_numbers<[1], [0], [0], [1], [0, 0, 1, 1], [], []>} : vector<64x32xf32>, vector<32x32xf32>, vector<64x32xf32> -> vector<64x32xf32>
    %105 = arith.addf %98, %104 : vector<64x32xf32>
    %c24 = arith.constant 24 : index
    %c0_55 = arith.constant 0 : index
    %106 = vector.load %arg13[%c24, %c0_55] : memref<96x32xf32, #tpu.memory_space<vmem>>, vector<64x32xf32>
    %c7_56 = arith.constant 7 : index
    %c0_57 = arith.constant 0 : index
    %c0_58 = arith.constant 0 : index
    %107 = vector.load %arg5[%c7_56, %c0_57, %c0_58] : memref<9x32x32xf32, #tpu.memory_space<vmem>>, vector<1x32x32xf32>
    %108 = vector.shape_cast %107 : vector<1x32x32xf32> to vector<32x32xf32>
    %cst_59 = arith.constant dense<0.000000e+00> : vector<64x32xf32>
    %109 = tpu.matmul %106, %108, %cst_59 {dimension_numbers = #tpu.dot_dimension_numbers<[1], [0], [0], [1], [0, 0, 1, 1], [], []>} : vector<64x32xf32>, vector<32x32xf32>, vector<64x32xf32> -> vector<64x32xf32>
    %110 = arith.addf %105, %109 : vector<64x32xf32>
    %c25 = arith.constant 25 : index
    %c0_60 = arith.constant 0 : index
    %111 = vector.load %arg13[%c25, %c0_60] : memref<96x32xf32, #tpu.memory_space<vmem>>, vector<64x32xf32>
    %112 = vector.broadcast %24 : vector<64x1xf32> to vector<64x32xf32>
    %113 = arith.mulf %111, %112 : vector<64x32xf32>
    %c8_61 = arith.constant 8 : index
    %c0_62 = arith.constant 0 : index
    %c0_63 = arith.constant 0 : index
    %114 = vector.load %arg5[%c8_61, %c0_62, %c0_63] : memref<9x32x32xf32, #tpu.memory_space<vmem>>, vector<1x32x32xf32>
    %115 = vector.shape_cast %114 : vector<1x32x32xf32> to vector<32x32xf32>
    %cst_64 = arith.constant dense<0.000000e+00> : vector<64x32xf32>
    %116 = tpu.matmul %113, %115, %cst_64 {dimension_numbers = #tpu.dot_dimension_numbers<[1], [0], [0], [1], [0, 0, 1, 1], [], []>} : vector<64x32xf32>, vector<32x32xf32>, vector<64x32xf32> -> vector<64x32xf32>
    %117 = arith.addf %110, %116 : vector<64x32xf32>
    %c0_65 = arith.constant 0 : index
    %c0_66 = arith.constant 0 : index
    %c0_67 = arith.constant 0 : index
    %118 = vector.load %arg2[%c0_65, %c0_66, %c0_67] : memref<1x1x128xf32, #tpu.memory_space<vmem>>, vector<1x1x128xf32>
    %119 = vector.shape_cast %118 : vector<1x1x128xf32> to vector<1x128xf32>
    %c0_68 = arith.constant 0 : index
    %c0_69 = arith.constant 0 : index
    %120 = vector.load %arg7[%c0_68, %c0_69] : memref<128x32xf32, #tpu.memory_space<vmem>>, vector<128x32xf32>
    %cst_70 = arith.constant dense<0.000000e+00> : vector<1x32xf32>
    %121 = tpu.matmul %119, %120, %cst_70 {dimension_numbers = #tpu.dot_dimension_numbers<[1], [0], [0], [1], [0, 0, 1, 1], [], []>} : vector<1x128xf32>, vector<128x32xf32>, vector<1x32xf32> -> vector<1x32xf32>
    %122 = vector.broadcast %121 : vector<1x32xf32> to vector<64x32xf32>
    %123 = arith.addf %117, %122 : vector<64x32xf32>
    %c0_71 = arith.constant 0 : index
    %c0_72 = arith.constant 0 : index
    %124 = vector.load %arg8[%c0_71, %c0_72] : memref<32x32xf32, #tpu.memory_space<vmem>>, vector<32x32xf32>
    %c0_73 = arith.constant 0 : index
    %c0_74 = arith.constant 0 : index
    %125 = vector.load %arg9[%c0_73, %c0_74] : memref<2x32xf32, #tpu.memory_space<vmem>>, vector<1x32xf32>
    %c1_75 = arith.constant 1 : index
    %c0_76 = arith.constant 0 : index
    %126 = vector.load %arg9[%c1_75, %c0_76] : memref<2x32xf32, #tpu.memory_space<vmem>>, vector<1x32xf32>
    %cst_77 = arith.constant dense<0.000000e+00> : vector<32xf32>
    %127 = vector.multi_reduction <add>, %123, %cst_77 [0] : vector<64x32xf32> to vector<32xf32>
    %128 = vector.shape_cast %127 : vector<32xf32> to vector<1x32xf32>
    %cst_78 = arith.constant dense<0.000000e+00> : vector<1x32xf32>
    %129 = tpu.matmul %128, %124, %cst_78 {dimension_numbers = #tpu.dot_dimension_numbers<[1], [0], [0], [1], [0, 0, 1, 1], [], []>} : vector<1x32xf32>, vector<32x32xf32>, vector<1x32xf32> -> vector<1x32xf32>
    %130 = vector.broadcast %129 : vector<1x32xf32> to vector<64x32xf32>
    %131 = arith.subf %123, %130 : vector<64x32xf32>
    %132 = arith.mulf %131, %131 : vector<64x32xf32>
    %cst_79 = arith.constant dense<0.000000e+00> : vector<32xf32>
    %133 = vector.multi_reduction <add>, %132, %cst_79 [0] : vector<64x32xf32> to vector<32xf32>
    %134 = vector.shape_cast %133 : vector<32xf32> to vector<1x32xf32>
    %cst_80 = arith.constant dense<0.000000e+00> : vector<1x32xf32>
    %135 = tpu.matmul %134, %124, %cst_80 {dimension_numbers = #tpu.dot_dimension_numbers<[1], [0], [0], [1], [0, 0, 1, 1], [], []>} : vector<1x32xf32>, vector<32x32xf32>, vector<1x32xf32> -> vector<1x32xf32>
    %cst_81 = arith.constant 9.99999997E-7 : f32
    %136 = vector.broadcast %cst_81 : f32 to vector<1x32xf32>
    %137 = arith.addf %135, %136 : vector<1x32xf32>
    %138 = math.rsqrt %137 : vector<1x32xf32>
    %139 = arith.mulf %138, %125 : vector<1x32xf32>
    %140 = vector.broadcast %139 : vector<1x32xf32> to vector<64x32xf32>
    %141 = arith.mulf %131, %140 : vector<64x32xf32>
    %142 = vector.broadcast %126 : vector<1x32xf32> to vector<64x32xf32>
    %143 = arith.addf %141, %142 : vector<64x32xf32>
    %cst_82 = arith.constant 0.000000e+00 : f32
    %144 = vector.broadcast %cst_82 : f32 to vector<64x32xf32>
    %145 = arith.subf %144, %143 : vector<64x32xf32>
    %146 = math.exp %145 : vector<64x32xf32>
    %cst_83 = arith.constant 1.000000e+00 : f32
    %147 = vector.broadcast %cst_83 : f32 to vector<64x32xf32>
    %148 = arith.addf %147, %146 : vector<64x32xf32>
    %cst_84 = arith.constant 1.000000e+00 : f32
    %149 = vector.broadcast %cst_84 : f32 to vector<64x32xf32>
    %150 = arith.divf %149, %148 : vector<64x32xf32>
    %151 = arith.mulf %143, %150 : vector<64x32xf32>
    %c0_85 = arith.constant 0 : index
    %c0_86 = arith.constant 0 : index
    %152 = vector.load %arg11[%c0_85, %c0_86] : memref<1x32xf32, #tpu.memory_space<vmem>>, vector<1x32xf32>
    %cst_87 = arith.constant 0.000000e+00 : f32
    %153 = vector.broadcast %cst_87 : f32 to vector<96x32xf32>
    %c0_88 = arith.constant 0 : index
    %c0_89 = arith.constant 0 : index
    %154 = vector.load %arg14[%c0_88, %c0_89] : memref<96x32xf32, #tpu.memory_space<vmem>>, vector<96x32xf32>
    tpu.vector_store %arg14[%c0_88, %c0_89], %153 {strides = array<i32>} : memref<96x32xf32, #tpu.memory_space<vmem>>, vector<96x32xf32>,
    %c16_90 = arith.constant 16 : index
    %c0_91 = arith.constant 0 : index
    %155 = vector.load %arg14[%c16_90, %c0_91] : memref<96x32xf32, #tpu.memory_space<vmem>>, vector<64x32xf32>
    tpu.vector_store %arg14[%c16_90, %c0_91], %151 {strides = array<i32>} : memref<96x32xf32, #tpu.memory_space<vmem>>, vector<64x32xf32>,
    %156 = vector.shape_cast %152 : vector<1x32xf32> to vector<1x32xf32>
    %157 = vector.broadcast %156 : vector<1x32xf32> to vector<64x32xf32>
    %c7_92 = arith.constant 7 : index
    %c0_93 = arith.constant 0 : index
    %158 = vector.load %arg14[%c7_92, %c0_93] : memref<96x32xf32, #tpu.memory_space<vmem>>, vector<64x32xf32>
    %159 = vector.broadcast %20 : vector<64x1xf32> to vector<64x32xf32>
    %160 = arith.mulf %158, %159 : vector<64x32xf32>
    %c0_94 = arith.constant 0 : index
    %c0_95 = arith.constant 0 : index
    %c0_96 = arith.constant 0 : index
    %161 = vector.load %arg10[%c0_94, %c0_95, %c0_96] : memref<9x32x32xf32, #tpu.memory_space<vmem>>, vector<1x32x32xf32>
    %162 = vector.shape_cast %161 : vector<1x32x32xf32> to vector<32x32xf32>
    %cst_97 = arith.constant dense<0.000000e+00> : vector<64x32xf32>
    %163 = tpu.matmul %160, %162, %cst_97 {dimension_numbers = #tpu.dot_dimension_numbers<[1], [0], [0], [1], [0, 0, 1, 1], [], []>} : vector<64x32xf32>, vector<32x32xf32>, vector<64x32xf32> -> vector<64x32xf32>
    %164 = arith.addf %157, %163 : vector<64x32xf32>
    %c8_98 = arith.constant 8 : index
    %c0_99 = arith.constant 0 : index
    %165 = vector.load %arg14[%c8_98, %c0_99] : memref<96x32xf32, #tpu.memory_space<vmem>>, vector<64x32xf32>
    %c1_100 = arith.constant 1 : index
    %c0_101 = arith.constant 0 : index
    %c0_102 = arith.constant 0 : index
    %166 = vector.load %arg10[%c1_100, %c0_101, %c0_102] : memref<9x32x32xf32, #tpu.memory_space<vmem>>, vector<1x32x32xf32>
    %167 = vector.shape_cast %166 : vector<1x32x32xf32> to vector<32x32xf32>
    %cst_103 = arith.constant dense<0.000000e+00> : vector<64x32xf32>
    %168 = tpu.matmul %165, %167, %cst_103 {dimension_numbers = #tpu.dot_dimension_numbers<[1], [0], [0], [1], [0, 0, 1, 1], [], []>} : vector<64x32xf32>, vector<32x32xf32>, vector<64x32xf32> -> vector<64x32xf32>
    %169 = arith.addf %164, %168 : vector<64x32xf32>
    %c9_104 = arith.constant 9 : index
    %c0_105 = arith.constant 0 : index
    %170 = vector.load %arg14[%c9_104, %c0_105] : memref<96x32xf32, #tpu.memory_space<vmem>>, vector<64x32xf32>
    %171 = vector.broadcast %24 : vector<64x1xf32> to vector<64x32xf32>
    %172 = arith.mulf %170, %171 : vector<64x32xf32>
    %c2_106 = arith.constant 2 : index
    %c0_107 = arith.constant 0 : index
    %c0_108 = arith.constant 0 : index
    %173 = vector.load %arg10[%c2_106, %c0_107, %c0_108] : memref<9x32x32xf32, #tpu.memory_space<vmem>>, vector<1x32x32xf32>
    %174 = vector.shape_cast %173 : vector<1x32x32xf32> to vector<32x32xf32>
    %cst_109 = arith.constant dense<0.000000e+00> : vector<64x32xf32>
    %175 = tpu.matmul %172, %174, %cst_109 {dimension_numbers = #tpu.dot_dimension_numbers<[1], [0], [0], [1], [0, 0, 1, 1], [], []>} : vector<64x32xf32>, vector<32x32xf32>, vector<64x32xf32> -> vector<64x32xf32>
    %176 = arith.addf %169, %175 : vector<64x32xf32>
    %c15_110 = arith.constant 15 : index
    %c0_111 = arith.constant 0 : index
    %177 = vector.load %arg14[%c15_110, %c0_111] : memref<96x32xf32, #tpu.memory_space<vmem>>, vector<64x32xf32>
    %178 = vector.broadcast %20 : vector<64x1xf32> to vector<64x32xf32>
    %179 = arith.mulf %177, %178 : vector<64x32xf32>
    %c3_112 = arith.constant 3 : index
    %c0_113 = arith.constant 0 : index
    %c0_114 = arith.constant 0 : index
    %180 = vector.load %arg10[%c3_112, %c0_113, %c0_114] : memref<9x32x32xf32, #tpu.memory_space<vmem>>, vector<1x32x32xf32>
    %181 = vector.shape_cast %180 : vector<1x32x32xf32> to vector<32x32xf32>
    %cst_115 = arith.constant dense<0.000000e+00> : vector<64x32xf32>
    %182 = tpu.matmul %179, %181, %cst_115 {dimension_numbers = #tpu.dot_dimension_numbers<[1], [0], [0], [1], [0, 0, 1, 1], [], []>} : vector<64x32xf32>, vector<32x32xf32>, vector<64x32xf32> -> vector<64x32xf32>
    %183 = arith.addf %176, %182 : vector<64x32xf32>
    %c16_116 = arith.constant 16 : index
    %c0_117 = arith.constant 0 : index
    %184 = vector.load %arg14[%c16_116, %c0_117] : memref<96x32xf32, #tpu.memory_space<vmem>>, vector<64x32xf32>
    %c4_118 = arith.constant 4 : index
    %c0_119 = arith.constant 0 : index
    %c0_120 = arith.constant 0 : index
    %185 = vector.load %arg10[%c4_118, %c0_119, %c0_120] : memref<9x32x32xf32, #tpu.memory_space<vmem>>, vector<1x32x32xf32>
    %186 = vector.shape_cast %185 : vector<1x32x32xf32> to vector<32x32xf32>
    %cst_121 = arith.constant dense<0.000000e+00> : vector<64x32xf32>
    %187 = tpu.matmul %184, %186, %cst_121 {dimension_numbers = #tpu.dot_dimension_numbers<[1], [0], [0], [1], [0, 0, 1, 1], [], []>} : vector<64x32xf32>, vector<32x32xf32>, vector<64x32xf32> -> vector<64x32xf32>
    %188 = arith.addf %183, %187 : vector<64x32xf32>
    %c17_122 = arith.constant 17 : index
    %c0_123 = arith.constant 0 : index
    %189 = vector.load %arg14[%c17_122, %c0_123] : memref<96x32xf32, #tpu.memory_space<vmem>>, vector<64x32xf32>
    %190 = vector.broadcast %24 : vector<64x1xf32> to vector<64x32xf32>
    %191 = arith.mulf %189, %190 : vector<64x32xf32>
    %c5_124 = arith.constant 5 : index
    %c0_125 = arith.constant 0 : index
    %c0_126 = arith.constant 0 : index
    %192 = vector.load %arg10[%c5_124, %c0_125, %c0_126] : memref<9x32x32xf32, #tpu.memory_space<vmem>>, vector<1x32x32xf32>
    %193 = vector.shape_cast %192 : vector<1x32x32xf32> to vector<32x32xf32>
    %cst_127 = arith.constant dense<0.000000e+00> : vector<64x32xf32>
    %194 = tpu.matmul %191, %193, %cst_127 {dimension_numbers = #tpu.dot_dimension_numbers<[1], [0], [0], [1], [0, 0, 1, 1], [], []>} : vector<64x32xf32>, vector<32x32xf32>, vector<64x32xf32> -> vector<64x32xf32>
    %195 = arith.addf %188, %194 : vector<64x32xf32>
    %c23_128 = arith.constant 23 : index
    %c0_129 = arith.constant 0 : index
    %196 = vector.load %arg14[%c23_128, %c0_129] : memref<96x32xf32, #tpu.memory_space<vmem>>, vector<64x32xf32>
    %197 = vector.broadcast %20 : vector<64x1xf32> to vector<64x32xf32>
    %198 = arith.mulf %196, %197 : vector<64x32xf32>
    %c6_130 = arith.constant 6 : index
    %c0_131 = arith.constant 0 : index
    %c0_132 = arith.constant 0 : index
    %199 = vector.load %arg10[%c6_130, %c0_131, %c0_132] : memref<9x32x32xf32, #tpu.memory_space<vmem>>, vector<1x32x32xf32>
    %200 = vector.shape_cast %199 : vector<1x32x32xf32> to vector<32x32xf32>
    %cst_133 = arith.constant dense<0.000000e+00> : vector<64x32xf32>
    %201 = tpu.matmul %198, %200, %cst_133 {dimension_numbers = #tpu.dot_dimension_numbers<[1], [0], [0], [1], [0, 0, 1, 1], [], []>} : vector<64x32xf32>, vector<32x32xf32>, vector<64x32xf32> -> vector<64x32xf32>
    %202 = arith.addf %195, %201 : vector<64x32xf32>
    %c24_134 = arith.constant 24 : index
    %c0_135 = arith.constant 0 : index
    %203 = vector.load %arg14[%c24_134, %c0_135] : memref<96x32xf32, #tpu.memory_space<vmem>>, vector<64x32xf32>
    %c7_136 = arith.constant 7 : index
    %c0_137 = arith.constant 0 : index
    %c0_138 = arith.constant 0 : index
    %204 = vector.load %arg10[%c7_136, %c0_137, %c0_138] : memref<9x32x32xf32, #tpu.memory_space<vmem>>, vector<1x32x32xf32>
    %205 = vector.shape_cast %204 : vector<1x32x32xf32> to vector<32x32xf32>
    %cst_139 = arith.constant dense<0.000000e+00> : vector<64x32xf32>
    %206 = tpu.matmul %203, %205, %cst_139 {dimension_numbers = #tpu.dot_dimension_numbers<[1], [0], [0], [1], [0, 0, 1, 1], [], []>} : vector<64x32xf32>, vector<32x32xf32>, vector<64x32xf32> -> vector<64x32xf32>
    %207 = arith.addf %202, %206 : vector<64x32xf32>
    %c25_140 = arith.constant 25 : index
    %c0_141 = arith.constant 0 : index
    %208 = vector.load %arg14[%c25_140, %c0_141] : memref<96x32xf32, #tpu.memory_space<vmem>>, vector<64x32xf32>
    %209 = vector.broadcast %24 : vector<64x1xf32> to vector<64x32xf32>
    %210 = arith.mulf %208, %209 : vector<64x32xf32>
    %c8_142 = arith.constant 8 : index
    %c0_143 = arith.constant 0 : index
    %c0_144 = arith.constant 0 : index
    %211 = vector.load %arg10[%c8_142, %c0_143, %c0_144] : memref<9x32x32xf32, #tpu.memory_space<vmem>>, vector<1x32x32xf32>
    %212 = vector.shape_cast %211 : vector<1x32x32xf32> to vector<32x32xf32>
    %cst_145 = arith.constant dense<0.000000e+00> : vector<64x32xf32>
    %213 = tpu.matmul %210, %212, %cst_145 {dimension_numbers = #tpu.dot_dimension_numbers<[1], [0], [0], [1], [0, 0, 1, 1], [], []>} : vector<64x32xf32>, vector<32x32xf32>, vector<64x32xf32> -> vector<64x32xf32>
    %214 = arith.addf %207, %213 : vector<64x32xf32>
    %215 = arith.addf %214, %26 : vector<64x32xf32>
    %c0_146 = arith.constant 0 : index
    %c0_147 = arith.constant 0 : index
    %c0_148 = arith.constant 0 : index
    %216 = vector.load %arg12[%c0_146, %c0_147, %c0_148] : memref<1x64x32xf32, #tpu.memory_space<vmem>>, vector<1x64x32xf32>
    %217 = vector.shape_cast %216 : vector<1x64x32xf32> to vector<64x32xf32>
    %218 = vector.shape_cast %215 : vector<64x32xf32> to vector<1x64x32xf32>
    tpu.vector_store %arg12[%c0_146, %c0_147, %c0_148], %218 {strides = array<i32>} : memref<1x64x32xf32, #tpu.memory_space<vmem>>, vector<1x64x32xf32>,
    return
  }
  func.func @transform_0(%arg0: i32) -> (i32, i32, i32) {
    %c0_i32 = arith.constant 0 : i32
    %c0_i32_0 = arith.constant 0 : i32
    %c0_i32_1 = arith.constant 0 : i32
    return %arg0, %c0_i32, %c0_i32_0 : i32, i32, i32
  }
  func.func @transform_1(%arg0: i32) -> (i32, i32, i32) {
    %c0_i32 = arith.constant 0 : i32
    %c0_i32_0 = arith.constant 0 : i32
    %c0_i32_1 = arith.constant 0 : i32
    return %arg0, %c0_i32, %c0_i32_0 : i32, i32, i32
  }
  func.func @transform_2(%arg0: i32) -> (i32, i32) {
    %c0_i32 = arith.constant 0 : i32
    %c0_i32_0 = arith.constant 0 : i32
    %c0_i32_1 = arith.constant 0 : i32
    return %c0_i32, %c0_i32_0 : i32, i32
  }
  func.func @transform_3(%arg0: i32) -> (i32, i32) {
    %c0_i32 = arith.constant 0 : i32
    %c0_i32_0 = arith.constant 0 : i32
    %c0_i32_1 = arith.constant 0 : i32
    return %c0_i32, %c0_i32_0 : i32, i32
  }
  func.func @transform_4(%arg0: i32) -> (i32, i32, i32) {
    %c0_i32 = arith.constant 0 : i32
    %c0_i32_0 = arith.constant 0 : i32
    %c0_i32_1 = arith.constant 0 : i32
    %c0_i32_2 = arith.constant 0 : i32
    return %c0_i32, %c0_i32_0, %c0_i32_1 : i32, i32, i32
  }
  func.func @transform_5(%arg0: i32) -> (i32, i32) {
    %c0_i32 = arith.constant 0 : i32
    %c0_i32_0 = arith.constant 0 : i32
    %c0_i32_1 = arith.constant 0 : i32
    return %c0_i32, %c0_i32_0 : i32, i32
  }
  func.func @transform_6(%arg0: i32) -> (i32, i32) {
    %c0_i32 = arith.constant 0 : i32
    %c0_i32_0 = arith.constant 0 : i32
    %c0_i32_1 = arith.constant 0 : i32
    return %c0_i32, %c0_i32_0 : i32, i32
  }
  func.func @transform_7(%arg0: i32) -> (i32, i32) {
    %c0_i32 = arith.constant 0 : i32
    %c0_i32_0 = arith.constant 0 : i32
    %c0_i32_1 = arith.constant 0 : i32
    return %c0_i32, %c0_i32_0 : i32, i32
  }
  func.func @transform_8(%arg0: i32) -> (i32, i32) {
    %c0_i32 = arith.constant 0 : i32
    %c0_i32_0 = arith.constant 0 : i32
    %c0_i32_1 = arith.constant 0 : i32
    return %c0_i32, %c0_i32_0 : i32, i32
  }
  func.func @transform_9(%arg0: i32) -> (i32, i32, i32) {
    %c0_i32 = arith.constant 0 : i32
    %c0_i32_0 = arith.constant 0 : i32
    %c0_i32_1 = arith.constant 0 : i32
    %c0_i32_2 = arith.constant 0 : i32
    return %c0_i32, %c0_i32_0, %c0_i32_1 : i32, i32, i32
  }
  func.func @transform_10(%arg0: i32) -> (i32, i32) {
    %c0_i32 = arith.constant 0 : i32
    %c0_i32_0 = arith.constant 0 : i32
    %c0_i32_1 = arith.constant 0 : i32
    return %c0_i32, %c0_i32_0 : i32, i32
  }
  func.func @transform_11(%arg0: i32) -> (i32, i32, i32) {
    %c0_i32 = arith.constant 0 : i32
    %c0_i32_0 = arith.constant 0 : i32
    %c0_i32_1 = arith.constant 0 : i32
    return %arg0, %c0_i32, %c0_i32_0 : i32, i32, i32
  }
}

module attributes {stable_mosaic.version = 11 : i64} {
  func.func @_attn_kernel(%arg0: i32, %arg1: memref<1x64x32xf32, #tpu.memory_space<vmem>>, %arg2: memref<32x32xf32, #tpu.memory_space<vmem>>, %arg3: memref<2x32xf32, #tpu.memory_space<vmem>>, %arg4: memref<32x96xf32, #tpu.memory_space<vmem>>, %arg5: memref<1x96xf32, #tpu.memory_space<vmem>>, %arg6: memref<32x32xf32, #tpu.memory_space<vmem>>, %arg7: memref<1x32xf32, #tpu.memory_space<vmem>>, %arg8: memref<1x64x32xf32, #tpu.memory_space<vmem>>) attributes {dimension_semantics = [#tpu.dimension_semantics<parallel>], iteration_bounds = array<i64: 2>, scalar_prefetch = 0 : i64, scratch_operands = 0 : i64, tpu.core_type = #tpu.core_type<tc>, window_params = [{transform_indices = @transform_0, window_bounds = array<i64: 1, 64, 32>}, {pipeline_mode = #tpu.pipeline_mode<synchronous>, transform_indices = @transform_1, window_bounds = array<i64: 32, 32>}, {pipeline_mode = #tpu.pipeline_mode<synchronous>, transform_indices = @transform_2, window_bounds = array<i64: 2, 32>}, {pipeline_mode = #tpu.pipeline_mode<synchronous>, transform_indices = @transform_3, window_bounds = array<i64: 32, 96>}, {pipeline_mode = #tpu.pipeline_mode<synchronous>, transform_indices = @transform_4, window_bounds = array<i64: 1, 96>}, {pipeline_mode = #tpu.pipeline_mode<synchronous>, transform_indices = @transform_5, window_bounds = array<i64: 32, 32>}, {pipeline_mode = #tpu.pipeline_mode<synchronous>, transform_indices = @transform_6, window_bounds = array<i64: 1, 32>}, {transform_indices = @transform_7, window_bounds = array<i64: 1, 64, 32>}]} {
    %c0 = arith.constant 0 : index
    %c0_0 = arith.constant 0 : index
    %c0_1 = arith.constant 0 : index
    %0 = vector.load %arg1[%c0, %c0_0, %c0_1] : memref<1x64x32xf32, #tpu.memory_space<vmem>>, vector<1x64x32xf32>
    %1 = vector.shape_cast %0 : vector<1x64x32xf32> to vector<64x32xf32>
    %c0_2 = arith.constant 0 : index
    %c0_3 = arith.constant 0 : index
    %2 = vector.load %arg2[%c0_2, %c0_3] : memref<32x32xf32, #tpu.memory_space<vmem>>, vector<32x32xf32>
    %c0_4 = arith.constant 0 : index
    %c0_5 = arith.constant 0 : index
    %3 = vector.load %arg3[%c0_4, %c0_5] : memref<2x32xf32, #tpu.memory_space<vmem>>, vector<1x32xf32>
    %c1 = arith.constant 1 : index
    %c0_6 = arith.constant 0 : index
    %4 = vector.load %arg3[%c1, %c0_6] : memref<2x32xf32, #tpu.memory_space<vmem>>, vector<1x32xf32>
    %cst = arith.constant dense<0.000000e+00> : vector<32xf32>
    %5 = vector.multi_reduction <add>, %1, %cst [0] : vector<64x32xf32> to vector<32xf32>
    %6 = vector.shape_cast %5 : vector<32xf32> to vector<1x32xf32>
    %cst_7 = arith.constant dense<0.000000e+00> : vector<1x32xf32>
    %7 = tpu.matmul %6, %2, %cst_7 {dimension_numbers = #tpu.dot_dimension_numbers<[1], [0], [0], [1], [0, 0, 1, 1], [], []>} : vector<1x32xf32>, vector<32x32xf32>, vector<1x32xf32> -> vector<1x32xf32>
    %8 = vector.broadcast %7 : vector<1x32xf32> to vector<64x32xf32>
    %9 = arith.subf %1, %8 : vector<64x32xf32>
    %10 = arith.mulf %9, %9 : vector<64x32xf32>
    %cst_8 = arith.constant dense<0.000000e+00> : vector<32xf32>
    %11 = vector.multi_reduction <add>, %10, %cst_8 [0] : vector<64x32xf32> to vector<32xf32>
    %12 = vector.shape_cast %11 : vector<32xf32> to vector<1x32xf32>
    %cst_9 = arith.constant dense<0.000000e+00> : vector<1x32xf32>
    %13 = tpu.matmul %12, %2, %cst_9 {dimension_numbers = #tpu.dot_dimension_numbers<[1], [0], [0], [1], [0, 0, 1, 1], [], []>} : vector<1x32xf32>, vector<32x32xf32>, vector<1x32xf32> -> vector<1x32xf32>
    %cst_10 = arith.constant 9.99999997E-7 : f32
    %14 = vector.broadcast %cst_10 : f32 to vector<1x32xf32>
    %15 = arith.addf %13, %14 : vector<1x32xf32>
    %16 = math.rsqrt %15 : vector<1x32xf32>
    %17 = arith.mulf %16, %3 : vector<1x32xf32>
    %18 = vector.broadcast %17 : vector<1x32xf32> to vector<64x32xf32>
    %19 = arith.mulf %9, %18 : vector<64x32xf32>
    %20 = vector.broadcast %4 : vector<1x32xf32> to vector<64x32xf32>
    %21 = arith.addf %19, %20 : vector<64x32xf32>
    %c0_11 = arith.constant 0 : index
    %c0_12 = arith.constant 0 : index
    %22 = vector.load %arg4[%c0_11, %c0_12] : memref<32x96xf32, #tpu.memory_space<vmem>>, vector<32x96xf32>
    %cst_13 = arith.constant dense<0.000000e+00> : vector<64x96xf32>
    %23 = tpu.matmul %21, %22, %cst_13 {dimension_numbers = #tpu.dot_dimension_numbers<[1], [0], [0], [1], [0, 0, 1, 1], [], []>} : vector<64x32xf32>, vector<32x96xf32>, vector<64x96xf32> -> vector<64x96xf32>
    %c0_14 = arith.constant 0 : index
    %c0_15 = arith.constant 0 : index
    %24 = vector.load %arg5[%c0_14, %c0_15] : memref<1x96xf32, #tpu.memory_space<vmem>>, vector<1x96xf32>
    %25 = vector.broadcast %24 : vector<1x96xf32> to vector<64x96xf32>
    %26 = arith.addf %23, %25 : vector<64x96xf32>
    %27 = vector.extract_strided_slice %26 {offsets = [0, 0], sizes = [64, 32], strides = [1, 1]} : vector<64x96xf32> to vector<64x32xf32>
    %28 = vector.extract_strided_slice %26 {offsets = [0, 32], sizes = [64, 32], strides = [1, 1]} : vector<64x96xf32> to vector<64x32xf32>
    %29 = vector.extract_strided_slice %26 {offsets = [0, 64], sizes = [64, 32], strides = [1, 1]} : vector<64x96xf32> to vector<64x32xf32>
    %cst_16 = arith.constant dense<0.000000e+00> : vector<64x64xf32>
    %30 = tpu.matmul %27, %28, %cst_16 {dimension_numbers = #tpu.dot_dimension_numbers<[1], [1], [0], [0], [0, 0, 1, 0], [], []>} : vector<64x32xf32>, vector<64x32xf32>, vector<64x64xf32> -> vector<64x64xf32>
    %cst_17 = arith.constant 0.176776692 : f32
    %31 = vector.broadcast %cst_17 : f32 to vector<64x64xf32>
    %32 = arith.mulf %30, %31 : vector<64x64xf32>
    %cst_18 = arith.constant dense<0xFF800000> : vector<64xf32>
    %33 = vector.multi_reduction <maximumf>, %32, %cst_18 [1] : vector<64x64xf32> to vector<64xf32>
    %34 = vector.shape_cast %33 : vector<64xf32> to vector<64x1xf32>
    %35 = vector.broadcast %34 : vector<64x1xf32> to vector<64x64xf32>
    %36 = arith.subf %32, %35 : vector<64x64xf32>
    %37 = math.exp %36 : vector<64x64xf32>
    %cst_19 = arith.constant dense<0.000000e+00> : vector<64xf32>
    %38 = vector.multi_reduction <add>, %37, %cst_19 [1] : vector<64x64xf32> to vector<64xf32>
    %39 = vector.shape_cast %38 : vector<64xf32> to vector<64x1xf32>
    %40 = tpu.reciprocal %39 {approx = true} : vector<64x1xf32> -> vector<64x1xf32>
    %41 = vector.broadcast %40 : vector<64x1xf32> to vector<64x64xf32>
    %42 = arith.mulf %37, %41 : vector<64x64xf32>
    %cst_20 = arith.constant dense<0.000000e+00> : vector<64x32xf32>
    %43 = tpu.matmul %42, %29, %cst_20 {dimension_numbers = #tpu.dot_dimension_numbers<[1], [0], [0], [1], [0, 0, 1, 1], [], []>} : vector<64x64xf32>, vector<64x32xf32>, vector<64x32xf32> -> vector<64x32xf32>
    %c0_21 = arith.constant 0 : index
    %c0_22 = arith.constant 0 : index
    %44 = vector.load %arg6[%c0_21, %c0_22] : memref<32x32xf32, #tpu.memory_space<vmem>>, vector<32x32xf32>
    %cst_23 = arith.constant dense<0.000000e+00> : vector<64x32xf32>
    %45 = tpu.matmul %43, %44, %cst_23 {dimension_numbers = #tpu.dot_dimension_numbers<[1], [0], [0], [1], [0, 0, 1, 1], [], []>} : vector<64x32xf32>, vector<32x32xf32>, vector<64x32xf32> -> vector<64x32xf32>
    %c0_24 = arith.constant 0 : index
    %c0_25 = arith.constant 0 : index
    %46 = vector.load %arg7[%c0_24, %c0_25] : memref<1x32xf32, #tpu.memory_space<vmem>>, vector<1x32xf32>
    %47 = vector.broadcast %46 : vector<1x32xf32> to vector<64x32xf32>
    %48 = arith.addf %45, %47 : vector<64x32xf32>
    %49 = arith.addf %48, %1 : vector<64x32xf32>
    %c0_26 = arith.constant 0 : index
    %c0_27 = arith.constant 0 : index
    %c0_28 = arith.constant 0 : index
    %50 = vector.load %arg8[%c0_26, %c0_27, %c0_28] : memref<1x64x32xf32, #tpu.memory_space<vmem>>, vector<1x64x32xf32>
    %51 = vector.shape_cast %50 : vector<1x64x32xf32> to vector<64x32xf32>
    %52 = vector.shape_cast %49 : vector<64x32xf32> to vector<1x64x32xf32>
    tpu.vector_store %arg8[%c0_26, %c0_27, %c0_28], %52 {strides = array<i32>} : memref<1x64x32xf32, #tpu.memory_space<vmem>>, vector<1x64x32xf32>,
    return
  }
  func.func @transform_0(%arg0: i32) -> (i32, i32, i32) {
    %c0_i32 = arith.constant 0 : i32
    %c0_i32_0 = arith.constant 0 : i32
    %c0_i32_1 = arith.constant 0 : i32
    return %arg0, %c0_i32, %c0_i32_0 : i32, i32, i32
  }
  func.func @transform_1(%arg0: i32) -> (i32, i32) {
    %c0_i32 = arith.constant 0 : i32
    %c0_i32_0 = arith.constant 0 : i32
    %c0_i32_1 = arith.constant 0 : i32
    return %c0_i32, %c0_i32_0 : i32, i32
  }
  func.func @transform_2(%arg0: i32) -> (i32, i32) {
    %c0_i32 = arith.constant 0 : i32
    %c0_i32_0 = arith.constant 0 : i32
    %c0_i32_1 = arith.constant 0 : i32
    return %c0_i32, %c0_i32_0 : i32, i32
  }
  func.func @transform_3(%arg0: i32) -> (i32, i32) {
    %c0_i32 = arith.constant 0 : i32
    %c0_i32_0 = arith.constant 0 : i32
    %c0_i32_1 = arith.constant 0 : i32
    return %c0_i32, %c0_i32_0 : i32, i32
  }
  func.func @transform_4(%arg0: i32) -> (i32, i32) {
    %c0_i32 = arith.constant 0 : i32
    %c0_i32_0 = arith.constant 0 : i32
    %c0_i32_1 = arith.constant 0 : i32
    return %c0_i32, %c0_i32_0 : i32, i32
  }
  func.func @transform_5(%arg0: i32) -> (i32, i32) {
    %c0_i32 = arith.constant 0 : i32
    %c0_i32_0 = arith.constant 0 : i32
    %c0_i32_1 = arith.constant 0 : i32
    return %c0_i32, %c0_i32_0 : i32, i32
  }
  func.func @transform_6(%arg0: i32) -> (i32, i32) {
    %c0_i32 = arith.constant 0 : i32
    %c0_i32_0 = arith.constant 0 : i32
    %c0_i32_1 = arith.constant 0 : i32
    return %c0_i32, %c0_i32_0 : i32, i32
  }
  func.func @transform_7(%arg0: i32) -> (i32, i32, i32) {
    %c0_i32 = arith.constant 0 : i32
    %c0_i32_0 = arith.constant 0 : i32
    %c0_i32_1 = arith.constant 0 : i32
    return %arg0, %c0_i32, %c0_i32_0 : i32, i32, i32
  }
}

module attributes {stable_mosaic.version = 11 : i64} {
  func.func @_resnet_kernel(%arg0: i32, %arg1: memref<1x64x32xf32, #tpu.memory_space<vmem>>, %arg2: memref<1x64x32xf32, #tpu.memory_space<vmem>>, %arg3: memref<1x1x128xf32, #tpu.memory_space<vmem>>, %arg4: memref<64x64xf32, #tpu.memory_space<vmem>>, %arg5: memref<2x64xf32, #tpu.memory_space<vmem>>, %arg6: memref<9x64x32xf32, #tpu.memory_space<vmem>>, %arg7: memref<1x32xf32, #tpu.memory_space<vmem>>, %arg8: memref<128x32xf32, #tpu.memory_space<vmem>>, %arg9: memref<32x32xf32, #tpu.memory_space<vmem>>, %arg10: memref<2x32xf32, #tpu.memory_space<vmem>>, %arg11: memref<9x32x32xf32, #tpu.memory_space<vmem>>, %arg12: memref<1x32xf32, #tpu.memory_space<vmem>>, %arg13: memref<64x32xf32, #tpu.memory_space<vmem>>, %arg14: memref<1x32xf32, #tpu.memory_space<vmem>>, %arg15: memref<1x64x32xf32, #tpu.memory_space<vmem>>, %arg16: memref<96x64xf32, #tpu.memory_space<vmem>>, %arg17: memref<96x32xf32, #tpu.memory_space<vmem>>) attributes {dimension_semantics = [#tpu.dimension_semantics<parallel>], iteration_bounds = array<i64: 2>, scalar_prefetch = 0 : i64, scratch_operands = 2 : i64, tpu.core_type = #tpu.core_type<tc>, window_params = [{transform_indices = @transform_0, window_bounds = array<i64: 1, 64, 32>}, {transform_indices = @transform_1, window_bounds = array<i64: 1, 64, 32>}, {transform_indices = @transform_2, window_bounds = array<i64: 1, 1, 128>}, {pipeline_mode = #tpu.pipeline_mode<synchronous>, transform_indices = @transform_3, window_bounds = array<i64: 64, 64>}, {pipeline_mode = #tpu.pipeline_mode<synchronous>, transform_indices = @transform_4, window_bounds = array<i64: 2, 64>}, {pipeline_mode = #tpu.pipeline_mode<synchronous>, transform_indices = @transform_5, window_bounds = array<i64: 9, 64, 32>}, {pipeline_mode = #tpu.pipeline_mode<synchronous>, transform_indices = @transform_6, window_bounds = array<i64: 1, 32>}, {pipeline_mode = #tpu.pipeline_mode<synchronous>, transform_indices = @transform_7, window_bounds = array<i64: 128, 32>}, {pipeline_mode = #tpu.pipeline_mode<synchronous>, transform_indices = @transform_8, window_bounds = array<i64: 32, 32>}, {pipeline_mode = #tpu.pipeline_mode<synchronous>, transform_indices = @transform_9, window_bounds = array<i64: 2, 32>}, {pipeline_mode = #tpu.pipeline_mode<synchronous>, transform_indices = @transform_10, window_bounds = array<i64: 9, 32, 32>}, {pipeline_mode = #tpu.pipeline_mode<synchronous>, transform_indices = @transform_11, window_bounds = array<i64: 1, 32>}, {pipeline_mode = #tpu.pipeline_mode<synchronous>, transform_indices = @transform_12, window_bounds = array<i64: 64, 32>}, {pipeline_mode = #tpu.pipeline_mode<synchronous>, transform_indices = @transform_13, window_bounds = array<i64: 1, 32>}, {transform_indices = @transform_14, window_bounds = array<i64: 1, 64, 32>}]} {
    %0 = tpu.iota {dimensions = array<i32: 0>} : vector<64x1xi32>
    %c8_i32 = arith.constant 8 : i32
    %c0_i32 = arith.constant 0 : i32
    %1 = arith.cmpi eq, %c8_i32, %c0_i32 : i32
    %c1_i32 = arith.constant 1 : i32
    %2 = arith.select %1, %c1_i32, %c8_i32 : i32
    %3 = vector.broadcast %2 : i32 to vector<64x1xi32>
    %4 = arith.remsi %0, %3 : vector<64x1xi32>
    %c0_i32_0 = arith.constant 0 : i32
    %5 = vector.broadcast %c0_i32_0 : i32 to vector<64x1xi32>
    %6 = arith.cmpi ne, %4, %5 : vector<64x1xi32>
    %c0_i32_1 = arith.constant 0 : i32
    %7 = vector.broadcast %c0_i32_1 : i32 to vector<64x1xi32>
    %8 = arith.cmpi slt, %4, %7 : vector<64x1xi32>
    %c0_i32_2 = arith.constant 0 : i32
    %9 = arith.cmpi slt, %2, %c0_i32_2 : i32
    %10 = vector.broadcast %9 : i1 to vector<64x1xi1>
    %11 = vector.broadcast %10 : vector<64x1xi1> to vector<64x1xi1>
    %12 = arith.xori %8, %11 : vector<64x1xi1>
    %13 = arith.andi %12, %6 : vector<64x1xi1>
    %14 = vector.broadcast %2 : i32 to vector<64x1xi32>
    %15 = arith.addi %4, %14 : vector<64x1xi32>
    %16 = arith.select %13, %15, %4 : vector<64x1xi1>, vector<64x1xi32>
    %c1_i32_3 = arith.constant 1 : i32
    %17 = vector.broadcast %c1_i32_3 : i32 to vector<64x1xi32>
    %18 = arith.cmpi sge, %16, %17 : vector<64x1xi32>
    %19 = arith.extui %18 : vector<64x1xi1> to vector<64x1xi32>
    %20 = arith.sitofp %19 : vector<64x1xi32> to vector<64x1xf32>
    %c6_i32 = arith.constant 6 : i32
    %21 = vector.broadcast %c6_i32 : i32 to vector<64x1xi32>
    %22 = arith.cmpi sle, %16, %21 : vector<64x1xi32>
    %23 = arith.extui %22 : vector<64x1xi1> to vector<64x1xi32>
    %24 = arith.sitofp %23 : vector<64x1xi32> to vector<64x1xf32>
    %c0 = arith.constant 0 : index
    %c0_4 = arith.constant 0 : index
    %c0_5 = arith.constant 0 : index
    %25 = vector.load %arg1[%c0, %c0_4, %c0_5] : memref<1x64x32xf32, #tpu.memory_space<vmem>>, vector<1x64x32xf32>
    %26 = vector.shape_cast %25 : vector<1x64x32xf32> to vector<64x32xf32>
    %c0_6 = arith.constant 0 : index
    %c0_7 = arith.constant 0 : index
    %c0_8 = arith.constant 0 : index
    %27 = vector.load %arg2[%c0_6, %c0_7, %c0_8] : memref<1x64x32xf32, #tpu.memory_space<vmem>>, vector<1x64x32xf32>
    %28 = vector.shape_cast %27 : vector<1x64x32xf32> to vector<64x32xf32>
    %29 = tpu.concatenate %26, %28 in 1 : vector<64x32xf32>, vector<64x32xf32> -> vector<64x64xf32>
    %c0_9 = arith.constant 0 : index
    %c0_10 = arith.constant 0 : index
    %30 = vector.load %arg4[%c0_9, %c0_10] : memref<64x64xf32, #tpu.memory_space<vmem>>, vector<64x64xf32>
    %c0_11 = arith.constant 0 : index
    %c0_12 = arith.constant 0 : index
    %31 = vector.load %arg5[%c0_11, %c0_12] : memref<2x64xf32, #tpu.memory_space<vmem>>, vector<1x64xf32>
    %c1 = arith.constant 1 : index
    %c0_13 = arith.constant 0 : index
    %32 = vector.load %arg5[%c1, %c0_13] : memref<2x64xf32, #tpu.memory_space<vmem>>, vector<1x64xf32>
    %cst = arith.constant dense<0.000000e+00> : vector<64xf32>
    %33 = vector.multi_reduction <add>, %29, %cst [0] : vector<64x64xf32> to vector<64xf32>
    %34 = vector.shape_cast %33 : vector<64xf32> to vector<1x64xf32>
    %cst_14 = arith.constant dense<0.000000e+00> : vector<1x64xf32>
    %35 = tpu.matmul %34, %30, %cst_14 {dimension_numbers = #tpu.dot_dimension_numbers<[1], [0], [0], [1], [0, 0, 1, 1], [], []>} : vector<1x64xf32>, vector<64x64xf32>, vector<1x64xf32> -> vector<1x64xf32>
    %36 = vector.broadcast %35 : vector<1x64xf32> to vector<64x64xf32>
    %37 = arith.subf %29, %36 : vector<64x64xf32>
    %38 = arith.mulf %37, %37 : vector<64x64xf32>
    %cst_15 = arith.constant dense<0.000000e+00> : vector<64xf32>
    %39 = vector.multi_reduction <add>, %38, %cst_15 [0] : vector<64x64xf32> to vector<64xf32>
    %40 = vector.shape_cast %39 : vector<64xf32> to vector<1x64xf32>
    %cst_16 = arith.constant dense<0.000000e+00> : vector<1x64xf32>
    %41 = tpu.matmul %40, %30, %cst_16 {dimension_numbers = #tpu.dot_dimension_numbers<[1], [0], [0], [1], [0, 0, 1, 1], [], []>} : vector<1x64xf32>, vector<64x64xf32>, vector<1x64xf32> -> vector<1x64xf32>
    %cst_17 = arith.constant 9.99999997E-7 : f32
    %42 = vector.broadcast %cst_17 : f32 to vector<1x64xf32>
    %43 = arith.addf %41, %42 : vector<1x64xf32>
    %44 = math.rsqrt %43 : vector<1x64xf32>
    %45 = arith.mulf %44, %31 : vector<1x64xf32>
    %46 = vector.broadcast %45 : vector<1x64xf32> to vector<64x64xf32>
    %47 = arith.mulf %37, %46 : vector<64x64xf32>
    %48 = vector.broadcast %32 : vector<1x64xf32> to vector<64x64xf32>
    %49 = arith.addf %47, %48 : vector<64x64xf32>
    %cst_18 = arith.constant 0.000000e+00 : f32
    %50 = vector.broadcast %cst_18 : f32 to vector<64x64xf32>
    %51 = arith.subf %50, %49 : vector<64x64xf32>
    %52 = math.exp %51 : vector<64x64xf32>
    %cst_19 = arith.constant 1.000000e+00 : f32
    %53 = vector.broadcast %cst_19 : f32 to vector<64x64xf32>
    %54 = arith.addf %53, %52 : vector<64x64xf32>
    %cst_20 = arith.constant 1.000000e+00 : f32
    %55 = vector.broadcast %cst_20 : f32 to vector<64x64xf32>
    %56 = arith.divf %55, %54 : vector<64x64xf32>
    %57 = arith.mulf %49, %56 : vector<64x64xf32>
    %c0_21 = arith.constant 0 : index
    %c0_22 = arith.constant 0 : index
    %58 = vector.load %arg7[%c0_21, %c0_22] : memref<1x32xf32, #tpu.memory_space<vmem>>, vector<1x32xf32>
    %cst_23 = arith.constant 0.000000e+00 : f32
    %59 = vector.broadcast %cst_23 : f32 to vector<96x64xf32>
    %c0_24 = arith.constant 0 : index
    %c0_25 = arith.constant 0 : index
    %60 = vector.load %arg16[%c0_24, %c0_25] : memref<96x64xf32, #tpu.memory_space<vmem>>, vector<96x64xf32>
    tpu.vector_store %arg16[%c0_24, %c0_25], %59 {strides = array<i32>} : memref<96x64xf32, #tpu.memory_space<vmem>>, vector<96x64xf32>,
    %c16 = arith.constant 16 : index
    %c0_26 = arith.constant 0 : index
    %61 = vector.load %arg16[%c16, %c0_26] : memref<96x64xf32, #tpu.memory_space<vmem>>, vector<64x64xf32>
    tpu.vector_store %arg16[%c16, %c0_26], %57 {strides = array<i32>} : memref<96x64xf32, #tpu.memory_space<vmem>>, vector<64x64xf32>,
    %62 = vector.shape_cast %58 : vector<1x32xf32> to vector<1x32xf32>
    %63 = vector.broadcast %62 : vector<1x32xf32> to vector<64x32xf32>
    %c7 = arith.constant 7 : index
    %c0_27 = arith.constant 0 : index
    %64 = vector.load %arg16[%c7, %c0_27] : memref<96x64xf32, #tpu.memory_space<vmem>>, vector<64x64xf32>
    %65 = vector.broadcast %20 : vector<64x1xf32> to vector<64x64xf32>
    %66 = arith.mulf %64, %65 : vector<64x64xf32>
    %c0_28 = arith.constant 0 : index
    %c0_29 = arith.constant 0 : index
    %c0_30 = arith.constant 0 : index
    %67 = vector.load %arg6[%c0_28, %c0_29, %c0_30] : memref<9x64x32xf32, #tpu.memory_space<vmem>>, vector<1x64x32xf32>
    %68 = vector.shape_cast %67 : vector<1x64x32xf32> to vector<64x32xf32>
    %cst_31 = arith.constant dense<0.000000e+00> : vector<64x32xf32>
    %69 = tpu.matmul %66, %68, %cst_31 {dimension_numbers = #tpu.dot_dimension_numbers<[1], [0], [0], [1], [0, 0, 1, 1], [], []>} : vector<64x64xf32>, vector<64x32xf32>, vector<64x32xf32> -> vector<64x32xf32>
    %70 = arith.addf %63, %69 : vector<64x32xf32>
    %c8 = arith.constant 8 : index
    %c0_32 = arith.constant 0 : index
    %71 = vector.load %arg16[%c8, %c0_32] : memref<96x64xf32, #tpu.memory_space<vmem>>, vector<64x64xf32>
    %c1_33 = arith.constant 1 : index
    %c0_34 = arith.constant 0 : index
    %c0_35 = arith.constant 0 : index
    %72 = vector.load %arg6[%c1_33, %c0_34, %c0_35] : memref<9x64x32xf32, #tpu.memory_space<vmem>>, vector<1x64x32xf32>
    %73 = vector.shape_cast %72 : vector<1x64x32xf32> to vector<64x32xf32>
    %cst_36 = arith.constant dense<0.000000e+00> : vector<64x32xf32>
    %74 = tpu.matmul %71, %73, %cst_36 {dimension_numbers = #tpu.dot_dimension_numbers<[1], [0], [0], [1], [0, 0, 1, 1], [], []>} : vector<64x64xf32>, vector<64x32xf32>, vector<64x32xf32> -> vector<64x32xf32>
    %75 = arith.addf %70, %74 : vector<64x32xf32>
    %c9 = arith.constant 9 : index
    %c0_37 = arith.constant 0 : index
    %76 = vector.load %arg16[%c9, %c0_37] : memref<96x64xf32, #tpu.memory_space<vmem>>, vector<64x64xf32>
    %77 = vector.broadcast %24 : vector<64x1xf32> to vector<64x64xf32>
    %78 = arith.mulf %76, %77 : vector<64x64xf32>
    %c2 = arith.constant 2 : index
    %c0_38 = arith.constant 0 : index
    %c0_39 = arith.constant 0 : index
    %79 = vector.load %arg6[%c2, %c0_38, %c0_39] : memref<9x64x32xf32, #tpu.memory_space<vmem>>, vector<1x64x32xf32>
    %80 = vector.shape_cast %79 : vector<1x64x32xf32> to vector<64x32xf32>
    %cst_40 = arith.constant dense<0.000000e+00> : vector<64x32xf32>
    %81 = tpu.matmul %78, %80, %cst_40 {dimension_numbers = #tpu.dot_dimension_numbers<[1], [0], [0], [1], [0, 0, 1, 1], [], []>} : vector<64x64xf32>, vector<64x32xf32>, vector<64x32xf32> -> vector<64x32xf32>
    %82 = arith.addf %75, %81 : vector<64x32xf32>
    %c15 = arith.constant 15 : index
    %c0_41 = arith.constant 0 : index
    %83 = vector.load %arg16[%c15, %c0_41] : memref<96x64xf32, #tpu.memory_space<vmem>>, vector<64x64xf32>
    %84 = vector.broadcast %20 : vector<64x1xf32> to vector<64x64xf32>
    %85 = arith.mulf %83, %84 : vector<64x64xf32>
    %c3 = arith.constant 3 : index
    %c0_42 = arith.constant 0 : index
    %c0_43 = arith.constant 0 : index
    %86 = vector.load %arg6[%c3, %c0_42, %c0_43] : memref<9x64x32xf32, #tpu.memory_space<vmem>>, vector<1x64x32xf32>
    %87 = vector.shape_cast %86 : vector<1x64x32xf32> to vector<64x32xf32>
    %cst_44 = arith.constant dense<0.000000e+00> : vector<64x32xf32>
    %88 = tpu.matmul %85, %87, %cst_44 {dimension_numbers = #tpu.dot_dimension_numbers<[1], [0], [0], [1], [0, 0, 1, 1], [], []>} : vector<64x64xf32>, vector<64x32xf32>, vector<64x32xf32> -> vector<64x32xf32>
    %89 = arith.addf %82, %88 : vector<64x32xf32>
    %c16_45 = arith.constant 16 : index
    %c0_46 = arith.constant 0 : index
    %90 = vector.load %arg16[%c16_45, %c0_46] : memref<96x64xf32, #tpu.memory_space<vmem>>, vector<64x64xf32>
    %c4 = arith.constant 4 : index
    %c0_47 = arith.constant 0 : index
    %c0_48 = arith.constant 0 : index
    %91 = vector.load %arg6[%c4, %c0_47, %c0_48] : memref<9x64x32xf32, #tpu.memory_space<vmem>>, vector<1x64x32xf32>
    %92 = vector.shape_cast %91 : vector<1x64x32xf32> to vector<64x32xf32>
    %cst_49 = arith.constant dense<0.000000e+00> : vector<64x32xf32>
    %93 = tpu.matmul %90, %92, %cst_49 {dimension_numbers = #tpu.dot_dimension_numbers<[1], [0], [0], [1], [0, 0, 1, 1], [], []>} : vector<64x64xf32>, vector<64x32xf32>, vector<64x32xf32> -> vector<64x32xf32>
    %94 = arith.addf %89, %93 : vector<64x32xf32>
    %c17 = arith.constant 17 : index
    %c0_50 = arith.constant 0 : index
    %95 = vector.load %arg16[%c17, %c0_50] : memref<96x64xf32, #tpu.memory_space<vmem>>, vector<64x64xf32>
    %96 = vector.broadcast %24 : vector<64x1xf32> to vector<64x64xf32>
    %97 = arith.mulf %95, %96 : vector<64x64xf32>
    %c5 = arith.constant 5 : index
    %c0_51 = arith.constant 0 : index
    %c0_52 = arith.constant 0 : index
    %98 = vector.load %arg6[%c5, %c0_51, %c0_52] : memref<9x64x32xf32, #tpu.memory_space<vmem>>, vector<1x64x32xf32>
    %99 = vector.shape_cast %98 : vector<1x64x32xf32> to vector<64x32xf32>
    %cst_53 = arith.constant dense<0.000000e+00> : vector<64x32xf32>
    %100 = tpu.matmul %97, %99, %cst_53 {dimension_numbers = #tpu.dot_dimension_numbers<[1], [0], [0], [1], [0, 0, 1, 1], [], []>} : vector<64x64xf32>, vector<64x32xf32>, vector<64x32xf32> -> vector<64x32xf32>
    %101 = arith.addf %94, %100 : vector<64x32xf32>
    %c23 = arith.constant 23 : index
    %c0_54 = arith.constant 0 : index
    %102 = vector.load %arg16[%c23, %c0_54] : memref<96x64xf32, #tpu.memory_space<vmem>>, vector<64x64xf32>
    %103 = vector.broadcast %20 : vector<64x1xf32> to vector<64x64xf32>
    %104 = arith.mulf %102, %103 : vector<64x64xf32>
    %c6 = arith.constant 6 : index
    %c0_55 = arith.constant 0 : index
    %c0_56 = arith.constant 0 : index
    %105 = vector.load %arg6[%c6, %c0_55, %c0_56] : memref<9x64x32xf32, #tpu.memory_space<vmem>>, vector<1x64x32xf32>
    %106 = vector.shape_cast %105 : vector<1x64x32xf32> to vector<64x32xf32>
    %cst_57 = arith.constant dense<0.000000e+00> : vector<64x32xf32>
    %107 = tpu.matmul %104, %106, %cst_57 {dimension_numbers = #tpu.dot_dimension_numbers<[1], [0], [0], [1], [0, 0, 1, 1], [], []>} : vector<64x64xf32>, vector<64x32xf32>, vector<64x32xf32> -> vector<64x32xf32>
    %108 = arith.addf %101, %107 : vector<64x32xf32>
    %c24 = arith.constant 24 : index
    %c0_58 = arith.constant 0 : index
    %109 = vector.load %arg16[%c24, %c0_58] : memref<96x64xf32, #tpu.memory_space<vmem>>, vector<64x64xf32>
    %c7_59 = arith.constant 7 : index
    %c0_60 = arith.constant 0 : index
    %c0_61 = arith.constant 0 : index
    %110 = vector.load %arg6[%c7_59, %c0_60, %c0_61] : memref<9x64x32xf32, #tpu.memory_space<vmem>>, vector<1x64x32xf32>
    %111 = vector.shape_cast %110 : vector<1x64x32xf32> to vector<64x32xf32>
    %cst_62 = arith.constant dense<0.000000e+00> : vector<64x32xf32>
    %112 = tpu.matmul %109, %111, %cst_62 {dimension_numbers = #tpu.dot_dimension_numbers<[1], [0], [0], [1], [0, 0, 1, 1], [], []>} : vector<64x64xf32>, vector<64x32xf32>, vector<64x32xf32> -> vector<64x32xf32>
    %113 = arith.addf %108, %112 : vector<64x32xf32>
    %c25 = arith.constant 25 : index
    %c0_63 = arith.constant 0 : index
    %114 = vector.load %arg16[%c25, %c0_63] : memref<96x64xf32, #tpu.memory_space<vmem>>, vector<64x64xf32>
    %115 = vector.broadcast %24 : vector<64x1xf32> to vector<64x64xf32>
    %116 = arith.mulf %114, %115 : vector<64x64xf32>
    %c8_64 = arith.constant 8 : index
    %c0_65 = arith.constant 0 : index
    %c0_66 = arith.constant 0 : index
    %117 = vector.load %arg6[%c8_64, %c0_65, %c0_66] : memref<9x64x32xf32, #tpu.memory_space<vmem>>, vector<1x64x32xf32>
    %118 = vector.shape_cast %117 : vector<1x64x32xf32> to vector<64x32xf32>
    %cst_67 = arith.constant dense<0.000000e+00> : vector<64x32xf32>
    %119 = tpu.matmul %116, %118, %cst_67 {dimension_numbers = #tpu.dot_dimension_numbers<[1], [0], [0], [1], [0, 0, 1, 1], [], []>} : vector<64x64xf32>, vector<64x32xf32>, vector<64x32xf32> -> vector<64x32xf32>
    %120 = arith.addf %113, %119 : vector<64x32xf32>
    %c0_68 = arith.constant 0 : index
    %c0_69 = arith.constant 0 : index
    %c0_70 = arith.constant 0 : index
    %121 = vector.load %arg3[%c0_68, %c0_69, %c0_70] : memref<1x1x128xf32, #tpu.memory_space<vmem>>, vector<1x1x128xf32>
    %122 = vector.shape_cast %121 : vector<1x1x128xf32> to vector<1x128xf32>
    %c0_71 = arith.constant 0 : index
    %c0_72 = arith.constant 0 : index
    %123 = vector.load %arg8[%c0_71, %c0_72] : memref<128x32xf32, #tpu.memory_space<vmem>>, vector<128x32xf32>
    %cst_73 = arith.constant dense<0.000000e+00> : vector<1x32xf32>
    %124 = tpu.matmul %122, %123, %cst_73 {dimension_numbers = #tpu.dot_dimension_numbers<[1], [0], [0], [1], [0, 0, 1, 1], [], []>} : vector<1x128xf32>, vector<128x32xf32>, vector<1x32xf32> -> vector<1x32xf32>
    %125 = vector.broadcast %124 : vector<1x32xf32> to vector<64x32xf32>
    %126 = arith.addf %120, %125 : vector<64x32xf32>
    %c0_74 = arith.constant 0 : index
    %c0_75 = arith.constant 0 : index
    %127 = vector.load %arg9[%c0_74, %c0_75] : memref<32x32xf32, #tpu.memory_space<vmem>>, vector<32x32xf32>
    %c0_76 = arith.constant 0 : index
    %c0_77 = arith.constant 0 : index
    %128 = vector.load %arg10[%c0_76, %c0_77] : memref<2x32xf32, #tpu.memory_space<vmem>>, vector<1x32xf32>
    %c1_78 = arith.constant 1 : index
    %c0_79 = arith.constant 0 : index
    %129 = vector.load %arg10[%c1_78, %c0_79] : memref<2x32xf32, #tpu.memory_space<vmem>>, vector<1x32xf32>
    %cst_80 = arith.constant dense<0.000000e+00> : vector<32xf32>
    %130 = vector.multi_reduction <add>, %126, %cst_80 [0] : vector<64x32xf32> to vector<32xf32>
    %131 = vector.shape_cast %130 : vector<32xf32> to vector<1x32xf32>
    %cst_81 = arith.constant dense<0.000000e+00> : vector<1x32xf32>
    %132 = tpu.matmul %131, %127, %cst_81 {dimension_numbers = #tpu.dot_dimension_numbers<[1], [0], [0], [1], [0, 0, 1, 1], [], []>} : vector<1x32xf32>, vector<32x32xf32>, vector<1x32xf32> -> vector<1x32xf32>
    %133 = vector.broadcast %132 : vector<1x32xf32> to vector<64x32xf32>
    %134 = arith.subf %126, %133 : vector<64x32xf32>
    %135 = arith.mulf %134, %134 : vector<64x32xf32>
    %cst_82 = arith.constant dense<0.000000e+00> : vector<32xf32>
    %136 = vector.multi_reduction <add>, %135, %cst_82 [0] : vector<64x32xf32> to vector<32xf32>
    %137 = vector.shape_cast %136 : vector<32xf32> to vector<1x32xf32>
    %cst_83 = arith.constant dense<0.000000e+00> : vector<1x32xf32>
    %138 = tpu.matmul %137, %127, %cst_83 {dimension_numbers = #tpu.dot_dimension_numbers<[1], [0], [0], [1], [0, 0, 1, 1], [], []>} : vector<1x32xf32>, vector<32x32xf32>, vector<1x32xf32> -> vector<1x32xf32>
    %cst_84 = arith.constant 9.99999997E-7 : f32
    %139 = vector.broadcast %cst_84 : f32 to vector<1x32xf32>
    %140 = arith.addf %138, %139 : vector<1x32xf32>
    %141 = math.rsqrt %140 : vector<1x32xf32>
    %142 = arith.mulf %141, %128 : vector<1x32xf32>
    %143 = vector.broadcast %142 : vector<1x32xf32> to vector<64x32xf32>
    %144 = arith.mulf %134, %143 : vector<64x32xf32>
    %145 = vector.broadcast %129 : vector<1x32xf32> to vector<64x32xf32>
    %146 = arith.addf %144, %145 : vector<64x32xf32>
    %cst_85 = arith.constant 0.000000e+00 : f32
    %147 = vector.broadcast %cst_85 : f32 to vector<64x32xf32>
    %148 = arith.subf %147, %146 : vector<64x32xf32>
    %149 = math.exp %148 : vector<64x32xf32>
    %cst_86 = arith.constant 1.000000e+00 : f32
    %150 = vector.broadcast %cst_86 : f32 to vector<64x32xf32>
    %151 = arith.addf %150, %149 : vector<64x32xf32>
    %cst_87 = arith.constant 1.000000e+00 : f32
    %152 = vector.broadcast %cst_87 : f32 to vector<64x32xf32>
    %153 = arith.divf %152, %151 : vector<64x32xf32>
    %154 = arith.mulf %146, %153 : vector<64x32xf32>
    %c0_88 = arith.constant 0 : index
    %c0_89 = arith.constant 0 : index
    %155 = vector.load %arg12[%c0_88, %c0_89] : memref<1x32xf32, #tpu.memory_space<vmem>>, vector<1x32xf32>
    %cst_90 = arith.constant 0.000000e+00 : f32
    %156 = vector.broadcast %cst_90 : f32 to vector<96x32xf32>
    %c0_91 = arith.constant 0 : index
    %c0_92 = arith.constant 0 : index
    %157 = vector.load %arg17[%c0_91, %c0_92] : memref<96x32xf32, #tpu.memory_space<vmem>>, vector<96x32xf32>
    tpu.vector_store %arg17[%c0_91, %c0_92], %156 {strides = array<i32>} : memref<96x32xf32, #tpu.memory_space<vmem>>, vector<96x32xf32>,
    %c16_93 = arith.constant 16 : index
    %c0_94 = arith.constant 0 : index
    %158 = vector.load %arg17[%c16_93, %c0_94] : memref<96x32xf32, #tpu.memory_space<vmem>>, vector<64x32xf32>
    tpu.vector_store %arg17[%c16_93, %c0_94], %154 {strides = array<i32>} : memref<96x32xf32, #tpu.memory_space<vmem>>, vector<64x32xf32>,
    %159 = vector.shape_cast %155 : vector<1x32xf32> to vector<1x32xf32>
    %160 = vector.broadcast %159 : vector<1x32xf32> to vector<64x32xf32>
    %c7_95 = arith.constant 7 : index
    %c0_96 = arith.constant 0 : index
    %161 = vector.load %arg17[%c7_95, %c0_96] : memref<96x32xf32, #tpu.memory_space<vmem>>, vector<64x32xf32>
    %162 = vector.broadcast %20 : vector<64x1xf32> to vector<64x32xf32>
    %163 = arith.mulf %161, %162 : vector<64x32xf32>
    %c0_97 = arith.constant 0 : index
    %c0_98 = arith.constant 0 : index
    %c0_99 = arith.constant 0 : index
    %164 = vector.load %arg11[%c0_97, %c0_98, %c0_99] : memref<9x32x32xf32, #tpu.memory_space<vmem>>, vector<1x32x32xf32>
    %165 = vector.shape_cast %164 : vector<1x32x32xf32> to vector<32x32xf32>
    %cst_100 = arith.constant dense<0.000000e+00> : vector<64x32xf32>
    %166 = tpu.matmul %163, %165, %cst_100 {dimension_numbers = #tpu.dot_dimension_numbers<[1], [0], [0], [1], [0, 0, 1, 1], [], []>} : vector<64x32xf32>, vector<32x32xf32>, vector<64x32xf32> -> vector<64x32xf32>
    %167 = arith.addf %160, %166 : vector<64x32xf32>
    %c8_101 = arith.constant 8 : index
    %c0_102 = arith.constant 0 : index
    %168 = vector.load %arg17[%c8_101, %c0_102] : memref<96x32xf32, #tpu.memory_space<vmem>>, vector<64x32xf32>
    %c1_103 = arith.constant 1 : index
    %c0_104 = arith.constant 0 : index
    %c0_105 = arith.constant 0 : index
    %169 = vector.load %arg11[%c1_103, %c0_104, %c0_105] : memref<9x32x32xf32, #tpu.memory_space<vmem>>, vector<1x32x32xf32>
    %170 = vector.shape_cast %169 : vector<1x32x32xf32> to vector<32x32xf32>
    %cst_106 = arith.constant dense<0.000000e+00> : vector<64x32xf32>
    %171 = tpu.matmul %168, %170, %cst_106 {dimension_numbers = #tpu.dot_dimension_numbers<[1], [0], [0], [1], [0, 0, 1, 1], [], []>} : vector<64x32xf32>, vector<32x32xf32>, vector<64x32xf32> -> vector<64x32xf32>
    %172 = arith.addf %167, %171 : vector<64x32xf32>
    %c9_107 = arith.constant 9 : index
    %c0_108 = arith.constant 0 : index
    %173 = vector.load %arg17[%c9_107, %c0_108] : memref<96x32xf32, #tpu.memory_space<vmem>>, vector<64x32xf32>
    %174 = vector.broadcast %24 : vector<64x1xf32> to vector<64x32xf32>
    %175 = arith.mulf %173, %174 : vector<64x32xf32>
    %c2_109 = arith.constant 2 : index
    %c0_110 = arith.constant 0 : index
    %c0_111 = arith.constant 0 : index
    %176 = vector.load %arg11[%c2_109, %c0_110, %c0_111] : memref<9x32x32xf32, #tpu.memory_space<vmem>>, vector<1x32x32xf32>
    %177 = vector.shape_cast %176 : vector<1x32x32xf32> to vector<32x32xf32>
    %cst_112 = arith.constant dense<0.000000e+00> : vector<64x32xf32>
    %178 = tpu.matmul %175, %177, %cst_112 {dimension_numbers = #tpu.dot_dimension_numbers<[1], [0], [0], [1], [0, 0, 1, 1], [], []>} : vector<64x32xf32>, vector<32x32xf32>, vector<64x32xf32> -> vector<64x32xf32>
    %179 = arith.addf %172, %178 : vector<64x32xf32>
    %c15_113 = arith.constant 15 : index
    %c0_114 = arith.constant 0 : index
    %180 = vector.load %arg17[%c15_113, %c0_114] : memref<96x32xf32, #tpu.memory_space<vmem>>, vector<64x32xf32>
    %181 = vector.broadcast %20 : vector<64x1xf32> to vector<64x32xf32>
    %182 = arith.mulf %180, %181 : vector<64x32xf32>
    %c3_115 = arith.constant 3 : index
    %c0_116 = arith.constant 0 : index
    %c0_117 = arith.constant 0 : index
    %183 = vector.load %arg11[%c3_115, %c0_116, %c0_117] : memref<9x32x32xf32, #tpu.memory_space<vmem>>, vector<1x32x32xf32>
    %184 = vector.shape_cast %183 : vector<1x32x32xf32> to vector<32x32xf32>
    %cst_118 = arith.constant dense<0.000000e+00> : vector<64x32xf32>
    %185 = tpu.matmul %182, %184, %cst_118 {dimension_numbers = #tpu.dot_dimension_numbers<[1], [0], [0], [1], [0, 0, 1, 1], [], []>} : vector<64x32xf32>, vector<32x32xf32>, vector<64x32xf32> -> vector<64x32xf32>
    %186 = arith.addf %179, %185 : vector<64x32xf32>
    %c16_119 = arith.constant 16 : index
    %c0_120 = arith.constant 0 : index
    %187 = vector.load %arg17[%c16_119, %c0_120] : memref<96x32xf32, #tpu.memory_space<vmem>>, vector<64x32xf32>
    %c4_121 = arith.constant 4 : index
    %c0_122 = arith.constant 0 : index
    %c0_123 = arith.constant 0 : index
    %188 = vector.load %arg11[%c4_121, %c0_122, %c0_123] : memref<9x32x32xf32, #tpu.memory_space<vmem>>, vector<1x32x32xf32>
    %189 = vector.shape_cast %188 : vector<1x32x32xf32> to vector<32x32xf32>
    %cst_124 = arith.constant dense<0.000000e+00> : vector<64x32xf32>
    %190 = tpu.matmul %187, %189, %cst_124 {dimension_numbers = #tpu.dot_dimension_numbers<[1], [0], [0], [1], [0, 0, 1, 1], [], []>} : vector<64x32xf32>, vector<32x32xf32>, vector<64x32xf32> -> vector<64x32xf32>
    %191 = arith.addf %186, %190 : vector<64x32xf32>
    %c17_125 = arith.constant 17 : index
    %c0_126 = arith.constant 0 : index
    %192 = vector.load %arg17[%c17_125, %c0_126] : memref<96x32xf32, #tpu.memory_space<vmem>>, vector<64x32xf32>
    %193 = vector.broadcast %24 : vector<64x1xf32> to vector<64x32xf32>
    %194 = arith.mulf %192, %193 : vector<64x32xf32>
    %c5_127 = arith.constant 5 : index
    %c0_128 = arith.constant 0 : index
    %c0_129 = arith.constant 0 : index
    %195 = vector.load %arg11[%c5_127, %c0_128, %c0_129] : memref<9x32x32xf32, #tpu.memory_space<vmem>>, vector<1x32x32xf32>
    %196 = vector.shape_cast %195 : vector<1x32x32xf32> to vector<32x32xf32>
    %cst_130 = arith.constant dense<0.000000e+00> : vector<64x32xf32>
    %197 = tpu.matmul %194, %196, %cst_130 {dimension_numbers = #tpu.dot_dimension_numbers<[1], [0], [0], [1], [0, 0, 1, 1], [], []>} : vector<64x32xf32>, vector<32x32xf32>, vector<64x32xf32> -> vector<64x32xf32>
    %198 = arith.addf %191, %197 : vector<64x32xf32>
    %c23_131 = arith.constant 23 : index
    %c0_132 = arith.constant 0 : index
    %199 = vector.load %arg17[%c23_131, %c0_132] : memref<96x32xf32, #tpu.memory_space<vmem>>, vector<64x32xf32>
    %200 = vector.broadcast %20 : vector<64x1xf32> to vector<64x32xf32>
    %201 = arith.mulf %199, %200 : vector<64x32xf32>
    %c6_133 = arith.constant 6 : index
    %c0_134 = arith.constant 0 : index
    %c0_135 = arith.constant 0 : index
    %202 = vector.load %arg11[%c6_133, %c0_134, %c0_135] : memref<9x32x32xf32, #tpu.memory_space<vmem>>, vector<1x32x32xf32>
    %203 = vector.shape_cast %202 : vector<1x32x32xf32> to vector<32x32xf32>
    %cst_136 = arith.constant dense<0.000000e+00> : vector<64x32xf32>
    %204 = tpu.matmul %201, %203, %cst_136 {dimension_numbers = #tpu.dot_dimension_numbers<[1], [0], [0], [1], [0, 0, 1, 1], [], []>} : vector<64x32xf32>, vector<32x32xf32>, vector<64x32xf32> -> vector<64x32xf32>
    %205 = arith.addf %198, %204 : vector<64x32xf32>
    %c24_137 = arith.constant 24 : index
    %c0_138 = arith.constant 0 : index
    %206 = vector.load %arg17[%c24_137, %c0_138] : memref<96x32xf32, #tpu.memory_space<vmem>>, vector<64x32xf32>
    %c7_139 = arith.constant 7 : index
    %c0_140 = arith.constant 0 : index
    %c0_141 = arith.constant 0 : index
    %207 = vector.load %arg11[%c7_139, %c0_140, %c0_141] : memref<9x32x32xf32, #tpu.memory_space<vmem>>, vector<1x32x32xf32>
    %208 = vector.shape_cast %207 : vector<1x32x32xf32> to vector<32x32xf32>
    %cst_142 = arith.constant dense<0.000000e+00> : vector<64x32xf32>
    %209 = tpu.matmul %206, %208, %cst_142 {dimension_numbers = #tpu.dot_dimension_numbers<[1], [0], [0], [1], [0, 0, 1, 1], [], []>} : vector<64x32xf32>, vector<32x32xf32>, vector<64x32xf32> -> vector<64x32xf32>
    %210 = arith.addf %205, %209 : vector<64x32xf32>
    %c25_143 = arith.constant 25 : index
    %c0_144 = arith.constant 0 : index
    %211 = vector.load %arg17[%c25_143, %c0_144] : memref<96x32xf32, #tpu.memory_space<vmem>>, vector<64x32xf32>
    %212 = vector.broadcast %24 : vector<64x1xf32> to vector<64x32xf32>
    %213 = arith.mulf %211, %212 : vector<64x32xf32>
    %c8_145 = arith.constant 8 : index
    %c0_146 = arith.constant 0 : index
    %c0_147 = arith.constant 0 : index
    %214 = vector.load %arg11[%c8_145, %c0_146, %c0_147] : memref<9x32x32xf32, #tpu.memory_space<vmem>>, vector<1x32x32xf32>
    %215 = vector.shape_cast %214 : vector<1x32x32xf32> to vector<32x32xf32>
    %cst_148 = arith.constant dense<0.000000e+00> : vector<64x32xf32>
    %216 = tpu.matmul %213, %215, %cst_148 {dimension_numbers = #tpu.dot_dimension_numbers<[1], [0], [0], [1], [0, 0, 1, 1], [], []>} : vector<64x32xf32>, vector<32x32xf32>, vector<64x32xf32> -> vector<64x32xf32>
    %217 = arith.addf %210, %216 : vector<64x32xf32>
    %c0_149 = arith.constant 0 : index
    %c0_150 = arith.constant 0 : index
    %218 = vector.load %arg13[%c0_149, %c0_150] : memref<64x32xf32, #tpu.memory_space<vmem>>, vector<64x32xf32>
    %cst_151 = arith.constant dense<0.000000e+00> : vector<64x32xf32>
    %219 = tpu.matmul %29, %218, %cst_151 {dimension_numbers = #tpu.dot_dimension_numbers<[1], [0], [0], [1], [0, 0, 1, 1], [], []>} : vector<64x64xf32>, vector<64x32xf32>, vector<64x32xf32> -> vector<64x32xf32>
    %c0_152 = arith.constant 0 : index
    %c0_153 = arith.constant 0 : index
    %220 = vector.load %arg14[%c0_152, %c0_153] : memref<1x32xf32, #tpu.memory_space<vmem>>, vector<1x32xf32>
    %221 = vector.broadcast %220 : vector<1x32xf32> to vector<64x32xf32>
    %222 = arith.addf %219, %221 : vector<64x32xf32>
    %223 = arith.addf %217, %222 : vector<64x32xf32>
    %c0_154 = arith.constant 0 : index
    %c0_155 = arith.constant 0 : index
    %c0_156 = arith.constant 0 : index
    %224 = vector.load %arg15[%c0_154, %c0_155, %c0_156] : memref<1x64x32xf32, #tpu.memory_space<vmem>>, vector<1x64x32xf32>
    %225 = vector.shape_cast %224 : vector<1x64x32xf32> to vector<64x32xf32>
    %226 = vector.shape_cast %223 : vector<64x32xf32> to vector<1x64x32xf32>
    tpu.vector_store %arg15[%c0_154, %c0_155, %c0_156], %226 {strides = array<i32>} : memref<1x64x32xf32, #tpu.memory_space<vmem>>, vector<1x64x32xf32>,
    return
  }
  func.func @transform_0(%arg0: i32) -> (i32, i32, i32) {
    %c0_i32 = arith.constant 0 : i32
    %c0_i32_0 = arith.constant 0 : i32
    %c0_i32_1 = arith.constant 0 : i32
    return %arg0, %c0_i32, %c0_i32_0 : i32, i32, i32
  }
  func.func @transform_1(%arg0: i32) -> (i32, i32, i32) {
    %c0_i32 = arith.constant 0 : i32
    %c0_i32_0 = arith.constant 0 : i32
    %c0_i32_1 = arith.constant 0 : i32
    return %arg0, %c0_i32, %c0_i32_0 : i32, i32, i32
  }
  func.func @transform_2(%arg0: i32) -> (i32, i32, i32) {
    %c0_i32 = arith.constant 0 : i32
    %c0_i32_0 = arith.constant 0 : i32
    %c0_i32_1 = arith.constant 0 : i32
    return %arg0, %c0_i32, %c0_i32_0 : i32, i32, i32
  }
  func.func @transform_3(%arg0: i32) -> (i32, i32) {
    %c0_i32 = arith.constant 0 : i32
    %c0_i32_0 = arith.constant 0 : i32
    %c0_i32_1 = arith.constant 0 : i32
    return %c0_i32, %c0_i32_0 : i32, i32
  }
  func.func @transform_4(%arg0: i32) -> (i32, i32) {
    %c0_i32 = arith.constant 0 : i32
    %c0_i32_0 = arith.constant 0 : i32
    %c0_i32_1 = arith.constant 0 : i32
    return %c0_i32, %c0_i32_0 : i32, i32
  }
  func.func @transform_5(%arg0: i32) -> (i32, i32, i32) {
    %c0_i32 = arith.constant 0 : i32
    %c0_i32_0 = arith.constant 0 : i32
    %c0_i32_1 = arith.constant 0 : i32
    %c0_i32_2 = arith.constant 0 : i32
    return %c0_i32, %c0_i32_0, %c0_i32_1 : i32, i32, i32
  }
  func.func @transform_6(%arg0: i32) -> (i32, i32) {
    %c0_i32 = arith.constant 0 : i32
    %c0_i32_0 = arith.constant 0 : i32
    %c0_i32_1 = arith.constant 0 : i32
    return %c0_i32, %c0_i32_0 : i32, i32
  }
  func.func @transform_7(%arg0: i32) -> (i32, i32) {
    %c0_i32 = arith.constant 0 : i32
    %c0_i32_0 = arith.constant 0 : i32
    %c0_i32_1 = arith.constant 0 : i32
    return %c0_i32, %c0_i32_0 : i32, i32
  }
  func.func @transform_8(%arg0: i32) -> (i32, i32) {
    %c0_i32 = arith.constant 0 : i32
    %c0_i32_0 = arith.constant 0 : i32
    %c0_i32_1 = arith.constant 0 : i32
    return %c0_i32, %c0_i32_0 : i32, i32
  }
  func.func @transform_9(%arg0: i32) -> (i32, i32) {
    %c0_i32 = arith.constant 0 : i32
    %c0_i32_0 = arith.constant 0 : i32
    %c0_i32_1 = arith.constant 0 : i32
    return %c0_i32, %c0_i32_0 : i32, i32
  }
  func.func @transform_10(%arg0: i32) -> (i32, i32, i32) {
    %c0_i32 = arith.constant 0 : i32
    %c0_i32_0 = arith.constant 0 : i32
    %c0_i32_1 = arith.constant 0 : i32
    %c0_i32_2 = arith.constant 0 : i32
    return %c0_i32, %c0_i32_0, %c0_i32_1 : i32, i32, i32
  }
  func.func @transform_11(%arg0: i32) -> (i32, i32) {
    %c0_i32 = arith.constant 0 : i32
    %c0_i32_0 = arith.constant 0 : i32
    %c0_i32_1 = arith.constant 0 : i32
    return %c0_i32, %c0_i32_0 : i32, i32
  }
  func.func @transform_12(%arg0: i32) -> (i32, i32) {
    %c0_i32 = arith.constant 0 : i32
    %c0_i32_0 = arith.constant 0 : i32
    %c0_i32_1 = arith.constant 0 : i32
    return %c0_i32, %c0_i32_0 : i32, i32
  }
  func.func @transform_13(%arg0: i32) -> (i32, i32) {
    %c0_i32 = arith.constant 0 : i32
    %c0_i32_0 = arith.constant 0 : i32
    %c0_i32_1 = arith.constant 0 : i32
    return %c0_i32, %c0_i32_0 : i32, i32
  }
  func.func @transform_14(%arg0: i32) -> (i32, i32, i32) {
    %c0_i32 = arith.constant 0 : i32
    %c0_i32_0 = arith.constant 0 : i32
    %c0_i32_1 = arith.constant 0 : i32
    return %arg0, %c0_i32, %c0_i32_0 : i32, i32, i32
  }
}

module attributes {stable_mosaic.version = 11 : i64} {
  func.func @_head_kernel(%arg0: i32, %arg1: memref<1x64x32xf32, #tpu.memory_space<vmem>>, %arg2: memref<32x32xf32, #tpu.memory_space<vmem>>, %arg3: memref<2x32xf32, #tpu.memory_space<vmem>>, %arg4: memref<9x32x18xf32, #tpu.memory_space<vmem>>, %arg5: memref<1x18xf32, #tpu.memory_space<vmem>>, %arg6: memref<1x1x1xf32, #tpu.memory_space<vmem>>, %arg7: memref<1x64x18xf32, #tpu.memory_space<vmem>>, %arg8: memref<96x32xf32, #tpu.memory_space<vmem>>) attributes {dimension_semantics = [#tpu.dimension_semantics<parallel>], iteration_bounds = array<i64: 2>, scalar_prefetch = 0 : i64, scratch_operands = 1 : i64, tpu.core_type = #tpu.core_type<tc>, window_params = [{transform_indices = @transform_0, window_bounds = array<i64: 1, 64, 32>}, {pipeline_mode = #tpu.pipeline_mode<synchronous>, transform_indices = @transform_1, window_bounds = array<i64: 32, 32>}, {pipeline_mode = #tpu.pipeline_mode<synchronous>, transform_indices = @transform_2, window_bounds = array<i64: 2, 32>}, {pipeline_mode = #tpu.pipeline_mode<synchronous>, transform_indices = @transform_3, window_bounds = array<i64: 9, 32, 18>}, {pipeline_mode = #tpu.pipeline_mode<synchronous>, transform_indices = @transform_4, window_bounds = array<i64: 1, 18>}, {transform_indices = @transform_5, window_bounds = array<i64: 1, 1, 1>}, {transform_indices = @transform_6, window_bounds = array<i64: 1, 64, 18>}]} {
    %0 = tpu.iota {dimensions = array<i32: 0>} : vector<64x1xi32>
    %c8_i32 = arith.constant 8 : i32
    %c0_i32 = arith.constant 0 : i32
    %1 = arith.cmpi eq, %c8_i32, %c0_i32 : i32
    %c1_i32 = arith.constant 1 : i32
    %2 = arith.select %1, %c1_i32, %c8_i32 : i32
    %3 = vector.broadcast %2 : i32 to vector<64x1xi32>
    %4 = arith.remsi %0, %3 : vector<64x1xi32>
    %c0_i32_0 = arith.constant 0 : i32
    %5 = vector.broadcast %c0_i32_0 : i32 to vector<64x1xi32>
    %6 = arith.cmpi ne, %4, %5 : vector<64x1xi32>
    %c0_i32_1 = arith.constant 0 : i32
    %7 = vector.broadcast %c0_i32_1 : i32 to vector<64x1xi32>
    %8 = arith.cmpi slt, %4, %7 : vector<64x1xi32>
    %c0_i32_2 = arith.constant 0 : i32
    %9 = arith.cmpi slt, %2, %c0_i32_2 : i32
    %10 = vector.broadcast %9 : i1 to vector<64x1xi1>
    %11 = vector.broadcast %10 : vector<64x1xi1> to vector<64x1xi1>
    %12 = arith.xori %8, %11 : vector<64x1xi1>
    %13 = arith.andi %12, %6 : vector<64x1xi1>
    %14 = vector.broadcast %2 : i32 to vector<64x1xi32>
    %15 = arith.addi %4, %14 : vector<64x1xi32>
    %16 = arith.select %13, %15, %4 : vector<64x1xi1>, vector<64x1xi32>
    %c1_i32_3 = arith.constant 1 : i32
    %17 = vector.broadcast %c1_i32_3 : i32 to vector<64x1xi32>
    %18 = arith.cmpi sge, %16, %17 : vector<64x1xi32>
    %19 = arith.extui %18 : vector<64x1xi1> to vector<64x1xi32>
    %20 = arith.sitofp %19 : vector<64x1xi32> to vector<64x1xf32>
    %c6_i32 = arith.constant 6 : i32
    %21 = vector.broadcast %c6_i32 : i32 to vector<64x1xi32>
    %22 = arith.cmpi sle, %16, %21 : vector<64x1xi32>
    %23 = arith.extui %22 : vector<64x1xi1> to vector<64x1xi32>
    %24 = arith.sitofp %23 : vector<64x1xi32> to vector<64x1xf32>
    %c0 = arith.constant 0 : index
    %c0_4 = arith.constant 0 : index
    %c0_5 = arith.constant 0 : index
    %25 = vector.load %arg1[%c0, %c0_4, %c0_5] : memref<1x64x32xf32, #tpu.memory_space<vmem>>, vector<1x64x32xf32>
    %26 = vector.shape_cast %25 : vector<1x64x32xf32> to vector<64x32xf32>
    %c0_6 = arith.constant 0 : index
    %c0_7 = arith.constant 0 : index
    %27 = vector.load %arg2[%c0_6, %c0_7] : memref<32x32xf32, #tpu.memory_space<vmem>>, vector<32x32xf32>
    %c0_8 = arith.constant 0 : index
    %c0_9 = arith.constant 0 : index
    %28 = vector.load %arg3[%c0_8, %c0_9] : memref<2x32xf32, #tpu.memory_space<vmem>>, vector<1x32xf32>
    %c1 = arith.constant 1 : index
    %c0_10 = arith.constant 0 : index
    %29 = vector.load %arg3[%c1, %c0_10] : memref<2x32xf32, #tpu.memory_space<vmem>>, vector<1x32xf32>
    %cst = arith.constant dense<0.000000e+00> : vector<32xf32>
    %30 = vector.multi_reduction <add>, %26, %cst [0] : vector<64x32xf32> to vector<32xf32>
    %31 = vector.shape_cast %30 : vector<32xf32> to vector<1x32xf32>
    %cst_11 = arith.constant dense<0.000000e+00> : vector<1x32xf32>
    %32 = tpu.matmul %31, %27, %cst_11 {dimension_numbers = #tpu.dot_dimension_numbers<[1], [0], [0], [1], [0, 0, 1, 1], [], []>} : vector<1x32xf32>, vector<32x32xf32>, vector<1x32xf32> -> vector<1x32xf32>
    %33 = vector.broadcast %32 : vector<1x32xf32> to vector<64x32xf32>
    %34 = arith.subf %26, %33 : vector<64x32xf32>
    %35 = arith.mulf %34, %34 : vector<64x32xf32>
    %cst_12 = arith.constant dense<0.000000e+00> : vector<32xf32>
    %36 = vector.multi_reduction <add>, %35, %cst_12 [0] : vector<64x32xf32> to vector<32xf32>
    %37 = vector.shape_cast %36 : vector<32xf32> to vector<1x32xf32>
    %cst_13 = arith.constant dense<0.000000e+00> : vector<1x32xf32>
    %38 = tpu.matmul %37, %27, %cst_13 {dimension_numbers = #tpu.dot_dimension_numbers<[1], [0], [0], [1], [0, 0, 1, 1], [], []>} : vector<1x32xf32>, vector<32x32xf32>, vector<1x32xf32> -> vector<1x32xf32>
    %cst_14 = arith.constant 9.99999997E-7 : f32
    %39 = vector.broadcast %cst_14 : f32 to vector<1x32xf32>
    %40 = arith.addf %38, %39 : vector<1x32xf32>
    %41 = math.rsqrt %40 : vector<1x32xf32>
    %42 = arith.mulf %41, %28 : vector<1x32xf32>
    %43 = vector.broadcast %42 : vector<1x32xf32> to vector<64x32xf32>
    %44 = arith.mulf %34, %43 : vector<64x32xf32>
    %45 = vector.broadcast %29 : vector<1x32xf32> to vector<64x32xf32>
    %46 = arith.addf %44, %45 : vector<64x32xf32>
    %cst_15 = arith.constant 0.000000e+00 : f32
    %47 = vector.broadcast %cst_15 : f32 to vector<64x32xf32>
    %48 = arith.subf %47, %46 : vector<64x32xf32>
    %49 = math.exp %48 : vector<64x32xf32>
    %cst_16 = arith.constant 1.000000e+00 : f32
    %50 = vector.broadcast %cst_16 : f32 to vector<64x32xf32>
    %51 = arith.addf %50, %49 : vector<64x32xf32>
    %cst_17 = arith.constant 1.000000e+00 : f32
    %52 = vector.broadcast %cst_17 : f32 to vector<64x32xf32>
    %53 = arith.divf %52, %51 : vector<64x32xf32>
    %54 = arith.mulf %46, %53 : vector<64x32xf32>
    %c0_18 = arith.constant 0 : index
    %c0_19 = arith.constant 0 : index
    %55 = vector.load %arg5[%c0_18, %c0_19] : memref<1x18xf32, #tpu.memory_space<vmem>>, vector<1x18xf32>
    %cst_20 = arith.constant 0.000000e+00 : f32
    %56 = vector.broadcast %cst_20 : f32 to vector<96x32xf32>
    %c0_21 = arith.constant 0 : index
    %c0_22 = arith.constant 0 : index
    %57 = vector.load %arg8[%c0_21, %c0_22] : memref<96x32xf32, #tpu.memory_space<vmem>>, vector<96x32xf32>
    tpu.vector_store %arg8[%c0_21, %c0_22], %56 {strides = array<i32>} : memref<96x32xf32, #tpu.memory_space<vmem>>, vector<96x32xf32>,
    %c16 = arith.constant 16 : index
    %c0_23 = arith.constant 0 : index
    %58 = vector.load %arg8[%c16, %c0_23] : memref<96x32xf32, #tpu.memory_space<vmem>>, vector<64x32xf32>
    tpu.vector_store %arg8[%c16, %c0_23], %54 {strides = array<i32>} : memref<96x32xf32, #tpu.memory_space<vmem>>, vector<64x32xf32>,
    %59 = vector.shape_cast %55 : vector<1x18xf32> to vector<1x18xf32>
    %60 = vector.broadcast %59 : vector<1x18xf32> to vector<64x18xf32>
    %c7 = arith.constant 7 : index
    %c0_24 = arith.constant 0 : index
    %61 = vector.load %arg8[%c7, %c0_24] : memref<96x32xf32, #tpu.memory_space<vmem>>, vector<64x32xf32>
    %62 = vector.broadcast %20 : vector<64x1xf32> to vector<64x32xf32>
    %63 = arith.mulf %61, %62 : vector<64x32xf32>
    %c0_25 = arith.constant 0 : index
    %c0_26 = arith.constant 0 : index
    %c0_27 = arith.constant 0 : index
    %64 = vector.load %arg4[%c0_25, %c0_26, %c0_27] : memref<9x32x18xf32, #tpu.memory_space<vmem>>, vector<1x32x18xf32>
    %65 = vector.shape_cast %64 : vector<1x32x18xf32> to vector<32x18xf32>
    %cst_28 = arith.constant dense<0.000000e+00> : vector<64x18xf32>
    %66 = tpu.matmul %63, %65, %cst_28 {dimension_numbers = #tpu.dot_dimension_numbers<[1], [0], [0], [1], [0, 0, 1, 1], [], []>} : vector<64x32xf32>, vector<32x18xf32>, vector<64x18xf32> -> vector<64x18xf32>
    %67 = arith.addf %60, %66 : vector<64x18xf32>
    %c8 = arith.constant 8 : index
    %c0_29 = arith.constant 0 : index
    %68 = vector.load %arg8[%c8, %c0_29] : memref<96x32xf32, #tpu.memory_space<vmem>>, vector<64x32xf32>
    %c1_30 = arith.constant 1 : index
    %c0_31 = arith.constant 0 : index
    %c0_32 = arith.constant 0 : index
    %69 = vector.load %arg4[%c1_30, %c0_31, %c0_32] : memref<9x32x18xf32, #tpu.memory_space<vmem>>, vector<1x32x18xf32>
    %70 = vector.shape_cast %69 : vector<1x32x18xf32> to vector<32x18xf32>
    %cst_33 = arith.constant dense<0.000000e+00> : vector<64x18xf32>
    %71 = tpu.matmul %68, %70, %cst_33 {dimension_numbers = #tpu.dot_dimension_numbers<[1], [0], [0], [1], [0, 0, 1, 1], [], []>} : vector<64x32xf32>, vector<32x18xf32>, vector<64x18xf32> -> vector<64x18xf32>
    %72 = arith.addf %67, %71 : vector<64x18xf32>
    %c9 = arith.constant 9 : index
    %c0_34 = arith.constant 0 : index
    %73 = vector.load %arg8[%c9, %c0_34] : memref<96x32xf32, #tpu.memory_space<vmem>>, vector<64x32xf32>
    %74 = vector.broadcast %24 : vector<64x1xf32> to vector<64x32xf32>
    %75 = arith.mulf %73, %74 : vector<64x32xf32>
    %c2 = arith.constant 2 : index
    %c0_35 = arith.constant 0 : index
    %c0_36 = arith.constant 0 : index
    %76 = vector.load %arg4[%c2, %c0_35, %c0_36] : memref<9x32x18xf32, #tpu.memory_space<vmem>>, vector<1x32x18xf32>
    %77 = vector.shape_cast %76 : vector<1x32x18xf32> to vector<32x18xf32>
    %cst_37 = arith.constant dense<0.000000e+00> : vector<64x18xf32>
    %78 = tpu.matmul %75, %77, %cst_37 {dimension_numbers = #tpu.dot_dimension_numbers<[1], [0], [0], [1], [0, 0, 1, 1], [], []>} : vector<64x32xf32>, vector<32x18xf32>, vector<64x18xf32> -> vector<64x18xf32>
    %79 = arith.addf %72, %78 : vector<64x18xf32>
    %c15 = arith.constant 15 : index
    %c0_38 = arith.constant 0 : index
    %80 = vector.load %arg8[%c15, %c0_38] : memref<96x32xf32, #tpu.memory_space<vmem>>, vector<64x32xf32>
    %81 = vector.broadcast %20 : vector<64x1xf32> to vector<64x32xf32>
    %82 = arith.mulf %80, %81 : vector<64x32xf32>
    %c3 = arith.constant 3 : index
    %c0_39 = arith.constant 0 : index
    %c0_40 = arith.constant 0 : index
    %83 = vector.load %arg4[%c3, %c0_39, %c0_40] : memref<9x32x18xf32, #tpu.memory_space<vmem>>, vector<1x32x18xf32>
    %84 = vector.shape_cast %83 : vector<1x32x18xf32> to vector<32x18xf32>
    %cst_41 = arith.constant dense<0.000000e+00> : vector<64x18xf32>
    %85 = tpu.matmul %82, %84, %cst_41 {dimension_numbers = #tpu.dot_dimension_numbers<[1], [0], [0], [1], [0, 0, 1, 1], [], []>} : vector<64x32xf32>, vector<32x18xf32>, vector<64x18xf32> -> vector<64x18xf32>
    %86 = arith.addf %79, %85 : vector<64x18xf32>
    %c16_42 = arith.constant 16 : index
    %c0_43 = arith.constant 0 : index
    %87 = vector.load %arg8[%c16_42, %c0_43] : memref<96x32xf32, #tpu.memory_space<vmem>>, vector<64x32xf32>
    %c4 = arith.constant 4 : index
    %c0_44 = arith.constant 0 : index
    %c0_45 = arith.constant 0 : index
    %88 = vector.load %arg4[%c4, %c0_44, %c0_45] : memref<9x32x18xf32, #tpu.memory_space<vmem>>, vector<1x32x18xf32>
    %89 = vector.shape_cast %88 : vector<1x32x18xf32> to vector<32x18xf32>
    %cst_46 = arith.constant dense<0.000000e+00> : vector<64x18xf32>
    %90 = tpu.matmul %87, %89, %cst_46 {dimension_numbers = #tpu.dot_dimension_numbers<[1], [0], [0], [1], [0, 0, 1, 1], [], []>} : vector<64x32xf32>, vector<32x18xf32>, vector<64x18xf32> -> vector<64x18xf32>
    %91 = arith.addf %86, %90 : vector<64x18xf32>
    %c17 = arith.constant 17 : index
    %c0_47 = arith.constant 0 : index
    %92 = vector.load %arg8[%c17, %c0_47] : memref<96x32xf32, #tpu.memory_space<vmem>>, vector<64x32xf32>
    %93 = vector.broadcast %24 : vector<64x1xf32> to vector<64x32xf32>
    %94 = arith.mulf %92, %93 : vector<64x32xf32>
    %c5 = arith.constant 5 : index
    %c0_48 = arith.constant 0 : index
    %c0_49 = arith.constant 0 : index
    %95 = vector.load %arg4[%c5, %c0_48, %c0_49] : memref<9x32x18xf32, #tpu.memory_space<vmem>>, vector<1x32x18xf32>
    %96 = vector.shape_cast %95 : vector<1x32x18xf32> to vector<32x18xf32>
    %cst_50 = arith.constant dense<0.000000e+00> : vector<64x18xf32>
    %97 = tpu.matmul %94, %96, %cst_50 {dimension_numbers = #tpu.dot_dimension_numbers<[1], [0], [0], [1], [0, 0, 1, 1], [], []>} : vector<64x32xf32>, vector<32x18xf32>, vector<64x18xf32> -> vector<64x18xf32>
    %98 = arith.addf %91, %97 : vector<64x18xf32>
    %c23 = arith.constant 23 : index
    %c0_51 = arith.constant 0 : index
    %99 = vector.load %arg8[%c23, %c0_51] : memref<96x32xf32, #tpu.memory_space<vmem>>, vector<64x32xf32>
    %100 = vector.broadcast %20 : vector<64x1xf32> to vector<64x32xf32>
    %101 = arith.mulf %99, %100 : vector<64x32xf32>
    %c6 = arith.constant 6 : index
    %c0_52 = arith.constant 0 : index
    %c0_53 = arith.constant 0 : index
    %102 = vector.load %arg4[%c6, %c0_52, %c0_53] : memref<9x32x18xf32, #tpu.memory_space<vmem>>, vector<1x32x18xf32>
    %103 = vector.shape_cast %102 : vector<1x32x18xf32> to vector<32x18xf32>
    %cst_54 = arith.constant dense<0.000000e+00> : vector<64x18xf32>
    %104 = tpu.matmul %101, %103, %cst_54 {dimension_numbers = #tpu.dot_dimension_numbers<[1], [0], [0], [1], [0, 0, 1, 1], [], []>} : vector<64x32xf32>, vector<32x18xf32>, vector<64x18xf32> -> vector<64x18xf32>
    %105 = arith.addf %98, %104 : vector<64x18xf32>
    %c24 = arith.constant 24 : index
    %c0_55 = arith.constant 0 : index
    %106 = vector.load %arg8[%c24, %c0_55] : memref<96x32xf32, #tpu.memory_space<vmem>>, vector<64x32xf32>
    %c7_56 = arith.constant 7 : index
    %c0_57 = arith.constant 0 : index
    %c0_58 = arith.constant 0 : index
    %107 = vector.load %arg4[%c7_56, %c0_57, %c0_58] : memref<9x32x18xf32, #tpu.memory_space<vmem>>, vector<1x32x18xf32>
    %108 = vector.shape_cast %107 : vector<1x32x18xf32> to vector<32x18xf32>
    %cst_59 = arith.constant dense<0.000000e+00> : vector<64x18xf32>
    %109 = tpu.matmul %106, %108, %cst_59 {dimension_numbers = #tpu.dot_dimension_numbers<[1], [0], [0], [1], [0, 0, 1, 1], [], []>} : vector<64x32xf32>, vector<32x18xf32>, vector<64x18xf32> -> vector<64x18xf32>
    %110 = arith.addf %105, %109 : vector<64x18xf32>
    %c25 = arith.constant 25 : index
    %c0_60 = arith.constant 0 : index
    %111 = vector.load %arg8[%c25, %c0_60] : memref<96x32xf32, #tpu.memory_space<vmem>>, vector<64x32xf32>
    %112 = vector.broadcast %24 : vector<64x1xf32> to vector<64x32xf32>
    %113 = arith.mulf %111, %112 : vector<64x32xf32>
    %c8_61 = arith.constant 8 : index
    %c0_62 = arith.constant 0 : index
    %c0_63 = arith.constant 0 : index
    %114 = vector.load %arg4[%c8_61, %c0_62, %c0_63] : memref<9x32x18xf32, #tpu.memory_space<vmem>>, vector<1x32x18xf32>
    %115 = vector.shape_cast %114 : vector<1x32x18xf32> to vector<32x18xf32>
    %cst_64 = arith.constant dense<0.000000e+00> : vector<64x18xf32>
    %116 = tpu.matmul %113, %115, %cst_64 {dimension_numbers = #tpu.dot_dimension_numbers<[1], [0], [0], [1], [0, 0, 1, 1], [], []>} : vector<64x32xf32>, vector<32x18xf32>, vector<64x18xf32> -> vector<64x18xf32>
    %117 = arith.addf %110, %116 : vector<64x18xf32>
    %c0_65 = arith.constant 0 : index
    %c0_66 = arith.constant 0 : index
    %c0_67 = arith.constant 0 : index
    %118 = vector.load %arg6[%c0_65, %c0_66, %c0_67] : memref<1x1x1xf32, #tpu.memory_space<vmem>>, vector<1x1x1xf32>
    %119 = vector.shape_cast %118 : vector<1x1x1xf32> to vector<1x1xf32>
    %120 = vector.broadcast %119 : vector<1x1xf32> to vector<64x18xf32>
    %121 = arith.mulf %117, %120 : vector<64x18xf32>
    %c0_68 = arith.constant 0 : index
    %c0_69 = arith.constant 0 : index
    %c0_70 = arith.constant 0 : index
    %122 = vector.load %arg7[%c0_68, %c0_69, %c0_70] : memref<1x64x18xf32, #tpu.memory_space<vmem>>, vector<1x64x18xf32>
    %123 = vector.shape_cast %122 : vector<1x64x18xf32> to vector<64x18xf32>
    %124 = vector.shape_cast %121 : vector<64x18xf32> to vector<1x64x18xf32>
    tpu.vector_store %arg7[%c0_68, %c0_69, %c0_70], %124 {strides = array<i32>} : memref<1x64x18xf32, #tpu.memory_space<vmem>>, vector<1x64x18xf32>,
    return
  }
  func.func @transform_0(%arg0: i32) -> (i32, i32, i32) {
    %c0_i32 = arith.constant 0 : i32
    %c0_i32_0 = arith.constant 0 : i32
    %c0_i32_1 = arith.constant 0 : i32
    return %arg0, %c0_i32, %c0_i32_0 : i32, i32, i32
  }
  func.func @transform_1(%arg0: i32) -> (i32, i32) {
    %c0_i32 = arith.constant 0 : i32
    %c0_i32_0 = arith.constant 0 : i32
    %c0_i32_1 = arith.constant 0 : i32
    return %c0_i32, %c0_i32_0 : i32, i32
  }
  func.func @transform_2(%arg0: i32) -> (i32, i32) {
    %c0_i32 = arith.constant 0 : i32
    %c0_i32_0 = arith.constant 0 : i32
    %c0_i32_1 = arith.constant 0 : i32
    return %c0_i32, %c0_i32_0 : i32, i32
  }
  func.func @transform_3(%arg0: i32) -> (i32, i32, i32) {
    %c0_i32 = arith.constant 0 : i32
    %c0_i32_0 = arith.constant 0 : i32
    %c0_i32_1 = arith.constant 0 : i32
    %c0_i32_2 = arith.constant 0 : i32
    return %c0_i32, %c0_i32_0, %c0_i32_1 : i32, i32, i32
  }
  func.func @transform_4(%arg0: i32) -> (i32, i32) {
    %c0_i32 = arith.constant 0 : i32
    %c0_i32_0 = arith.constant 0 : i32
    %c0_i32_1 = arith.constant 0 : i32
    return %c0_i32, %c0_i32_0 : i32, i32
  }
  func.func @transform_5(%arg0: i32) -> (i32, i32, i32) {
    %c0_i32 = arith.constant 0 : i32
    %c0_i32_0 = arith.constant 0 : i32
    %c0_i32_1 = arith.constant 0 : i32
    return %arg0, %c0_i32, %c0_i32_0 : i32, i32, i32
  }
  func.func @transform_6(%arg0: i32) -> (i32, i32, i32) {
    %c0_i32 = arith.constant 0 : i32
    %c0_i32_0 = arith.constant 0 : i32
    %c0_i32_1 = arith.constant 0 : i32
    return %arg0, %c0_i32, %c0_i32_0 : i32, i32, i32
  }
}

</mosaic_0001>

<bundles_post_ra>
// kernel: custom-call.1
= control target key start
LH: loop header
LB: loop body
LE: loop exit
PB: predicated region body
PF: predicated region fallthrough
CT: control target
= control target key end

     0   :  { %s59_s0 = inlined_call_operand.hbm [shape: c64[2,8,8,3,3], index: 0, kind: input, shape index: {}]   ;;  %s60_s1 = inlined_call_operand.vmem [shape: f32[2,8,8,3,3], index: 1, kind: output, shape index: {}]  }
   0x1   :  { %s2_s8 = scalar_lea.hbm %s59_s0, 2304 }
   0x2   :  { %3 = vsyncpa [#allocation0], 0  ;;  %s4_s11 = sshll.u32 %s60_s1, 4  ;;  %s34_s14 = scalar_lea.hbm %s59_s0, 4608  ;;  %s5_s11 = int_to_ptr.vmem [resolvable:$true] %s4_s11 }
   0x3   :  { %p11_p0 = scmp.ne.s32.totalorder %s2_s8, %s34_s14  ;;  %p13_p1 = scmp.lt.u32.totalorder %s2_s8, %s59_s0 }
   0x4   :  { %p14_p2 = scmp.lt.u32.totalorder %s34_s14, %s34_s14  ;;  %p16_p4 = scmp.lt.u32.totalorder %s34_s14, %s2_s8 }
   0x6   :  { %p15_p3 = por %p14_p2, %p13_p1 }
   0x8   :  { %p17_p5 = por %p16_p4, %p15_p3 }
   0xa   :  { %p18_p6 = pnand %p17_p5, %p11_p0 }
   0xc   :  { %21 = shalt.err (!%p18_p6)  }
   0xd   :  { %s22_s17 = scalar_lea.vmem %s5_s11, 2304  ;;  %p27_p8 = scmp.lt.s32.totalorder %s5_s11, %s5_s11 }
   0xe   :  { %p23_p7 = scmp.ne.s32.totalorder %s5_s11, %s22_s17  ;;  %p28_p9 = scmp.lt.s32.totalorder %s22_s17, %s22_s17 }
  0x10   :  { %p29_p10 = por %p28_p9, %p27_p8 }
  0x12   :  { %p30_p11 = pnand %p29_p10, %p23_p7 }
  0x14   :  { %33 = shalt.err (!%p30_p11)  }
  0x15   :  { %7 = dma.hbm_to_vmem [thread:$0]  %s2_s8, 2304, %s5_s11, [#allocation0] }
  0x16   :  { %35 = dma.done.wait [#allocation0], 2304  }
  0x17   :  { %36 = vsyncadd [#allocation0], 4294964992 }
  0x18   :  { %9 = vsyncpa [#allocation0], 1 }

// kernel: custom-call
= control target key start
LH: loop header
LB: loop body
LE: loop exit
PB: predicated region body
PF: predicated region fallthrough
CT: control target
= control target key end

     0   :  { %2 = vsyncpa [#allocation0], 0  ;;  %s61_s0 = inlined_call_operand.hbm [shape: c64[2,8,8,3,3], index: 0, kind: input, shape index: {}]   ;;  %s62_s1 = inlined_call_operand.vmem [shape: f32[2,8,8,3,3], index: 1, kind: output, shape index: {}]  }
   0x1   :  { %s3_s8 = sshll.u32 %s62_s1, 4  ;;  %s9_s11 = scalar_lea.hbm %s61_s0, 2304  ;;  %s4_s8 = int_to_ptr.vmem [resolvable:$true] %s3_s8 }
   0x2   :  { %p10_p0 = scmp.ne.s32.totalorder %s61_s0, %s9_s11  ;;  %s11_s16 = scalar_lea.hbm %s61_s0, 4608 }
   0x3   :  { %p12_p1 = scmp.lt.u32.totalorder %s11_s16, %s9_s11  ;;  %p13_p2 = scmp.lt.u32.totalorder %s9_s11, %s61_s0 }
   0x5   :  { %p14_p3 = por %p13_p2, %p12_p1 }
   0x7   :  { %p15_p4 = pnand %p14_p3, %p10_p0 }
   0x9   :  { %18 = shalt.err (!%p15_p4)  }
   0xa   :  { %s19_s1 = scalar_lea.vmem %s4_s8, 2304  ;;  %p24_p6 = scmp.lt.s32.totalorder %s4_s8, %s4_s8 }
   0xb   :  { %p20_p5 = scmp.ne.s32.totalorder %s4_s8, %s19_s1  ;;  %p25_p7 = scmp.lt.s32.totalorder %s19_s1, %s19_s1 }
   0xd   :  { %p26_p8 = por %p25_p7, %p24_p6 }
   0xf   :  { %p27_p9 = pnand %p26_p8, %p20_p5 }
  0x11   :  { %30 = shalt.err (!%p27_p9)  }
  0x12   :  { %6 = dma.hbm_to_vmem [thread:$0]  %s61_s0, 2304, %s4_s8, [#allocation0] }
  0x13   :  { %31 = dma.done.wait [#allocation0], 2304  }
  0x14   :  { %32 = vsyncadd [#allocation0], 4294964992 }
  0x15   :  { %8 = vsyncpa [#allocation0], 1 }

// kernel: model_forward_pallas.13
= control target key start
LH: loop header
LB: loop body
LE: loop exit
PB: predicated region body
PF: predicated region fallthrough
CT: control target
= control target key end

     0   :  { %v319_v0 = vmov 0.0|0.0   ;;  %vm320_vm0 = vmmov 0   ;;  %v321_v4 = vmov 0.0   ;;  %vm32_vm1 = vcmask 261120   ;;  %s424_s1 = inlined_call_operand.vmem [shape: f32[32,128], index: 1, kind: input, shape index: {}]   ;;  %s425_s0 = inlined_call_operand.vmem [shape: f32[2,32], index: 0, kind: input, shape index: {}]   ;;  %s426_s3 = inlined_call_operand.vmem [shape: f32[128,128], index: 3, kind: input, shape index: {}]   ;;  %s427_s2 = inlined_call_operand.vmem [shape: f32[1,128], index: 2, kind: input, shape index: {}]   ;;  %s428_s4 = inlined_call_operand.vmem [shape: f32[1,128], index: 4, kind: input, shape index: {}]   ;;  %s429_s5 = inlined_call_operand.vmem [shape: f32[2,128], index: 5, kind: output, shape index: {}]  }
   0x1   :  { %282 = vmatprep.subr.bf16.mxu0 %v319_v0  ;;  %v21_v1 = vld [vmem:[%s424_s1] sm:$0xff]  ;;  %v22_v2 = vld [vmem:[%s424_s1 + $0x8] sm:$0xff]  ;;  %v23_v3 = vld [vmem:[%s424_s1 + $0x10] sm:$0xff]  ;;  %244 = vmatprep.mubr.msk.f32.mxu0 %vm320_vm0, %v321_v4 }
   0x2   :  { %v283_v5 = vpack.c.bf16 %v22_v2, %v21_v1  ;;  %v24_v6 = vld [vmem:[%s424_s1 + $0x18] sm:$0xff]  ;;  %288 = vmatprep.subr.bf16.mxu1 %v319_v0  ;;  %279 = vmatprep.mubr.msk.f32.mxu1 %vm320_vm0, %v321_v4  ;;  %v20_v8 = vld [vmem:[%s425_s0] sm:$0x3]  ;;  %v114_v10 = vld [vmem:[%s426_s3 + $0x8] sm:$0xff] }
   0x3   :  { %v286_v7 = vpack.c.bf16 %v24_v6, %v23_v3  ;;  %v113_v9 = vld [vmem:[%s426_s3] sm:$0xff]  ;;  %v115_v12 = vld [vmem:[%s426_s3 + $0x10] sm:$0xff]  ;;  %v116_v13 = vld [vmem:[%s426_s3 + $0x18] sm:$0xff] }
   0x4   :  { %284 = vmatpush3.bf16.msra.mxu0 %v283_v5  ;;  %v289_v11 = vpack.c.bf16 %v114_v10, %v113_v9  ;;  %v292_v14 = vpack.c.bf16 %v116_v13, %v115_v12  ;;  %v117_v15 = vld [vmem:[%s426_s3 + $0x20] sm:$0xff]  ;;  %v118_v16 = vld [vmem:[%s426_s3 + $0x28] sm:$0xff]  ;;  %v119_v18 = vld [vmem:[%s426_s3 + $0x30] sm:$0xff] }
   0x5   :  { %285 = vmatprep.subr.bf16.mxu0 %v319_v0  ;;  %v295_v17 = vpack.c.bf16 %v118_v16, %v117_v15  ;;  %v120_v19 = vld [vmem:[%s426_s3 + $0x38] sm:$0xff]  ;;  %v121_v21 = vld [vmem:[%s426_s3 + $0x40] sm:$0xff]  ;;  %v122_v22 = vld [vmem:[%s426_s3 + $0x48] sm:$0xff] }
   0x6   :  { %290 = vmatpush3.bf16.msra.mxu1 %v289_v11  ;;  %v298_v20 = vpack.c.bf16 %v120_v19, %v119_v18  ;;  %v301_v23 = vpack.c.bf16 %v122_v22, %v121_v21  ;;  %v123_v24 = vld [vmem:[%s426_s3 + $0x50] sm:$0xff]  ;;  %v124_v25 = vld [vmem:[%s426_s3 + $0x58] sm:$0xff]  ;;  %v125_v27 = vld [vmem:[%s426_s3 + $0x60] sm:$0xff] }
   0x7   :  { %291 = vmatprep.subr.bf16.mxu1 %v319_v0  ;;  %v304_v26 = vpack.c.bf16 %v124_v25, %v123_v24  ;;  %v126_v28 = vld [vmem:[%s426_s3 + $0x68] sm:$0xff]  ;;  %v127_v30 = vld [vmem:[%s426_s3 + $0x70] sm:$0xff]  ;;  %v128_v31 = vld [vmem:[%s426_s3 + $0x78] sm:$0xff] }
   0x8   :  { %287 = vmatpush3.bf16.msra.mxu0 %v286_v7  ;;  %v307_v29 = vpack.c.bf16 %v126_v28, %v125_v27  ;;  %v310_v32 = vpack.c.bf16 %v128_v31, %v127_v30  ;;  %v211_v33 = vld [vmem:[%s427_s2] ss:$0 sm:$0xff] }
   0x9   :  { %v213_v43 = vld [vmem:[%s428_s4] ss:$0 sm:$0xff] }
   0xa   :  { %293 = vmatpush3.bf16.msra.mxu1 %v292_v14 }
   0xb   :  { %245 = vmatmul.mubr.msk.f32.vlgmr.msra.gmra.mrb[0].mxu0 %vm32_vm1, %v20_v8  ;;  %294 = vmatprep.subr.bf16.mxu1 %v319_v0 }
   0xe   :  { %296 = vmatpush3.bf16.msra.mxu1 %v295_v17 }
   0xf   :  { %297 = vmatprep.subr.bf16.mxu1 %v319_v0 }
  0x12   :  { %299 = vmatpush3.bf16.msra.mxu1 %v298_v20 }
  0x13   :  { %300 = vmatprep.subr.bf16.mxu1 %v319_v0 }
  0x16   :  { %302 = vmatpush3.bf16.msra.mxu1 %v301_v23 }
  0x17   :  { %303 = vmatprep.subr.bf16.mxu1 %v319_v0 }
  0x1a   :  { %305 = vmatpush3.bf16.msra.mxu1 %v304_v26 }
  0x1b   :  { %306 = vmatprep.subr.bf16.mxu1 %v319_v0 }
  0x1e   :  { %308 = vmatpush3.bf16.msra.mxu1 %v307_v29 }
  0x1f   :  { %309 = vmatprep.subr.bf16.mxu1 %v319_v0 }
  0x22   :  { %311 = vmatpush3.bf16.msra.mxu1 %v310_v32 }
  0xde   :  { %v102_v34 = vpop.f32.mrb[0].mxu0 }
  0xdf   :  { %v103_v35 = vadd.f32 %v211_v33, %v102_v34  ;;  %v246_v36 = vpop.f32.mrb[1].mxu0 }
  0xe1   :  { %v106_v37 = vsub.f32 0.0, %v103_v35 }
  0xe3   :  { %v107_v38 = vmul.f32 1.442695, %v106_v37 }
  0xe5   :  { %315 = vpow2.f32 %v107_v38 }
  0xef   :  { %v316_v39 = vpop.eup %315 }
  0xf0   :  { %v109_v40 = vadd.f32 1.0, %v316_v39 }
  0xf2   :  { %317 = vrcp.f32 %v109_v40 }
  0xfc   :  { %v318_v41 = vpop.eup %317 }
  0xfd   :  { %v112_v42 = vmul.f32 %v318_v41, %v103_v35 }
  0xff   :  { %280 = vmatmul.mubr.f32.vlgmr.msra.gmra.mrb[0].mxu1 %v112_v42 }
 0x1d2   :  { %v202_v44 = vpop.f32.mrb[0].mxu1 }
 0x1d3   :  { %v203_v45 = vadd.f32 %v213_v43, %v202_v44  ;;  %v281_v46 = vpop.f32.mrb[1].mxu1 }
 0x1d5   :  { %206 = vst [vmem:[%s429_s5] sm:$0x3] %v203_v45 }

// kernel: model_forward_pallas.15
= control target key start
LH: loop header
LB: loop body
LE: loop exit
PB: predicated region body
PF: predicated region fallthrough
CT: control target
= control target key end

     0   :  { %s1748_s24 = smov 0   ;;  %s2000_s0 = inlined_call_operand.vmem [shape: f32[2,64,32], index: 0, kind: input, shape index: {}]   ;;  %s2001_s1 = inlined_call_operand.vmem [shape: f32[32,32], index: 1, kind: input, shape index: {}]   ;;  %s2002_s2 = inlined_call_operand.vmem [shape: f32[2,32], index: 2, kind: input, shape index: {}]   ;;  %s2003_s3 = inlined_call_operand.vmem [shape: f32[32,96], index: 3, kind: input, shape index: {}]   ;;  %s2004_s4 = inlined_call_operand.vmem [shape: f32[1,96], index: 4, kind: input, shape index: {}]   ;;  %s2005_s5 = inlined_call_operand.vmem [shape: f32[32,32], index: 5, kind: input, shape index: {}]   ;;  %s2006_s6 = inlined_call_operand.vmem [shape: f32[1,32], index: 6, kind: input, shape index: {}]   ;;  %s2007_s7 = inlined_call_operand.vmem [shape: f32[2,64,32], index: 7, kind: output, shape index: {}]  }
   0x1 LB: > { %s1290_s25 = sadd.s32 4294967295, %s1701_s24   ;;  %p1294_p0 = scmp.ge.s32.totalorder %s1701_s24, 1  ;;  %s1701_s24 = sphi %s1748_s24, %s17_s24  }
   0x2   : > { %p237_p1 = scmp.lt.s32.totalorder %s1701_s24, 3 }
   0x4   : > { %p238_p2 = pnand %p1294_p0, %p237_p1 }
   0x5   : > { %v287_v0 = vld [vmem:[%s2001_s1] sm:$0xff] (!%p238_p2)  ;;  %v288_v1 = vld [vmem:[%s2001_s1 + $0x8] sm:$0xff] (!%p238_p2)  ;;  %v289_v2 = vld [vmem:[%s2001_s1 + $0x10] sm:$0xff] (!%p238_p2)  ;;  %v1703_v3 = vmov (!%p238_p2), 0.0|0.0   ;;  %vm1704_vm0 = vmmov (!%p238_p2), 0   ;;  %v1705_v6 = vmov (!%p238_p2), 0.0   ;;  %v388_v37 = vlaneseq (!%p238_p2) }
   0x6   : > { %241 = sbr.rel (%p238_p2) target bundleno = 1891 (0x763), region = 48  ;;  %1532 = vmatprep.subr.bf16.mxu0 (!%p238_p2), %v1703_v3  ;;  %v1533_v4 = vpack.c.bf16 (!%p238_p2), %v288_v1, %v287_v0  ;;  %v290_v5 = vld [vmem:[%s2001_s1 + $0x18] sm:$0xff] (!%p238_p2)  ;;  %1422 = vmatprep.mubr.msk.f32.mxu0 (!%p238_p2), %vm1704_vm0, %v1705_v6  ;;  %p269_p3 = scmp.lt.s32.totalorder (!%p238_p2), %s1290_s25, 1  ;;  %vm293_vm1 = vcmask (!%p238_p2), 261120   ;;  %vm837_vm3 = vcmask (!%p238_p2), 523264  }
   0x7   : > { %1538 = vmatprep.subr.bf16.mxu1 (!%p238_p2), %v1703_v3  ;;  %1433 = vmatprep.mubr.msk.f32.mxu1 (!%p238_p2), %vm1704_vm0, %v1705_v6  ;;  %v1536_v7 = vpack.c.bf16 (!%p238_p2), %v290_v5, %v289_v2  ;;  %v389_v38 = vshrl.u32 (!%p238_p2), %v388_v37, 7  ;;  %v1301_v37 = vld [vmem:[%s2002_s2 + $0x1] ss:$0 sm:$0xff] (!%p238_p2)  ;;  %s1706_s8 = smov (!%p238_p2), 96   ;;  %vm1870_vm2 = vmpackc.low (!%p238_p2), %vm293_vm1, %vm293_vm1  ;;  %s1707_s9 = smov (!%p238_p2), 64  }
   0x8   : > { %1534 = vmatpush3.bf16.msra.mxu0 (!%p238_p2), %v1533_v4  ;;  %1540 = vmatpush3.bf16.msra.mxu1 (!%p238_p2), %v1533_v4 }
   0x9   : > { %1535 = vmatprep.subr.bf16.mxu0 (!%p238_p2), %v1703_v3  ;;  %1541 = vmatprep.subr.bf16.mxu1 (!%p238_p2), %v1703_v3  ;;  %v390_v39 = vsub.s32 (!%p238_p2), 0, %v389_v38 }
   0xc   : > { %1537 = vmatpush3.bf16.msra.mxu0 (!%p238_p2), %v1536_v7  ;;  %1543 = vmatpush3.bf16.msra.mxu1 (!%p238_p2), %v1536_v7 }
   0xd   : > { %s2011_s25 = smov (!%p269_p3, %s1290_s25), 1 }
   0xe   : > { %s1346_s11 = sshll.u32 %s2011_s25, 6 }
   0xf   : > { %s273_s14 = scalar_lea.vmem %s2000_s0, %s1346_s11  ;;  %s278_s23 = scalar_lea.vmem %s2007_s7, %s1346_s11 }
  0x10   : > { %v1776_v8 = vld [vmem:[%s273_s14] sm:$0xff]  ;;  %v1778_v9 = vld [vmem:[%s273_s14 + $0x8] sm:$0xff]  ;;  %v1780_v10 = vld [vmem:[%s273_s14 + $0x10] sm:$0xff] }
  0x11   : > { %v1782_v11 = vld [vmem:[%s273_s14 + $0x18] sm:$0xff]  ;;  %v294_v12 = vsel %vm293_vm1, %v1776_v8, 0.0  ;;  %v295_v13 = vsel %vm293_vm1, %v1778_v9, 0.0  ;;  %v297_v14 = vsel %vm293_vm1, %v1780_v10, 0.0  ;;  %v1790_v15 = vld [vmem:[%s273_s14 + $0x20] sm:$0xff]  ;;  %v1794_v18 = vld [vmem:[%s273_s14 + $0x28] sm:$0xff] }
  0x12   : > { %v296_v16 = vadd.f32 %v295_v13, %v294_v12  ;;  %v299_v17 = vsel %vm293_vm1, %v1782_v11, 0.0  ;;  %v301_v20 = vsel %vm293_vm1, %v1790_v15, 0.0  ;;  %v1798_v21 = vld [vmem:[%s273_s14 + $0x30] sm:$0xff]  ;;  %v303_v23 = vsel %vm293_vm1, %v1794_v18, 0.0  ;;  %v1802_v24 = vld [vmem:[%s273_s14 + $0x38] sm:$0xff] }
  0x13   : > { %v305_v26 = vsel %vm293_vm1, %v1798_v21, 0.0  ;;  %v307_v28 = vsel %vm293_vm1, %v1802_v24, 0.0 }
  0x14   : > { %v298_v19 = vadd.f32 %v297_v14, %v296_v16 }
  0x16   : > { %v300_v22 = vadd.f32 %v299_v17, %v298_v19 }
  0x18   : > { %v302_v25 = vadd.f32 %v301_v20, %v300_v22 }
  0x1a   : > { %v304_v27 = vadd.f32 %v303_v23, %v302_v25  ;;  %v528_v23 = vld [vmem:[%s2003_s3] sm:$0xff]  ;;  %v529_v25 = vld [vmem:[%s2003_s3 + $0x8] sm:$0xff] }
  0x1c   : > { %v306_v29 = vadd.f32 %v305_v26, %v304_v27  ;;  %v1544_v26 = vpack.c.bf16 %v529_v25, %v528_v23  ;;  %v530_v27 = vld [vmem:[%s2003_s3 + $0x10] sm:$0xff] }
  0x1e   : > { %v308_v30 = vadd.f32 %v307_v28, %v306_v29  ;;  %v531_v28 = vld [vmem:[%s2003_s3 + $0x18] sm:$0xff]  ;;  %1545 = vmatprep.subr.bf16.mxu0 %v1544_v26 }
  0x1f   : > { %v1548_v29 = vpack.c.bf16 %v531_v28, %v530_v27 }
  0x20   : > { %v309_v31 = vrot.slane %v308_v30, 4 }
  0x22   : > { %v310_v32 = vadd.f32 %v309_v31, %v308_v30 }
  0x24   : > { %v311_v33 = vrot.slane %v310_v32, 2 }
  0x26   : > { %v312_v34 = vadd.f32 %v311_v33, %v310_v32  ;;  %v291_v33 = vld [vmem:[%s2002_s2] sm:$0x1] }
  0x28   : > { %v313_v35 = vrot.slane %v312_v34, 1 }
  0x2a   : > { %v314_v36 = vadd.f32 %v313_v35, %v312_v34 }
  0x2c   : > { %1423 = vmatmul.mubr.msk.f32.vlgmr.msra.gmra.mrb[0].mxu0 %vm293_vm1, %v314_v36 }
  0x2d   : > { %1547 = vmatpush3.bf16.msra.mxu0 %v1544_v26 }
  0x2e   : > { %1549 = vmatprep.subr.bf16.mxu0 %v1548_v29 }
  0x31   : > { %1551 = vmatpush3.bf16.msra.mxu0 %v1548_v29 }
  0xff   : > { %v384_v40 = vpop.f32.mrb[0].mxu0 }
 0x100   : > { %v391_v41 = vrot.slane %v384_v40, %v390_v39  ;;  %v1424_v42 = vpop.f32.mrb[1].mxu0 }
 0x102   : > { %v392_v43 = vsub.f32 %v1776_v8, %v391_v41  ;;  %v393_v44 = vsub.f32 %v1778_v9, %v391_v41  ;;  %v394_v45 = vsub.f32 %v1780_v10, %v391_v41  ;;  %v395_v46 = vsub.f32 %v1782_v11, %v391_v41 }
 0x103   : > { %v396_v47 = vsub.f32 %v1790_v15, %v391_v41  ;;  %v397_v51 = vsub.f32 %v1794_v18, %v391_v41  ;;  %v398_v56 = vsub.f32 %v1798_v21, %v391_v41  ;;  %v399_v60 = vsub.f32 %v1802_v24, %v391_v41 }
 0x104   : > { %v400_v48 = vmul.f32 %v392_v43, %v392_v43  ;;  %v401_v49 = vmul.f32 %v393_v44, %v393_v44  ;;  %v402_v50 = vmul.f32 %v394_v45, %v394_v45  ;;  %v403_v52 = vmul.f32 %v395_v46, %v395_v46 }
 0x105   : > { %v404_v57 = vmul.f32 %v396_v47, %v396_v47  ;;  %v405_v61 = vmul.f32 %v397_v51, %v397_v51  ;;  %v406_v0 = vmul.f32 %v398_v56, %v398_v56  ;;  %v407_v3 = vmul.f32 %v399_v60, %v399_v60 }
 0x106   : > { %v408_v53 = vsel %vm293_vm1, %v400_v48, 0.0  ;;  %v409_v54 = vsel %vm293_vm1, %v401_v49, 0.0  ;;  %v411_v58 = vsel %vm293_vm1, %v402_v50, 0.0  ;;  %v413_v62 = vsel %vm293_vm1, %v403_v52, 0.0 }
 0x107   : > { %v410_v55 = vadd.f32 %v409_v54, %v408_v53  ;;  %v415_v1 = vsel %vm293_vm1, %v404_v57, 0.0  ;;  %v417_v4 = vsel %vm293_vm1, %v405_v61, 0.0  ;;  %v419_v6 = vsel %vm293_vm1, %v406_v0, 0.0 }
 0x108   : > { %v421_v12 = vsel %vm293_vm1, %v407_v3, 0.0 }
 0x109   : > { %v412_v59 = vadd.f32 %v411_v58, %v410_v55 }
 0x10b   : > { %v414_v63 = vadd.f32 %v413_v62, %v412_v59 }
 0x10d   : > { %v416_v2 = vadd.f32 %v415_v1, %v414_v63 }
 0x10f   : > { %v418_v5 = vadd.f32 %v417_v4, %v416_v2 }
 0x111   : > { %v420_v7 = vadd.f32 %v419_v6, %v418_v5 }
 0x113   : > { %v422_v13 = vadd.f32 %v421_v12, %v420_v7 }
 0x115   : > { %v423_v14 = vrot.slane %v422_v13, 4 }
 0x117   : > { %v424_v16 = vadd.f32 %v423_v14, %v422_v13 }
 0x119   : > { %v425_v17 = vrot.slane %v424_v16, 2 }
 0x11b   : > { %v426_v19 = vadd.f32 %v425_v17, %v424_v16 }
 0x11d   : > { %v427_v20 = vrot.slane %v426_v19, 1 }
 0x11f   : > { %v428_v22 = vadd.f32 %v427_v20, %v426_v19 }
 0x121   : > { %1434 = vmatmul.mubr.msk.f32.vlgmr.msra.gmra.mrb[0].mxu1 %vm293_vm1, %v428_v22 }
 0x1f4   : > { %v498_v30 = vpop.f32.mrb[0].mxu1 }
 0x1f5   : > { %v499_v31 = vadd.f32 1e-06, %v498_v30  ;;  %v1435_v32 = vpop.f32.mrb[1].mxu1 }
 0x1f7   : > { %1661 = vrsqrt.f32 %v499_v31 }
 0x201   : > { %v1662_v34 = vpop.eup %1661 }
 0x202   : > { %v503_v35 = vmul.f32 %v1662_v34, %v291_v33 }
 0x204   : > { %v507_v36 = vrot.slane %v503_v35, %v390_v39 }
 0x206   : > { %v508_v38 = vmul.f32 %v507_v36, %v392_v43  ;;  %v509_v40 = vmul.f32 %v507_v36, %v393_v44  ;;  %v510_v41 = vmul.f32 %v507_v36, %v394_v45  ;;  %v511_v49 = vmul.f32 %v507_v36, %v395_v46 }
 0x207   : > { %v512_v52 = vmul.f32 %v507_v36, %v396_v47  ;;  %v513_v39 = vmul.f32 %v507_v36, %v397_v51  ;;  %v514_v55 = vmul.f32 %v507_v36, %v398_v56  ;;  %v515_v44 = vmul.f32 %v507_v36, %v399_v60  ;;  %v1302_v47 = vld [vmem:[%s2004_s4] ss:$0 sm:$0xff] }
 0x208   : > { %v520_v42 = vadd.f32 %v1301_v37, %v508_v38  ;;  %v521_v48 = vadd.f32 %v1301_v37, %v509_v40  ;;  %v522_v50 = vadd.f32 %v1301_v37, %v510_v41  ;;  %v523_v53 = vadd.f32 %v1301_v37, %v511_v49 }
 0x209   : > { %v524_v54 = vadd.f32 %v1301_v37, %v512_v52  ;;  %v525_v43 = vadd.f32 %v1301_v37, %v513_v39  ;;  %v526_v45 = vadd.f32 %v1301_v37, %v514_v55  ;;  %v527_v46 = vadd.f32 %v1301_v37, %v515_v44 }
 0x20a   : > { %1444 = vmatprep.mubr.msk.f32.mxu0 %vm293_vm1, %v520_v42 }
 0x20b   : > { %1445 = vmatmul.mubr.msk.f32.vlgmr.msra.gmra.mrb[2].mxu0 %vm293_vm1, %v521_v48 }
 0x20c   : > { %1447 = vmatprep.mubr.msk.f32.mxu0 %vm293_vm1, %v522_v50 }
 0x20f   : > { %1448 = vmatmul.mubr.msk.f32.gmra.mrb[4].mxu0 %vm293_vm1, %v523_v53 }
 0x210   : > { %1450 = vmatprep.mubr.msk.f32.mxu0 %vm293_vm1, %v524_v54 }
 0x213   : > { %1451 = vmatmul.mubr.msk.f32.gmra.mrb[6].mxu0 %vm293_vm1, %v525_v43 }
 0x214   : > { %1453 = vmatprep.mubr.msk.f32.mxu0 %vm293_vm1, %v526_v45 }
 0x217   : > { %1454 = vmatmul.mubr.msk.f32.gmra.mrb[8].mxu0 %vm293_vm1, %v527_v46 }
 0x2de   : > { %v1446_v51 = vpop.f32.mrb[2].mxu0 }
 0x2df   : > { %v635_v56 = vadd.f32 %v1446_v51, %v1302_v47  ;;  %v629_v57 = vpop.f32.mrb[3].mxu0 }
 0x2e0   : > { %v630_v58 = vadd.f32 %v1302_v47, %v629_v57 }
 0x2e2   : > { %v1449_v59 = vpop.f32.mrb[4].mxu0  ;;  %1472 = vmatprep.mubr.msk.f32.mxu1 %vm293_vm1, %v630_v58  ;;  %v1856_v60 = vpack.i.bf16 %v635_v56, %v630_v58 }
 0x2e3   : > { %v645_v61 = vadd.f32 %v1449_v59, %v1302_v47  ;;  %v639_v62 = vpop.f32.mrb[5].mxu0 }
 0x2e4   : > { %v640_v63 = vadd.f32 %v1302_v47, %v639_v62  ;;  %1622 = vrot.lane.b32.xlu0 %v1856_v60, %s1706_s8 }
 0x2e6   : > { %v1452_v0 = vpop.f32.mrb[6].mxu0  ;;  %v1859_v1 = vpack.i.bf16 %v645_v61, %v640_v63 }
 0x2e7   : > { %v655_v2 = vadd.f32 %v1452_v0, %v1302_v47  ;;  %v649_v3 = vpop.f32.mrb[7].mxu0 }
 0x2e8   : > { %v650_v4 = vadd.f32 %v1302_v47, %v649_v3  ;;  %1627 = vrot.lane.b32.xlu0 %v1859_v1, %s1706_s8 }
 0x2ea   : > { %v1455_v5 = vpop.f32.mrb[8].mxu0  ;;  %v1862_v6 = vpack.i.bf16 %v655_v2, %v650_v4 }
 0x2eb   : > { %v665_v7 = vadd.f32 %v1455_v5, %v1302_v47  ;;  %v659_v12 = vpop.f32.mrb[9].mxu0 }
 0x2ec   : > { %v660_v13 = vadd.f32 %v1302_v47, %v659_v12  ;;  %1632 = vrot.lane.b32.xlu1 %v1862_v6, %s1706_s8 }
 0x2ee   : > { %v1865_v14 = vpack.i.bf16 %v665_v7, %v660_v13 }
 0x2f0   : > { %1637 = vrot.lane.b32.xlu1 %v1865_v14, %s1706_s8 }
 0x356   : > { %v1623_v16 = vpop.permute.xlu0 %1622 }
 0x357   : > { %v1625_v17 = vunpack.i.h.bf16 %v1623_v16  ;;  %v1624_v19 = vunpack.i.l.bf16 %v1623_v16 }
 0x359   : > { %v1552_v22 = vpack.c.bf16 %v1625_v17, %v1624_v19 }
 0x35a   : > { %v1628_v23 = vpop.permute.xlu0 %1627 }
 0x35b   : > { %v1630_v25 = vunpack.i.h.bf16 %v1628_v23  ;;  %v1629_v26 = vunpack.i.l.bf16 %v1628_v23  ;;  %1554 = vmatprep.subr.msk.bf16.mxu1 %vm1870_vm2, %v1552_v22 }
 0x35c   : > { %1557 = vmatpush3.bf16.xpose.msk.msra.mxu1 %vm1870_vm2, %v1552_v22 }
 0x35d   : > { %v1558_v27 = vpack.c.bf16 %v1630_v25, %v1629_v26 }
 0x35e   : > { %v1633_v28 = vpop.permute.xlu1 %1632 }
 0x35f   : > { %v1635_v29 = vunpack.i.h.bf16 %v1633_v28  ;;  %v1634_v30 = vunpack.i.l.bf16 %v1633_v28  ;;  %1560 = vmatprep.subr.msk.bf16.mxu1 %vm1870_vm2, %v1558_v27 }
 0x361   : > { %v1564_v31 = vpack.c.bf16 %v1635_v29, %v1634_v30 }
 0x362   : > { %v1638_v32 = vpop.permute.xlu1 %1637 }
 0x363   : > { %v1640_v33 = vunpack.i.h.bf16 %v1638_v32  ;;  %v1639_v34 = vunpack.i.l.bf16 %v1638_v32 }
 0x364   : > { %1563 = vmatpush3.bf16.xpose.msk.msra.mxu1 %vm1870_vm2, %v1558_v27 }
 0x365   : > { %1566 = vmatprep.subr.msk.bf16.mxu1 %vm1870_vm2, %v1564_v31  ;;  %v1570_v35 = vpack.c.bf16 %v1640_v33, %v1639_v34 }
 0x36c   : > { %1569 = vmatpush3.bf16.xpose.msk.msra.mxu1 %vm1870_vm2, %v1564_v31 }
 0x36d   : > { %1572 = vmatprep.subr.msk.bf16.mxu1 %vm1870_vm2, %v1570_v35 }
 0x374   : > { %1575 = vmatpush3.bf16.xpose.msk.msra.mxu1 %vm1870_vm2, %v1570_v35 }
 0x37b   : > { %1473 = vmatmul.mubr.msk.f32.vlgmr.msra.gmra.mrb[2].mxu1 %vm293_vm1, %v635_v56 }
 0x37c   : > { %1475 = vmatprep.mubr.msk.f32.mxu1 %vm293_vm1, %v640_v63 }
 0x37f   : > { %1476 = vmatmul.mubr.msk.f32.gmra.mrb[4].mxu1 %vm293_vm1, %v645_v61 }
 0x380   : > { %1478 = vmatprep.mubr.msk.f32.mxu1 %vm293_vm1, %v650_v4 }
 0x383   : > { %1479 = vmatmul.mubr.msk.f32.gmra.mrb[6].mxu1 %vm293_vm1, %v655_v2 }
 0x384   : > { %1481 = vmatprep.mubr.msk.f32.mxu1 %vm293_vm1, %v660_v13 }
 0x387   : > { %1482 = vmatmul.mubr.msk.f32.gmra.mrb[8].mxu1 %vm293_vm1, %v665_v7 }
 0x44e   : > { %v1474_v36 = vpop.f32.mrb[2].mxu1 }
 0x44f   : > { %v830_v37 = vmul.f32 0.17677669, %v1474_v36  ;;  %v790_v38 = vpop.f32.mrb[3].mxu1 }
 0x450   : > { %v829_v40 = vmul.f32 0.17677669, %v790_v38 }
 0x451   : > { %v841_v41 = vsel %vm837_vm3, %v830_v37, -inf }
 0x452   : > { %842 = vmax.xlane.f32.xlu1 %v841_v41  ;;  %v1477_v42 = vpop.f32.mrb[4].mxu1  ;;  %v838_v48 = vsel %vm837_vm3, %v829_v40, -inf }
 0x453   : > { %839 = vmax.xlane.f32.xlu0 %v838_v48  ;;  %v800_v49 = vpop.f32.mrb[5].mxu1  ;;  %v832_v52 = vmul.f32 0.17677669, %v1477_v42 }
 0x454   : > { %v831_v50 = vmul.f32 0.17677669, %v800_v49 }
 0x455   : > { %v847_v45 = vsel %vm837_vm3, %v832_v52, -inf }
 0x456   : > { %v1480_v53 = vpop.f32.mrb[6].mxu1  ;;  %v844_v39 = vsel %vm837_vm3, %v831_v50, -inf }
 0x457   : > { %845 = vmax.xlane.f32.xlu0 %v844_v39  ;;  %v810_v54 = vpop.f32.mrb[7].mxu1  ;;  %v834_v43 = vmul.f32 0.17677669, %v1480_v53 }
 0x458   : > { %v833_v55 = vmul.f32 0.17677669, %v810_v54 }
 0x459   : > { %v853_v57 = vsel %vm837_vm3, %v834_v43, -inf }
 0x45a   : > { %v1483_v44 = vpop.f32.mrb[8].mxu1  ;;  %v850_v46 = vsel %vm837_vm3, %v833_v55, -inf }
 0x45b   : > { %848 = vmax.xlane.f32.xlu0 %v847_v45  ;;  %851 = vmax.xlane.f32.xlu1 %v850_v46  ;;  %v820_v47 = vpop.f32.mrb[9].mxu1  ;;  %v836_v56 = vmul.f32 0.17677669, %v1483_v44 }
 0x45c   : > { %v835_v51 = vmul.f32 0.17677669, %v820_v47 }
 0x45d   : > { %v859_v59 = vsel %vm837_vm3, %v836_v56, -inf }
 0x45e   : > { %v856_v58 = vsel %vm837_vm3, %v835_v51, -inf }
 0x45f   : > { %854 = vmax.xlane.f32.xlu0 %v853_v57  ;;  %857 = vmax.xlane.f32.xlu1 %v856_v58 }
 0x463   : > { %860 = vmax.xlane.f32.xlu0 %v859_v59 }
 0x470   : > { %1642 = vrot.lane.b32.xlu1 %v1856_v60, %s1707_s9 }
 0x4df   : > { %v843_v61 = vpop.xlane.xlu1 %842 }
 0x4e0   : > { %v863_v62 = vsub.f32 %v830_v37, %v843_v61  ;;  %v840_v63 = vpop.xlane.xlu0 %839 }
 0x4e1   : > { %v862_v0 = vsub.f32 %v829_v40, %v840_v63 }
 0x4e2   : > { %v872_v2 = vmul.f32 1.442695, %v863_v62 }
 0x4e3   : > { %v870_v3 = vmul.f32 1.442695, %v862_v0 }
 0x4e4   : > { %1663 = vpow2.f32 %v872_v2  ;;  %v846_v4 = vpop.xlane.xlu0 %845 }
 0x4e5   : > { %1665 = vpow2.f32 %v870_v3  ;;  %v864_v5 = vsub.f32 %v831_v50, %v846_v4 }
 0x4e7   : > { %v874_v7 = vmul.f32 1.442695, %v864_v5 }
 0x4e8   : > { %v849_v12 = vpop.xlane.xlu0 %848  ;;  %v852_v13 = vpop.xlane.xlu1 %851 }
 0x4e9   : > { %1667 = vpow2.f32 %v874_v7  ;;  %v865_v16 = vsub.f32 %v832_v52, %v849_v12  ;;  %v866_v17 = vsub.f32 %v833_v55, %v852_v13 }
 0x4eb   : > { %v876_v19 = vmul.f32 1.442695, %v865_v16  ;;  %v878_v20 = vmul.f32 1.442695, %v866_v17  ;;  %v1079_v16 = vld [vmem:[%s2005_s5] sm:$0xff]  ;;  %v1080_v17 = vld [vmem:[%s2005_s5 + $0x8] sm:$0xff] }
 0x4ec   : > { %v855_v22 = vpop.xlane.xlu0 %854  ;;  %v858_v60 = vpop.xlane.xlu1 %857 }
 0x4ed   : > { %1669 = vpow2.f32 %v876_v19  ;;  %v867_v23 = vsub.f32 %v834_v43, %v855_v22  ;;  %v868_v28 = vsub.f32 %v835_v51, %v858_v60  ;;  %v1592_v22 = vpack.c.bf16 %v1080_v17, %v1079_v16 }
 0x4ee   : > { %v1907_v25 = vpop.eup %1663  ;;  %1671 = vpow2.f32 %v878_v20 }
 0x4ef   : > { %v1666_v26 = vpop.eup %1665  ;;  %v880_v27 = vmul.f32 1.442695, %v867_v23  ;;  %v889_v29 = vsel %vm837_vm3, %v1907_v25, 0.0  ;;  %v882_v37 = vmul.f32 1.442695, %v868_v28  ;;  %v1081_v23 = vld [vmem:[%s2005_s5 + $0x10] sm:$0xff] }
 0x4f0   : > { %890 = vadd.xlane.f32.xlu0 %v889_v29  ;;  %v861_v30 = vpop.xlane.xlu0 %860  ;;  %v1643_v31 = vpop.permute.xlu1 %1642  ;;  %v886_v32 = vsel %vm837_vm3, %v1666_v26, 0.0 }
 0x4f1   : > { %1673 = vpow2.f32 %v880_v27  ;;  %v869_v33 = vsub.f32 %v836_v56, %v861_v30  ;;  %v1645_v34 = vunpack.i.h.bf16 %v1643_v31  ;;  %v1644_v35 = vunpack.i.l.bf16 %v1643_v31  ;;  %887 = vadd.xlane.f32.xlu1 %v886_v32 }
 0x4f3   : > { %v1912_v36 = vpop.eup %1667  ;;  %v884_v38 = vmul.f32 1.442695, %v869_v33  ;;  %v1576_v40 = vpack.c.bf16 %v1645_v34, %v1644_v35 }
 0x4f4   : > { %v892_v41 = vsel %vm837_vm3, %v1912_v36, 0.0 }
 0x4f5   : > { %1675 = vpow2.f32 %v884_v38  ;;  %893 = vadd.xlane.f32.xlu1 %v892_v41  ;;  %1577 = vmatprep.subr.bf16.mxu0 %v1576_v40 }
 0x4f6   : > { %1600 = vmatprep.subr.bf16.mxu1 %v1576_v40  ;;  %1579 = vmatpush3.bf16.msra.mxu0 %v1576_v40  ;;  %1677 = vpow2.f32 %v882_v37 }
 0x4f7   : > { %v1916_v42 = vpop.eup %1669  ;;  %1604 = vmatpush3.bf16.msra.mxu1 %v1576_v40 }
 0x4f8   : > { %v1918_v48 = vpop.eup %1671  ;;  %v895_v49 = vsel %vm837_vm3, %v1916_v42, 0.0 }
 0x4f9   : > { %896 = vadd.xlane.f32.xlu0 %v895_v49  ;;  %v898_v50 = vsel %vm837_vm3, %v1918_v48, 0.0 }
 0x4fa   : > { %899 = vadd.xlane.f32.xlu1 %v898_v50 }
 0x4fb   : > { %v1924_v52 = vpop.eup %1673 }
 0x4fc   : > { %v901_v53 = vsel %vm837_vm3, %v1924_v52, 0.0 }
 0x4fd   : > { %902 = vadd.xlane.f32.xlu0 %v901_v53 }
 0x4ff   : > { %v1928_v39 = vpop.eup %1675 }
 0x500   : > { %v907_v54 = vsel %vm837_vm3, %v1928_v39, 0.0  ;;  %v1678_v55 = vpop.eup %1677 }
 0x501   : > { %908 = vadd.xlane.f32.xlu0 %v907_v54  ;;  %v904_v43 = vsel %vm837_vm3, %v1678_v55, 0.0 }
 0x505   : > { %905 = vadd.xlane.f32.xlu0 %v904_v43 }
 0x50b   : > { %1652 = vrot.lane.b32.xlu1 %v1862_v6, %s1707_s9 }
 0x50f   : > { %1657 = vrot.lane.b32.xlu1 %v1865_v14, %s1707_s9 }
 0x51b   : > { %1647 = vrot.lane.b32.xlu0 %v1859_v1, %s1707_s9 }
 0x57d   : > { %v891_v45 = vpop.xlane.xlu0 %890 }
 0x57e   : > { %v888_v44 = vpop.xlane.xlu1 %887 }
 0x57f   : > { %1679 = vrcp.f32 %v888_v44 }
 0x582   : > { %v894_v46 = vpop.xlane.xlu1 %893 }
 0x586   : > { %v897_v47 = vpop.xlane.xlu0 %896 }
 0x587   : > { %v900_v58 = vpop.xlane.xlu1 %899 }
 0x589   : > { %v1680_v51 = vpop.eup %1679 }
 0x58a   : > { %v903_v56 = vpop.xlane.xlu0 %902  ;;  %v918_v57 = vmul.f32 %v1680_v51, %v1666_v26  ;;  %v1082_v26 = vld [vmem:[%s2005_s5 + $0x18] sm:$0xff] }
 0x58b   : > { %v1653_v61 = vpop.permute.xlu1 %1652  ;;  %v1596_v30 = vpack.c.bf16 %v1082_v26, %v1081_v23 }
 0x58c   : > { %1500 = vmatprep.mubr.msk.f32.mxu0 %vm837_vm3, %v918_v57  ;;  %v1655_v62 = vunpack.i.h.bf16 %v1653_v61  ;;  %v1654_v63 = vunpack.i.l.bf16 %v1653_v61 }
 0x58e   : > { %v909_v59 = vpop.xlane.xlu0 %908  ;;  %v1584_v4 = vpack.c.bf16 %v1655_v62, %v1654_v63 }
 0x58f   : > { %v1658_v2 = vpop.permute.xlu1 %1657 }
 0x590   : > { %v1660_v5 = vunpack.i.h.bf16 %v1658_v2  ;;  %v1659_v7 = vunpack.i.l.bf16 %v1658_v2 }
 0x592   : > { %v906_v6 = vpop.xlane.xlu0 %905  ;;  %v1588_v19 = vpack.c.bf16 %v1660_v5, %v1659_v7 }
 0x593   : > { %1681 = vrcp.f32 %v906_v6 }
 0x594   : > { %1683 = vrcp.f32 %v891_v45 }
 0x595   : > { %1685 = vrcp.f32 %v909_v59 }
 0x596   : > { %v1648_v14 = vpop.permute.xlu0 %1647  ;;  %1687 = vrcp.f32 %v894_v46 }
 0x597   : > { %v1650_v1 = vunpack.i.h.bf16 %v1648_v14  ;;  %v1649_v0 = vunpack.i.l.bf16 %v1648_v14  ;;  %1689 = vrcp.f32 %v897_v47 }
 0x598   : > { %1691 = vrcp.f32 %v900_v58 }
 0x599   : > { %v1580_v3 = vpack.c.bf16 %v1650_v1, %v1649_v0  ;;  %1693 = vrcp.f32 %v903_v56 }
 0x59b   : > { %1581 = vmatprep.subr.bf16.mxu0 %v1580_v3  ;;  %1601 = vmatprep.subr.bf16.mxu1 %v1580_v3 }
 0x59c   : > { %1583 = vmatpush3.bf16.msra.mxu0 %v1580_v3  ;;  %1605 = vmatpush3.bf16.msra.mxu1 %v1580_v3 }
 0x59d   : > { %v1682_v12 = vpop.eup %1681  ;;  %1585 = vmatprep.subr.bf16.mxu0 %v1584_v4  ;;  %1602 = vmatprep.subr.bf16.mxu1 %v1584_v4 }
 0x59e   : > { %v924_v13 = vmul.f32 %v1682_v12, %v1678_v55  ;;  %v1684_v20 = vpop.eup %1683 }
 0x59f   : > { %v1686_v60 = vpop.eup %1685  ;;  %v919_v28 = vmul.f32 %v1684_v20, %v1907_v25 }
 0x5a0   : > { %1587 = vmatpush3.bf16.msra.mxu0 %v1584_v4  ;;  %1606 = vmatpush3.bf16.msra.mxu1 %v1584_v4  ;;  %v1688_v27 = vpop.eup %1687  ;;  %v925_v29 = vmul.f32 %v1686_v60, %v1928_v39 }
 0x5a1   : > { %1509 = vmatprep.mubr.msk.f32.mxu1 %vm837_vm3, %v924_v13  ;;  %1589 = vmatprep.subr.bf16.mxu0 %v1588_v19  ;;  %v1690_v31 = vpop.eup %1689  ;;  %v920_v32 = vmul.f32 %v1688_v27, %v1912_v36 }
 0x5a2   : > { %1603 = vmatprep.subr.bf16.mxu1 %v1588_v19  ;;  %v1692_v33 = vpop.eup %1691  ;;  %v921_v34 = vmul.f32 %v1690_v31, %v1916_v42 }
 0x5a3   : > { %v1694_v35 = vpop.eup %1693  ;;  %v922_v25 = vmul.f32 %v1692_v33, %v1918_v48 }
 0x5a4   : > { %1591 = vmatpush3.bf16.msra.mxu0 %v1588_v19  ;;  %1607 = vmatpush3.bf16.msra.mxu1 %v1588_v19  ;;  %v923_v36 = vmul.f32 %v1694_v35, %v1924_v52  ;;  %v1335_v52 = vld [vmem:[%s2006_s6] ss:$0 sm:$0xff] }
 0x5a5   : > { %1593 = vmatprep.subr.bf16.mxu0 %v1592_v22 }
 0x5a7   : > { %1501 = vmatmul.mubr.msk.f32.vlgmr.msra.gmra.mrb[10].mxu0 %vm837_vm3, %v919_v28  ;;  %1510 = vmatmul.mubr.msk.f32.vlgmr.msra.gmra.mrb[10].mxu1 %vm837_vm3, %v925_v29 }
 0x5a8   : > { %1503 = vmatprep.mubr.msk.f32.mxu0 %vm837_vm3, %v920_v32  ;;  %1595 = vmatpush3.bf16.msra.mxu0 %v1592_v22 }
 0x5a9   : > { %1597 = vmatprep.subr.bf16.mxu0 %v1596_v30 }
 0x5ab   : > { %1504 = vmatmul.mubr.msk.f32.gmra.mrb[12].mxu0 %vm837_vm3, %v921_v34 }
 0x5ac   : > { %1506 = vmatprep.mubr.msk.f32.mxu0 %vm837_vm3, %v922_v25  ;;  %1599 = vmatpush3.bf16.msra.mxu0 %v1596_v30 }
 0x5af   : > { %1507 = vmatmul.mubr.msk.f32.gmra.mrb[14].mxu0 %vm837_vm3, %v923_v36 }
 0x67a   : > { %v1502_v37 = vpop.f32.mrb[10].mxu0  ;;  %v1511_v38 = vpop.f32.mrb[10].mxu1 }
 0x67b   : > { %v1040_v40 = vpop.f32.mrb[11].mxu0  ;;  %v1070_v41 = vpop.f32.mrb[11].mxu1 }
 0x67c   : > { %1520 = vmatprep.mubr.msk.f32.mxu0 %vm293_vm1, %v1040_v40 }
 0x67d   : > { %1521 = vmatmul.mubr.msk.f32.vlgmr.msra.gmra.mrb[16].mxu0 %vm293_vm1, %v1502_v37 }
 0x67e   : > { %v1505_v42 = vpop.f32.mrb[12].mxu0 }
 0x67f   : > { %v1050_v48 = vpop.f32.mrb[13].mxu0 }
 0x680   : > { %1523 = vmatprep.mubr.msk.f32.mxu0 %vm293_vm1, %v1050_v48 }
 0x681   : > { %1524 = vmatmul.mubr.msk.f32.gmra.mrb[18].mxu0 %vm293_vm1, %v1505_v42 }
 0x682   : > { %v1508_v49 = vpop.f32.mrb[14].mxu0 }
 0x683   : > { %v1060_v50 = vpop.f32.mrb[15].mxu0 }
 0x684   : > { %1526 = vmatprep.mubr.msk.f32.mxu0 %vm293_vm1, %v1060_v50 }
 0x685   : > { %1527 = vmatmul.mubr.msk.f32.gmra.mrb[20].mxu0 %vm293_vm1, %v1508_v49 }
 0x686   : > { %1529 = vmatprep.mubr.msk.f32.mxu0 %vm293_vm1, %v1070_v41 }
 0x689   : > { %1530 = vmatmul.mubr.msk.f32.gmra.mrb[22].mxu0 %vm293_vm1, %v1511_v38 }
 0x750   : > { %v1522_v53 = vpop.f32.mrb[16].mxu0 }
 0x751   : > { %v1186_v39 = vadd.f32 %v1522_v53, %v1335_v52  ;;  %v1180_v54 = vpop.f32.mrb[17].mxu0 }
 0x752   : > { %v1181_v55 = vadd.f32 %v1335_v52, %v1180_v54 }
 0x753   : > { %v1220_v43 = vadd.f32 %v1186_v39, %v1778_v9 }
 0x754   : > { %v1219_v44 = vadd.f32 %v1181_v55, %v1776_v8  ;;  %v1525_v45 = vpop.f32.mrb[18].mxu0 }
 0x755   : > { %1228 = vst.msk [vmem:[%s278_s23 + $0x8] sm:$0xff] %vm293_vm1, %v1220_v43  ;;  %v1196_v46 = vadd.f32 %v1525_v45, %v1335_v52  ;;  %v1190_v47 = vpop.f32.mrb[19].mxu0 }
 0x756   : > { %1227 = vst.msk [vmem:[%s278_s23] sm:$0xff] %vm293_vm1, %v1219_v44  ;;  %v1191_v51 = vadd.f32 %v1335_v52, %v1190_v47 }
 0x757   : > { %v1222_v56 = vadd.f32 %v1196_v46, %v1782_v11 }
 0x758   : > { %v1221_v57 = vadd.f32 %v1191_v51, %v1780_v10  ;;  %v1528_v58 = vpop.f32.mrb[20].mxu0 }
 0x759   : > { %1230 = vst.msk [vmem:[%s278_s23 + $0x18] sm:$0xff] %vm293_vm1, %v1222_v56  ;;  %v1206_v59 = vadd.f32 %v1528_v58, %v1335_v52  ;;  %v1200_v61 = vpop.f32.mrb[21].mxu0 }
 0x75a   : > { %1229 = vst.msk [vmem:[%s278_s23 + $0x10] sm:$0xff] %vm293_vm1, %v1221_v57  ;;  %v1201_v8 = vadd.f32 %v1335_v52, %v1200_v61 }
 0x75b   : > { %v1224_v9 = vadd.f32 %v1206_v59, %v1794_v18 }
 0x75c   : > { %v1223_v6 = vadd.f32 %v1201_v8, %v1790_v15  ;;  %v1531_v14 = vpop.f32.mrb[22].mxu0 }
 0x75d   : > { %1232 = vst.msk [vmem:[%s278_s23 + $0x28] sm:$0xff] %vm293_vm1, %v1224_v9  ;;  %v1216_v62 = vadd.f32 %v1531_v14, %v1335_v52  ;;  %v1210_v63 = vpop.f32.mrb[23].mxu0 }
 0x75e   : > { %1231 = vst.msk [vmem:[%s278_s23 + $0x20] sm:$0xff] %vm293_vm1, %v1223_v6  ;;  %v1211_v10 = vadd.f32 %v1335_v52, %v1210_v63 }
 0x75f   : > { %v1226_v11 = vadd.f32 %v1216_v62, %v1802_v24 }
 0x760   : > { %v1225_v1 = vadd.f32 %v1211_v10, %v1798_v21 }
 0x761   : > { %1234 = vst.msk [vmem:[%s278_s23 + $0x38] sm:$0xff] %vm293_vm1, %v1226_v11 }
 0x762   : > { %1233 = vst.msk [vmem:[%s278_s23 + $0x30] sm:$0xff] %vm293_vm1, %v1225_v1 }
 0x763 PF: > { %s17_s24 = sadd.s32 1, %s1701_s24  }
 0x764   : > { %p14_p4 = scmp.ge.s32.totalorder %s17_s24, 4  }
 0x766   :  { %16 = sbr.rel (!%p14_p4) target bundleno = 1 (0x1), region = 78 }

// kernel: model_forward_pallas.12
= control target key start
LH: loop header
LB: loop body
LE: loop exit
PB: predicated region body
PF: predicated region fallthrough
CT: control target
= control target key end

     0   :  { %s2428_s12 = smov 0   ;;  %s3032_s0 = inlined_call_operand.vmem [shape: f32[2,64,32], index: 0, kind: input, shape index: {}]   ;;  %s3033_s1 = inlined_call_operand.vmem [shape: f32[9,32,32], index: 1, kind: input, shape index: {}]   ;;  %s3034_s2 = inlined_call_operand.vmem [shape: f32[1,32], index: 2, kind: input, shape index: {}]   ;;  %s3035_s3 = inlined_call_operand.vmem [shape: f32[2,64,32], index: 3, kind: output, shape index: {}]  }
   0x1 LB: > { %s1820_s13 = sadd.s32 4294967295, %s2405_s12   ;;  %p1824_p0 = scmp.ge.s32.totalorder %s2405_s12, 1  ;;  %s2405_s12 = sphi %s2428_s12, %s13_s12  }
   0x2   : > { %p137_p1 = scmp.lt.s32.totalorder %s2405_s12, 3 }
   0x4   : > { %p138_p2 = pnand %p1824_p0, %p137_p1 }
   0x5   : > { %v376_v0 = vld [vmem:[%s3033_s1] sm:$0xff] (!%p138_p2)  ;;  %v377_v1 = vld [vmem:[%s3033_s1 + $0x8] sm:$0xff] (!%p138_p2)  ;;  %p2447_p3 = scmp.lt.s32.totalorder (!%p138_p2), %s1820_s13, 1  ;;  %vm333_vm0 = vcmask (!%p138_p2), 261120   ;;  %v171_v3 = vlaneseq (!%p138_p2)  ;;  %v378_v6 = vld [vmem:[%s3033_s1 + $0x10] sm:$0xff] (!%p138_p2)  ;;  %v2407_v8 = vmov (!%p138_p2), 0.0  }
   0x6   : > { %141 = sbr.rel (%p138_p2) target bundleno = 314 (0x13a), region = 32  ;;  %v1890_v2 = vld [vmem:[%s3033_s1 + $0x80] sm:$0xff] (!%p138_p2)  ;;  %v2242_v4 = vpack.c.bf16 (!%p138_p2), %v377_v1, %v376_v0  ;;  %v1891_v5 = vld [vmem:[%s3033_s1 + $0x88] sm:$0xff] (!%p138_p2)  ;;  %v379_v7 = vld [vmem:[%s3033_s1 + $0x18] sm:$0xff] (!%p138_p2)  ;;  %336 = vst.msk [vmem:[#allocation2 + $0x10] sm:$0xff] (!%p138_p2), %vm333_vm0, %v2407_v8 }
   0x7   : > { %334 = vst.msk [vmem:[#allocation2] sm:$0xff] (!%p138_p2), %vm333_vm0, %v2407_v8  ;;  %335 = vst.msk [vmem:[#allocation2 + $0x8] sm:$0xff] (!%p138_p2), %vm333_vm0, %v2407_v8  ;;  %v2484_v9 = vpack.c.bf16 (!%p138_p2), %v1891_v5, %v1890_v2  ;;  %v2246_v10 = vpack.c.bf16 (!%p138_p2), %v379_v7, %v378_v6  ;;  %v1892_v11 = vld [vmem:[%s3033_s1 + $0x90] sm:$0xff] (!%p138_p2)  ;;  %v1893_v12 = vld [vmem:[%s3033_s1 + $0x98] sm:$0xff] (!%p138_p2)  ;;  %v2498_v13 = vshrl.u32 (!%p138_p2), %v171_v3, 7 }
   0x8   : > { %337 = vst.msk [vmem:[#allocation2 + $0x18] sm:$0xff] (!%p138_p2), %vm333_vm0, %v2407_v8  ;;  %338 = vst.msk [vmem:[#allocation2 + $0x20] sm:$0xff] (!%p138_p2), %vm333_vm0, %v2407_v8  ;;  %v1854_v14 = vld [vmem:[%s3033_s1 + $0x20] sm:$0xff] (!%p138_p2)  ;;  %2243 = vmatprep.subr.bf16.mxu1 (!%p138_p2), %v2242_v4  ;;  %v2503_v15 = vpack.c.bf16 (!%p138_p2), %v1893_v12, %v1892_v11  ;;  %v1855_v16 = vld [vmem:[%s3033_s1 + $0x28] sm:$0xff] (!%p138_p2) }
   0x9   : > { %339 = vst.msk [vmem:[#allocation2 + $0x28] sm:$0xff] (!%p138_p2), %vm333_vm0, %v2407_v8  ;;  %340 = vst.msk [vmem:[#allocation2 + $0x30] sm:$0xff] (!%p138_p2), %vm333_vm0, %v2407_v8  ;;  %v1902_v17 = vld [vmem:[%s3033_s1 + $0xa0] sm:$0xff] (!%p138_p2)  ;;  %v1903_v18 = vld [vmem:[%s3033_s1 + $0xa8] sm:$0xff] (!%p138_p2)  ;;  %2275 = vmatprep.subr.bf16.mxu0 (!%p138_p2), %v2484_v9  ;;  %2245 = vmatpush3.bf16.msra.mxu1 (!%p138_p2), %v2242_v4  ;;  %v184_v19 = vand.u32 (!%p138_p2), 7, %v2498_v13  ;;  %v173_v20 = vadd.s32 (!%p138_p2), 8, %v2498_v13  ;;  %v2526_v21 = vpack.c.bf16 (!%p138_p2), %v1855_v16, %v1854_v14 }
   0xa   : > { %341 = vst.msk [vmem:[#allocation2 + $0x38] sm:$0xff] (!%p138_p2), %vm333_vm0, %v2407_v8  ;;  %342 = vst.msk [vmem:[#allocation2 + $0x40] sm:$0xff] (!%p138_p2), %vm333_vm0, %v2407_v8  ;;  %2277 = vmatpush3.bf16.msra.mxu0 (!%p138_p2), %v2484_v9  ;;  %2247 = vmatprep.subr.bf16.mxu1 (!%p138_p2), %v2246_v10  ;;  %v174_v22 = vadd.s32 (!%p138_p2), 16, %v2498_v13  ;;  %v2530_v23 = vadd.s32 (!%p138_p2), 24, %v2498_v13  ;;  %v2533_v24 = vadd.s32 (!%p138_p2), 32, %v2498_v13  ;;  %v2538_v27 = vpack.c.bf16 (!%p138_p2), %v1903_v18, %v1902_v17  ;;  %v1904_v41 = vld [vmem:[%s3033_s1 + $0xb0] sm:$0xff] (!%p138_p2) }
   0xb   : > { %343 = vst.msk [vmem:[#allocation2 + $0x48] sm:$0xff] (!%p138_p2), %vm333_vm0, %v2407_v8  ;;  %344 = vst.msk [vmem:[#allocation2 + $0x50] sm:$0xff] (!%p138_p2), %vm333_vm0, %v2407_v8  ;;  %2279 = vmatprep.subr.bf16.mxu0 (!%p138_p2), %v2503_v15  ;;  %vm276_vm1 = vcmp.ge.s32.totalorder (!%p138_p2), %v184_v19, 1  ;;  %v191_v28 = vand.u32 (!%p138_p2), 7, %v173_v20  ;;  %v2553_v37 = vadd.s32 (!%p138_p2), 40, %v2498_v13  ;;  %v1905_v42 = vld [vmem:[%s3033_s1 + $0xb8] sm:$0xff] (!%p138_p2) }
   0xc   : > { %345 = vst.msk [vmem:[#allocation2 + $0x58] sm:$0xff] (!%p138_p2), %vm333_vm0, %v2407_v8  ;;  %v2543_v30 = vsel (!%p138_p2), %vm276_vm1, 1.0, %v2407_v8  ;;  %v198_v31 = vand.u32 (!%p138_p2), 7, %v174_v22  ;;  %v205_v33 = vand.u32 (!%p138_p2), 7, %v2530_v23  ;;  %v212_v36 = vand.u32 (!%p138_p2), 7, %v2533_v24  ;;  %v1856_v52 = vld [vmem:[%s3033_s1 + $0x30] sm:$0xff] (!%p138_p2) }
   0xd   : > { %s3058_s13 = smov (!%p2447_p3, %s1820_s13), 1  ;;  %2249 = vmatpush3.bf16.msra.mxu1 %v2246_v10  ;;  %vm277_vm2 = vcmp.ge.s32.totalorder %v191_v28, 1  ;;  %v219_v44 = vand.u32 7, %v2553_v37  ;;  %vm2579_vm5 = vcmp.le.s32.totalorder %v184_v19, 6  ;;  %v2593_v49 = vadd.s32 48, %v2498_v13  ;;  %v1857_v53 = vld [vmem:[%s3033_s1 + $0x38] sm:$0xff] }
   0xe   : > { %s1952_s14 = sshll.u32 %s3058_s13, 6  ;;  %v360_v35 = vld [vmem:[#allocation2 + $0x7] sm:$0xff]  ;;  %2281 = vmatpush3.bf16.msra.mxu0 %v2503_v15  ;;  %2251 = vmatprep.subr.bf16.mxu1 %v2526_v21  ;;  %vm278_vm3 = vcmp.ge.s32.totalorder %v198_v31, 1  ;;  %vm2573_vm4 = vcmp.ge.s32.totalorder %v205_v33, 1  ;;  %v2584_v47 = vsel %vm277_vm2, 1.0, %v2407_v8  ;;  %vm2588_vm6 = vcmp.ge.s32.totalorder %v212_v36, 1 }
   0xf   : > { %s2524_s17 = scalar_lea.vmem %s3032_s0, %s1952_s14  ;;  %v368_v39 = vmul.f32 %v2543_v30, %v360_v35  ;;  %2283 = vmatprep.subr.bf16.mxu0 %v2538_v27  ;;  %vm2596_vm7 = vcmp.le.s32.totalorder %v191_v28, 6  ;;  %v2601_v51 = vsel %vm278_vm3, 1.0, %v2407_v8  ;;  %v2610_v54 = vadd.s32 56, %v2498_v13  ;;  %v1914_v60 = vld [vmem:[%s3033_s1 + $0xc0] sm:$0xff]  ;;  %v1915_v61 = vld [vmem:[%s3033_s1 + $0xc8] sm:$0xff]  ;;  %v1917_v24 = vld [vmem:[%s3033_s1 + $0xd8] sm:$0xff]  ;;  %s3011_s22 = scalar_lea.vmem %s3035_s3, %s1952_s14 }
  0x10   : > { %v324_v25 = vld [vmem:[%s2524_s17] sm:$0xff]  ;;  %v325_v26 = vld [vmem:[%s2524_s17 + $0x8] sm:$0xff]  ;;  %v326_v29 = vld [vmem:[%s2524_s17 + $0x10] sm:$0xff]  ;;  %v2286_v58 = vpack.c.bf16 %v1905_v42, %v1904_v41  ;;  %v2621_v59 = vsel %vm2573_vm4, 1.0, %v2407_v8  ;;  %vm2629_vm8 = vcmp.le.s32.totalorder %v198_v31, 6  ;;  %v226_v63 = vand.u32 7, %v2593_v49 }
  0x11   : > { %346 = vst.msk [vmem:[#allocation2 + $0x10] sm:$0xff] %vm333_vm0, %v324_v25  ;;  %347 = vst.msk [vmem:[#allocation2 + $0x18] sm:$0xff] %vm333_vm0, %v325_v26  ;;  %v327_v32 = vld [vmem:[%s2524_s17 + $0x18] sm:$0xff]  ;;  %v328_v34 = vld [vmem:[%s2524_s17 + $0x20] sm:$0xff]  ;;  %2070 = vmatprep.mubr.msk.f32.mxu1 %vm333_vm0, %v368_v39  ;;  %v2647_v4 = vsel %vm2579_vm5, 1.0, %v2407_v8  ;;  %v2652_v5 = vsel %vm2588_vm6, 1.0, %v2407_v8  ;;  %v2254_v12 = vpack.c.bf16 %v1857_v53, %v1856_v52 }
  0x12   : > { %348 = vst.msk [vmem:[#allocation2 + $0x20] sm:$0xff] %vm333_vm0, %v326_v29  ;;  %349 = vst.msk [vmem:[#allocation2 + $0x28] sm:$0xff] %vm333_vm0, %v327_v32  ;;  %v329_v38 = vld [vmem:[%s2524_s17 + $0x28] sm:$0xff]  ;;  %v330_v40 = vld [vmem:[%s2524_s17 + $0x30] sm:$0xff]  ;;  %vm2656_vm9 = vcmp.ge.s32.totalorder %v219_v44, 1  ;;  %vm2670_vm10 = vcmp.ge.s32.totalorder %v226_v63, 1  ;;  %v2290_v32 = vpack.c.bf16 %v1915_v61, %v1914_v60 }
  0x13   : > { %350 = vst.msk [vmem:[#allocation2 + $0x30] sm:$0xff] %vm333_vm0, %v328_v34  ;;  %351 = vst.msk [vmem:[#allocation2 + $0x38] sm:$0xff] %vm333_vm0, %v329_v38  ;;  %v331_v45 = vld [vmem:[%s2524_s17 + $0x38] sm:$0xff]  ;;  %v1866_v14 = vld [vmem:[%s3033_s1 + $0x40] sm:$0xff]  ;;  %v2680_v16 = vsel %vm2596_vm7, 1.0, %v2407_v8  ;;  %v2693_v20 = vsel %vm2629_vm8, 1.0, %v2407_v8 }
  0x14   : > { %352 = vst.msk [vmem:[#allocation2 + $0x40] sm:$0xff] %vm333_vm0, %v330_v40  ;;  %353 = vst.msk [vmem:[#allocation2 + $0x48] sm:$0xff] %vm333_vm0, %v331_v45  ;;  %v233_v22 = vand.u32 7, %v2610_v54  ;;  %v1867_v25 = vld [vmem:[%s3033_s1 + $0x48] sm:$0xff]  ;;  %v2709_v28 = vsel %vm2656_vm9, 1.0, %v2407_v8  ;;  %vm2717_vm11 = vcmp.le.s32.totalorder %v205_v33, 6 }
  0x15   : > { %v2725_v34 = vsel %vm2670_vm10, 1.0, %v2407_v8  ;;  %vm2735_vm13 = vcmp.le.s32.totalorder %v212_v36, 6  ;;  %v2258_v39 = vpack.c.bf16 %v1867_v25, %v1866_v14  ;;  %v1916_v40 = vld [vmem:[%s3033_s1 + $0xd0] sm:$0xff]  ;;  %v2757_v42 = vsel %vm2717_vm11, 1.0, %v2407_v8  ;;  %v1927_v37 = vld [vmem:[%s3033_s1 + $0xe8] sm:$0xff]  ;;  %v1869_v13 = vld [vmem:[%s3033_s1 + $0x58] sm:$0xff] }
  0x16   : > { %vm2729_vm12 = vcmp.ge.s32.totalorder %v233_v22, 1  ;;  %v2775_v50 = vsel %vm2735_vm13, 1.0, %v2407_v8  ;;  %vm305_vm14 = vcmp.le.s32.totalorder %v219_v44, 6  ;;  %v2294_v53 = vpack.c.bf16 %v1917_v24, %v1916_v40  ;;  %v1928_v23 = vld [vmem:[%s3033_s1 + $0xf0] sm:$0xff] }
  0x17   : > { %v2768_v46 = vsel %vm2729_vm12, 1.0, %v2407_v8  ;;  %vm306_vm15 = vcmp.le.s32.totalorder %v226_v63, 6  ;;  %v2799_v60 = vsel %vm305_vm14, 1.0, %v2407_v8  ;;  %vm307_vm1 = vcmp.le.s32.totalorder %v233_v22, 6 }
  0x18   : > { %v2612_v55 = vld [vmem:[#allocation2 + $0x10] sm:$0xff]  ;;  %v2636_v0 = vld [vmem:[#allocation2 + $0x18] sm:$0xff]  ;;  %v2805_v62 = vsel %vm306_vm15, 1.0, %v2407_v8 }
  0x19   : > { %v2614_v56 = vld [vmem:[#allocation2 + $0xf] sm:$0xff]  ;;  %v2616_v57 = vld [vmem:[#allocation2 + $0x17] sm:$0xff]  ;;  %2150 = vmatprep.mubr.msk.f32.mxu0 %vm333_vm0, %v2612_v55  ;;  %v2640_v2 = vld [vmem:[#allocation2 + $0x1f] sm:$0xff] }
  0x1a   : > { %v369_v1 = vmul.f32 %v2584_v47, %v2614_v56  ;;  %v2642_v3 = vld [vmem:[#allocation2 + $0x20] sm:$0xff]  ;;  %2151 = vmatmul.mubr.msk.f32.vlgmr.msra.gmra.mrb[0].mxu0 %vm333_vm0, %v2636_v0  ;;  %v370_v7 = vmul.f32 %v2601_v51, %v2616_v57  ;;  %v2664_v10 = vld [vmem:[#allocation2 + $0x11] sm:$0xff]  ;;  %v2684_v17 = vld [vmem:[#allocation2 + $0x28] sm:$0xff]  ;;  %v371_v18 = vmul.f32 %v2621_v59, %v2640_v2  ;;  %v1300_v38 = vmul.f32 %v2584_v47, %v2640_v2 }
  0x1b   : > { %v2666_v11 = vld [vmem:[#allocation2 + $0x27] sm:$0xff]  ;;  %2285 = vmatpush3.bf16.msra.mxu0 %v2538_v27  ;;  %v2688_v19 = vld [vmem:[#allocation2 + $0x19] sm:$0xff]  ;;  %2153 = vmatprep.mubr.msk.f32.mxu0 %vm333_vm0, %v2642_v3  ;;  %v1141_v26 = vmul.f32 %v2647_v4, %v2664_v10  ;;  %v2711_v29 = vld [vmem:[#allocation2 + $0x2f] sm:$0xff] }
  0x1c   : > { %2071 = vmatmul.mubr.msk.f32.vlgmr.msra.gmra.mrb[0].mxu1 %vm333_vm0, %v369_v1  ;;  %v372_v27 = vmul.f32 %v2652_v5, %v2666_v11  ;;  %v2713_v31 = vld [vmem:[#allocation2 + $0x21] sm:$0xff]  ;;  %2287 = vmatprep.subr.bf16.mxu0 %v2286_v58  ;;  %v2727_v35 = vld [vmem:[#allocation2 + $0x37] sm:$0xff]  ;;  %v1142_v33 = vmul.f32 %v2680_v16, %v2688_v19  ;;  %v373_v36 = vmul.f32 %v2709_v28, %v2711_v29  ;;  %v2759_v43 = vld [vmem:[#allocation2 + $0x29] sm:$0xff] }
  0x1d   : > { %2253 = vmatpush3.bf16.msra.mxu1 %v2526_v21  ;;  %2073 = vmatprep.mubr.msk.f32.mxu1 %vm333_vm0, %v370_v7  ;;  %v1143_v41 = vmul.f32 %v2693_v20, %v2713_v31  ;;  %v374_v45 = vmul.f32 %v2725_v34, %v2727_v35  ;;  %v2770_v48 = vld [vmem:[#allocation2 + $0x3f] sm:$0xff]  ;;  %v2777_v52 = vld [vmem:[#allocation2 + $0x31] sm:$0xff]  ;;  %v1144_v54 = vmul.f32 %v2757_v42, %v2759_v43  ;;  %v517_v1 = vld [vmem:[#allocation2 + $0x8] sm:$0xff] }
  0x1e   : > { %2154 = vmatmul.mubr.msk.f32.gmra.mrb[2].mxu0 %vm333_vm0, %v2684_v17  ;;  %2255 = vmatprep.subr.bf16.mxu1 %v2254_v12  ;;  %v375_v44 = vmul.f32 %v2768_v46, %v2770_v48  ;;  %v1145_v49 = vmul.f32 %v2775_v50, %v2777_v52  ;;  %v2801_v61 = vld [vmem:[#allocation2 + $0x39] sm:$0xff]  ;;  %v2807_v63 = vld [vmem:[#allocation2 + $0x41] sm:$0xff]  ;;  %v2825_v22 = vld [vmem:[#allocation2 + $0x49] sm:$0xff]  ;;  %v1299_v21 = vmul.f32 %v2543_v30, %v2616_v57 }
  0x1f   : > { %2289 = vmatpush3.bf16.msra.mxu0 %v2286_v58  ;;  %2170 = vmatprep.mubr.msk.f32.mxu0 %vm333_vm0, %v1141_v26  ;;  %v1926_v58 = vld [vmem:[%s3033_s1 + $0xe0] sm:$0xff]  ;;  %v1146_v7 = vmul.f32 %v2799_v60, %v2801_v61  ;;  %v1147_v14 = vmul.f32 %v2805_v62, %v2807_v63  ;;  %v2862_v40 = vld [vmem:[#allocation2 + $0x38] sm:$0xff]  ;;  %v667_v24 = vld [vmem:[#allocation2 + $0x9] sm:$0xff] }
  0x20   : > { %2074 = vmatmul.mubr.msk.f32.gmra.mrb[2].mxu1 %vm333_vm0, %v371_v18  ;;  %2291 = vmatprep.subr.bf16.mxu0 %v2290_v32  ;;  %v2298_v6 = vpack.c.bf16 %v1927_v37, %v1926_v58  ;;  %v2823_v18 = vsel %vm307_vm1, 1.0, %v2407_v8  ;;  %v1879_v8 = vld [vmem:[%s3033_s1 + $0x68] sm:$0xff]  ;;  %v2880_v58 = vld [vmem:[#allocation2 + $0x40] sm:$0xff]  ;;  %v675_v37 = vmul.f32 %v2647_v4, %v667_v24 }
  0x21   : > { %2076 = vmatprep.mubr.msk.f32.mxu1 %vm333_vm0, %v372_v27  ;;  %2257 = vmatpush3.bf16.msra.mxu1 %v2254_v12  ;;  %v1868_v12 = vld [vmem:[%s3033_s1 + $0x50] sm:$0xff]  ;;  %v1148_v26 = vmul.f32 %v2823_v18, %v2825_v22  ;;  %v1878_v27 = vld [vmem:[%s3033_s1 + $0x60] sm:$0xff] }
  0x22   : > { %2171 = vmatmul.mubr.msk.f32.vlgmr.msra.gmra.mrb[0].mxu0 %vm333_vm0, %v1142_v33  ;;  %2259 = vmatprep.subr.bf16.mxu1 %v2258_v39  ;;  %v2262_v25 = vpack.c.bf16 %v1869_v13, %v1868_v12  ;;  %v1301_v33 = vmul.f32 %v2601_v51, %v2666_v11  ;;  %v676_v12 = vmul.f32 %v2680_v16, %v2664_v10 }
  0x23   : > { %2173 = vmatprep.mubr.msk.f32.mxu0 %vm333_vm0, %v1143_v41  ;;  %2293 = vmatpush3.bf16.msra.mxu0 %v2290_v32  ;;  %v2266_v32 = vpack.c.bf16 %v1879_v8, %v1878_v27  ;;  %v1302_v41 = vmul.f32 %v2621_v59, %v2711_v29  ;;  %v678_v10 = vmul.f32 %v2757_v42, %v2713_v31 }
  0x24   : > { %2077 = vmatmul.mubr.msk.f32.gmra.mrb[4].mxu1 %vm333_vm0, %v373_v36  ;;  %2295 = vmatprep.subr.bf16.mxu0 %v2294_v53  ;;  %v679_v8 = vmul.f32 %v2775_v50, %v2759_v43 }
  0x25   : > { %2079 = vmatprep.mubr.msk.f32.mxu1 %vm333_vm0, %v374_v45  ;;  %v1938_v45 = vld [vmem:[%s3033_s1 + $0x100] sm:$0xff] }
  0x26   : > { %2174 = vmatmul.mubr.msk.f32.gmra.mrb[2].mxu0 %vm333_vm0, %v1144_v54  ;;  %v1303_v54 = vmul.f32 %v2652_v5, %v2727_v35 }
  0x27   : > { %2176 = vmatprep.mubr.msk.f32.mxu0 %vm333_vm0, %v1145_v49  ;;  %2297 = vmatpush3.bf16.msra.mxu0 %v2294_v53  ;;  %v1939_v53 = vld [vmem:[%s3033_s1 + $0x108] sm:$0xff] }
  0x28   : > { %2080 = vmatmul.mubr.msk.f32.gmra.mrb[6].mxu1 %vm333_vm0, %v375_v44  ;;  %2299 = vmatprep.subr.bf16.mxu0 %v2298_v6  ;;  %v2883_v44 = vld [vmem:[#allocation2 + $0x47] sm:$0xff]  ;;  %v2306_v49 = vpack.c.bf16 %v1939_v53, %v1938_v45 }
  0x29   : > { %2090 = vmatprep.mubr.msk.f32.mxu1 %vm333_vm0, %v517_v1  ;;  %v1304_v1 = vmul.f32 %v2709_v28, %v2770_v48  ;;  %v1305_v13 = vmul.f32 %v2725_v34, %v2883_v44 }
  0x2a   : > { %2177 = vmatmul.mubr.msk.f32.gmra.mrb[4].mxu0 %vm333_vm0, %v1146_v7  ;;  %v1881_v7 = vld [vmem:[%s3033_s1 + $0x78] sm:$0xff] }
  0x2b   : > { %2179 = vmatprep.mubr.msk.f32.mxu0 %vm333_vm0, %v1147_v14  ;;  %v1298_v14 = vld [vmem:[#allocation2 + $0x4f] sm:$0xff] }
  0x2c   : > { %2091 = vmatmul.mubr.msk.f32.vlgmr.msra.gmra.mrb[0].mxu1 %vm333_vm0, %v2612_v55  ;;  %v1929_v55 = vld [vmem:[%s3033_s1 + $0xf8] sm:$0xff]  ;;  %v1306_v27 = vmul.f32 %v2768_v46, %v1298_v14 }
  0x2d   : > { %2261 = vmatpush3.bf16.msra.mxu1 %v2258_v39  ;;  %2093 = vmatprep.mubr.msk.f32.mxu1 %vm333_vm0, %v2636_v0  ;;  %v2860_v39 = vld [vmem:[#allocation2 + $0x30] sm:$0xff]  ;;  %v2302_v36 = vpack.c.bf16 %v1929_v55, %v1928_v23  ;;  %v681_v23 = vmul.f32 %v2805_v62, %v2801_v61 }
  0x2e   : > { %2263 = vmatprep.subr.bf16.mxu1 %v2262_v25  ;;  %2180 = vmatmul.mubr.msk.f32.gmra.mrb[6].mxu0 %vm333_vm0, %v1148_v26 }
  0x2f   : > { %2190 = vmatprep.mubr.msk.f32.mxu0 %vm333_vm0, %v1299_v21  ;;  %v1940_v21 = vld [vmem:[%s3033_s1 + $0x110] sm:$0xff] }
  0x30   : > { %2094 = vmatmul.mubr.msk.f32.gmra.mrb[2].mxu1 %vm333_vm0, %v2642_v3 }
  0x31   : > { %2096 = vmatprep.mubr.msk.f32.mxu1 %vm333_vm0, %v2684_v17  ;;  %2265 = vmatpush3.bf16.msra.mxu1 %v2262_v25  ;;  %v677_v25 = vmul.f32 %v2693_v20, %v2688_v19 }
  0x32   : > { %2267 = vmatprep.subr.bf16.mxu1 %v2266_v32  ;;  %2191 = vmatmul.mubr.msk.f32.vlgmr.msra.gmra.mrb[0].mxu0 %vm333_vm0, %v1300_v38  ;;  %v1941_v38 = vld [vmem:[%s3033_s1 + $0x118] sm:$0xff] }
  0x33   : > { %2193 = vmatprep.mubr.msk.f32.mxu0 %vm333_vm0, %v1301_v33  ;;  %2301 = vmatpush3.bf16.msra.mxu0 %v2298_v6  ;;  %v1880_v6 = vld [vmem:[%s3033_s1 + $0x70] sm:$0xff]  ;;  %v2310_v55 = vpack.c.bf16 %v1941_v38, %v1940_v21  ;;  %v833_v33 = vmul.f32 %v2543_v30, %v2614_v56  ;;  %v835_v30 = vmul.f32 %v2601_v51, %v2640_v2 }
  0x34   : > { %2097 = vmatmul.mubr.msk.f32.gmra.mrb[4].mxu1 %vm333_vm0, %v2860_v39  ;;  %2303 = vmatprep.subr.bf16.mxu0 %v2302_v36  ;;  %v2270_v26 = vpack.c.bf16 %v1881_v7, %v1880_v6  ;;  %v836_v56 = vmul.f32 %v2621_v59, %v2666_v11  ;;  %v837_v51 = vmul.f32 %v2652_v5, %v2711_v29 }
  0x35   : > { %2099 = vmatprep.mubr.msk.f32.mxu1 %vm333_vm0, %v2862_v40  ;;  %v1608_v2 = vmul.f32 %v2680_v16, %v2713_v31  ;;  %v838_v59 = vmul.f32 %v2709_v28, %v2727_v35  ;;  %v1610_v5 = vmul.f32 %v2757_v42, %v2777_v52  ;;  %v840_v11 = vmul.f32 %v2768_v46, %v2883_v44 }
  0x36   : > { %2194 = vmatmul.mubr.msk.f32.gmra.mrb[2].mxu0 %vm333_vm0, %v1302_v41  ;;  %v1611_v16 = vmul.f32 %v2775_v50, %v2801_v61 }
  0x37   : > { %2196 = vmatprep.mubr.msk.f32.mxu0 %vm333_vm0, %v1303_v54  ;;  %2305 = vmatpush3.bf16.msra.mxu0 %v2302_v36 }
  0x38   : > { %2100 = vmatmul.mubr.msk.f32.gmra.mrb[6].mxu1 %vm333_vm0, %v2880_v58  ;;  %2307 = vmatprep.subr.bf16.mxu0 %v2306_v49 }
  0x39   : > { %2110 = vmatprep.mubr.msk.f32.mxu1 %vm333_vm0, %v675_v37 }
  0x3a   : > { %2197 = vmatmul.mubr.msk.f32.gmra.mrb[4].mxu0 %vm333_vm0, %v1304_v1 }
  0x3b   : > { %2199 = vmatprep.mubr.msk.f32.mxu0 %vm333_vm0, %v1305_v13 }
  0x3c   : > { %2111 = vmatmul.mubr.msk.f32.vlgmr.msra.gmra.mrb[0].mxu1 %vm333_vm0, %v676_v12 }
  0x3d   : > { %2269 = vmatpush3.bf16.msra.mxu1 %v2266_v32  ;;  %2113 = vmatprep.mubr.msk.f32.mxu1 %vm333_vm0, %v677_v25  ;;  %v680_v32 = vmul.f32 %v2799_v60, %v2777_v52 }
  0x3e   : > { %2271 = vmatprep.subr.bf16.mxu1 %v2270_v26  ;;  %2200 = vmatmul.mubr.msk.f32.gmra.mrb[6].mxu0 %vm333_vm0, %v1306_v27 }
  0x3f   : > { %2210 = vmatprep.mubr.msk.f32.mxu0 %vm333_vm0, %v2636_v0  ;;  %v682_v0 = vmul.f32 %v2823_v18, %v2807_v63 }
  0x40   : > { %2114 = vmatmul.mubr.msk.f32.gmra.mrb[2].mxu1 %vm333_vm0, %v678_v10 }
  0x41   : > { %2116 = vmatprep.mubr.msk.f32.mxu1 %vm333_vm0, %v679_v8  ;;  %2273 = vmatpush3.bf16.msra.mxu1 %v2270_v26 }
  0x42   : > { %2314 = vmatprep.subr.bf16.mxu1 %v2484_v9  ;;  %2211 = vmatmul.mubr.msk.f32.vlgmr.msra.gmra.mrb[0].mxu0 %vm333_vm0, %v2642_v3  ;;  %v834_v3 = vmul.f32 %v2584_v47, %v2616_v57  ;;  %v1456_v47 = vld [vmem:[#allocation2 + $0x50] sm:$0xff]  ;;  %v1607_v57 = vmul.f32 %v2647_v4, %v2688_v19  ;;  %v839_v4 = vmul.f32 %v2725_v34, %v2770_v48  ;;  %v1845_v34 = vld [vmem:[%s3034_s2] ss:$0 sm:$0xff] }
  0x43   : > { %2213 = vmatprep.mubr.msk.f32.mxu0 %vm333_vm0, %v2684_v17  ;;  %2309 = vmatpush3.bf16.msra.mxu0 %v2306_v49  ;;  %v1455_v17 = vld [vmem:[#allocation2 + $0x48] sm:$0xff]  ;;  %v1613_v19 = vmul.f32 %v2805_v62, %v2825_v22 }
  0x44   : > { %2117 = vmatmul.mubr.msk.f32.gmra.mrb[4].mxu1 %vm333_vm0, %v680_v32  ;;  %2311 = vmatprep.subr.bf16.mxu0 %v2310_v55 }
  0x45   : > { %2119 = vmatprep.mubr.msk.f32.mxu1 %vm333_vm0, %v681_v23 }
  0x46   : > { %2214 = vmatmul.mubr.msk.f32.gmra.mrb[2].mxu0 %vm333_vm0, %v2860_v39 }
  0x47   : > { %2216 = vmatprep.mubr.msk.f32.mxu0 %vm333_vm0, %v2862_v40  ;;  %2313 = vmatpush3.bf16.msra.mxu0 %v2310_v55 }
  0x48   : > { %2120 = vmatmul.mubr.msk.f32.gmra.mrb[6].mxu1 %vm333_vm0, %v682_v0 }
  0x49   : > { %2130 = vmatprep.mubr.msk.f32.mxu1 %vm333_vm0, %v833_v33 }
  0x4a   : > { %2217 = vmatmul.mubr.msk.f32.gmra.mrb[4].mxu0 %vm333_vm0, %v2880_v58 }
  0x4b   : > { %2219 = vmatprep.mubr.msk.f32.mxu0 %vm333_vm0, %v1455_v17 }
  0x4c   : > { %2131 = vmatmul.mubr.msk.f32.vlgmr.msra.gmra.mrb[0].mxu1 %vm333_vm0, %v834_v3 }
  0x4d   : > { %2316 = vmatpush3.bf16.msra.mxu1 %v2484_v9  ;;  %2133 = vmatprep.mubr.msk.f32.mxu1 %vm333_vm0, %v835_v30  ;;  %v1609_v9 = vmul.f32 %v2693_v20, %v2759_v43  ;;  %v1606_v20 = vld [vmem:[#allocation2 + $0x51] sm:$0xff] }
  0x4e   : > { %2315 = vmatprep.subr.bf16.mxu1 %v2503_v15  ;;  %2220 = vmatmul.mubr.msk.f32.gmra.mrb[6].mxu0 %vm333_vm0, %v1456_v47  ;;  %v1614_v28 = vmul.f32 %v2823_v18, %v1606_v20 }
  0x4f   : > { %2230 = vmatprep.mubr.msk.f32.mxu0 %vm333_vm0, %v1607_v57 }
  0x50   : > { %2134 = vmatmul.mubr.msk.f32.gmra.mrb[2].mxu1 %vm333_vm0, %v836_v56 }
  0x51   : > { %2136 = vmatprep.mubr.msk.f32.mxu1 %vm333_vm0, %v837_v51  ;;  %2317 = vmatpush3.bf16.msra.mxu1 %v2503_v15  ;;  %v1612_v15 = vmul.f32 %v2799_v60, %v2807_v63 }
  0x52   : > { %2231 = vmatmul.mubr.msk.f32.vlgmr.msra.gmra.mrb[0].mxu0 %vm333_vm0, %v1608_v2 }
  0x53   : > { %2233 = vmatprep.mubr.msk.f32.mxu0 %vm333_vm0, %v1609_v9 }
  0x54   : > { %2137 = vmatmul.mubr.msk.f32.gmra.mrb[4].mxu1 %vm333_vm0, %v838_v59 }
  0x55   : > { %2139 = vmatprep.mubr.msk.f32.mxu1 %vm333_vm0, %v839_v4 }
  0x56   : > { %2234 = vmatmul.mubr.msk.f32.gmra.mrb[2].mxu0 %vm333_vm0, %v1610_v5 }
  0x57   : > { %2236 = vmatprep.mubr.msk.f32.mxu0 %vm333_vm0, %v1611_v16 }
  0x58   : > { %2140 = vmatmul.mubr.msk.f32.gmra.mrb[6].mxu1 %vm333_vm0, %v840_v11 }
  0x59   : > { %2156 = vmatprep.mubr.msk.f32.mxu1 %vm333_vm0, %v2860_v39 }
  0x5a   : > { %2237 = vmatmul.mubr.msk.f32.gmra.mrb[4].mxu0 %vm333_vm0, %v1612_v15 }
  0x5b   : > { %2239 = vmatprep.mubr.msk.f32.mxu0 %vm333_vm0, %v1613_v19 }
  0x5c   : > { %2157 = vmatmul.mubr.msk.f32.vlgmr.msra.gmra.mrb[4].mxu1 %vm333_vm0, %v2862_v40 }
  0x5d   : > { %2159 = vmatprep.mubr.msk.f32.mxu1 %vm333_vm0, %v2880_v58 }
  0x5e   : > { %2240 = vmatmul.mubr.msk.f32.gmra.mrb[6].mxu0 %vm333_vm0, %v1614_v28 }
  0x60   : > { %2160 = vmatmul.mubr.msk.f32.gmra.mrb[6].mxu1 %vm333_vm0, %v1455_v17 }
 0x11f   : > { %v2132_v29 = vpop.f32.mrb[0].mxu1 }
 0x120   : > { %v936_v31 = vpop.f32.mrb[1].mxu1  ;;  %v2318_v43 = vadd.f32 %v2132_v29, %v1845_v34 }
 0x121   : > { %v2320_v46 = vadd.f32 %v1845_v34, %v936_v31 }
 0x123   : > { %v2135_v35 = vpop.f32.mrb[2].mxu1 }
 0x124   : > { %v946_v42 = vpop.f32.mrb[3].mxu1  ;;  %v2322_v61 = vadd.f32 %v2135_v35, %v1845_v34 }
 0x125   : > { %v2232_v48 = vpop.f32.mrb[0].mxu0  ;;  %v2324_v62 = vadd.f32 %v1845_v34, %v946_v42 }
 0x126   : > { %v2319_v50 = vadd.f32 %v2318_v43, %v2232_v48  ;;  %v1710_v52 = vpop.f32.mrb[1].mxu0 }
 0x127   : > { %v2321_v60 = vadd.f32 %v2320_v46, %v1710_v52 }
 0x128   : > { %1758 = vst.msk [vmem:[%s3011_s22 + $0x8] sm:$0xff] %vm333_vm0, %v2319_v50 }
 0x129   : > { %1757 = vst.msk [vmem:[%s3011_s22] sm:$0xff] %vm333_vm0, %v2321_v60  ;;  %v2235_v63 = vpop.f32.mrb[2].mxu0 }
 0x12a   : > { %v2323_v18 = vadd.f32 %v2322_v61, %v2235_v63  ;;  %v1720_v22 = vpop.f32.mrb[3].mxu0 }
 0x12b   : > { %v2325_v39 = vadd.f32 %v2324_v62, %v1720_v22 }
 0x12c   : > { %1760 = vst.msk [vmem:[%s3011_s22 + $0x18] sm:$0xff] %vm333_vm0, %v2323_v18 }
 0x12d   : > { %1759 = vst.msk [vmem:[%s3011_s22 + $0x10] sm:$0xff] %vm333_vm0, %v2325_v39  ;;  %v2238_v40 = vpop.f32.mrb[4].mxu0 }
 0x12e   : > { %v1730_v36 = vpop.f32.mrb[5].mxu0 }
 0x12f   : > { %v2158_v24 = vpop.f32.mrb[4].mxu1 }
 0x130   : > { %v2326_v41 = vadd.f32 %v2158_v24, %v1845_v34  ;;  %v1106_v45 = vpop.f32.mrb[5].mxu1 }
 0x131   : > { %v2328_v53 = vadd.f32 %v1845_v34, %v1106_v45  ;;  %v2241_v58 = vpop.f32.mrb[6].mxu0 }
 0x132   : > { %v2327_v54 = vadd.f32 %v2326_v41, %v2238_v40  ;;  %v1740_v49 = vpop.f32.mrb[7].mxu0 }
 0x133   : > { %v2329_v37 = vadd.f32 %v2328_v53, %v1730_v36  ;;  %v2161_v44 = vpop.f32.mrb[6].mxu1 }
 0x134   : > { %1762 = vst.msk [vmem:[%s3011_s22 + $0x28] sm:$0xff] %vm333_vm0, %v2327_v54  ;;  %v2330_v1 = vadd.f32 %v2161_v44, %v1845_v34  ;;  %v1116_v6 = vpop.f32.mrb[7].mxu1 }
 0x135   : > { %1761 = vst.msk [vmem:[%s3011_s22 + $0x20] sm:$0xff] %vm333_vm0, %v2329_v37  ;;  %v2332_v7 = vadd.f32 %v1845_v34, %v1116_v6 }
 0x136   : > { %v2331_v12 = vadd.f32 %v2330_v1, %v2241_v58 }
 0x137   : > { %v2333_v13 = vadd.f32 %v2332_v7, %v1740_v49 }
 0x138   : > { %1764 = vst.msk [vmem:[%s3011_s22 + $0x38] sm:$0xff] %vm333_vm0, %v2331_v12 }
 0x139   : > { %1763 = vst.msk [vmem:[%s3011_s22 + $0x30] sm:$0xff] %vm333_vm0, %v2333_v13 }
 0x13a PF: > { %s13_s12 = sadd.s32 1, %s2405_s12  }
 0x13b   : > { %p10_p4 = scmp.ge.s32.totalorder %s13_s12, 4  }
 0x13d   :  { %12 = sbr.rel (!%p10_p4) target bundleno = 1 (0x1), region = 70 }

// kernel: custom-call.2
= control target key start
LH: loop header
LB: loop body
LE: loop exit
PB: predicated region body
PF: predicated region fallthrough
CT: control target
= control target key end

     0   :  { %s462_s0 = inlined_call_operand.vmem [shape: f32[2,8,8,3,3], index: 0, kind: input, shape index: {}]   ;;  %s463_s2 = inlined_call_operand.vmem [shape: c64[2,8,8,3,3], index: 2, kind: output, shape index: {}]   ;;  %s464_s1 = inlined_call_operand.vmem [shape: f32[2,8,8,3,3], index: 1, kind: input, shape index: {}]  }
   0x1   :  { %v5_v0 = vld [vmem:[%s462_s0] sm:$0xff]  ;;  %v162_v1 = vld [vmem:[%s462_s0 + $0x8] sm:$0xff]  ;;  %v164_v2 = vld [vmem:[%s462_s0 + $0x10] sm:$0xff] }
   0x2   :  { %6 = vst [vmem:[%s463_s2] sm:$0xff] %v5_v0  ;;  %163 = vst [vmem:[%s463_s2 + $0x8] sm:$0xff] %v162_v1  ;;  %v166_v3 = vld [vmem:[%s462_s0 + $0x18] sm:$0xff]  ;;  %v168_v4 = vld [vmem:[%s462_s0 + $0x20] sm:$0xff] }
   0x3   :  { %165 = vst [vmem:[%s463_s2 + $0x10] sm:$0xff] %v164_v2  ;;  %v170_v5 = vld [vmem:[%s462_s0 + $0x28] sm:$0xff]  ;;  %167 = vst [vmem:[%s463_s2 + $0x18] sm:$0xff] %v166_v3  ;;  %v172_v6 = vld [vmem:[%s462_s0 + $0x30] sm:$0xff] }
   0x4   :  { %169 = vst [vmem:[%s463_s2 + $0x20] sm:$0xff] %v168_v4  ;;  %171 = vst [vmem:[%s463_s2 + $0x28] sm:$0xff] %v170_v5  ;;  %v174_v7 = vld [vmem:[%s462_s0 + $0x38] sm:$0xff]  ;;  %v176_v8 = vld [vmem:[%s462_s0 + $0x40] sm:$0xff] }
   0x5   :  { %173 = vst [vmem:[%s463_s2 + $0x30] sm:$0xff] %v172_v6  ;;  %175 = vst [vmem:[%s463_s2 + $0x38] sm:$0xff] %v174_v7  ;;  %v178_v9 = vld [vmem:[%s462_s0 + $0x48] sm:$0xff]  ;;  %v180_v10 = vld [vmem:[%s462_s0 + $0x50] sm:$0xff] }
   0x6   :  { %177 = vst [vmem:[%s463_s2 + $0x40] sm:$0xff] %v176_v8  ;;  %v182_v11 = vld [vmem:[%s462_s0 + $0x58] sm:$0xff]  ;;  %179 = vst [vmem:[%s463_s2 + $0x48] sm:$0xff] %v178_v9  ;;  %v184_v12 = vld [vmem:[%s462_s0 + $0x60] sm:$0xff] }
   0x7   :  { %181 = vst [vmem:[%s463_s2 + $0x50] sm:$0xff] %v180_v10  ;;  %183 = vst [vmem:[%s463_s2 + $0x58] sm:$0xff] %v182_v11  ;;  %v186_v13 = vld [vmem:[%s462_s0 + $0x68] sm:$0xff]  ;;  %v188_v14 = vld [vmem:[%s462_s0 + $0x70] sm:$0xff] }
   0x8   :  { %185 = vst [vmem:[%s463_s2 + $0x60] sm:$0xff] %v184_v12  ;;  %187 = vst [vmem:[%s463_s2 + $0x68] sm:$0xff] %v186_v13  ;;  %v190_v15 = vld [vmem:[%s462_s0 + $0x78] sm:$0xff]  ;;  %v192_v16 = vld [vmem:[%s462_s0 + $0x80] sm:$0xff] }
   0x9   :  { %189 = vst [vmem:[%s463_s2 + $0x70] sm:$0xff] %v188_v14  ;;  %v194_v17 = vld [vmem:[%s462_s0 + $0x88] sm:$0xff]  ;;  %191 = vst [vmem:[%s463_s2 + $0x78] sm:$0xff] %v190_v15  ;;  %v75_v18 = vld [vmem:[%s464_s1] sm:$0xff] }
   0xa   :  { %193 = vst [vmem:[%s463_s2 + $0x80] sm:$0xff] %v192_v16  ;;  %195 = vst [vmem:[%s463_s2 + $0x88] sm:$0xff] %v194_v17  ;;  %v197_v19 = vld [vmem:[%s464_s1 + $0x8] sm:$0xff]  ;;  %v199_v20 = vld [vmem:[%s464_s1 + $0x10] sm:$0xff] }
   0xb   :  { %196 = vst [vmem:[%s463_s2 + $0x90] sm:$0xff] %v75_v18  ;;  %198 = vst [vmem:[%s463_s2 + $0x98] sm:$0xff] %v197_v19  ;;  %v201_v21 = vld [vmem:[%s464_s1 + $0x18] sm:$0xff]  ;;  %v203_v22 = vld [vmem:[%s464_s1 + $0x20] sm:$0xff] }
   0xc   :  { %200 = vst [vmem:[%s463_s2 + $0xa0] sm:$0xff] %v199_v20  ;;  %v205_v23 = vld [vmem:[%s464_s1 + $0x28] sm:$0xff]  ;;  %202 = vst [vmem:[%s463_s2 + $0xa8] sm:$0xff] %v201_v21  ;;  %v207_v24 = vld [vmem:[%s464_s1 + $0x30] sm:$0xff] }
   0xd   :  { %204 = vst [vmem:[%s463_s2 + $0xb0] sm:$0xff] %v203_v22  ;;  %206 = vst [vmem:[%s463_s2 + $0xb8] sm:$0xff] %v205_v23  ;;  %v209_v25 = vld [vmem:[%s464_s1 + $0x38] sm:$0xff]  ;;  %v211_v26 = vld [vmem:[%s464_s1 + $0x40] sm:$0xff] }
   0xe   :  { %208 = vst [vmem:[%s463_s2 + $0xc0] sm:$0xff] %v207_v24  ;;  %210 = vst [vmem:[%s463_s2 + $0xc8] sm:$0xff] %v209_v25  ;;  %v213_v27 = vld [vmem:[%s464_s1 + $0x48] sm:$0xff]  ;;  %v215_v28 = vld [vmem:[%s464_s1 + $0x50] sm:$0xff] }
   0xf   :  { %212 = vst [vmem:[%s463_s2 + $0xd0] sm:$0xff] %v211_v26  ;;  %v217_v29 = vld [vmem:[%s464_s1 + $0x58] sm:$0xff]  ;;  %214 = vst [vmem:[%s463_s2 + $0xd8] sm:$0xff] %v213_v27  ;;  %v219_v30 = vld [vmem:[%s464_s1 + $0x60] sm:$0xff] }
  0x10   :  { %216 = vst [vmem:[%s463_s2 + $0xe0] sm:$0xff] %v215_v28  ;;  %218 = vst [vmem:[%s463_s2 + $0xe8] sm:$0xff] %v217_v29  ;;  %v221_v31 = vld [vmem:[%s464_s1 + $0x68] sm:$0xff]  ;;  %v223_v32 = vld [vmem:[%s464_s1 + $0x70] sm:$0xff] }
  0x11   :  { %220 = vst [vmem:[%s463_s2 + $0xf0] sm:$0xff] %v219_v30  ;;  %222 = vst [vmem:[%s463_s2 + $0xf8] sm:$0xff] %v221_v31  ;;  %v225_v33 = vld [vmem:[%s464_s1 + $0x78] sm:$0xff]  ;;  %v227_v34 = vld [vmem:[%s464_s1 + $0x80] sm:$0xff] }
  0x12   :  { %224 = vst [vmem:[%s463_s2 + $0x100] sm:$0xff] %v223_v32  ;;  %v229_v35 = vld [vmem:[%s464_s1 + $0x88] sm:$0xff]  ;;  %226 = vst [vmem:[%s463_s2 + $0x108] sm:$0xff] %v225_v33 }
  0x13   :  { %228 = vst [vmem:[%s463_s2 + $0x110] sm:$0xff] %v227_v34  ;;  %230 = vst [vmem:[%s463_s2 + $0x118] sm:$0xff] %v229_v35 }

// kernel: model_forward_pallas.14
= control target key start
LH: loop header
LB: loop body
LE: loop exit
PB: predicated region body
PF: predicated region fallthrough
CT: control target
= control target key end

     0   :  { %s5613_s17 = smov 0   ;;  %s6813_s0 = inlined_call_operand.vmem [shape: f32[2,64,32], index: 0, kind: input, shape index: {}]   ;;  %s6814_s1 = inlined_call_operand.vmem [shape: f32[2,1,128], index: 1, kind: input, shape index: {}]   ;;  %s6815_s2 = inlined_call_operand.vmem [shape: f32[32,32], index: 2, kind: input, shape index: {}]   ;;  %s6816_s3 = inlined_call_operand.vmem [shape: f32[2,32], index: 3, kind: input, shape index: {}]   ;;  %s6817_s4 = inlined_call_operand.vmem [shape: f32[9,32,32], index: 4, kind: input, shape index: {}]   ;;  %s6818_s5 = inlined_call_operand.vmem [shape: f32[1,32], index: 5, kind: input, shape index: {}]   ;;  %s6819_s6 = inlined_call_operand.vmem [shape: f32[128,32], index: 6, kind: input, shape index: {}]   ;;  %s6820_s7 = inlined_call_operand.vmem [shape: f32[32,32], index: 7, kind: input, shape index: {}]   ;;  %s6821_s8 = inlined_call_operand.vmem [shape: f32[2,32], index: 8, kind: input, shape index: {}]   ;;  %s6822_s9 = inlined_call_operand.vmem [shape: f32[9,32,32], index: 9, kind: input, shape index: {}]   ;;  %s6823_s10 = inlined_call_operand.vmem [shape: f32[1,32], index: 10, kind: input, shape index: {}]   ;;  %s6824_s11 = inlined_call_operand.vmem [shape: f32[2,64,32], index: 11, kind: output, shape index: {}]  }
   0x1 LB: > { %s4182_s18 = sadd.s32 4294967295, %s5548_s17   ;;  %p4186_p0 = scmp.ge.s32.totalorder %s5548_s17, 1  ;;  %s5548_s17 = sphi %s5613_s17, %s21_s17  }
   0x2   : > { %p345_p1 = scmp.lt.s32.totalorder %s5548_s17, 3 }
   0x4   : > { %p346_p2 = pnand %p4186_p0, %p345_p1 }
   0x5   : > { %v562_v0 = vld [vmem:[%s6815_s2] sm:$0xff] (!%p346_p2)  ;;  %v563_v1 = vld [vmem:[%s6815_s2 + $0x8] sm:$0xff] (!%p346_p2)  ;;  %v564_v2 = vld [vmem:[%s6815_s2 + $0x10] sm:$0xff] (!%p346_p2)  ;;  %v5550_v3 = vmov (!%p346_p2), 0.0|0.0   ;;  %vm5551_vm0 = vmmov (!%p346_p2), 0   ;;  %v5552_v6 = vmov (!%p346_p2), 0.0   ;;  %v401_v37 = vlaneseq (!%p346_p2) }
   0x6   : > { %349 = sbr.rel (%p346_p2) target bundleno = 1841 (0x731), region = 64  ;;  %5119 = vmatprep.subr.bf16.mxu0 (!%p346_p2), %v5550_v3  ;;  %v5120_v4 = vpack.c.bf16 (!%p346_p2), %v563_v1, %v562_v0  ;;  %v565_v5 = vld [vmem:[%s6815_s2 + $0x18] sm:$0xff] (!%p346_p2)  ;;  %4688 = vmatprep.mubr.msk.f32.mxu0 (!%p346_p2), %vm5551_vm0, %v5552_v6  ;;  %p5638_p3 = scmp.lt.s32.totalorder (!%p346_p2), %s4182_s18, 1  ;;  %vm568_vm1 = vcmask (!%p346_p2), 261120  }
   0x7   : > { %860 = vst.msk [vmem:[#allocation2] sm:$0xff] (!%p346_p2), %vm568_vm1, %v5552_v6  ;;  %861 = vst.msk [vmem:[#allocation2 + $0x8] sm:$0xff] (!%p346_p2), %vm568_vm1, %v5552_v6  ;;  %5125 = vmatprep.subr.bf16.mxu1 (!%p346_p2), %v5550_v3  ;;  %4699 = vmatprep.mubr.msk.f32.mxu1 (!%p346_p2), %vm5551_vm0, %v5552_v6  ;;  %v5123_v7 = vpack.c.bf16 (!%p346_p2), %v565_v5, %v564_v2  ;;  %v5727_v38 = vshrl.u32 (!%p346_p2), %v401_v37, 7 }
   0x8   : > { %862 = vst.msk [vmem:[#allocation2 + $0x10] sm:$0xff] (!%p346_p2), %vm568_vm1, %v5552_v6  ;;  %863 = vst.msk [vmem:[#allocation2 + $0x18] sm:$0xff] (!%p346_p2), %vm568_vm1, %v5552_v6  ;;  %5121 = vmatpush3.bf16.msra.mxu0 (!%p346_p2), %v5120_v4  ;;  %5127 = vmatpush3.bf16.msra.mxu1 (!%p346_p2), %v5120_v4 }
   0x9   : > { %864 = vst.msk [vmem:[#allocation2 + $0x20] sm:$0xff] (!%p346_p2), %vm568_vm1, %v5552_v6  ;;  %865 = vst.msk [vmem:[#allocation2 + $0x28] sm:$0xff] (!%p346_p2), %vm568_vm1, %v5552_v6  ;;  %5122 = vmatprep.subr.bf16.mxu0 (!%p346_p2), %v5550_v3  ;;  %5128 = vmatprep.subr.bf16.mxu1 (!%p346_p2), %v5550_v3  ;;  %v5730_v39 = vsub.s32 (!%p346_p2), 0, %v5727_v38 }
   0xa   : > { %866 = vst.msk [vmem:[#allocation2 + $0x30] sm:$0xff] (!%p346_p2), %vm568_vm1, %v5552_v6  ;;  %867 = vst.msk [vmem:[#allocation2 + $0x38] sm:$0xff] (!%p346_p2), %vm568_vm1, %v5552_v6 }
   0xb   : > { %868 = vst.msk [vmem:[#allocation2 + $0x40] sm:$0xff] (!%p346_p2), %vm568_vm1, %v5552_v6  ;;  %869 = vst.msk [vmem:[#allocation2 + $0x48] sm:$0xff] (!%p346_p2), %vm568_vm1, %v5552_v6 }
   0xc   : > { %870 = vst.msk [vmem:[#allocation2 + $0x50] sm:$0xff] (!%p346_p2), %vm568_vm1, %v5552_v6  ;;  %871 = vst.msk [vmem:[#allocation2 + $0x58] sm:$0xff] (!%p346_p2), %vm568_vm1, %v5552_v6  ;;  %5124 = vmatpush3.bf16.msra.mxu0 (!%p346_p2), %v5123_v7  ;;  %5130 = vmatpush3.bf16.msra.mxu1 (!%p346_p2), %v5123_v7 }
   0xd   : > { %2679 = vst.msk [vmem:[#allocation3] sm:$0xff] %vm568_vm1, %v5552_v6  ;;  %2680 = vst.msk [vmem:[#allocation3 + $0x8] sm:$0xff] %vm568_vm1, %v5552_v6  ;;  %s6827_s18 = smov (!%p5638_p3, %s4182_s18), 1  ;;  %5227 = vmatprep.subr.bf16.mxu1 %v5550_v3 }
   0xe   : > { %2681 = vst.msk [vmem:[#allocation3 + $0x10] sm:$0xff] %vm568_vm1, %v5552_v6  ;;  %2682 = vst.msk [vmem:[#allocation3 + $0x18] sm:$0xff] %vm568_vm1, %v5552_v6  ;;  %s4425_s28 = sshll.u32 %s6827_s18, 6  ;;  %s395_s20 = scalar_lea.vmem %s6814_s1, %s6827_s18 }
   0xf   : > { %2683 = vst.msk [vmem:[#allocation3 + $0x20] sm:$0xff] %vm568_vm1, %v5552_v6  ;;  %2684 = vst.msk [vmem:[#allocation3 + $0x28] sm:$0xff] %vm568_vm1, %v5552_v6  ;;  %s5707_s12 = scalar_lea.vmem %s6813_s0, %s4425_s28  ;;  %s6784_s21 = scalar_lea.vmem %s6824_s11, %s4425_s28 }
  0x10   : > { %2685 = vst.msk [vmem:[#allocation3 + $0x30] sm:$0xff] %vm568_vm1, %v5552_v6  ;;  %2686 = vst.msk [vmem:[#allocation3 + $0x38] sm:$0xff] %vm568_vm1, %v5552_v6  ;;  %v554_v8 = vld [vmem:[%s5707_s12] sm:$0xff]  ;;  %v555_v9 = vld [vmem:[%s5707_s12 + $0x8] sm:$0xff] }
  0x11   : > { %2687 = vst.msk [vmem:[#allocation3 + $0x40] sm:$0xff] %vm568_vm1, %v5552_v6  ;;  %2688 = vst.msk [vmem:[#allocation3 + $0x48] sm:$0xff] %vm568_vm1, %v5552_v6  ;;  %v556_v10 = vld [vmem:[%s5707_s12 + $0x10] sm:$0xff]  ;;  %v557_v11 = vld [vmem:[%s5707_s12 + $0x18] sm:$0xff]  ;;  %v569_v12 = vsel %vm568_vm1, %v554_v8, 0.0  ;;  %v570_v13 = vsel %vm568_vm1, %v555_v9, 0.0 }
  0x12   : > { %2689 = vst.msk [vmem:[#allocation3 + $0x50] sm:$0xff] %vm568_vm1, %v5552_v6  ;;  %2690 = vst.msk [vmem:[#allocation3 + $0x58] sm:$0xff] %vm568_vm1, %v5552_v6  ;;  %v572_v14 = vsel %vm568_vm1, %v556_v10, 0.0  ;;  %v558_v15 = vld [vmem:[%s5707_s12 + $0x20] sm:$0xff]  ;;  %v571_v16 = vadd.f32 %v570_v13, %v569_v12  ;;  %v574_v17 = vsel %vm568_vm1, %v557_v11, 0.0  ;;  %v559_v18 = vld [vmem:[%s5707_s12 + $0x28] sm:$0xff] }
  0x13   : > { %v576_v20 = vsel %vm568_vm1, %v558_v15, 0.0  ;;  %v560_v21 = vld [vmem:[%s5707_s12 + $0x30] sm:$0xff]  ;;  %v578_v23 = vsel %vm568_vm1, %v559_v18, 0.0  ;;  %v561_v24 = vld [vmem:[%s5707_s12 + $0x38] sm:$0xff] }
  0x14   : > { %v573_v19 = vadd.f32 %v572_v14, %v571_v16  ;;  %v580_v26 = vsel %vm568_vm1, %v560_v21, 0.0  ;;  %v582_v28 = vsel %vm568_vm1, %v561_v24, 0.0 }
  0x16   : > { %v575_v22 = vadd.f32 %v574_v17, %v573_v19  ;;  %v903_v19 = vld [vmem:[%s6817_s4 + $0x8] sm:$0xff] }
  0x18   : > { %v577_v25 = vadd.f32 %v576_v20, %v575_v22  ;;  %v904_v20 = vld [vmem:[%s6817_s4 + $0x10] sm:$0xff] }
  0x1a   : > { %v579_v27 = vadd.f32 %v578_v23, %v577_v25  ;;  %v905_v23 = vld [vmem:[%s6817_s4 + $0x18] sm:$0xff] }
  0x1b   : > { %v5135_v25 = vpack.c.bf16 %v905_v23, %v904_v20 }
  0x1c   : > { %v581_v29 = vadd.f32 %v580_v26, %v579_v27  ;;  %v4219_v26 = vld [vmem:[%s6817_s4 + $0x20] sm:$0xff]  ;;  %v4220_v27 = vld [vmem:[%s6817_s4 + $0x28] sm:$0xff] }
  0x1e   : > { %v583_v30 = vadd.f32 %v582_v28, %v581_v29 }
  0x20   : > { %v584_v31 = vrot.slane %v583_v30, 4 }
  0x22   : > { %v585_v32 = vadd.f32 %v584_v31, %v583_v30  ;;  %v5793_v30 = vpack.c.bf16 %v4220_v27, %v4219_v26 }
  0x24   : > { %v586_v33 = vrot.slane %v585_v32, 2 }
  0x26   : > { %v587_v34 = vadd.f32 %v586_v33, %v585_v32 }
  0x28   : > { %v588_v35 = vrot.slane %v587_v34, 1 }
  0x2a   : > { %v589_v36 = vadd.f32 %v588_v35, %v587_v34  ;;  %v566_v34 = vld [vmem:[%s6816_s3] sm:$0x1] }
  0x2c   : > { %4689 = vmatmul.mubr.msk.f32.vlgmr.msra.gmra.mrb[0].mxu0 %vm568_vm1, %v589_v36 }
  0xff   : > { %v659_v40 = vpop.f32.mrb[0].mxu0 }
 0x100   : > { %v666_v41 = vrot.slane %v659_v40, %v5730_v39  ;;  %v4690_v42 = vpop.f32.mrb[1].mxu0  ;;  %v4209_v40 = vld [vmem:[%s6816_s3 + $0x1] ss:$0 sm:$0xff] }
 0x102   : > { %v5733_v43 = vsub.f32 %v554_v8, %v666_v41  ;;  %v5735_v44 = vsub.f32 %v555_v9, %v666_v41  ;;  %v5737_v45 = vsub.f32 %v556_v10, %v666_v41  ;;  %v5739_v46 = vsub.f32 %v557_v11, %v666_v41 }
 0x103   : > { %v5741_v47 = vsub.f32 %v558_v15, %v666_v41  ;;  %v5749_v51 = vsub.f32 %v559_v18, %v666_v41  ;;  %v673_v56 = vsub.f32 %v560_v21, %v666_v41  ;;  %v674_v60 = vsub.f32 %v561_v24, %v666_v41  ;;  %v902_v18 = vld [vmem:[%s6817_s4] sm:$0xff] }
 0x104   : > { %v675_v48 = vmul.f32 %v5733_v43, %v5733_v43  ;;  %v676_v49 = vmul.f32 %v5735_v44, %v5735_v44  ;;  %v677_v50 = vmul.f32 %v5737_v45, %v5737_v45  ;;  %v678_v52 = vmul.f32 %v5739_v46, %v5739_v46  ;;  %v886_v24 = vld [vmem:[#allocation2 + $0x7] sm:$0xff] }
 0x105   : > { %v679_v57 = vmul.f32 %v5741_v47, %v5741_v47  ;;  %v680_v61 = vmul.f32 %v5749_v51, %v5749_v51  ;;  %v681_v0 = vmul.f32 %v673_v56, %v673_v56  ;;  %v682_v4 = vmul.f32 %v674_v60, %v674_v60 }
 0x106   : > { %v683_v53 = vsel %vm568_vm1, %v675_v48, 0.0  ;;  %v684_v54 = vsel %vm568_vm1, %v676_v49, 0.0  ;;  %v686_v58 = vsel %vm568_vm1, %v677_v50, 0.0  ;;  %v688_v62 = vsel %vm568_vm1, %v678_v52, 0.0 }
 0x107   : > { %v685_v55 = vadd.f32 %v684_v54, %v683_v53  ;;  %v690_v1 = vsel %vm568_vm1, %v679_v57, 0.0  ;;  %v692_v5 = vsel %vm568_vm1, %v680_v61, 0.0  ;;  %v694_v8 = vsel %vm568_vm1, %v681_v0, 0.0 }
 0x108   : > { %v696_v10 = vsel %vm568_vm1, %v682_v4, 0.0  ;;  %v414_v21 = vand.u32 7, %v5727_v38  ;;  %v5131_v22 = vpack.c.bf16 %v903_v19, %v902_v18 }
 0x109   : > { %v687_v59 = vadd.f32 %v686_v58, %v685_v55 }
 0x10a   : > { %vm506_vm2 = vcmp.ge.s32.totalorder %v414_v21, 1  ;;  %5132 = vmatprep.subr.bf16.mxu0 %v5131_v22  ;;  %vm530_vm10 = vcmp.le.s32.totalorder %v414_v21, 6 }
 0x10b   : > { %v689_v63 = vadd.f32 %v688_v62, %v687_v59  ;;  %v5790_v28 = vsel %vm506_vm2, 1.0, %v5552_v6  ;;  %5134 = vmatpush3.bf16.msra.mxu0 %v5131_v22 }
 0x10c   : > { %v894_v29 = vmul.f32 %v5790_v28, %v886_v24  ;;  %5136 = vmatprep.subr.bf16.mxu0 %v5135_v25 }
 0x10d   : > { %v691_v2 = vadd.f32 %v690_v1, %v689_v63 }
 0x10e   : > { %4710 = vmatprep.mubr.msk.f32.mxu0 %vm568_vm1, %v894_v29  ;;  %v5832_v29 = vadd.s32 8, %v5727_v38 }
 0x10f   : > { %v693_v7 = vadd.f32 %v692_v5, %v691_v2  ;;  %5138 = vmatpush3.bf16.msra.mxu0 %v5135_v25 }
 0x110   : > { %5140 = vmatprep.subr.bf16.mxu0 %v5793_v30 }
 0x111   : > { %v695_v9 = vadd.f32 %v694_v8, %v693_v7 }
 0x113   : > { %v697_v11 = vadd.f32 %v696_v10, %v695_v9 }
 0x115   : > { %v698_v12 = vrot.slane %v697_v11, 4 }
 0x117   : > { %v699_v13 = vadd.f32 %v698_v12, %v697_v11 }
 0x119   : > { %v700_v14 = vrot.slane %v699_v13, 2 }
 0x11b   : > { %v701_v15 = vadd.f32 %v700_v14, %v699_v13 }
 0x11d   : > { %v702_v16 = vrot.slane %v701_v15, 1 }
 0x11f   : > { %v703_v17 = vadd.f32 %v702_v16, %v701_v15 }
 0x121   : > { %4700 = vmatmul.mubr.msk.f32.vlgmr.msra.gmra.mrb[0].mxu1 %vm568_vm1, %v703_v17 }
 0x122   : > { %4925 = vmatprep.mubr.msk.f32.mxu1 %vm5551_vm0, %v5552_v6 }
 0x1f4   : > { %v773_v31 = vpop.f32.mrb[0].mxu1 }
 0x1f5   : > { %v774_v32 = vadd.f32 1e-06, %v773_v31  ;;  %v4701_v33 = vpop.f32.mrb[1].mxu1  ;;  %v5835_v31 = vadd.s32 16, %v5727_v38 }
 0x1f7   : > { %5466 = vrsqrt.f32 %v774_v32 }
 0x201   : > { %v5467_v35 = vpop.eup %5466 }
 0x202   : > { %v778_v36 = vmul.f32 %v5467_v35, %v566_v34  ;;  %v421_v34 = vand.u32 7, %v5832_v29 }
 0x204   : > { %v782_v37 = vrot.slane %v778_v36, %v5730_v39  ;;  %v5839_v36 = vadd.s32 24, %v5727_v38  ;;  %vm507_vm3 = vcmp.ge.s32.totalorder %v421_v34, 1  ;;  %vm531_vm11 = vcmp.le.s32.totalorder %v421_v34, 6 }
 0x205   : > { %v6010_v34 = vsel %vm531_vm11, 1.0, %v5552_v6 }
 0x206   : > { %v783_v41 = vmul.f32 %v782_v37, %v5733_v43  ;;  %v784_v42 = vmul.f32 %v782_v37, %v5735_v44  ;;  %v785_v48 = vmul.f32 %v782_v37, %v5737_v45  ;;  %v786_v49 = vmul.f32 %v782_v37, %v5739_v46 }
 0x207   : > { %v787_v50 = vmul.f32 %v782_v37, %v5741_v47  ;;  %v788_v52 = vmul.f32 %v782_v37, %v5749_v51  ;;  %v789_v53 = vmul.f32 %v782_v37, %v673_v56  ;;  %v790_v54 = vmul.f32 %v782_v37, %v674_v60 }
 0x208   : > { %v795_v55 = vadd.f32 %v4209_v40, %v783_v41  ;;  %v5810_v57 = vadd.f32 %v4209_v40, %v784_v42  ;;  %v5812_v58 = vadd.f32 %v4209_v40, %v785_v48  ;;  %v5814_v59 = vadd.f32 %v4209_v40, %v786_v49 }
 0x209   : > { %v5816_v43 = vadd.f32 %v4209_v40, %v787_v50  ;;  %v5818_v44 = vadd.f32 %v4209_v40, %v788_v52  ;;  %v5820_v45 = vadd.f32 %v4209_v40, %v789_v53  ;;  %v5822_v46 = vadd.f32 %v4209_v40, %v790_v54 }
 0x20a   : > { %v803_v47 = vsub.f32 0.0, %v795_v55  ;;  %v804_v51 = vsub.f32 0.0, %v5810_v57  ;;  %v805_v56 = vsub.f32 0.0, %v5812_v58  ;;  %v806_v60 = vsub.f32 0.0, %v5814_v59 }
 0x20b   : > { %v807_v61 = vsub.f32 0.0, %v5816_v43  ;;  %v808_v62 = vsub.f32 0.0, %v5818_v44  ;;  %v809_v63 = vsub.f32 0.0, %v5820_v45  ;;  %v810_v5 = vsub.f32 0.0, %v5822_v46 }
 0x20c   : > { %v811_v0 = vmul.f32 1.442695, %v803_v47  ;;  %v813_v1 = vmul.f32 1.442695, %v804_v51  ;;  %v815_v2 = vmul.f32 1.442695, %v805_v56 }
 0x20d   : > { %v817_v4 = vmul.f32 1.442695, %v806_v60  ;;  %v819_v7 = vmul.f32 1.442695, %v807_v61  ;;  %v821_v8 = vmul.f32 1.442695, %v808_v62 }
 0x20e   : > { %5468 = vpow2.f32 %v811_v0  ;;  %v823_v9 = vmul.f32 1.442695, %v809_v63  ;;  %v825_v10 = vmul.f32 1.442695, %v810_v5  ;;  %v428_v40 = vand.u32 7, %v5835_v31  ;;  %v4221_v61 = vld [vmem:[%s6817_s4 + $0x30] sm:$0xff] }
 0x20f   : > { %5470 = vpow2.f32 %v813_v1  ;;  %v5844_v42 = vadd.s32 32, %v5727_v38  ;;  %v435_v54 = vand.u32 7, %v5839_v36  ;;  %v4222_v62 = vld [vmem:[%s6817_s4 + $0x38] sm:$0xff]  ;;  %v5886_v0 = vadd.s32 56, %v5727_v38  ;;  %v4255_v36 = vld [vmem:[%s6817_s4 + $0x80] sm:$0xff] }
 0x210   : > { %5472 = vpow2.f32 %v815_v2  ;;  %vm508_vm4 = vcmp.ge.s32.totalorder %v428_v40, 1  ;;  %v5143_v5 = vpack.c.bf16 %v4222_v62, %v4221_v61  ;;  %vm532_vm12 = vcmp.le.s32.totalorder %v428_v40, 6  ;;  %v4246_v61 = vld [vmem:[%s6817_s4 + $0x78] sm:$0xff] }
 0x211   : > { %5474 = vpow2.f32 %v817_v4  ;;  %v5880_v63 = vsel %vm508_vm4, 1.0, %v5552_v6  ;;  %vm509_vm5 = vcmp.ge.s32.totalorder %v435_v54, 1  ;;  %v6020_v31 = vsel %vm532_vm12, 1.0, %v5552_v6 }
 0x212   : > { %5476 = vpow2.f32 %v819_v7  ;;  %vm533_vm13 = vcmp.le.s32.totalorder %v435_v54, 6 }
 0x213   : > { %5478 = vpow2.f32 %v821_v8  ;;  %v5902_v8 = vsel %vm509_vm5, 1.0, %v5552_v6 }
 0x214   : > { %5480 = vpow2.f32 %v823_v9 }
 0x215   : > { %5482 = vpow2.f32 %v825_v10  ;;  %v4231_v10 = vld [vmem:[%s6817_s4 + $0x40] sm:$0xff] }
 0x218   : > { %v5469_v11 = vpop.eup %5468 }
 0x219   : > { %v5471_v12 = vpop.eup %5470  ;;  %v827_v13 = vadd.f32 1.0, %v5469_v11  ;;  %v4232_v11 = vld [vmem:[%s6817_s4 + $0x48] sm:$0xff] }
 0x21a   : > { %v5473_v14 = vpop.eup %5472  ;;  %v828_v15 = vadd.f32 1.0, %v5471_v12 }
 0x21b   : > { %v5475_v16 = vpop.eup %5474  ;;  %5484 = vrcp.f32 %v827_v13  ;;  %v829_v17 = vadd.f32 1.0, %v5473_v14  ;;  %v463_v14 = vand.u32 7, %v5886_v0 }
 0x21c   : > { %v5477_v18 = vpop.eup %5476  ;;  %5486 = vrcp.f32 %v828_v15  ;;  %v830_v19 = vadd.f32 1.0, %v5475_v16  ;;  %v5147_v16 = vpack.c.bf16 %v4232_v11, %v4231_v10 }
 0x21d   : > { %v5479_v20 = vpop.eup %5478  ;;  %5488 = vrcp.f32 %v829_v17  ;;  %v831_v22 = vadd.f32 1.0, %v5477_v18  ;;  %vm513_vm9 = vcmp.ge.s32.totalorder %v463_v14, 1 }
 0x21e   : > { %v5481_v23 = vpop.eup %5480  ;;  %5490 = vrcp.f32 %v830_v19  ;;  %v832_v24 = vadd.f32 1.0, %v5479_v20 }
 0x21f   : > { %v5483_v25 = vpop.eup %5482  ;;  %5492 = vrcp.f32 %v831_v22  ;;  %v833_v26 = vadd.f32 1.0, %v5481_v23 }
 0x220   : > { %5494 = vrcp.f32 %v832_v24  ;;  %v834_v27 = vadd.f32 1.0, %v5483_v25  ;;  %v5948_v24 = vsel %vm513_vm9, 1.0, %v5552_v6 }
 0x221   : > { %5496 = vrcp.f32 %v833_v26 }
 0x222   : > { %5498 = vrcp.f32 %v834_v27  ;;  %v1043_v27 = vld [vmem:[#allocation2 + $0x8] sm:$0xff] }
 0x225   : > { %v5485_v32 = vpop.eup %5484 }
 0x226   : > { %v5487_v33 = vpop.eup %5486  ;;  %v851_v35 = vmul.f32 %v5485_v32, %v795_v55  ;;  %v5855_v55 = vadd.s32 40, %v5727_v38  ;;  %v4233_v32 = vld [vmem:[%s6817_s4 + $0x50] sm:$0xff] }
 0x227   : > { %v5489_v37 = vpop.eup %5488  ;;  %v852_v41 = vmul.f32 %v5487_v33, %v5810_v57  ;;  %v4234_v33 = vld [vmem:[%s6817_s4 + $0x58] sm:$0xff] }
 0x228   : > { %v5491_v48 = vpop.eup %5490  ;;  %872 = vst.msk [vmem:[#allocation2 + $0x10] sm:$0xff] %vm568_vm1, %v851_v35  ;;  %v853_v49 = vmul.f32 %v5489_v37, %v5812_v58  ;;  %v442_v58 = vand.u32 7, %v5844_v42  ;;  %v5151_v35 = vpack.c.bf16 %v4234_v33, %v4233_v32  ;;  %v4256_v42 = vld [vmem:[%s6817_s4 + $0x88] sm:$0xff] }
 0x229   : > { %v5493_v50 = vpop.eup %5492  ;;  %873 = vst.msk [vmem:[#allocation2 + $0x18] sm:$0xff] %vm568_vm1, %v852_v41  ;;  %v854_v52 = vmul.f32 %v5491_v48, %v5814_v59  ;;  %v5863_v59 = vadd.s32 48, %v5727_v38  ;;  %v4243_v41 = vld [vmem:[%s6817_s4 + $0x60] sm:$0xff]  ;;  %v4244_v48 = vld [vmem:[%s6817_s4 + $0x68] sm:$0xff]  ;;  %v4245_v38 = vld [vmem:[%s6817_s4 + $0x70] sm:$0xff]  ;;  %v5163_v11 = vpack.c.bf16 %v4256_v42, %v4255_v36 }
 0x22a   : > { %v5495_v53 = vpop.eup %5494  ;;  %874 = vst.msk [vmem:[#allocation2 + $0x20] sm:$0xff] %vm568_vm1, %v853_v49  ;;  %v855_v57 = vmul.f32 %v5493_v50, %v5816_v43  ;;  %v5869_v43 = vsel %vm507_vm3, 1.0, %v5552_v6  ;;  %vm510_vm6 = vcmp.ge.s32.totalorder %v442_v58, 1  ;;  %v5155_v50 = vpack.c.bf16 %v4244_v48, %v4243_v41  ;;  %v4268_v41 = vld [vmem:[%s6817_s4 + $0xa8] sm:$0xff]  ;;  %v4279_v42 = vld [vmem:[%s6817_s4 + $0xc0] sm:$0xff] }
 0x22b   : > { %v5497_v47 = vpop.eup %5496  ;;  %875 = vst.msk [vmem:[#allocation2 + $0x28] sm:$0xff] %vm568_vm1, %v854_v52  ;;  %v856_v51 = vmul.f32 %v5495_v53, %v5818_v44  ;;  %v5914_v12 = vsel %vm510_vm6, 1.0, %v5552_v6  ;;  %vm534_vm14 = vcmp.le.s32.totalorder %v442_v58, 6  ;;  %vm537_vm3 = vcmp.le.s32.totalorder %v463_v14, 6 }
 0x22c   : > { %v5499_v56 = vpop.eup %5498  ;;  %876 = vst.msk [vmem:[#allocation2 + $0x30] sm:$0xff] %vm568_vm1, %v855_v57  ;;  %v857_v60 = vmul.f32 %v5497_v47, %v5820_v45  ;;  %v449_v45 = vand.u32 7, %v5855_v55  ;;  %v6046_v54 = vsel %vm534_vm14, 1.0, %v5552_v6 }
 0x22d   : > { %877 = vst.msk [vmem:[#allocation2 + $0x38] sm:$0xff] %vm568_vm1, %v856_v51  ;;  %v858_v44 = vmul.f32 %v5499_v56, %v5822_v46  ;;  %v456_v46 = vand.u32 7, %v5863_v59  ;;  %v5997_v51 = vsel %vm530_vm10, 1.0, %v5552_v6 }
 0x22e   : > { %878 = vst.msk [vmem:[#allocation2 + $0x40] sm:$0xff] %vm568_vm1, %v857_v60  ;;  %vm511_vm7 = vcmp.ge.s32.totalorder %v449_v45, 1  ;;  %vm535_vm15 = vcmp.le.s32.totalorder %v449_v45, 6 }
 0x22f   : > { %v5889_v1 = vld [vmem:[#allocation2 + $0xf] sm:$0xff]  ;;  %879 = vst.msk [vmem:[#allocation2 + $0x48] sm:$0xff] %vm568_vm1, %v858_v44  ;;  %vm512_vm8 = vcmp.ge.s32.totalorder %v456_v46, 1  ;;  %v5930_v18 = vsel %vm511_vm7, 1.0, %v5552_v6  ;;  %v5159_v44 = vpack.c.bf16 %v4246_v61, %v4245_v38  ;;  %vm536_vm2 = vcmp.le.s32.totalorder %v456_v46, 6 }
 0x230   : > { %v895_v2 = vmul.f32 %v5869_v43, %v5889_v1  ;;  %v5897_v4 = vld [vmem:[#allocation2 + $0x17] sm:$0xff]  ;;  %v1193_v56 = vld [vmem:[#allocation2 + $0x9] sm:$0xff]  ;;  %v6066_v55 = vsel %vm536_vm2, 1.0, %v5552_v6  ;;  %v1359_v14 = vmul.f32 %v5790_v28, %v5889_v1  ;;  %v4267_v1 = vld [vmem:[%s6817_s4 + $0xa0] sm:$0xff] }
 0x231   : > { %v896_v7 = vmul.f32 %v5880_v63, %v5897_v4  ;;  %v5904_v9 = vld [vmem:[#allocation2 + $0x1f] sm:$0xff]  ;;  %v5964_v37 = vld [vmem:[#allocation2 + $0x10] sm:$0xff]  ;;  %v1201_v29 = vmul.f32 %v5997_v51, %v1193_v56  ;;  %v1360_v32 = vmul.f32 %v5869_v43, %v5897_v4 }
 0x232   : > { %4711 = vmatmul.mubr.msk.f32.vlgmr.msra.gmra.mrb[2].mxu0 %vm568_vm1, %v895_v2  ;;  %v5916_v13 = vld [vmem:[#allocation2 + $0x27] sm:$0xff]  ;;  %v897_v15 = vmul.f32 %v5902_v8, %v5904_v9  ;;  %v5974_v49 = vld [vmem:[#allocation2 + $0x18] sm:$0xff] }
 0x233   : > { %5142 = vmatpush3.bf16.msra.mxu0 %v5793_v30  ;;  %4713 = vmatprep.mubr.msk.f32.mxu0 %vm568_vm1, %v896_v7  ;;  %v898_v17 = vmul.f32 %v5914_v12, %v5916_v13  ;;  %v5932_v19 = vld [vmem:[#allocation2 + $0x2f] sm:$0xff]  ;;  %v5936_v30 = vsel %vm512_vm8, 1.0, %v5552_v6  ;;  %v5978_v52 = vld [vmem:[#allocation2 + $0x20] sm:$0xff]  ;;  %v1362_v48 = vmul.f32 %v5902_v8, %v5916_v13 }
 0x234   : > { %5144 = vmatprep.subr.bf16.mxu0 %v5143_v5  ;;  %v5938_v20 = vld [vmem:[#allocation2 + $0x37] sm:$0xff]  ;;  %v899_v22 = vmul.f32 %v5930_v18, %v5932_v19  ;;  %v5982_v53 = vld [vmem:[#allocation2 + $0x28] sm:$0xff]  ;;  %v1363_v56 = vmul.f32 %v5914_v12, %v5932_v19 }
 0x235   : > { %v900_v23 = vmul.f32 %v5936_v30, %v5938_v20  ;;  %v5950_v25 = vld [vmem:[#allocation2 + $0x3f] sm:$0xff]  ;;  %v5988_v57 = vld [vmem:[#allocation2 + $0x30] sm:$0xff]  ;;  %v1364_v38 = vmul.f32 %v5930_v18, %v5938_v20 }
 0x236   : > { %4714 = vmatmul.mubr.msk.f32.gmra.mrb[4].mxu0 %vm568_vm1, %v897_v15  ;;  %v901_v26 = vmul.f32 %v5948_v24, %v5950_v25  ;;  %v5994_v47 = vld [vmem:[#allocation2 + $0x38] sm:$0xff]  ;;  %v6006_v21 = vld [vmem:[#allocation2 + $0x40] sm:$0xff]  ;;  %v6048_v58 = vld [vmem:[#allocation2 + $0x29] sm:$0xff] }
 0x237   : > { %4716 = vmatprep.mubr.msk.f32.mxu0 %vm568_vm1, %v898_v17  ;;  %5146 = vmatpush3.bf16.msra.mxu0 %v5143_v5  ;;  %v6012_v60 = vld [vmem:[#allocation2 + $0x11] sm:$0xff]  ;;  %v6022_v40 = vld [vmem:[#allocation2 + $0x19] sm:$0xff]  ;;  %v6034_v5 = vsel %vm533_vm13, 1.0, %v5552_v6  ;;  %v6036_v7 = vld [vmem:[#allocation2 + $0x21] sm:$0xff]  ;;  %v1205_v15 = vmul.f32 %v6046_v54, %v6048_v58 }
 0x238   : > { %5148 = vmatprep.subr.bf16.mxu0 %v5147_v16  ;;  %v1202_v62 = vmul.f32 %v6010_v34, %v6012_v60  ;;  %v1203_v2 = vmul.f32 %v6020_v31, %v6022_v40  ;;  %v1204_v10 = vmul.f32 %v6034_v5, %v6036_v7  ;;  %v6062_v17 = vld [vmem:[#allocation2 + $0x31] sm:$0xff]  ;;  %v6068_v59 = vld [vmem:[#allocation2 + $0x39] sm:$0xff]  ;;  %v6118_v61 = vld [vmem:[#allocation2 + $0x47] sm:$0xff] }
 0x239   : > { %v1207_v46 = vmul.f32 %v6066_v55, %v6068_v59 }
 0x23a   : > { %4717 = vmatmul.mubr.msk.f32.gmra.mrb[6].mxu0 %vm568_vm1, %v899_v22  ;;  %v6078_v22 = vsel %vm537_vm3, 1.0, %v5552_v6 }
 0x23b   : > { %4719 = vmatprep.mubr.msk.f32.mxu0 %vm568_vm1, %v900_v23  ;;  %v6080_v23 = vld [vmem:[#allocation2 + $0x41] sm:$0xff] }
 0x23c   : > { %v1208_v0 = vmul.f32 %v6078_v22, %v6080_v23 }
 0x23e   : > { %4720 = vmatmul.mubr.msk.f32.gmra.mrb[8].mxu0 %vm568_vm1, %v901_v26  ;;  %v4257_v26 = vld [vmem:[%s6817_s4 + $0x90] sm:$0xff] }
 0x23f   : > { %4730 = vmatprep.mubr.msk.f32.mxu0 %vm568_vm1, %v1043_v27  ;;  %v4258_v27 = vld [vmem:[%s6817_s4 + $0x98] sm:$0xff] }
 0x240   : > { %v5167_v33 = vpack.c.bf16 %v4258_v27, %v4257_v26  ;;  %v4291_v26 = vld [vmem:[%s6817_s4 + $0xe0] sm:$0xff]  ;;  %v4292_v27 = vld [vmem:[%s6817_s4 + $0xe8] sm:$0xff] }
 0x242   : > { %4731 = vmatmul.mubr.msk.f32.vlgmr.msra.gmra.mrb[2].mxu0 %vm568_vm1, %v5964_v37 }
 0x243   : > { %5150 = vmatpush3.bf16.msra.mxu0 %v5147_v16  ;;  %4733 = vmatprep.mubr.msk.f32.mxu0 %vm568_vm1, %v5974_v49  ;;  %v6060_v16 = vsel %vm535_vm15, 1.0, %v5552_v6 }
 0x244   : > { %5152 = vmatprep.subr.bf16.mxu0 %v5151_v35  ;;  %v1206_v45 = vmul.f32 %v6060_v16, %v6062_v17 }
 0x246   : > { %4734 = vmatmul.mubr.msk.f32.gmra.mrb[4].mxu0 %vm568_vm1, %v5978_v52 }
 0x247   : > { %4736 = vmatprep.mubr.msk.f32.mxu0 %vm568_vm1, %v5982_v53  ;;  %5154 = vmatpush3.bf16.msra.mxu0 %v5151_v35  ;;  %v1361_v35 = vmul.f32 %v5880_v63, %v5904_v9 }
 0x248   : > { %5156 = vmatprep.subr.bf16.mxu0 %v5155_v50 }
 0x24a   : > { %4737 = vmatmul.mubr.msk.f32.gmra.mrb[6].mxu0 %vm568_vm1, %v5988_v57 }
 0x24b   : > { %4739 = vmatprep.mubr.msk.f32.mxu0 %vm568_vm1, %v5994_v47 }
 0x24e   : > { %4740 = vmatmul.mubr.msk.f32.gmra.mrb[8].mxu0 %vm568_vm1, %v6006_v21 }
 0x24f   : > { %4750 = vmatprep.mubr.msk.f32.mxu0 %vm568_vm1, %v1201_v29  ;;  %v1365_v29 = vmul.f32 %v5936_v30, %v5950_v25 }
 0x252   : > { %4751 = vmatmul.mubr.msk.f32.vlgmr.msra.gmra.mrb[2].mxu0 %vm568_vm1, %v1202_v62  ;;  %v1366_v62 = vmul.f32 %v5948_v24, %v6118_v61 }
 0x253   : > { %5158 = vmatpush3.bf16.msra.mxu0 %v5155_v50  ;;  %4753 = vmatprep.mubr.msk.f32.mxu0 %vm568_vm1, %v1203_v2  ;;  %v5171_v50 = vpack.c.bf16 %v4268_v41, %v4267_v1  ;;  %v4270_v2 = vld [vmem:[%s6817_s4 + $0xb8] sm:$0xff]  ;;  %v1672_v1 = vmul.f32 %v6060_v16, %v6068_v59  ;;  %v1673_v41 = vmul.f32 %v6066_v55, %v6080_v23 }
 0x254   : > { %5160 = vmatprep.subr.bf16.mxu0 %v5159_v44 }
 0x256   : > { %4754 = vmatmul.mubr.msk.f32.gmra.mrb[4].mxu0 %vm568_vm1, %v1204_v10  ;;  %v4280_v10 = vld [vmem:[%s6817_s4 + $0xc8] sm:$0xff] }
 0x257   : > { %4756 = vmatprep.mubr.msk.f32.mxu0 %vm568_vm1, %v1205_v15  ;;  %5162 = vmatpush3.bf16.msra.mxu0 %v5159_v44  ;;  %v4269_v44 = vld [vmem:[%s6817_s4 + $0xb0] sm:$0xff]  ;;  %v1667_v15 = vmul.f32 %v5997_v51, %v6012_v60  ;;  %v1669_v60 = vmul.f32 %v6020_v31, %v6036_v7 }
 0x258   : > { %5164 = vmatprep.subr.bf16.mxu0 %v5163_v11  ;;  %v5175_v36 = vpack.c.bf16 %v4270_v2, %v4269_v44  ;;  %v1827_v2 = vmul.f32 %v5880_v63, %v5916_v13  ;;  %v1829_v13 = vmul.f32 %v5914_v12, %v5938_v20  ;;  %v4305_v20 = vld [vmem:[%s6817_s4 + $0x110] sm:$0xff] }
 0x25a   : > { %4757 = vmatmul.mubr.msk.f32.gmra.mrb[6].mxu0 %vm568_vm1, %v1206_v45  ;;  %v4281_v45 = vld [vmem:[%s6817_s4 + $0xd0] sm:$0xff] }
 0x25b   : > { %4759 = vmatprep.mubr.msk.f32.mxu0 %vm568_vm1, %v1207_v46  ;;  %v4282_v46 = vld [vmem:[%s6817_s4 + $0xd8] sm:$0xff] }
 0x25e   : > { %4760 = vmatmul.mubr.msk.f32.gmra.mrb[8].mxu0 %vm568_vm1, %v1208_v0  ;;  %v1668_v0 = vmul.f32 %v6010_v34, %v6022_v40 }
 0x25f   : > { %4770 = vmatprep.mubr.msk.f32.mxu0 %vm568_vm1, %v1359_v14  ;;  %v5183_v14 = vpack.c.bf16 %v4282_v46, %v4281_v45  ;;  %v4306_v45 = vld [vmem:[%s6817_s4 + $0x118] sm:$0xff]  ;;  %v2135_v46 = vmul.f32 %v6020_v31, %v6048_v58 }
 0x262   : > { %4771 = vmatmul.mubr.msk.f32.vlgmr.msra.gmra.mrb[2].mxu0 %vm568_vm1, %v1360_v32  ;;  %v1670_v32 = vmul.f32 %v6034_v5, %v6048_v58  ;;  %v2137_v58 = vmul.f32 %v6046_v54, %v6068_v59  ;;  %v2291_v59 = vld [vmem:[%s6819_s6 + $0x38] sm:$0xff] }
 0x263   : > { %5166 = vmatpush3.bf16.msra.mxu0 %v5163_v11  ;;  %4773 = vmatprep.mubr.msk.f32.mxu0 %vm568_vm1, %v1361_v35  ;;  %v5179_v11 = vpack.c.bf16 %v4280_v10, %v4279_v42  ;;  %v1671_v35 = vmul.f32 %v6046_v54, %v6062_v17  ;;  %v1830_v10 = vmul.f32 %v5930_v18, %v5950_v25 }
 0x264   : > { %5168 = vmatprep.subr.bf16.mxu0 %v5167_v33  ;;  %v5199_v25 = vpack.c.bf16 %v4306_v45, %v4305_v20 }
 0x266   : > { %4774 = vmatmul.mubr.msk.f32.gmra.mrb[4].mxu0 %vm568_vm1, %v1362_v48  ;;  %v6186_v48 = vld [vmem:[#allocation2 + $0x49] sm:$0xff] }
 0x267   : > { %4776 = vmatprep.mubr.msk.f32.mxu0 %vm568_vm1, %v1363_v56  ;;  %5170 = vmatpush3.bf16.msra.mxu0 %v5167_v33  ;;  %v5187_v33 = vpack.c.bf16 %v4292_v27, %v4291_v26  ;;  %v1825_v56 = vmul.f32 %v5790_v28, %v5897_v4  ;;  %v4303_v4 = vld [vmem:[%s6817_s4 + $0x100] sm:$0xff]  ;;  %v2132_v26 = vld [vmem:[#allocation2 + $0x51] sm:$0xff] }
 0x268   : > { %5172 = vmatprep.subr.bf16.mxu0 %v5171_v50  ;;  %v2290_v27 = vld [vmem:[%s6819_s6 + $0x30] sm:$0xff] }
 0x26a   : > { %4777 = vmatmul.mubr.msk.f32.gmra.mrb[6].mxu0 %vm568_vm1, %v1364_v38  ;;  %v4293_v38 = vld [vmem:[%s6817_s4 + $0xf0] sm:$0xff] }
 0x26b   : > { %4779 = vmatprep.mubr.msk.f32.mxu0 %vm568_vm1, %v1365_v29  ;;  %v4294_v29 = vld [vmem:[%s6817_s4 + $0xf8] sm:$0xff] }
 0x26c   : > { %v5191_v44 = vpack.c.bf16 %v4294_v29, %v4293_v38  ;;  %v2296_v38 = vld [vmem:[%s6819_s6 + $0x60] sm:$0xff]  ;;  %v2297_v29 = vld [vmem:[%s6819_s6 + $0x68] sm:$0xff] }
 0x26e   : > { %4780 = vmatmul.mubr.msk.f32.gmra.mrb[8].mxu0 %vm568_vm1, %v1366_v62  ;;  %v1826_v62 = vmul.f32 %v5869_v43, %v5904_v9  ;;  %v1828_v9 = vmul.f32 %v5902_v8, %v5932_v19 }
 0x26f   : > { %4790 = vmatprep.mubr.msk.f32.mxu0 %vm568_vm1, %v5964_v37  ;;  %v6151_v37 = vld [vmem:[#allocation2 + $0x48] sm:$0xff] }
 0x272   : > { %4791 = vmatmul.mubr.msk.f32.vlgmr.msra.gmra.mrb[2].mxu0 %vm568_vm1, %v5974_v49 }
 0x273   : > { %5174 = vmatpush3.bf16.msra.mxu0 %v5171_v50  ;;  %4793 = vmatprep.mubr.msk.f32.mxu0 %vm568_vm1, %v5978_v52  ;;  %v1674_v50 = vmul.f32 %v6078_v22, %v6186_v48 }
 0x274   : > { %5176 = vmatprep.subr.bf16.mxu0 %v5175_v36 }
 0x276   : > { %4794 = vmatmul.mubr.msk.f32.gmra.mrb[4].mxu0 %vm568_vm1, %v5982_v53 }
 0x277   : > { %4796 = vmatprep.mubr.msk.f32.mxu0 %vm568_vm1, %v5988_v57  ;;  %5178 = vmatpush3.bf16.msra.mxu0 %v5175_v36  ;;  %v4304_v36 = vld [vmem:[%s6817_s4 + $0x108] sm:$0xff] }
 0x278   : > { %5180 = vmatprep.subr.bf16.mxu0 %v5179_v11  ;;  %v5195_v42 = vpack.c.bf16 %v4304_v36, %v4303_v4  ;;  %v2283_v36 = vld [vmem:[%s395_s20] sm:$0x1] }
 0x27a   : > { %4797 = vmatmul.mubr.msk.f32.gmra.mrb[6].mxu0 %vm568_vm1, %v5994_v47 }
 0x27b   : > { %4799 = vmatprep.mubr.msk.f32.mxu0 %vm568_vm1, %v6006_v21 }
 0x27e   : > { %4800 = vmatmul.mubr.msk.f32.gmra.mrb[8].mxu0 %vm568_vm1, %v6151_v37 }
 0x27f   : > { %4810 = vmatprep.mubr.msk.f32.mxu0 %vm568_vm1, %v1667_v15  ;;  %v1824_v15 = vld [vmem:[#allocation2 + $0x4f] sm:$0xff] }
 0x280   : > { %v1832_v19 = vmul.f32 %v5948_v24, %v1824_v15 }
 0x282   : > { %4811 = vmatmul.mubr.msk.f32.vlgmr.msra.gmra.mrb[2].mxu0 %vm568_vm1, %v1668_v0  ;;  %v2288_v0 = vld [vmem:[%s6819_s6 + $0x20] sm:$0xff] }
 0x283   : > { %5182 = vmatpush3.bf16.msra.mxu0 %v5179_v11  ;;  %4813 = vmatprep.mubr.msk.f32.mxu0 %vm568_vm1, %v1669_v60  ;;  %v1831_v11 = vmul.f32 %v5936_v30, %v6118_v61  ;;  %v2286_v61 = vld [vmem:[%s6819_s6 + $0x10] sm:$0xff] }
 0x284   : > { %5184 = vmatprep.subr.bf16.mxu0 %v5183_v14 }
 0x286   : > { %4814 = vmatmul.mubr.msk.f32.gmra.mrb[4].mxu0 %vm568_vm1, %v1670_v32  ;;  %v2139_v32 = vmul.f32 %v6066_v55, %v6186_v48  ;;  %v2294_v48 = vld [vmem:[%s6819_s6 + $0x50] sm:$0xff] }
 0x287   : > { %4816 = vmatprep.mubr.msk.f32.mxu0 %vm568_vm1, %v1671_v35  ;;  %5186 = vmatpush3.bf16.msra.mxu0 %v5183_v14  ;;  %v2289_v14 = vld [vmem:[%s6819_s6 + $0x28] sm:$0xff]  ;;  %v5213_v35 = vpack.c.bf16 %v2291_v59, %v2290_v27 }
 0x288   : > { %5188 = vmatprep.subr.bf16.mxu0 %v5187_v33  ;;  %v5210_v60 = vpack.c.bf16 %v2289_v14, %v2288_v0 }
 0x28a   : > { %4817 = vmatmul.mubr.msk.f32.gmra.mrb[6].mxu0 %vm568_vm1, %v1672_v1  ;;  %v2293_v1 = vld [vmem:[%s6819_s6 + $0x48] sm:$0xff] }
 0x28b   : > { %4819 = vmatprep.mubr.msk.f32.mxu0 %vm568_vm1, %v1673_v41 }
 0x28e   : > { %4820 = vmatmul.mubr.msk.f32.gmra.mrb[8].mxu0 %vm568_vm1, %v1674_v50  ;;  %v2295_v50 = vld [vmem:[%s6819_s6 + $0x58] sm:$0xff] }
 0x28f   : > { %4830 = vmatprep.mubr.msk.f32.mxu0 %vm568_vm1, %v1825_v56  ;;  %v5219_v56 = vpack.c.bf16 %v2295_v50, %v2294_v48 }
 0x292   : > { %4831 = vmatmul.mubr.msk.f32.vlgmr.msra.gmra.mrb[2].mxu0 %vm568_vm1, %v1826_v62  ;;  %v5222_v62 = vpack.c.bf16 %v2297_v29, %v2296_v38 }
 0x293   : > { %5190 = vmatpush3.bf16.msra.mxu0 %v5187_v33  ;;  %4833 = vmatprep.mubr.msk.f32.mxu0 %vm568_vm1, %v1827_v2  ;;  %v2140_v33 = vmul.f32 %v6078_v22, %v2132_v26  ;;  %v2299_v2 = vld [vmem:[%s6819_s6 + $0x78] sm:$0xff] }
 0x294   : > { %5192 = vmatprep.subr.bf16.mxu0 %v5191_v44 }
 0x296   : > { %4834 = vmatmul.mubr.msk.f32.gmra.mrb[4].mxu0 %vm568_vm1, %v1828_v9  ;;  %v2382_v9 = vld [vmem:[%s6820_s7] sm:$0xff] }
 0x297   : > { %4836 = vmatprep.mubr.msk.f32.mxu0 %vm568_vm1, %v1829_v13  ;;  %5194 = vmatpush3.bf16.msra.mxu0 %v5191_v44  ;;  %v2298_v44 = vld [vmem:[%s6819_s6 + $0x70] sm:$0xff] }
 0x298   : > { %5196 = vmatprep.subr.bf16.mxu0 %v5195_v42  ;;  %v5225_v4 = vpack.c.bf16 %v2299_v2, %v2298_v44  ;;  %v2384_v13 = vld [vmem:[%s6820_s7 + $0x10] sm:$0xff] }
 0x29a   : > { %4837 = vmatmul.mubr.msk.f32.gmra.mrb[6].mxu0 %vm568_vm1, %v1830_v10 }
 0x29b   : > { %4839 = vmatprep.mubr.msk.f32.mxu0 %vm568_vm1, %v1831_v11  ;;  %v2385_v11 = vld [vmem:[%s6820_s7 + $0x18] sm:$0xff] }
 0x29c   : > { %v5231_v15 = vpack.c.bf16 %v2385_v11, %v2384_v13 }
 0x29e   : > { %4840 = vmatmul.mubr.msk.f32.gmra.mrb[8].mxu0 %vm568_vm1, %v1832_v19 }
 0x29f   : > { %4850 = vmatprep.mubr.msk.f32.mxu0 %vm568_vm1, %v5974_v49  ;;  %v1982_v49 = vld [vmem:[#allocation2 + $0x50] sm:$0xff] }
 0x2a2   : > { %4851 = vmatmul.mubr.msk.f32.vlgmr.msra.gmra.mrb[2].mxu0 %vm568_vm1, %v5978_v52  ;;  %v2284_v52 = vld [vmem:[%s6819_s6] sm:$0xff] }
 0x2a3   : > { %5198 = vmatpush3.bf16.msra.mxu0 %v5195_v42  ;;  %4853 = vmatprep.mubr.msk.f32.mxu0 %vm568_vm1, %v5982_v53  ;;  %v2285_v53 = vld [vmem:[%s6819_s6 + $0x8] sm:$0xff] }
 0x2a4   : > { %5200 = vmatprep.subr.bf16.mxu0 %v5199_v25  ;;  %v2383_v42 = vld [vmem:[%s6820_s7 + $0x8] sm:$0xff] }
 0x2a5   : > { %v5228_v10 = vpack.c.bf16 %v2383_v42, %v2382_v9 }
 0x2a6   : > { %4854 = vmatmul.mubr.msk.f32.gmra.mrb[4].mxu0 %vm568_vm1, %v5988_v57  ;;  %v2133_v57 = vmul.f32 %v5997_v51, %v6022_v40 }
 0x2a7   : > { %4856 = vmatprep.mubr.msk.f32.mxu0 %vm568_vm1, %v5994_v47  ;;  %5202 = vmatpush3.bf16.msra.mxu0 %v5199_v25  ;;  %v5204_v47 = vpack.c.bf16 %v2285_v53, %v2284_v52 }
 0x2a8   : > { %5203 = vmatprep.subr.bf16.mxu0 %v5550_v3  ;;  %5229 = vmatpush3.bf16.msra.mxu1 %v5228_v10 }
 0x2a9   : > { %5230 = vmatprep.subr.bf16.mxu1 %v5550_v3 }
 0x2aa   : > { %4857 = vmatmul.mubr.msk.f32.gmra.mrb[6].mxu0 %vm568_vm1, %v6006_v21  ;;  %v2134_v21 = vmul.f32 %v6010_v34, %v6036_v7  ;;  %v2136_v7 = vmul.f32 %v6034_v5, %v6062_v17  ;;  %v2138_v17 = vmul.f32 %v6060_v16, %v6080_v23  ;;  %v2292_v23 = vld [vmem:[%s6819_s6 + $0x40] sm:$0xff] }
 0x2ab   : > { %4859 = vmatprep.mubr.msk.f32.mxu0 %vm568_vm1, %v6151_v37  ;;  %v2287_v37 = vld [vmem:[%s6819_s6 + $0x18] sm:$0xff]  ;;  %v5216_v41 = vpack.c.bf16 %v2293_v1, %v2292_v23 }
 0x2ac   : > { %v5207_v40 = vpack.c.bf16 %v2287_v37, %v2286_v61  ;;  %5232 = vmatpush3.bf16.msra.mxu1 %v5231_v15 }
 0x2ad   : > { %5233 = vmatprep.subr.bf16.mxu1 %v5550_v3 }
 0x2ae   : > { %4860 = vmatmul.mubr.msk.f32.gmra.mrb[8].mxu0 %vm568_vm1, %v1982_v49 }
 0x2af   : > { %4870 = vmatprep.mubr.msk.f32.mxu0 %vm568_vm1, %v2133_v57 }
 0x2b2   : > { %4871 = vmatmul.mubr.msk.f32.vlgmr.msra.gmra.mrb[2].mxu0 %vm568_vm1, %v2134_v21 }
 0x2b3   : > { %5205 = vmatpush3.bf16.msra.mxu0 %v5204_v47  ;;  %4873 = vmatprep.mubr.msk.f32.mxu0 %vm568_vm1, %v2135_v46  ;;  %v4210_v47 = vld [vmem:[%s6818_s5] ss:$0 sm:$0xff] }
 0x2b4   : > { %5206 = vmatprep.subr.bf16.mxu0 %v5550_v3 }
 0x2b6   : > { %4874 = vmatmul.mubr.msk.f32.gmra.mrb[4].mxu0 %vm568_vm1, %v2136_v7 }
 0x2b7   : > { %5208 = vmatpush3.bf16.msra.mxu0 %v5207_v40  ;;  %4876 = vmatprep.mubr.msk.f32.mxu0 %vm568_vm1, %v2137_v58 }
 0x2b8   : > { %5209 = vmatprep.subr.bf16.mxu0 %v5550_v3 }
 0x2ba   : > { %4877 = vmatmul.mubr.msk.f32.gmra.mrb[6].mxu0 %vm568_vm1, %v2138_v17 }
 0x2bb   : > { %5211 = vmatpush3.bf16.msra.mxu0 %v5210_v60  ;;  %4879 = vmatprep.mubr.msk.f32.mxu0 %vm568_vm1, %v2139_v32 }
 0x2bc   : > { %5212 = vmatprep.subr.bf16.mxu0 %v5550_v3 }
 0x2be   : > { %4880 = vmatmul.mubr.msk.f32.gmra.mrb[8].mxu0 %vm568_vm1, %v2140_v33 }
 0x2bf   : > { %5214 = vmatpush3.bf16.msra.mxu0 %v5213_v35  ;;  %4914 = vmatprep.mubr.msk.f32.mxu0 %vm5551_vm0, %v5552_v6 }
 0x2c0   : > { %5215 = vmatprep.subr.bf16.mxu0 %v5550_v3 }
 0x2c3   : > { %5217 = vmatpush3.bf16.msra.mxu0 %v5216_v41 }
 0x2c4   : > { %5218 = vmatprep.subr.bf16.mxu0 %v5550_v3 }
 0x2c7   : > { %5220 = vmatpush3.bf16.msra.mxu0 %v5219_v56 }
 0x2c8   : > { %5221 = vmatprep.subr.bf16.mxu0 %v5550_v3 }
 0x2cb   : > { %5223 = vmatpush3.bf16.msra.mxu0 %v5222_v62 }
 0x2cc   : > { %5224 = vmatprep.subr.bf16.mxu0 %v5550_v3 }
 0x2cf   : > { %5226 = vmatpush3.bf16.msra.mxu0 %v5225_v4 }
 0x2d2   : > { %4915 = vmatmul.mubr.f32.vlgmr.msra.gmra.mrb[10].mxu0 %v2283_v36 }
 0x385   : > { %v4872_v19 = vpop.f32.mrb[2].mxu0 }
 0x386   : > { %v2236_v20 = vpop.f32.mrb[3].mxu0  ;;  %v5311_v21 = vadd.f32 %v4872_v19, %v4210_v47 }
 0x387   : > { %v5312_v37 = vadd.f32 %v4210_v47, %v2236_v20 }
 0x389   : > { %v4875_v45 = vpop.f32.mrb[4].mxu0 }
 0x38a   : > { %v2246_v25 = vpop.f32.mrb[5].mxu0  ;;  %v5313_v46 = vadd.f32 %v4875_v45, %v4210_v47 }
 0x38b   : > { %v5314_v40 = vadd.f32 %v4210_v47, %v2246_v25 }
 0x38d   : > { %v4878_v49 = vpop.f32.mrb[6].mxu0 }
 0x38e   : > { %v2256_v52 = vpop.f32.mrb[7].mxu0  ;;  %v5315_v14 = vadd.f32 %v4878_v49, %v4210_v47 }
 0x38f   : > { %v5316_v58 = vadd.f32 %v4210_v47, %v2256_v52 }
 0x391   : > { %v4881_v53 = vpop.f32.mrb[8].mxu0 }
 0x392   : > { %v2266_v57 = vpop.f32.mrb[9].mxu0  ;;  %v5317_v60 = vadd.f32 %v4881_v53, %v4210_v47 }
 0x393   : > { %v5318_v26 = vadd.f32 %v4210_v47, %v2266_v57 }
 0x3a5   : > { %v2366_v61 = vpop.f32.mrb[10].mxu0 }
 0x3a6   : > { %v2373_v7 = vrot.slane %v2366_v61, %v5730_v39  ;;  %v4916_v0 = vpop.f32.mrb[11].mxu0 }
 0x3a8   : > { %v2374_v17 = vadd.f32 %v5312_v37, %v2373_v7  ;;  %v2375_v27 = vadd.f32 %v5311_v21, %v2373_v7  ;;  %v2376_v59 = vadd.f32 %v5314_v40, %v2373_v7  ;;  %v2377_v32 = vadd.f32 %v5313_v46, %v2373_v7 }
 0x3a9   : > { %v2378_v33 = vadd.f32 %v5316_v58, %v2373_v7  ;;  %v2379_v35 = vadd.f32 %v5315_v14, %v2373_v7  ;;  %v2380_v23 = vadd.f32 %v5318_v26, %v2373_v7  ;;  %v2381_v1 = vadd.f32 %v5317_v60, %v2373_v7 }
 0x3aa   : > { %v2388_v41 = vsel %vm568_vm1, %v2374_v17, 0.0  ;;  %v2389_v48 = vsel %vm568_vm1, %v2375_v27, 0.0  ;;  %v2391_v56 = vsel %vm568_vm1, %v2376_v59, 0.0  ;;  %v2393_v29 = vsel %vm568_vm1, %v2377_v32, 0.0 }
 0x3ab   : > { %v2390_v50 = vadd.f32 %v2389_v48, %v2388_v41  ;;  %v2395_v44 = vsel %vm568_vm1, %v2378_v33, 0.0  ;;  %v2397_v4 = vsel %vm568_vm1, %v2379_v35, 0.0  ;;  %v2399_v9 = vsel %vm568_vm1, %v2380_v23, 0.0 }
 0x3ac   : > { %v2401_v13 = vsel %vm568_vm1, %v2381_v1, 0.0 }
 0x3ad   : > { %v2392_v38 = vadd.f32 %v2391_v56, %v2390_v50 }
 0x3af   : > { %v2394_v62 = vadd.f32 %v2393_v29, %v2392_v38 }
 0x3b1   : > { %v2396_v2 = vadd.f32 %v2395_v44, %v2394_v62 }
 0x3b3   : > { %v2398_v36 = vadd.f32 %v2397_v4, %v2396_v2 }
 0x3b5   : > { %v2400_v42 = vadd.f32 %v2399_v9, %v2398_v36 }
 0x3b7   : > { %v2402_v11 = vadd.f32 %v2401_v13, %v2400_v42 }
 0x3b9   : > { %v2403_v19 = vrot.slane %v2402_v11, 4 }
 0x3bb   : > { %v2404_v20 = vadd.f32 %v2403_v19, %v2402_v11  ;;  %v2721_v11 = vld [vmem:[%s6822_s9] sm:$0xff]  ;;  %v2722_v19 = vld [vmem:[%s6822_s9 + $0x8] sm:$0xff] }
 0x3bd   : > { %v2405_v45 = vrot.slane %v2404_v20, 2 }
 0x3bf   : > { %v2406_v25 = vadd.f32 %v2405_v45, %v2404_v20  ;;  %v2723_v20 = vld [vmem:[%s6822_s9 + $0x10] sm:$0xff]  ;;  %v5239_v45 = vpack.c.bf16 %v2722_v19, %v2721_v11 }
 0x3c1   : > { %v2407_v49 = vrot.slane %v2406_v25, 1 }
 0x3c3   : > { %v2408_v52 = vadd.f32 %v2407_v49, %v2406_v25  ;;  %v2724_v25 = vld [vmem:[%s6822_s9 + $0x18] sm:$0xff]  ;;  %v2705_v49 = vld [vmem:[#allocation3 + $0x7] sm:$0xff] }
 0x3c5   : > { %4926 = vmatmul.mubr.msk.f32.vlgmr.msra.gmra.mrb[2].mxu1 %vm568_vm1, %v2408_v52  ;;  %v5243_v52 = vpack.c.bf16 %v2724_v25, %v2723_v20 }
 0x3c6   : > { %5235 = vmatpush3.bf16.msra.mxu1 %v5228_v10  ;;  %4936 = vmatprep.mubr.msk.f32.mxu1 %vm5551_vm0, %v5552_v6 }
 0x3c7   : > { %5236 = vmatprep.subr.bf16.mxu1 %v5550_v3 }
 0x3ca   : > { %5238 = vmatpush3.bf16.msra.mxu1 %v5231_v15 }
 0x3cb   : > { %5240 = vmatprep.subr.bf16.mxu1 %v5239_v45 }
 0x498   : > { %v2478_v53 = vpop.f32.mrb[2].mxu1 }
 0x499   : > { %v2485_v57 = vrot.slane %v2478_v53, %v5730_v39  ;;  %v4927_v47 = vpop.f32.mrb[3].mxu1  ;;  %v2713_v53 = vmul.f32 %v5790_v28, %v2705_v49 }
 0x49a   : > { %v4328_v47 = vld [vmem:[%s6822_s9 + $0x28] sm:$0xff] }
 0x49b   : > { %v6365_v21 = vsub.f32 %v2374_v17, %v2485_v57  ;;  %v6367_v61 = vsub.f32 %v2375_v27, %v2485_v57  ;;  %v6369_v37 = vsub.f32 %v2376_v59, %v2485_v57  ;;  %v6371_v46 = vsub.f32 %v2377_v32, %v2485_v57 }
 0x49c   : > { %v6373_v40 = vsub.f32 %v2378_v33, %v2485_v57  ;;  %v2491_v15 = vsub.f32 %v2379_v35, %v2485_v57  ;;  %v2492_v60 = vsub.f32 %v2380_v23, %v2485_v57  ;;  %v2493_v59 = vsub.f32 %v2381_v1, %v2485_v57  ;;  %v4327_v57 = vld [vmem:[%s6822_s9 + $0x20] sm:$0xff] }
 0x49d   : > { %v2494_v6 = vmul.f32 %v6365_v21, %v6365_v21  ;;  %v2495_v3 = vmul.f32 %v6367_v61, %v6367_v61  ;;  %v2496_v10 = vmul.f32 %v6369_v37, %v6369_v37  ;;  %v2497_v7 = vmul.f32 %v6371_v46, %v6371_v46 }
 0x49e   : > { %v2498_v26 = vmul.f32 %v6373_v40, %v6373_v40  ;;  %v2499_v32 = vmul.f32 %v2491_v15, %v2491_v15  ;;  %v2500_v41 = vmul.f32 %v2492_v60, %v2492_v60  ;;  %v2501_v56 = vmul.f32 %v2493_v59, %v2493_v59 }
 0x49f   : > { %v2502_v0 = vsel %vm568_vm1, %v2494_v6, 0.0  ;;  %v2503_v14 = vsel %vm568_vm1, %v2495_v3, 0.0  ;;  %v2505_v17 = vsel %vm568_vm1, %v2496_v10, 0.0  ;;  %v2507_v33 = vsel %vm568_vm1, %v2497_v7, 0.0 }
 0x4a0   : > { %v2504_v58 = vadd.f32 %v2503_v14, %v2502_v0  ;;  %v2509_v48 = vsel %vm568_vm1, %v2498_v26, 0.0  ;;  %v2511_v38 = vsel %vm568_vm1, %v2499_v32, 0.0  ;;  %v2513_v23 = vsel %vm568_vm1, %v2500_v41, 0.0  ;;  %v2386_v0 = vld [vmem:[%s6821_s8] sm:$0x1] }
 0x4a1   : > { %v2515_v44 = vsel %vm568_vm1, %v2501_v56, 0.0  ;;  %v6414_v6 = vpack.c.bf16 %v4328_v47, %v4327_v57 }
 0x4a2   : > { %v2506_v27 = vadd.f32 %v2505_v17, %v2504_v58  ;;  %v4317_v17 = vld [vmem:[%s6821_s8 + $0x1] ss:$0 sm:$0xff] }
 0x4a4   : > { %v2508_v35 = vadd.f32 %v2507_v33, %v2506_v27 }
 0x4a6   : > { %v2510_v50 = vadd.f32 %v2509_v48, %v2508_v35 }
 0x4a8   : > { %v2512_v29 = vadd.f32 %v2511_v38, %v2510_v50 }
 0x4aa   : > { %v2514_v62 = vadd.f32 %v2513_v23, %v2512_v29 }
 0x4ac   : > { %v2516_v2 = vadd.f32 %v2515_v44, %v2514_v62 }
 0x4ae   : > { %v2517_v4 = vrot.slane %v2516_v2, 4 }
 0x4b0   : > { %v2518_v1 = vadd.f32 %v2517_v4, %v2516_v2 }
 0x4b2   : > { %v2519_v36 = vrot.slane %v2518_v1, 2 }
 0x4b4   : > { %v2520_v9 = vadd.f32 %v2519_v36, %v2518_v1 }
 0x4b6   : > { %v2521_v42 = vrot.slane %v2520_v9, 1 }
 0x4b8   : > { %v2522_v13 = vadd.f32 %v2521_v42, %v2520_v9 }
 0x4ba   : > { %4937 = vmatmul.mubr.msk.f32.vlgmr.msra.gmra.mrb[4].mxu1 %vm568_vm1, %v2522_v13 }
 0x4bb   : > { %5242 = vmatpush3.bf16.msra.mxu1 %v5239_v45  ;;  %4947 = vmatprep.mubr.msk.f32.mxu1 %vm568_vm1, %v2713_v53 }
 0x4bc   : > { %5244 = vmatprep.subr.bf16.mxu1 %v5243_v52 }
 0x4bf   : > { %5246 = vmatpush3.bf16.msra.mxu1 %v5243_v52 }
 0x4c0   : > { %5248 = vmatprep.subr.bf16.mxu1 %v6414_v6 }
 0x58d   : > { %v2592_v3 = vpop.f32.mrb[4].mxu1 }
 0x58e   : > { %v2593_v10 = vadd.f32 1e-06, %v2592_v3  ;;  %v4938_v7 = vpop.f32.mrb[5].mxu1 }
 0x590   : > { %5500 = vrsqrt.f32 %v2593_v10 }
 0x59a   : > { %v5501_v14 = vpop.eup %5500 }
 0x59b   : > { %v2597_v58 = vmul.f32 %v5501_v14, %v2386_v0 }
 0x59d   : > { %v2601_v26 = vrot.slane %v2597_v58, %v5730_v39 }
 0x59f   : > { %v2602_v27 = vmul.f32 %v2601_v26, %v6365_v21  ;;  %v2603_v32 = vmul.f32 %v2601_v26, %v6367_v61  ;;  %v2604_v33 = vmul.f32 %v2601_v26, %v6369_v37  ;;  %v2605_v35 = vmul.f32 %v2601_v26, %v6371_v46 }
 0x5a0   : > { %v2606_v41 = vmul.f32 %v2601_v26, %v6373_v40  ;;  %v2607_v48 = vmul.f32 %v2601_v26, %v2491_v15  ;;  %v2608_v50 = vmul.f32 %v2601_v26, %v2492_v60  ;;  %v2609_v56 = vmul.f32 %v2601_v26, %v2493_v59 }
 0x5a1   : > { %v2614_v38 = vadd.f32 %v4317_v17, %v2602_v27  ;;  %v2615_v29 = vadd.f32 %v4317_v17, %v2603_v32  ;;  %v2616_v39 = vadd.f32 %v4317_v17, %v2604_v33  ;;  %v6429_v23 = vadd.f32 %v4317_v17, %v2605_v35 }
 0x5a2   : > { %v6431_v62 = vadd.f32 %v4317_v17, %v2606_v41  ;;  %v6433_v44 = vadd.f32 %v4317_v17, %v2607_v48  ;;  %v6435_v21 = vadd.f32 %v4317_v17, %v2608_v50  ;;  %v6437_v61 = vadd.f32 %v4317_v17, %v2609_v56 }
 0x5a3   : > { %v2622_v37 = vsub.f32 0.0, %v2614_v38  ;;  %v2623_v46 = vsub.f32 0.0, %v2615_v29  ;;  %v2624_v2 = vsub.f32 0.0, %v2616_v39  ;;  %v2625_v40 = vsub.f32 0.0, %v6429_v23 }
 0x5a4   : > { %v2626_v15 = vsub.f32 0.0, %v6431_v62  ;;  %v2627_v60 = vsub.f32 0.0, %v6433_v44  ;;  %v2628_v59 = vsub.f32 0.0, %v6435_v21  ;;  %v2629_v42 = vsub.f32 0.0, %v6437_v61 }
 0x5a5   : > { %v2630_v4 = vmul.f32 1.442695, %v2622_v37  ;;  %v2632_v1 = vmul.f32 1.442695, %v2623_v46  ;;  %v2634_v36 = vmul.f32 1.442695, %v2624_v2 }
 0x5a6   : > { %v2636_v9 = vmul.f32 1.442695, %v2625_v40  ;;  %v2638_v13 = vmul.f32 1.442695, %v2626_v15  ;;  %v2640_v11 = vmul.f32 1.442695, %v2627_v60 }
 0x5a7   : > { %5502 = vpow2.f32 %v2630_v4  ;;  %v2642_v19 = vmul.f32 1.442695, %v2628_v59  ;;  %v2644_v20 = vmul.f32 1.442695, %v2629_v42  ;;  %v4329_v60 = vld [vmem:[%s6822_s9 + $0x30] sm:$0xff] }
 0x5a8   : > { %5504 = vpow2.f32 %v2632_v1 }
 0x5a9   : > { %5506 = vpow2.f32 %v2634_v36 }
 0x5aa   : > { %5508 = vpow2.f32 %v2636_v9  ;;  %v4340_v9 = vld [vmem:[%s6822_s9 + $0x48] sm:$0xff] }
 0x5ab   : > { %5510 = vpow2.f32 %v2638_v13 }
 0x5ac   : > { %5512 = vpow2.f32 %v2640_v11 }
 0x5ad   : > { %5514 = vpow2.f32 %v2642_v19 }
 0x5ae   : > { %5516 = vpow2.f32 %v2644_v20 }
 0x5b1   : > { %v5503_v45 = vpop.eup %5502 }
 0x5b2   : > { %v5505_v25 = vpop.eup %5504  ;;  %v2646_v49 = vadd.f32 1.0, %v5503_v45 }
 0x5b3   : > { %v5507_v52 = vpop.eup %5506  ;;  %v2647_v53 = vadd.f32 1.0, %v5505_v25 }
 0x5b4   : > { %v5509_v57 = vpop.eup %5508  ;;  %5518 = vrcp.f32 %v2646_v49  ;;  %v2648_v47 = vadd.f32 1.0, %v5507_v52 }
 0x5b5   : > { %v5511_v3 = vpop.eup %5510  ;;  %5520 = vrcp.f32 %v2647_v53  ;;  %v2649_v10 = vadd.f32 1.0, %v5509_v57  ;;  %v2862_v53 = vld [vmem:[#allocation3 + $0x8] sm:$0xff]  ;;  %v4341_v57 = vld [vmem:[%s6822_s9 + $0x50] sm:$0xff] }
 0x5b6   : > { %v5513_v7 = vpop.eup %5512  ;;  %5522 = vrcp.f32 %v2648_v47  ;;  %v2650_v0 = vadd.f32 1.0, %v5511_v3  ;;  %v4342_v47 = vld [vmem:[%s6822_s9 + $0x58] sm:$0xff] }
 0x5b7   : > { %v5515_v14 = vpop.eup %5514  ;;  %5524 = vrcp.f32 %v2649_v10  ;;  %v2651_v58 = vadd.f32 1.0, %v5513_v7  ;;  %v5259_v3 = vpack.c.bf16 %v4342_v47, %v4341_v57  ;;  %v4351_v7 = vld [vmem:[%s6822_s9 + $0x60] sm:$0xff]  ;;  %v4376_v57 = vld [vmem:[%s6822_s9 + $0xa8] sm:$0xff] }
 0x5b8   : > { %v5517_v26 = vpop.eup %5516  ;;  %5526 = vrcp.f32 %v2650_v0  ;;  %v2652_v17 = vadd.f32 1.0, %v5515_v14  ;;  %v4352_v0 = vld [vmem:[%s6822_s9 + $0x68] sm:$0xff] }
 0x5b9   : > { %5528 = vrcp.f32 %v2651_v58  ;;  %v2653_v27 = vadd.f32 1.0, %v5517_v26  ;;  %v5263_v58 = vpack.c.bf16 %v4352_v0, %v4351_v7 }
 0x5ba   : > { %5530 = vrcp.f32 %v2652_v17 }
 0x5bb   : > { %5532 = vrcp.f32 %v2653_v27 }
 0x5be   : > { %v5519_v32 = vpop.eup %5518 }
 0x5bf   : > { %v5521_v33 = vpop.eup %5520  ;;  %v2670_v35 = vmul.f32 %v5519_v32, %v2614_v38 }
 0x5c0   : > { %v5523_v41 = vpop.eup %5522  ;;  %v2671_v48 = vmul.f32 %v5521_v33, %v2615_v29 }
 0x5c1   : > { %v5525_v50 = vpop.eup %5524  ;;  %2691 = vst.msk [vmem:[#allocation3 + $0x10] sm:$0xff] %vm568_vm1, %v2670_v35  ;;  %v2672_v56 = vmul.f32 %v5523_v41, %v2616_v39  ;;  %v4353_v35 = vld [vmem:[%s6822_s9 + $0x70] sm:$0xff] }
 0x5c2   : > { %v5527_v37 = vpop.eup %5526  ;;  %2692 = vst.msk [vmem:[#allocation3 + $0x18] sm:$0xff] %vm568_vm1, %v2671_v48  ;;  %v2673_v46 = vmul.f32 %v5525_v50, %v6429_v23  ;;  %v4330_v23 = vld [vmem:[%s6822_s9 + $0x38] sm:$0xff] }
 0x5c3   : > { %v5529_v2 = vpop.eup %5528  ;;  %2693 = vst.msk [vmem:[#allocation3 + $0x20] sm:$0xff] %vm568_vm1, %v2672_v56  ;;  %v2674_v40 = vmul.f32 %v5527_v37, %v6431_v62  ;;  %v5251_v4 = vpack.c.bf16 %v4330_v23, %v4329_v60  ;;  %v4354_v56 = vld [vmem:[%s6822_s9 + $0x78] sm:$0xff] }
 0x5c4   : > { %v5531_v15 = vpop.eup %5530  ;;  %2694 = vst.msk [vmem:[#allocation3 + $0x28] sm:$0xff] %vm568_vm1, %v2673_v46  ;;  %v2675_v38 = vmul.f32 %v5529_v2, %v6433_v44  ;;  %v5267_v2 = vpack.c.bf16 %v4354_v56, %v4353_v35  ;;  %v4378_v56 = vld [vmem:[%s6822_s9 + $0xb8] sm:$0xff] }
 0x5c5   : > { %v5533_v29 = vpop.eup %5532  ;;  %2695 = vst.msk [vmem:[#allocation3 + $0x30] sm:$0xff] %vm568_vm1, %v2674_v40  ;;  %v2676_v39 = vmul.f32 %v5531_v15, %v6435_v21 }
 0x5c6   : > { %2696 = vst.msk [vmem:[#allocation3 + $0x38] sm:$0xff] %vm568_vm1, %v2675_v38  ;;  %v2677_v62 = vmul.f32 %v5533_v29, %v6437_v61  ;;  %v4339_v61 = vld [vmem:[%s6822_s9 + $0x40] sm:$0xff]  ;;  %v4364_v29 = vld [vmem:[%s6822_s9 + $0x88] sm:$0xff] }
 0x5c7   : > { %2697 = vst.msk [vmem:[#allocation3 + $0x40] sm:$0xff] %vm568_vm1, %v2676_v39  ;;  %v5255_v11 = vpack.c.bf16 %v4340_v9, %v4339_v61  ;;  %v4363_v38 = vld [vmem:[%s6822_s9 + $0x80] sm:$0xff] }
 0x5c8   : > { %v6462_v44 = vld [vmem:[#allocation3 + $0xf] sm:$0xff]  ;;  %2698 = vst.msk [vmem:[#allocation3 + $0x48] sm:$0xff] %vm568_vm1, %v2677_v62  ;;  %v5271_v23 = vpack.c.bf16 %v4364_v29, %v4363_v38 }
 0x5c9   : > { %v2714_v21 = vmul.f32 %v5869_v43, %v6462_v44  ;;  %v6467_v59 = vld [vmem:[#allocation3 + $0x17] sm:$0xff]  ;;  %v3012_v33 = vld [vmem:[#allocation3 + $0x9] sm:$0xff] }
 0x5ca   : > { %v2715_v1 = vmul.f32 %v5880_v63, %v6467_v59  ;;  %v6471_v36 = vld [vmem:[#allocation3 + $0x1f] sm:$0xff]  ;;  %v6512_v10 = vld [vmem:[#allocation3 + $0x10] sm:$0xff]  ;;  %v3020_v48 = vmul.f32 %v5997_v51, %v3012_v33 }
 0x5cb   : > { %4948 = vmatmul.mubr.msk.f32.vlgmr.msra.gmra.mrb[6].mxu1 %vm568_vm1, %v2714_v21  ;;  %v6480_v42 = vld [vmem:[#allocation3 + $0x27] sm:$0xff]  ;;  %v2716_v13 = vmul.f32 %v5902_v8, %v6471_v36  ;;  %v6522_v14 = vld [vmem:[#allocation3 + $0x18] sm:$0xff] }
 0x5cc   : > { %5250 = vmatpush3.bf16.msra.mxu1 %v6414_v6  ;;  %4950 = vmatprep.mubr.msk.f32.mxu1 %vm568_vm1, %v2715_v1  ;;  %v2717_v19 = vmul.f32 %v5914_v12, %v6480_v42  ;;  %v6488_v20 = vld [vmem:[#allocation3 + $0x2f] sm:$0xff]  ;;  %v6526_v26 = vld [vmem:[#allocation3 + $0x20] sm:$0xff]  ;;  %v3181_v47 = vmul.f32 %v5902_v8, %v6480_v42 }
 0x5cd   : > { %5252 = vmatprep.subr.bf16.mxu1 %v5251_v4  ;;  %v6491_v45 = vld [vmem:[#allocation3 + $0x37] sm:$0xff]  ;;  %v2718_v6 = vmul.f32 %v5930_v18, %v6488_v20  ;;  %v6530_v17 = vld [vmem:[#allocation3 + $0x28] sm:$0xff]  ;;  %v3182_v7 = vmul.f32 %v5914_v12, %v6488_v20 }
 0x5ce   : > { %v2719_v25 = vmul.f32 %v5936_v30, %v6491_v45  ;;  %v6498_v49 = vld [vmem:[#allocation3 + $0x3f] sm:$0xff]  ;;  %v6534_v27 = vld [vmem:[#allocation3 + $0x30] sm:$0xff]  ;;  %v3183_v0 = vmul.f32 %v5930_v18, %v6491_v45 }
 0x5cf   : > { %4951 = vmatmul.mubr.msk.f32.gmra.mrb[8].mxu1 %vm568_vm1, %v2716_v13  ;;  %v2720_v52 = vmul.f32 %v5948_v24, %v6498_v49  ;;  %v6538_v32 = vld [vmem:[#allocation3 + $0x38] sm:$0xff]  ;;  %v6545_v41 = vld [vmem:[#allocation3 + $0x40] sm:$0xff]  ;;  %v6571_v39 = vld [vmem:[#allocation3 + $0x29] sm:$0xff] }
 0x5d0   : > { %4953 = vmatprep.mubr.msk.f32.mxu1 %vm568_vm1, %v2717_v19  ;;  %5254 = vmatpush3.bf16.msra.mxu1 %v5251_v4  ;;  %v6548_v50 = vld [vmem:[#allocation3 + $0x11] sm:$0xff]  ;;  %v6555_v37 = vld [vmem:[#allocation3 + $0x19] sm:$0xff]  ;;  %v6562_v15 = vld [vmem:[#allocation3 + $0x21] sm:$0xff]  ;;  %v3024_v62 = vmul.f32 %v6046_v54, %v6571_v39 }
 0x5d1   : > { %5256 = vmatprep.subr.bf16.mxu1 %v5255_v11  ;;  %v3021_v46 = vmul.f32 %v6010_v34, %v6548_v50  ;;  %v3022_v40 = vmul.f32 %v6020_v31, %v6555_v37  ;;  %v3023_v60 = vmul.f32 %v6034_v5, %v6562_v15  ;;  %v6578_v21 = vld [vmem:[#allocation3 + $0x31] sm:$0xff]  ;;  %v6581_v4 = vld [vmem:[#allocation3 + $0x39] sm:$0xff]  ;;  %v6588_v9 = vld [vmem:[#allocation3 + $0x41] sm:$0xff]  ;;  %v3486_v29 = vmul.f32 %v5997_v51, %v6548_v50 }
 0x5d2   : > { %v3025_v1 = vmul.f32 %v6060_v16, %v6578_v21  ;;  %v3026_v61 = vmul.f32 %v6066_v55, %v6581_v4  ;;  %v3027_v13 = vmul.f32 %v6078_v22, %v6588_v9  ;;  %v4365_v19 = vld [vmem:[%s6822_s9 + $0x90] sm:$0xff]  ;;  %v6626_v33 = vld [vmem:[#allocation3 + $0x47] sm:$0xff]  ;;  %v3488_v50 = vmul.f32 %v6020_v31, %v6562_v15 }
 0x5d3   : > { %4954 = vmatmul.mubr.msk.f32.gmra.mrb[10].mxu1 %vm568_vm1, %v2718_v6  ;;  %v4366_v6 = vld [vmem:[%s6822_s9 + $0x98] sm:$0xff]  ;;  %v3185_v35 = vmul.f32 %v5948_v24, %v6626_v33 }
 0x5d4   : > { %4956 = vmatprep.mubr.msk.f32.mxu1 %vm568_vm1, %v2719_v25  ;;  %v3179_v25 = vmul.f32 %v5869_v43, %v6467_v59 }
 0x5d7   : > { %4957 = vmatmul.mubr.msk.f32.gmra.mrb[12].mxu1 %vm568_vm1, %v2720_v52  ;;  %v5275_v52 = vpack.c.bf16 %v4366_v6, %v4365_v19  ;;  %v3490_v6 = vmul.f32 %v6046_v54, %v6578_v21 }
 0x5d8   : > { %4967 = vmatprep.mubr.msk.f32.mxu1 %vm568_vm1, %v2862_v53  ;;  %v3180_v53 = vmul.f32 %v5880_v63, %v6471_v36 }
 0x5db   : > { %4968 = vmatmul.mubr.msk.f32.vlgmr.msra.gmra.mrb[6].mxu1 %vm568_vm1, %v6512_v10 }
 0x5dc   : > { %5258 = vmatpush3.bf16.msra.mxu1 %v5255_v11  ;;  %4970 = vmatprep.mubr.msk.f32.mxu1 %vm568_vm1, %v6522_v14  ;;  %v3178_v11 = vmul.f32 %v5790_v28, %v6462_v44  ;;  %v4375_v44 = vld [vmem:[%s6822_s9 + $0xa0] sm:$0xff] }
 0x5dd   : > { %5260 = vmatprep.subr.bf16.mxu1 %v5259_v3 }
 0x5df   : > { %4971 = vmatmul.mubr.msk.f32.gmra.mrb[8].mxu1 %vm568_vm1, %v6526_v26 }
 0x5e0   : > { %4973 = vmatprep.mubr.msk.f32.mxu1 %vm568_vm1, %v6530_v17  ;;  %5262 = vmatpush3.bf16.msra.mxu1 %v5259_v3  ;;  %v5279_v3 = vpack.c.bf16 %v4376_v57, %v4375_v44  ;;  %v3644_v57 = vmul.f32 %v5790_v28, %v6467_v59  ;;  %v4411_v28 = vld [vmem:[%s6822_s9 + $0x100] sm:$0xff]  ;;  %v4412_v59 = vld [vmem:[%s6822_s9 + $0x108] sm:$0xff] }
 0x5e1   : > { %5264 = vmatprep.subr.bf16.mxu1 %v5263_v58 }
 0x5e3   : > { %4974 = vmatmul.mubr.msk.f32.gmra.mrb[10].mxu1 %vm568_vm1, %v6534_v27 }
 0x5e4   : > { %4976 = vmatprep.mubr.msk.f32.mxu1 %vm568_vm1, %v6538_v32 }
 0x5e7   : > { %4977 = vmatmul.mubr.msk.f32.gmra.mrb[12].mxu1 %vm568_vm1, %v6545_v41 }
 0x5e8   : > { %4987 = vmatprep.mubr.msk.f32.mxu1 %vm568_vm1, %v3020_v48  ;;  %v4377_v48 = vld [vmem:[%s6822_s9 + $0xb0] sm:$0xff] }
 0x5eb   : > { %4988 = vmatmul.mubr.msk.f32.vlgmr.msra.gmra.mrb[6].mxu1 %vm568_vm1, %v3021_v46  ;;  %v5283_v46 = vpack.c.bf16 %v4378_v56, %v4377_v48  ;;  %v3643_v48 = vld [vmem:[#allocation3 + $0x4f] sm:$0xff] }
 0x5ec   : > { %5266 = vmatpush3.bf16.msra.mxu1 %v5263_v58  ;;  %4990 = vmatprep.mubr.msk.f32.mxu1 %vm568_vm1, %v3022_v40  ;;  %v3184_v58 = vmul.f32 %v5936_v30, %v6498_v49  ;;  %v4388_v40 = vld [vmem:[%s6822_s9 + $0xc8] sm:$0xff]  ;;  %v5537_v56 = vld [vmem:[%s5707_s12 + $0x10] sm:$0xff] }
 0x5ed   : > { %5268 = vmatprep.subr.bf16.mxu1 %v5267_v2 }
 0x5ef   : > { %4991 = vmatmul.mubr.msk.f32.gmra.mrb[8].mxu1 %vm568_vm1, %v3023_v60  ;;  %v4389_v60 = vld [vmem:[%s6822_s9 + $0xd0] sm:$0xff] }
 0x5f0   : > { %4993 = vmatprep.mubr.msk.f32.mxu1 %vm568_vm1, %v3024_v62  ;;  %5270 = vmatpush3.bf16.msra.mxu1 %v5267_v2  ;;  %v4387_v2 = vld [vmem:[%s6822_s9 + $0xc0] sm:$0xff]  ;;  %v3487_v62 = vmul.f32 %v6010_v34, %v6555_v37 }
 0x5f1   : > { %5272 = vmatprep.subr.bf16.mxu1 %v5271_v23  ;;  %v5287_v38 = vpack.c.bf16 %v4388_v40, %v4387_v2 }
 0x5f3   : > { %4994 = vmatmul.mubr.msk.f32.gmra.mrb[10].mxu1 %vm568_vm1, %v3025_v1 }
 0x5f4   : > { %4996 = vmatprep.mubr.msk.f32.mxu1 %vm568_vm1, %v3026_v61  ;;  %v4399_v61 = vld [vmem:[%s6822_s9 + $0xe0] sm:$0xff] }
 0x5f7   : > { %4997 = vmatmul.mubr.msk.f32.gmra.mrb[12].mxu1 %vm568_vm1, %v3027_v13  ;;  %v4400_v13 = vld [vmem:[%s6822_s9 + $0xe8] sm:$0xff] }
 0x5f8   : > { %5007 = vmatprep.mubr.msk.f32.mxu1 %vm568_vm1, %v3178_v11  ;;  %v3489_v11 = vmul.f32 %v6034_v5, %v6571_v39  ;;  %v5295_v19 = vpack.c.bf16 %v4400_v13, %v4399_v61 }
 0x5fb   : > { %5008 = vmatmul.mubr.msk.f32.vlgmr.msra.gmra.mrb[6].mxu1 %vm568_vm1, %v3179_v25  ;;  %v3491_v25 = vmul.f32 %v6060_v16, %v6581_v4 }
 0x5fc   : > { %5274 = vmatpush3.bf16.msra.mxu1 %v5271_v23  ;;  %5010 = vmatprep.mubr.msk.f32.mxu1 %vm568_vm1, %v3180_v53  ;;  %v4390_v23 = vld [vmem:[%s6822_s9 + $0xd8] sm:$0xff]  ;;  %v3485_v53 = vld [vmem:[#allocation3 + $0x49] sm:$0xff] }
 0x5fd   : > { %5276 = vmatprep.subr.bf16.mxu1 %v5275_v52  ;;  %v5291_v1 = vpack.c.bf16 %v4390_v23, %v4389_v60  ;;  %v3493_v44 = vmul.f32 %v6078_v22, %v3485_v53  ;;  %v5539_v23 = vld [vmem:[%s5707_s12 + $0x20] sm:$0xff] }
 0x5ff   : > { %5011 = vmatmul.mubr.msk.f32.gmra.mrb[8].mxu1 %vm568_vm1, %v3181_v47  ;;  %v4401_v47 = vld [vmem:[%s6822_s9 + $0xf0] sm:$0xff] }
 0x600   : > { %5013 = vmatprep.mubr.msk.f32.mxu1 %vm568_vm1, %v3182_v7  ;;  %5278 = vmatpush3.bf16.msra.mxu1 %v5275_v52  ;;  %v3492_v52 = vmul.f32 %v6066_v55, %v6588_v9  ;;  %v3645_v7 = vmul.f32 %v5869_v43, %v6471_v36  ;;  %v3647_v43 = vmul.f32 %v5902_v8, %v6488_v20  ;;  %v4414_v20 = vld [vmem:[%s6822_s9 + $0x118] sm:$0xff] }
 0x601   : > { %5280 = vmatprep.subr.bf16.mxu1 %v5279_v3  ;;  %v5303_v36 = vpack.c.bf16 %v4412_v59, %v4411_v28  ;;  %v3651_v8 = vmul.f32 %v5948_v24, %v3643_v48  ;;  %v3952_v24 = vmul.f32 %v5997_v51, %v6555_v37  ;;  %v3956_v51 = vmul.f32 %v6046_v54, %v6581_v4 }
 0x603   : > { %5014 = vmatmul.mubr.msk.f32.gmra.mrb[10].mxu1 %vm568_vm1, %v3183_v0 }
 0x604   : > { %5016 = vmatprep.mubr.msk.f32.mxu1 %vm568_vm1, %v3184_v58  ;;  %v3646_v58 = vmul.f32 %v5880_v63, %v6480_v42  ;;  %v3648_v63 = vmul.f32 %v5914_v12, %v6491_v45  ;;  %v3649_v42 = vmul.f32 %v5930_v18, %v6498_v49  ;;  %v4413_v12 = vld [vmem:[%s6822_s9 + $0x110] sm:$0xff]  ;;  %v3953_v45 = vmul.f32 %v6010_v34, %v6562_v15 }
 0x605   : > { %v5307_v18 = vpack.c.bf16 %v4414_v20, %v4413_v12  ;;  %v3954_v49 = vmul.f32 %v6020_v31, %v6571_v39  ;;  %v3951_v34 = vld [vmem:[#allocation3 + $0x51] sm:$0xff]  ;;  %v3957_v31 = vmul.f32 %v6060_v16, %v6588_v9 }
 0x606   : > { %v5536_v9 = vld [vmem:[%s5707_s12 + $0x18] sm:$0xff] }
 0x607   : > { %5017 = vmatmul.mubr.msk.f32.gmra.mrb[12].mxu1 %vm568_vm1, %v3185_v35  ;;  %v3650_v35 = vmul.f32 %v5936_v30, %v6626_v33  ;;  %v3801_v30 = vld [vmem:[#allocation3 + $0x50] sm:$0xff] }
 0x608   : > { %5027 = vmatprep.mubr.msk.f32.mxu1 %vm568_vm1, %v6512_v10  ;;  %v6659_v10 = vld [vmem:[#allocation3 + $0x48] sm:$0xff] }
 0x60b   : > { %5028 = vmatmul.mubr.msk.f32.vlgmr.msra.gmra.mrb[6].mxu1 %vm568_vm1, %v6522_v14 }
 0x60c   : > { %5282 = vmatpush3.bf16.msra.mxu1 %v5279_v3  ;;  %5030 = vmatprep.mubr.msk.f32.mxu1 %vm568_vm1, %v6526_v26  ;;  %v4402_v3 = vld [vmem:[%s6822_s9 + $0xf8] sm:$0xff] }
 0x60d   : > { %5284 = vmatprep.subr.bf16.mxu1 %v5283_v46  ;;  %v5299_v0 = vpack.c.bf16 %v4402_v3, %v4401_v47 }
 0x60f   : > { %5031 = vmatmul.mubr.msk.f32.gmra.mrb[8].mxu1 %vm568_vm1, %v6530_v17 }
 0x610   : > { %5033 = vmatprep.mubr.msk.f32.mxu1 %vm568_vm1, %v6534_v27  ;;  %5286 = vmatpush3.bf16.msra.mxu1 %v5283_v46 }
 0x611   : > { %5288 = vmatprep.subr.bf16.mxu1 %v5287_v38 }
 0x613   : > { %5034 = vmatmul.mubr.msk.f32.gmra.mrb[10].mxu1 %vm568_vm1, %v6538_v32 }
 0x614   : > { %5036 = vmatprep.mubr.msk.f32.mxu1 %vm568_vm1, %v6545_v41 }
 0x617   : > { %5037 = vmatmul.mubr.msk.f32.gmra.mrb[12].mxu1 %vm568_vm1, %v6659_v10 }
 0x618   : > { %5047 = vmatprep.mubr.msk.f32.mxu1 %vm568_vm1, %v3486_v29  ;;  %v5538_v29 = vld [vmem:[%s5707_s12 + $0x28] sm:$0xff] }
 0x61b   : > { %5048 = vmatmul.mubr.msk.f32.vlgmr.msra.gmra.mrb[6].mxu1 %vm568_vm1, %v3487_v62 }
 0x61c   : > { %5290 = vmatpush3.bf16.msra.mxu1 %v5287_v38  ;;  %5050 = vmatprep.mubr.msk.f32.mxu1 %vm568_vm1, %v3488_v50 }
 0x61d   : > { %5292 = vmatprep.subr.bf16.mxu1 %v5291_v1 }
 0x61f   : > { %5051 = vmatmul.mubr.msk.f32.gmra.mrb[8].mxu1 %vm568_vm1, %v3489_v11  ;;  %v5540_v11 = vld [vmem:[%s5707_s12 + $0x38] sm:$0xff] }
 0x620   : > { %5053 = vmatprep.mubr.msk.f32.mxu1 %vm568_vm1, %v3490_v6  ;;  %5294 = vmatpush3.bf16.msra.mxu1 %v5291_v1  ;;  %v5541_v6 = vld [vmem:[%s5707_s12 + $0x30] sm:$0xff] }
 0x621   : > { %5296 = vmatprep.subr.bf16.mxu1 %v5295_v19 }
 0x623   : > { %5054 = vmatmul.mubr.msk.f32.gmra.mrb[10].mxu1 %vm568_vm1, %v3491_v25 }
 0x624   : > { %5056 = vmatprep.mubr.msk.f32.mxu1 %vm568_vm1, %v3492_v52 }
 0x627   : > { %5057 = vmatmul.mubr.msk.f32.gmra.mrb[12].mxu1 %vm568_vm1, %v3493_v44 }
 0x628   : > { %5067 = vmatprep.mubr.msk.f32.mxu1 %vm568_vm1, %v3644_v57 }
 0x62b   : > { %5068 = vmatmul.mubr.msk.f32.vlgmr.msra.gmra.mrb[6].mxu1 %vm568_vm1, %v3645_v7 }
 0x62c   : > { %5298 = vmatpush3.bf16.msra.mxu1 %v5295_v19  ;;  %5070 = vmatprep.mubr.msk.f32.mxu1 %vm568_vm1, %v3646_v58 }
 0x62d   : > { %5300 = vmatprep.subr.bf16.mxu1 %v5299_v0 }
 0x62f   : > { %5071 = vmatmul.mubr.msk.f32.gmra.mrb[8].mxu1 %vm568_vm1, %v3647_v43 }
 0x630   : > { %5073 = vmatprep.mubr.msk.f32.mxu1 %vm568_vm1, %v3648_v63  ;;  %5302 = vmatpush3.bf16.msra.mxu1 %v5299_v0 }
 0x631   : > { %5304 = vmatprep.subr.bf16.mxu1 %v5303_v36 }
 0x633   : > { %5074 = vmatmul.mubr.msk.f32.gmra.mrb[10].mxu1 %vm568_vm1, %v3649_v42 }
 0x634   : > { %5076 = vmatprep.mubr.msk.f32.mxu1 %vm568_vm1, %v3650_v35 }
 0x637   : > { %5077 = vmatmul.mubr.msk.f32.gmra.mrb[12].mxu1 %vm568_vm1, %v3651_v8 }
 0x638   : > { %5087 = vmatprep.mubr.msk.f32.mxu1 %vm568_vm1, %v6522_v14  ;;  %v3955_v14 = vmul.f32 %v6034_v5, %v6578_v21  ;;  %v4318_v5 = vld [vmem:[%s6823_s10] ss:$0 sm:$0xff] }
 0x63b   : > { %5088 = vmatmul.mubr.msk.f32.vlgmr.msra.gmra.mrb[6].mxu1 %vm568_vm1, %v6526_v26  ;;  %v3958_v26 = vmul.f32 %v6066_v55, %v3485_v53  ;;  %v5534_v55 = vld [vmem:[%s5707_s12 + $0x8] sm:$0xff] }
 0x63c   : > { %5306 = vmatpush3.bf16.msra.mxu1 %v5303_v36  ;;  %5090 = vmatprep.mubr.msk.f32.mxu1 %vm568_vm1, %v6530_v17  ;;  %v3959_v17 = vmul.f32 %v6078_v22, %v3951_v34 }
 0x63d   : > { %5308 = vmatprep.subr.bf16.mxu1 %v5307_v18 }
 0x63f   : > { %5091 = vmatmul.mubr.msk.f32.gmra.mrb[8].mxu1 %vm568_vm1, %v6534_v27 }
 0x640   : > { %5093 = vmatprep.mubr.msk.f32.mxu1 %vm568_vm1, %v6538_v32  ;;  %5310 = vmatpush3.bf16.msra.mxu1 %v5307_v18 }
 0x643   : > { %5094 = vmatmul.mubr.msk.f32.gmra.mrb[10].mxu1 %vm568_vm1, %v6545_v41  ;;  %v5535_v41 = vld [vmem:[%s5707_s12] sm:$0xff] }
 0x644   : > { %5096 = vmatprep.mubr.msk.f32.mxu1 %vm568_vm1, %v6659_v10 }
 0x647   : > { %5097 = vmatmul.mubr.msk.f32.gmra.mrb[12].mxu1 %vm568_vm1, %v3801_v30 }
 0x648   : > { %5107 = vmatprep.mubr.msk.f32.mxu1 %vm568_vm1, %v3952_v24 }
 0x64b   : > { %5108 = vmatmul.mubr.msk.f32.vlgmr.msra.gmra.mrb[6].mxu1 %vm568_vm1, %v3953_v45 }
 0x64c   : > { %5110 = vmatprep.mubr.msk.f32.mxu1 %vm568_vm1, %v3954_v49 }
 0x64f   : > { %5111 = vmatmul.mubr.msk.f32.gmra.mrb[8].mxu1 %vm568_vm1, %v3955_v14 }
 0x650   : > { %5113 = vmatprep.mubr.msk.f32.mxu1 %vm568_vm1, %v3956_v51 }
 0x653   : > { %5114 = vmatmul.mubr.msk.f32.gmra.mrb[10].mxu1 %vm568_vm1, %v3957_v31 }
 0x654   : > { %5116 = vmatprep.mubr.msk.f32.mxu1 %vm568_vm1, %v3958_v26 }
 0x657   : > { %5117 = vmatmul.mubr.msk.f32.gmra.mrb[12].mxu1 %vm568_vm1, %v3959_v17 }
 0x71e   : > { %v5109_v54 = vpop.f32.mrb[6].mxu1 }
 0x71f   : > { %v5319_v27 = vadd.f32 %v5109_v54, %v4318_v5  ;;  %v4055_v32 = vpop.f32.mrb[7].mxu1 }
 0x720   : > { %v5320_v16 = vadd.f32 %v4318_v5, %v4055_v32 }
 0x721   : > { %v4103_v22 = vadd.f32 %v5534_v55, %v5319_v27 }
 0x722   : > { %v4102_v37 = vadd.f32 %v5535_v41, %v5320_v16  ;;  %v5112_v15 = vpop.f32.mrb[8].mxu1 }
 0x723   : > { %4111 = vst.msk [vmem:[%s6784_s21 + $0x8] sm:$0xff] %vm568_vm1, %v4103_v22  ;;  %v5321_v39 = vadd.f32 %v5112_v15, %v4318_v5  ;;  %v4065_v21 = vpop.f32.mrb[9].mxu1 }
 0x724   : > { %4110 = vst.msk [vmem:[%s6784_s21] sm:$0xff] %vm568_vm1, %v4102_v37  ;;  %v5322_v4 = vadd.f32 %v4318_v5, %v4065_v21 }
 0x725   : > { %v4105_v33 = vadd.f32 %v5536_v9, %v5321_v39 }
 0x726   : > { %v4104_v46 = vadd.f32 %v5537_v56, %v5322_v4  ;;  %v5115_v2 = vpop.f32.mrb[10].mxu1 }
 0x727   : > { %4113 = vst.msk [vmem:[%s6784_s21 + $0x18] sm:$0xff] %vm568_vm1, %v4105_v33  ;;  %v5323_v40 = vadd.f32 %v5115_v2, %v4318_v5  ;;  %v4075_v38 = vpop.f32.mrb[11].mxu1 }
 0x728   : > { %4112 = vst.msk [vmem:[%s6784_s21 + $0x10] sm:$0xff] %vm568_vm1, %v4104_v46  ;;  %v5324_v10 = vadd.f32 %v4318_v5, %v4075_v38 }
 0x729   : > { %v4107_v60 = vadd.f32 %v5538_v29, %v5323_v40 }
 0x72a   : > { %v4106_v62 = vadd.f32 %v5539_v23, %v5324_v10  ;;  %v5118_v1 = vpop.f32.mrb[12].mxu1 }
 0x72b   : > { %4115 = vst.msk [vmem:[%s6784_s21 + $0x28] sm:$0xff] %vm568_vm1, %v4107_v60  ;;  %v5325_v50 = vadd.f32 %v5118_v1, %v4318_v5  ;;  %v4085_v61 = vpop.f32.mrb[13].mxu1 }
 0x72c   : > { %4114 = vst.msk [vmem:[%s6784_s21 + $0x20] sm:$0xff] %vm568_vm1, %v4106_v62  ;;  %v5326_v13 = vadd.f32 %v4318_v5, %v4085_v61 }
 0x72d   : > { %v4109_v19 = vadd.f32 %v5540_v11, %v5325_v50 }
 0x72e   : > { %v4108_v25 = vadd.f32 %v5541_v6, %v5326_v13 }
 0x72f   : > { %4117 = vst.msk [vmem:[%s6784_s21 + $0x38] sm:$0xff] %vm568_vm1, %v4109_v19 }
 0x730   : > { %4116 = vst.msk [vmem:[%s6784_s21 + $0x30] sm:$0xff] %vm568_vm1, %v4108_v25 }
 0x731 PF: > { %s21_s17 = sadd.s32 1, %s5548_s17  }
 0x732   : > { %p18_p4 = scmp.ge.s32.totalorder %s21_s17, 4  }
 0x734   :  { %20 = sbr.rel (!%p18_p4) target bundleno = 1 (0x1), region = 113 }

// kernel: model_forward_pallas.23
= control target key start
LH: loop header
LB: loop body
LE: loop exit
PB: predicated region body
PF: predicated region fallthrough
CT: control target
= control target key end

     0   :  { %s2947_s21 = smov 0   ;;  %s3626_s0 = inlined_call_operand.vmem [shape: f32[2,64,32], index: 0, kind: input, shape index: {}]   ;;  %s3627_s1 = inlined_call_operand.vmem [shape: f32[32,32], index: 1, kind: input, shape index: {}]   ;;  %s3628_s2 = inlined_call_operand.vmem [shape: f32[2,32], index: 2, kind: input, shape index: {}]   ;;  %s3629_s3 = inlined_call_operand.vmem [shape: f32[9,32,18], index: 3, kind: input, shape index: {}]   ;;  %s3630_s4 = inlined_call_operand.vmem [shape: f32[1,18], index: 4, kind: input, shape index: {}]   ;;  %s3631_s5 = inlined_call_operand.vmem [shape: f32[2,1,1], index: 5, kind: input, shape index: {}]   ;;  %s3632_s6 = inlined_call_operand.vmem [shape: f32[2,64,18], index: 6, kind: output, shape index: {}]  }
   0x1 LB: > { %s2239_s22 = sadd.s32 4294967295, %s2906_s21   ;;  %p2243_p0 = scmp.ge.s32.totalorder %s2906_s21, 1  ;;  %s2906_s21 = sphi %s2947_s21, %s16_s21  }
   0x2   : > { %p220_p1 = scmp.lt.s32.totalorder %s2906_s21, 3 }
   0x4   : > { %p221_p2 = pnand %p2243_p0, %p220_p1 }
   0x5   : > { %v427_v0 = vld [vmem:[%s3627_s1] sm:$0xff] (!%p221_p2)  ;;  %v428_v1 = vld [vmem:[%s3627_s1 + $0x8] sm:$0xff] (!%p221_p2)  ;;  %v429_v2 = vld [vmem:[%s3627_s1 + $0x10] sm:$0xff] (!%p221_p2)  ;;  %v2908_v3 = vmov (!%p221_p2), 0.0|0.0   ;;  %vm2909_vm0 = vmmov (!%p221_p2), 0   ;;  %v2910_v6 = vmov (!%p221_p2), 0.0   ;;  %v266_v37 = vlaneseq (!%p221_p2) }
   0x6   : > { %224 = sbr.rel (%p221_p2) target bundleno = 856 (0x358), region = 44  ;;  %2697 = vmatprep.subr.bf16.mxu1 (!%p221_p2), %v2908_v3  ;;  %v2698_v4 = vpack.c.bf16 (!%p221_p2), %v428_v1, %v427_v0  ;;  %v430_v5 = vld [vmem:[%s3627_s1 + $0x18] sm:$0xff] (!%p221_p2)  ;;  %2503 = vmatprep.mubr.msk.f32.mxu1 (!%p221_p2), %vm2909_vm0, %v2910_v6  ;;  %p2971_p3 = scmp.lt.s32.totalorder (!%p221_p2), %s2239_s22, 1  ;;  %vm433_vm1 = vcmask (!%p221_p2), 261120  }
   0x7   : > { %725 = vst.msk [vmem:[#allocation2] sm:$0xff] (!%p221_p2), %vm433_vm1, %v2910_v6  ;;  %726 = vst.msk [vmem:[#allocation2 + $0x8] sm:$0xff] (!%p221_p2), %vm433_vm1, %v2910_v6  ;;  %v2701_v7 = vpack.c.bf16 (!%p221_p2), %v430_v5, %v429_v2  ;;  %v3022_v38 = vshrl.u32 (!%p221_p2), %v266_v37, 7  ;;  %v2277_v37 = vld [vmem:[%s3629_s3 + $0x28] sm:$0xff] (!%p221_p2) }
   0x8   : > { %727 = vst.msk [vmem:[#allocation2 + $0x10] sm:$0xff] (!%p221_p2), %vm433_vm1, %v2910_v6  ;;  %728 = vst.msk [vmem:[#allocation2 + $0x18] sm:$0xff] (!%p221_p2), %vm433_vm1, %v2910_v6  ;;  %2699 = vmatpush3.bf16.msra.mxu1 (!%p221_p2), %v2698_v4 }
   0x9   : > { %729 = vst.msk [vmem:[#allocation2 + $0x20] sm:$0xff] (!%p221_p2), %vm433_vm1, %v2910_v6  ;;  %730 = vst.msk [vmem:[#allocation2 + $0x28] sm:$0xff] (!%p221_p2), %vm433_vm1, %v2910_v6  ;;  %2700 = vmatprep.subr.bf16.mxu1 (!%p221_p2), %v2908_v3  ;;  %v530_v39 = vsub.s32 (!%p221_p2), 0, %v3022_v38 }
   0xa   : > { %731 = vst.msk [vmem:[#allocation2 + $0x30] sm:$0xff] (!%p221_p2), %vm433_vm1, %v2910_v6  ;;  %732 = vst.msk [vmem:[#allocation2 + $0x38] sm:$0xff] (!%p221_p2), %vm433_vm1, %v2910_v6 }
   0xb   : > { %733 = vst.msk [vmem:[#allocation2 + $0x40] sm:$0xff] (!%p221_p2), %vm433_vm1, %v2910_v6  ;;  %734 = vst.msk [vmem:[#allocation2 + $0x48] sm:$0xff] (!%p221_p2), %vm433_vm1, %v2910_v6 }
   0xc   : > { %735 = vst.msk [vmem:[#allocation2 + $0x50] sm:$0xff] (!%p221_p2), %vm433_vm1, %v2910_v6  ;;  %736 = vst.msk [vmem:[#allocation2 + $0x58] sm:$0xff] (!%p221_p2), %vm433_vm1, %v2910_v6  ;;  %2702 = vmatpush3.bf16.msra.mxu1 (!%p221_p2), %v2701_v7 }
   0xd   : > { %s3641_s22 = smov (!%p2971_p3, %s2239_s22), 1  ;;  %2703 = vmatprep.subr.bf16.mxu1 %v2908_v3 }
   0xe   : > { %s2375_s8 = sshll.u32 %s3641_s22, 6  ;;  %s260_s17 = scalar_lea.vmem %s3631_s5, %s3641_s22 }
   0xf   : > { %s257_s11 = scalar_lea.vmem %s3626_s0, %s2375_s8 }
  0x10   : > { %v419_v8 = vld [vmem:[%s257_s11] sm:$0xff]  ;;  %v420_v9 = vld [vmem:[%s257_s11 + $0x8] sm:$0xff]  ;;  %v421_v10 = vld [vmem:[%s257_s11 + $0x10] sm:$0xff] }
  0x11   : > { %v422_v11 = vld [vmem:[%s257_s11 + $0x18] sm:$0xff]  ;;  %v434_v12 = vsel %vm433_vm1, %v419_v8, 0.0  ;;  %v435_v13 = vsel %vm433_vm1, %v420_v9, 0.0  ;;  %v437_v14 = vsel %vm433_vm1, %v421_v10, 0.0  ;;  %v423_v15 = vld [vmem:[%s257_s11 + $0x20] sm:$0xff]  ;;  %v424_v18 = vld [vmem:[%s257_s11 + $0x28] sm:$0xff] }
  0x12   : > { %v436_v16 = vadd.f32 %v435_v13, %v434_v12  ;;  %v439_v17 = vsel %vm433_vm1, %v422_v11, 0.0  ;;  %v441_v20 = vsel %vm433_vm1, %v423_v15, 0.0  ;;  %v425_v21 = vld [vmem:[%s257_s11 + $0x30] sm:$0xff]  ;;  %v443_v23 = vsel %vm433_vm1, %v424_v18, 0.0  ;;  %v426_v24 = vld [vmem:[%s257_s11 + $0x38] sm:$0xff]  ;;  %s3605_s11 = scalar_lea.vmem %s3632_s6, %s2375_s8 }
  0x13   : > { %v445_v26 = vsel %vm433_vm1, %v425_v21, 0.0  ;;  %v447_v28 = vsel %vm433_vm1, %v426_v24, 0.0 }
  0x14   : > { %v438_v19 = vadd.f32 %v437_v14, %v436_v16 }
  0x16   : > { %v440_v22 = vadd.f32 %v439_v17, %v438_v19  ;;  %v2312_v17 = vld [vmem:[%s3629_s3 + $0x80] sm:$0xff] }
  0x17   : > { %v767_v19 = vld [vmem:[%s3629_s3] sm:$0xff] }
  0x18   : > { %v442_v25 = vadd.f32 %v441_v20, %v440_v22  ;;  %v2314_v22 = vld [vmem:[%s3629_s3 + $0x90] sm:$0xff] }
  0x1a   : > { %v444_v27 = vadd.f32 %v443_v23, %v442_v25  ;;  %v2315_v23 = vld [vmem:[%s3629_s3 + $0x98] sm:$0xff] }
  0x1b   : > { %v2745_v25 = vpack.c.bf16 %v2315_v23, %v2314_v22 }
  0x1c   : > { %v446_v29 = vadd.f32 %v445_v26, %v444_v27  ;;  %v769_v26 = vld [vmem:[%s3629_s3 + $0x10] sm:$0xff]  ;;  %v770_v27 = vld [vmem:[%s3629_s3 + $0x18] sm:$0xff] }
  0x1e   : > { %v448_v30 = vadd.f32 %v447_v28, %v446_v29  ;;  %v2713_v28 = vpack.c.bf16 %v770_v27, %v769_v26  ;;  %v279_v29 = vand.u32 7, %v3022_v38 }
  0x20   : > { %v449_v31 = vrot.slane %v448_v30, 4  ;;  %vm371_vm2 = vcmp.ge.s32.totalorder %v279_v29, 1  ;;  %vm395_vm10 = vcmp.le.s32.totalorder %v279_v29, 6 }
  0x22   : > { %v450_v32 = vadd.f32 %v449_v31, %v448_v30  ;;  %v3096_v30 = vsel %vm371_vm2, 1.0, %v2910_v6  ;;  %v751_v31 = vld [vmem:[#allocation2 + $0x7] sm:$0xff] }
  0x24   : > { %v451_v33 = vrot.slane %v450_v32, 2 }
  0x26   : > { %v452_v34 = vadd.f32 %v451_v33, %v450_v32  ;;  %v2324_v32 = vld [vmem:[%s3629_s3 + $0xa0] sm:$0xff]  ;;  %v2325_v33 = vld [vmem:[%s3629_s3 + $0xa8] sm:$0xff] }
  0x28   : > { %v453_v35 = vrot.slane %v452_v34, 1 }
  0x2a   : > { %v454_v36 = vadd.f32 %v453_v35, %v452_v34  ;;  %v759_v34 = vmul.f32 %v3096_v30, %v751_v31  ;;  %v3105_v35 = vpack.c.bf16 %v2325_v33, %v2324_v32 }
  0x2c   : > { %2504 = vmatmul.mubr.msk.f32.vlgmr.msra.gmra.mrb[0].mxu1 %vm433_vm1, %v454_v36  ;;  %v2276_v36 = vld [vmem:[%s3629_s3 + $0x20] sm:$0xff] }
  0x2d   : > { %2705 = vmatpush3.bf16.msra.mxu1 %v2698_v4  ;;  %2514 = vmatprep.mubr.msk.f32.mxu1 %vm2909_vm0, %v2910_v6 }
  0x2e   : > { %2706 = vmatprep.subr.bf16.mxu1 %v2908_v3 }
  0x31   : > { %2708 = vmatpush3.bf16.msra.mxu1 %v2701_v7 }
  0xff   : > { %v524_v40 = vpop.f32.mrb[0].mxu1 }
 0x100   : > { %v531_v41 = vrot.slane %v524_v40, %v530_v39  ;;  %v2505_v42 = vpop.f32.mrb[1].mxu1  ;;  %v3115_v40 = vpack.c.bf16 %v2277_v37, %v2276_v36 }
 0x102   : > { %v3027_v43 = vsub.f32 %v419_v8, %v531_v41  ;;  %v3029_v44 = vsub.f32 %v420_v9, %v531_v41  ;;  %v3031_v45 = vsub.f32 %v421_v10, %v531_v41  ;;  %v3033_v46 = vsub.f32 %v422_v11, %v531_v41 }
 0x103   : > { %v3035_v47 = vsub.f32 %v423_v15, %v531_v41  ;;  %v3043_v51 = vsub.f32 %v424_v18, %v531_v41  ;;  %v3049_v56 = vsub.f32 %v425_v21, %v531_v41  ;;  %v3054_v60 = vsub.f32 %v426_v24, %v531_v41  ;;  %v2313_v18 = vld [vmem:[%s3629_s3 + $0x88] sm:$0xff] }
 0x104   : > { %v540_v48 = vmul.f32 %v3027_v43, %v3027_v43  ;;  %v541_v49 = vmul.f32 %v3029_v44, %v3029_v44  ;;  %v542_v50 = vmul.f32 %v3031_v45, %v3031_v45  ;;  %v543_v52 = vmul.f32 %v3033_v46, %v3033_v46  ;;  %v768_v21 = vld [vmem:[%s3629_s3 + $0x8] sm:$0xff] }
 0x105   : > { %v544_v57 = vmul.f32 %v3035_v47, %v3035_v47  ;;  %v545_v61 = vmul.f32 %v3043_v51, %v3043_v51  ;;  %v546_v0 = vmul.f32 %v3049_v56, %v3049_v56  ;;  %v547_v3 = vmul.f32 %v3054_v60, %v3054_v60 }
 0x106   : > { %v548_v53 = vsel %vm433_vm1, %v540_v48, 0.0  ;;  %v549_v54 = vsel %vm433_vm1, %v541_v49, 0.0  ;;  %v551_v58 = vsel %vm433_vm1, %v542_v50, 0.0  ;;  %v553_v62 = vsel %vm433_vm1, %v543_v52, 0.0  ;;  %v431_v49 = vld [vmem:[%s3628_s2] sm:$0x1] }
 0x107   : > { %v550_v55 = vadd.f32 %v549_v54, %v548_v53  ;;  %v555_v1 = vsel %vm433_vm1, %v544_v57, 0.0  ;;  %v557_v4 = vsel %vm433_vm1, %v545_v61, 0.0  ;;  %v559_v7 = vsel %vm433_vm1, %v546_v0, 0.0  ;;  %v2372_v52 = vld [vmem:[%s260_s17] ss:$0 sm:$0xff] }
 0x108   : > { %v561_v9 = vsel %vm433_vm1, %v547_v3, 0.0  ;;  %v2741_v20 = vpack.c.bf16 %v2313_v18, %v2312_v17  ;;  %v2709_v24 = vpack.c.bf16 %v768_v21, %v767_v19  ;;  %v2911_v50 = vmov 0   ;;  %v2266_v57 = vld [vmem:[%s3628_s2 + $0x1] ss:$0 sm:$0xff] }
 0x109   : > { %v552_v59 = vadd.f32 %v551_v58, %v550_v55  ;;  %2865 = vset.pattern.permute.xlu0 %v2911_v50 }
 0x10a   : > { %2742 = vmatprep.subr.bf16.mxu0 %v2741_v20  ;;  %2710 = vmatprep.subr.bf16.mxu1 %v2709_v24 }
 0x10b   : > { %v554_v63 = vadd.f32 %v553_v62, %v552_v59  ;;  %2744 = vmatpush3.bf16.msra.mxu0 %v2741_v20  ;;  %2155 = vperm.xlu0 %2865, %v2372_v52  }
 0x10c   : > { %2746 = vmatprep.subr.bf16.mxu0 %v2745_v25 }
 0x10d   : > { %v556_v2 = vadd.f32 %v555_v1, %v554_v63 }
 0x10f   : > { %v558_v5 = vadd.f32 %v557_v4, %v556_v2  ;;  %2748 = vmatpush3.bf16.msra.mxu0 %v2745_v25 }
 0x110   : > { %2750 = vmatprep.subr.bf16.mxu0 %v3105_v35 }
 0x111   : > { %v560_v8 = vadd.f32 %v559_v7, %v558_v5 }
 0x113   : > { %v562_v10 = vadd.f32 %v561_v9, %v560_v8 }
 0x115   : > { %v563_v11 = vrot.slane %v562_v10, 4 }
 0x117   : > { %v564_v12 = vadd.f32 %v563_v11, %v562_v10 }
 0x119   : > { %v565_v13 = vrot.slane %v564_v12, 2 }
 0x11b   : > { %v566_v14 = vadd.f32 %v565_v13, %v564_v12 }
 0x11d   : > { %v567_v15 = vrot.slane %v566_v14, 1 }
 0x11f   : > { %v568_v16 = vadd.f32 %v567_v15, %v566_v14 }
 0x121   : > { %2515 = vmatmul.mubr.msk.f32.vlgmr.msra.gmra.mrb[2].mxu1 %vm433_vm1, %v568_v16 }
 0x122   : > { %2712 = vmatpush3.bf16.msra.mxu1 %v2709_v24  ;;  %2525 = vmatprep.mubr.msk.f32.mxu1 %vm433_vm1, %v759_v34 }
 0x123   : > { %2714 = vmatprep.subr.bf16.mxu1 %v2713_v28 }
 0x126   : > { %2716 = vmatpush3.bf16.msra.mxu1 %v2713_v28 }
 0x127   : > { %2718 = vmatprep.subr.bf16.mxu1 %v3115_v40 }
 0x1f4   : > { %v638_v41 = vpop.f32.mrb[2].mxu1 }
 0x1f5   : > { %v639_v42 = vadd.f32 1e-06, %v638_v41  ;;  %v2516_v48 = vpop.f32.mrb[3].mxu1  ;;  %v3157_v41 = vadd.s32 8, %v3022_v38 }
 0x1f7   : > { %2866 = vrsqrt.f32 %v639_v42  ;;  %v3160_v42 = vadd.s32 16, %v3022_v38 }
 0x201   : > { %v2867_v53 = vpop.eup %2866 }
 0x202   : > { %v643_v54 = vmul.f32 %v2867_v53, %v431_v49 }
 0x204   : > { %v647_v55 = vrot.slane %v643_v54, %v530_v39  ;;  %v286_v54 = vand.u32 7, %v3157_v41 }
 0x206   : > { %v650_v58 = vmul.f32 %v647_v55, %v3031_v45  ;;  %v648_v59 = vmul.f32 %v647_v55, %v3027_v43  ;;  %v649_v61 = vmul.f32 %v647_v55, %v3029_v44  ;;  %v651_v62 = vmul.f32 %v647_v55, %v3033_v46 }
 0x207   : > { %v652_v63 = vmul.f32 %v647_v55, %v3035_v47  ;;  %v653_v0 = vmul.f32 %v647_v55, %v3043_v51  ;;  %v654_v1 = vmul.f32 %v647_v55, %v3049_v56  ;;  %v655_v39 = vmul.f32 %v647_v55, %v3054_v60 }
 0x208   : > { %v662_v2 = vadd.f32 %v2266_v57, %v650_v58  ;;  %v660_v3 = vadd.f32 %v2266_v57, %v648_v59  ;;  %v3138_v4 = vadd.f32 %v2266_v57, %v649_v61  ;;  %v3140_v5 = vadd.f32 %v2266_v57, %v651_v62 }
 0x209   : > { %v3142_v45 = vadd.f32 %v2266_v57, %v652_v63  ;;  %v3144_v43 = vadd.f32 %v2266_v57, %v653_v0  ;;  %v3146_v44 = vadd.f32 %v2266_v57, %v654_v1  ;;  %v3148_v46 = vadd.f32 %v2266_v57, %v655_v39 }
 0x20a   : > { %v670_v47 = vsub.f32 0.0, %v662_v2  ;;  %v668_v51 = vsub.f32 0.0, %v660_v3  ;;  %v669_v56 = vsub.f32 0.0, %v3138_v4  ;;  %v671_v60 = vsub.f32 0.0, %v3140_v5 }
 0x20b   : > { %v672_v7 = vsub.f32 0.0, %v3142_v45  ;;  %v673_v8 = vsub.f32 0.0, %v3144_v43  ;;  %v674_v9 = vsub.f32 0.0, %v3146_v44  ;;  %v675_v14 = vsub.f32 0.0, %v3148_v46 }
 0x20c   : > { %v680_v10 = vmul.f32 1.442695, %v670_v47  ;;  %v676_v11 = vmul.f32 1.442695, %v668_v51  ;;  %v678_v12 = vmul.f32 1.442695, %v669_v56 }
 0x20d   : > { %v682_v13 = vmul.f32 1.442695, %v671_v60  ;;  %v684_v15 = vmul.f32 1.442695, %v672_v7  ;;  %v686_v16 = vmul.f32 1.442695, %v673_v8 }
 0x20e   : > { %2868 = vpow2.f32 %v680_v10  ;;  %v688_v17 = vmul.f32 1.442695, %v674_v9  ;;  %v690_v18 = vmul.f32 1.442695, %v675_v14  ;;  %v3164_v55 = vadd.s32 24, %v3022_v38  ;;  %v2326_v60 = vld [vmem:[%s3629_s3 + $0xb0] sm:$0xff] }
 0x20f   : > { %2870 = vpow2.f32 %v676_v11  ;;  %v293_v59 = vand.u32 7, %v3160_v42  ;;  %v3170_v61 = vadd.s32 32, %v3022_v38  ;;  %vm372_vm3 = vcmp.ge.s32.totalorder %v286_v54, 1  ;;  %v2327_v7 = vld [vmem:[%s3629_s3 + $0xb8] sm:$0xff]  ;;  %v2278_v10 = vld [vmem:[%s3629_s3 + $0x30] sm:$0xff] }
 0x210   : > { %2872 = vpow2.f32 %v678_v12  ;;  %v3190_v51 = vadd.s32 48, %v3022_v38  ;;  %v3195_v56 = vsel %vm372_vm3, 1.0, %v2910_v6  ;;  %v3216_v9 = vadd.s32 56, %v3022_v38  ;;  %v2279_v11 = vld [vmem:[%s3629_s3 + $0x38] sm:$0xff]  ;;  %v2338_v42 = vld [vmem:[%s3629_s3 + $0xd0] sm:$0xff] }
 0x211   : > { %2874 = vpow2.f32 %v682_v13  ;;  %vm373_vm4 = vcmp.ge.s32.totalorder %v293_v59, 1  ;;  %vm3322_vm11 = vcmp.le.s32.totalorder %v286_v54, 6  ;;  %vm397_vm12 = vcmp.le.s32.totalorder %v293_v59, 6  ;;  %v2339_v59 = vld [vmem:[%s3629_s3 + $0xd8] sm:$0xff] }
 0x212   : > { %2876 = vpow2.f32 %v684_v15  ;;  %v321_v15 = vand.u32 7, %v3190_v51 }
 0x213   : > { %2878 = vpow2.f32 %v686_v16 }
 0x214   : > { %2880 = vpow2.f32 %v688_v17  ;;  %vm377_vm8 = vcmp.ge.s32.totalorder %v321_v15, 1  ;;  %vm401_vm0 = vcmp.le.s32.totalorder %v321_v15, 6 }
 0x215   : > { %2882 = vpow2.f32 %v690_v18 }
 0x218   : > { %v2869_v19 = vpop.eup %2868 }
 0x219   : > { %v2871_v20 = vpop.eup %2870  ;;  %v694_v21 = vadd.f32 1.0, %v2869_v19  ;;  %v2753_v19 = vpack.c.bf16 %v2327_v7, %v2326_v60  ;;  %v3375_v60 = vsel %vm397_vm12, 1.0, %v2910_v6 }
 0x21a   : > { %v2873_v22 = vpop.eup %2872  ;;  %v692_v23 = vadd.f32 1.0, %v2871_v20  ;;  %v2336_v20 = vld [vmem:[%s3629_s3 + $0xc0] sm:$0xff] }
 0x21b   : > { %v2875_v24 = vpop.eup %2874  ;;  %2884 = vrcp.f32 %v694_v21  ;;  %v693_v25 = vadd.f32 1.0, %v2873_v22 }
 0x21c   : > { %v2877_v26 = vpop.eup %2876  ;;  %2886 = vrcp.f32 %v692_v23  ;;  %v695_v27 = vadd.f32 1.0, %v2875_v24  ;;  %v2721_v24 = vpack.c.bf16 %v2279_v11, %v2278_v10 }
 0x21d   : > { %v2879_v28 = vpop.eup %2878  ;;  %2888 = vrcp.f32 %v693_v25  ;;  %v696_v31 = vadd.f32 1.0, %v2877_v26  ;;  %v2337_v25 = vld [vmem:[%s3629_s3 + $0xc8] sm:$0xff]  ;;  %v2288_v26 = vld [vmem:[%s3629_s3 + $0x40] sm:$0xff] }
 0x21e   : > { %v2881_v32 = vpop.eup %2880  ;;  %2890 = vrcp.f32 %v695_v27  ;;  %v697_v33 = vadd.f32 1.0, %v2879_v28 }
 0x21f   : > { %v2883_v34 = vpop.eup %2882  ;;  %2892 = vrcp.f32 %v696_v31  ;;  %v698_v36 = vadd.f32 1.0, %v2881_v32  ;;  %v328_v32 = vand.u32 7, %v3216_v9 }
 0x220   : > { %2894 = vrcp.f32 %v697_v33  ;;  %v699_v37 = vadd.f32 1.0, %v2883_v34 }
 0x221   : > { %2896 = vrcp.f32 %v698_v36  ;;  %v2757_v36 = vpack.c.bf16 %v2337_v25, %v2336_v20  ;;  %vm378_vm9 = vcmp.ge.s32.totalorder %v328_v32, 1  ;;  %v2348_v20 = vld [vmem:[%s3629_s3 + $0xe0] sm:$0xff]  ;;  %vm402_vm2 = vcmp.le.s32.totalorder %v328_v32, 6 }
 0x222   : > { %2898 = vrcp.f32 %v699_v37  ;;  %v3452_v9 = vsel %vm402_vm2, 1.0, %v2910_v6 }
 0x225   : > { %v2885_v48 = vpop.eup %2884 }
 0x226   : > { %v2887_v49 = vpop.eup %2886  ;;  %v718_v50 = vmul.f32 %v2885_v48, %v662_v2  ;;  %v300_v2 = vand.u32 7, %v3164_v55  ;;  %v2290_v55 = vld [vmem:[%s3629_s3 + $0x50] sm:$0xff] }
 0x227   : > { %v2889_v52 = vpop.eup %2888  ;;  %v716_v53 = vmul.f32 %v2887_v49, %v660_v3 }
 0x228   : > { %v2891_v57 = vpop.eup %2890  ;;  %739 = vst.msk [vmem:[#allocation2 + $0x20] sm:$0xff] %vm433_vm1, %v718_v50  ;;  %v717_v58 = vmul.f32 %v2889_v52, %v3138_v4  ;;  %v3182_v4 = vadd.s32 40, %v3022_v38  ;;  %vm3209_vm5 = vcmp.ge.s32.totalorder %v300_v2, 1  ;;  %vm398_vm13 = vcmp.le.s32.totalorder %v300_v2, 6  ;;  %v2291_v2 = vld [vmem:[%s3629_s3 + $0x58] sm:$0xff] }
 0x229   : > { %v2893_v62 = vpop.eup %2892  ;;  %737 = vst.msk [vmem:[#allocation2 + $0x10] sm:$0xff] %vm433_vm1, %v716_v53  ;;  %v719_v63 = vmul.f32 %v2891_v57, %v3140_v5  ;;  %v307_v5 = vand.u32 7, %v3170_v61  ;;  %v3255_v23 = vsel %vm3209_vm5, 1.0, %v2910_v6  ;;  %v3391_v10 = vsel %vm398_vm13, 1.0, %v2910_v6 }
 0x22a   : > { %v2895_v0 = vpop.eup %2894  ;;  %738 = vst.msk [vmem:[#allocation2 + $0x18] sm:$0xff] %vm433_vm1, %v717_v58  ;;  %v720_v1 = vmul.f32 %v2893_v62, %v3142_v45  ;;  %v314_v8 = vand.u32 7, %v3182_v4  ;;  %v2761_v61 = vpack.c.bf16 %v2339_v59, %v2338_v42  ;;  %v2300_v4 = vld [vmem:[%s3629_s3 + $0x60] sm:$0xff] }
 0x22b   : > { %v2897_v39 = vpop.eup %2896  ;;  %740 = vst.msk [vmem:[#allocation2 + $0x28] sm:$0xff] %vm433_vm1, %v719_v63  ;;  %v721_v3 = vmul.f32 %v2895_v0, %v3144_v43  ;;  %vm3230_vm6 = vcmp.ge.s32.totalorder %v307_v5, 1  ;;  %v3333_v63 = vsel %vm378_vm9, 1.0, %v2910_v6  ;;  %vm399_vm14 = vcmp.le.s32.totalorder %v307_v5, 6 }
 0x22c   : > { %v2899_v47 = vpop.eup %2898  ;;  %741 = vst.msk [vmem:[#allocation2 + $0x30] sm:$0xff] %vm433_vm1, %v720_v1  ;;  %v722_v45 = vmul.f32 %v2897_v39, %v3146_v44  ;;  %v3205_v44 = vsel %vm373_vm4, 1.0, %v2910_v6  ;;  %v3270_v28 = vsel %vm3230_vm6, 1.0, %v2910_v6  ;;  %vm376_vm7 = vcmp.ge.s32.totalorder %v314_v8, 1 }
 0x22d   : > { %742 = vst.msk [vmem:[#allocation2 + $0x38] sm:$0xff] %vm433_vm1, %v721_v3  ;;  %v723_v43 = vmul.f32 %v2899_v47, %v3148_v46  ;;  %v3297_v49 = vsel %vm376_vm7, 1.0, %v2910_v6  ;;  %v3338_v1 = vsel %vm395_vm10, 1.0, %v2910_v6  ;;  %v908_v47 = vld [vmem:[#allocation2 + $0x8] sm:$0xff]  ;;  %v3399_v14 = vsel %vm399_vm14, 1.0, %v2910_v6 }
 0x22e   : > { %743 = vst.msk [vmem:[#allocation2 + $0x40] sm:$0xff] %vm433_vm1, %v722_v45  ;;  %v3358_v45 = vsel %vm3322_vm11, 1.0, %v2910_v6  ;;  %vm400_vm15 = vcmp.le.s32.totalorder %v314_v8, 6  ;;  %v2301_v8 = vld [vmem:[%s3629_s3 + $0x68] sm:$0xff] }
 0x22f   : > { %744 = vst.msk [vmem:[#allocation2 + $0x48] sm:$0xff] %vm433_vm1, %v723_v43  ;;  %v3265_v27 = vld [vmem:[#allocation2 + $0x20] sm:$0xff] }
 0x230   : > { %v3224_v12 = vld [vmem:[#allocation2 + $0x10] sm:$0xff] }
 0x231   : > { %v3226_v13 = vld [vmem:[#allocation2 + $0xf] sm:$0xff]  ;;  %2605 = vmatprep.mubr.msk.f32.mxu0 %vm433_vm1, %v3224_v12  ;;  %v3237_v16 = vld [vmem:[#allocation2 + $0x18] sm:$0xff] }
 0x232   : > { %v760_v17 = vmul.f32 %v3195_v56, %v3226_v13  ;;  %v3241_v18 = vld [vmem:[#allocation2 + $0x17] sm:$0xff]  ;;  %2606 = vmatmul.mubr.msk.f32.vlgmr.msra.gmra.mrb[0].mxu0 %vm433_vm1, %v3237_v16  ;;  %v3248_v21 = vld [vmem:[#allocation2 + $0x1f] sm:$0xff]  ;;  %v3272_v31 = vld [vmem:[#allocation2 + $0x27] sm:$0xff] }
 0x233   : > { %v761_v22 = vmul.f32 %v3205_v44, %v3241_v18  ;;  %2752 = vmatpush3.bf16.msra.mxu0 %v3105_v35  ;;  %v2289_v35 = vld [vmem:[%s3629_s3 + $0x48] sm:$0xff]  ;;  %2608 = vmatprep.mubr.msk.f32.mxu0 %vm433_vm1, %v3265_v27  ;;  %v762_v34 = vmul.f32 %v3255_v23, %v3248_v21  ;;  %v3292_v37 = vld [vmem:[#allocation2 + $0x30] sm:$0xff]  ;;  %v763_v48 = vmul.f32 %v3270_v28, %v3272_v31  ;;  %v3360_v43 = vld [vmem:[#allocation2 + $0x19] sm:$0xff] }
 0x234   : > { %2526 = vmatmul.mubr.msk.f32.vlgmr.msra.gmra.mrb[4].mxu1 %vm433_vm1, %v760_v17  ;;  %v3285_v33 = vld [vmem:[#allocation2 + $0x28] sm:$0xff]  ;;  %2754 = vmatprep.subr.bf16.mxu0 %v2753_v19  ;;  %v3301_v52 = vpack.c.bf16 %v2289_v35, %v2288_v26  ;;  %v3309_v53 = vld [vmem:[#allocation2 + $0x37] sm:$0xff]  ;;  %v1533_v46 = vmul.f32 %v3358_v45, %v3360_v43  ;;  %v3436_v26 = vsel %vm401_vm0, 1.0, %v2910_v6  ;;  %v1691_v42 = vmul.f32 %v3195_v56, %v3248_v21 }
 0x235   : > { %2528 = vmatprep.mubr.msk.f32.mxu1 %vm433_vm1, %v761_v22  ;;  %2720 = vmatpush3.bf16.msra.mxu1 %v3115_v40  ;;  %v3299_v50 = vld [vmem:[#allocation2 + $0x2f] sm:$0xff]  ;;  %v3307_v40 = vsel %vm377_vm8, 1.0, %v2910_v6  ;;  %v3316_v57 = vld [vmem:[#allocation2 + $0x38] sm:$0xff]  ;;  %v3328_v38 = vld [vmem:[#allocation2 + $0x40] sm:$0xff] }
 0x236   : > { %2609 = vmatmul.mubr.msk.f32.gmra.mrb[2].mxu0 %vm433_vm1, %v3285_v33  ;;  %2722 = vmatprep.subr.bf16.mxu1 %v2721_v24  ;;  %v764_v58 = vmul.f32 %v3297_v49, %v3299_v50  ;;  %v765_v29 = vmul.f32 %v3307_v40, %v3309_v53  ;;  %v3335_v0 = vld [vmem:[#allocation2 + $0x3f] sm:$0xff]  ;;  %v3340_v41 = vld [vmem:[#allocation2 + $0x11] sm:$0xff]  ;;  %v3349_v54 = vld [vmem:[#allocation2 + $0x48] sm:$0xff] }
 0x237   : > { %2611 = vmatprep.mubr.msk.f32.mxu0 %vm433_vm1, %v3292_v37  ;;  %2756 = vmatpush3.bf16.msra.mxu0 %v2753_v19  ;;  %v766_v39 = vmul.f32 %v3333_v63, %v3335_v0  ;;  %v1532_v3 = vmul.f32 %v3338_v1, %v3340_v41  ;;  %v3377_v7 = vld [vmem:[#allocation2 + $0x21] sm:$0xff]  ;;  %v3393_v11 = vld [vmem:[#allocation2 + $0x29] sm:$0xff]  ;;  %v3401_v17 = vld [vmem:[#allocation2 + $0x31] sm:$0xff]  ;;  %v2729_v19 = vpack.c.bf16 %v2291_v2, %v2290_v55 }
 0x238   : > { %2529 = vmatmul.mubr.msk.f32.gmra.mrb[6].mxu1 %vm433_vm1, %v762_v34  ;;  %2758 = vmatprep.subr.bf16.mxu0 %v2757_v36  ;;  %v1534_v5 = vmul.f32 %v3375_v60, %v3377_v7  ;;  %v2349_v22 = vld [vmem:[%s3629_s3 + $0xe8] sm:$0xff]  ;;  %v1536_v51 = vmul.f32 %v3399_v14, %v3401_v17  ;;  %v3431_v15 = vld [vmem:[#allocation2 + $0x39] sm:$0xff]  ;;  %v2733_v34 = vpack.c.bf16 %v2301_v8, %v2300_v4 }
 0x239   : > { %2531 = vmatprep.mubr.msk.f32.mxu1 %vm433_vm1, %v763_v48  ;;  %2724 = vmatpush3.bf16.msra.mxu1 %v2721_v24  ;;  %v1535_v24 = vmul.f32 %v3391_v10, %v3393_v11  ;;  %v2765_v25 = vpack.c.bf16 %v2349_v22, %v2348_v20  ;;  %v3438_v35 = vld [vmem:[#allocation2 + $0x41] sm:$0xff]  ;;  %v3454_v32 = vld [vmem:[#allocation2 + $0x49] sm:$0xff]  ;;  %v1067_v59 = vmul.f32 %v3358_v45, %v3340_v41 }
 0x23a   : > { %2612 = vmatmul.mubr.msk.f32.gmra.mrb[4].mxu0 %vm433_vm1, %v3316_v57  ;;  %2726 = vmatprep.subr.bf16.mxu1 %v3301_v52  ;;  %v1538_v48 = vmul.f32 %v3436_v26, %v3438_v35  ;;  %v1692_v2 = vmul.f32 %v3205_v44, %v3272_v31  ;;  %v1693_v41 = vmul.f32 %v3255_v23, %v3299_v50 }
 0x23b   : > { %2614 = vmatprep.mubr.msk.f32.mxu0 %vm433_vm1, %v3328_v38  ;;  %v1069_v20 = vmul.f32 %v3391_v10, %v3377_v7  ;;  %v1694_v22 = vmul.f32 %v3270_v28, %v3309_v53  ;;  %v1070_v8 = vmul.f32 %v3399_v14, %v3393_v11 }
 0x23c   : > { %2532 = vmatmul.mubr.msk.f32.gmra.mrb[8].mxu1 %vm433_vm1, %v764_v58  ;;  %v1690_v58 = vmul.f32 %v3096_v30, %v3241_v18 }
 0x23d   : > { %2534 = vmatprep.mubr.msk.f32.mxu1 %vm433_vm1, %v765_v29  ;;  %v2350_v29 = vld [vmem:[%s3629_s3 + $0xf0] sm:$0xff] }
 0x23e   : > { %2615 = vmatmul.mubr.msk.f32.gmra.mrb[6].mxu0 %vm433_vm1, %v3349_v54 }
 0x23f   : > { %2625 = vmatprep.mubr.msk.f32.mxu0 %vm433_vm1, %v1532_v3  ;;  %v2302_v3 = vld [vmem:[%s3629_s3 + $0x70] sm:$0xff] }
 0x240   : > { %2535 = vmatmul.mubr.msk.f32.gmra.mrb[10].mxu1 %vm433_vm1, %v766_v39  ;;  %v2351_v39 = vld [vmem:[%s3629_s3 + $0xf8] sm:$0xff] }
 0x241   : > { %2545 = vmatprep.mubr.msk.f32.mxu1 %vm433_vm1, %v908_v47  ;;  %v2303_v47 = vld [vmem:[%s3629_s3 + $0x78] sm:$0xff]  ;;  %v2769_v55 = vpack.c.bf16 %v2351_v39, %v2350_v29  ;;  %v1225_v39 = vmul.f32 %v3195_v56, %v3241_v18  ;;  %v1228_v56 = vmul.f32 %v3270_v28, %v3299_v50  ;;  %v1847_v18 = vld [vmem:[#allocation2 + $0x50] sm:$0xff]  ;;  %v2000_v28 = vmul.f32 %v3375_v60, %v3393_v11  ;;  %v2156_v11 = vpop.permute.xlu0 %2155 }
 0x242   : > { %2626 = vmatmul.mubr.msk.f32.vlgmr.msra.gmra.mrb[0].mxu0 %vm433_vm1, %v1533_v46  ;;  %v1068_v46 = vmul.f32 %v3375_v60, %v3360_v43  ;;  %v2363_v29 = vld [vmem:[%s3629_s3 + $0x118] sm:$0xff]  ;;  %v2004_v50 = vmul.f32 %v3436_v26, %v3454_v32 }
 0x243   : > { %2760 = vmatpush3.bf16.msra.mxu0 %v2757_v36  ;;  %2628 = vmatprep.mubr.msk.f32.mxu0 %vm433_vm1, %v1534_v5  ;;  %v2360_v5 = vld [vmem:[%s3629_s3 + $0x100] sm:$0xff] }
 0x244   : > { %2546 = vmatmul.mubr.msk.f32.vlgmr.msra.gmra.mrb[4].mxu1 %vm433_vm1, %v3224_v12  ;;  %2762 = vmatprep.subr.bf16.mxu0 %v2761_v61  ;;  %v3429_v12 = vsel %vm400_vm15, 1.0, %v2910_v6  ;;  %v1539_v6 = vmul.f32 %v3452_v9, %v3454_v32 }
 0x245   : > { %2548 = vmatprep.mubr.msk.f32.mxu1 %vm433_vm1, %v3237_v16  ;;  %2728 = vmatpush3.bf16.msra.mxu1 %v3301_v52  ;;  %v1537_v36 = vmul.f32 %v3429_v12, %v3431_v15  ;;  %v1058_v52 = vld [vmem:[#allocation2 + $0x9] sm:$0xff] }
 0x246   : > { %2629 = vmatmul.mubr.msk.f32.gmra.mrb[2].mxu0 %vm433_vm1, %v1535_v24  ;;  %2730 = vmatprep.subr.bf16.mxu1 %v2729_v19  ;;  %v1066_v62 = vmul.f32 %v3338_v1, %v1058_v52  ;;  %v1688_v24 = vld [vmem:[#allocation2 + $0x47] sm:$0xff] }
 0x247   : > { %2631 = vmatprep.mubr.msk.f32.mxu0 %vm433_vm1, %v1536_v51  ;;  %2764 = vmatpush3.bf16.msra.mxu0 %v2761_v61  ;;  %v2737_v61 = vpack.c.bf16 %v2303_v47, %v2302_v3  ;;  %v1695_v51 = vmul.f32 %v3297_v49, %v3335_v0 }
 0x248   : > { %2549 = vmatmul.mubr.msk.f32.gmra.mrb[6].mxu1 %vm433_vm1, %v3265_v27  ;;  %2766 = vmatprep.subr.bf16.mxu0 %v2765_v25 }
 0x249   : > { %2551 = vmatprep.mubr.msk.f32.mxu1 %vm433_vm1, %v3285_v33  ;;  %2732 = vmatpush3.bf16.msra.mxu1 %v2729_v19  ;;  %v2361_v19 = vld [vmem:[%s3629_s3 + $0x108] sm:$0xff] }
 0x24a   : > { %2632 = vmatmul.mubr.msk.f32.gmra.mrb[4].mxu0 %vm433_vm1, %v1537_v36  ;;  %2734 = vmatprep.subr.bf16.mxu1 %v2733_v34  ;;  %v2773_v4 = vpack.c.bf16 %v2361_v19, %v2360_v5  ;;  %v1689_v36 = vld [vmem:[#allocation2 + $0x4f] sm:$0xff] }
 0x24b   : > { %2634 = vmatprep.mubr.msk.f32.mxu0 %vm433_vm1, %v1538_v48  ;;  %v1072_v48 = vmul.f32 %v3436_v26, %v3431_v15  ;;  %v1697_v52 = vmul.f32 %v3333_v63, %v1689_v36 }
 0x24c   : > { %2552 = vmatmul.mubr.msk.f32.gmra.mrb[8].mxu1 %vm433_vm1, %v3292_v37 }
 0x24d   : > { %2554 = vmatprep.mubr.msk.f32.mxu1 %vm433_vm1, %v3316_v57 }
 0x24e   : > { %2635 = vmatmul.mubr.msk.f32.gmra.mrb[6].mxu0 %vm433_vm1, %v1539_v6  ;;  %v1073_v6 = vmul.f32 %v3452_v9, %v3438_v35 }
 0x24f   : > { %2645 = vmatprep.mubr.msk.f32.mxu0 %vm433_vm1, %v1690_v58  ;;  %v1224_v58 = vmul.f32 %v3096_v30, %v3226_v13  ;;  %v1226_v30 = vmul.f32 %v3205_v44, %v3248_v21  ;;  %v1227_v13 = vmul.f32 %v3255_v23, %v3272_v31  ;;  %v1229_v44 = vmul.f32 %v3297_v49, %v3309_v53 }
 0x250   : > { %2555 = vmatmul.mubr.msk.f32.gmra.mrb[10].mxu1 %vm433_vm1, %v3328_v38  ;;  %v1231_v21 = vmul.f32 %v3333_v63, %v1688_v24  ;;  %v1998_v23 = vmul.f32 %v3338_v1, %v3360_v43  ;;  %v2001_v31 = vmul.f32 %v3391_v10, %v3401_v17  ;;  %v2003_v49 = vmul.f32 %v3429_v12, %v3438_v35 }
 0x251   : > { %2565 = vmatprep.mubr.msk.f32.mxu1 %vm433_vm1, %v1066_v62  ;;  %v2362_v62 = vld [vmem:[%s3629_s3 + $0x110] sm:$0xff] }
 0x252   : > { %2646 = vmatmul.mubr.msk.f32.vlgmr.msra.gmra.mrb[0].mxu0 %vm433_vm1, %v1691_v42  ;;  %v2777_v3 = vpack.c.bf16 %v2363_v29, %v2362_v62 }
 0x253   : > { %2768 = vmatpush3.bf16.msra.mxu0 %v2765_v25  ;;  %2648 = vmatprep.mubr.msk.f32.mxu0 %vm433_vm1, %v1692_v2  ;;  %v1071_v25 = vmul.f32 %v3429_v12, %v3401_v17 }
 0x254   : > { %2566 = vmatmul.mubr.msk.f32.vlgmr.msra.gmra.mrb[4].mxu1 %vm433_vm1, %v1067_v59  ;;  %2770 = vmatprep.subr.bf16.mxu0 %v2769_v55 }
 0x255   : > { %2568 = vmatprep.mubr.msk.f32.mxu1 %vm433_vm1, %v1068_v46  ;;  %2736 = vmatpush3.bf16.msra.mxu1 %v2733_v34  ;;  %v1696_v34 = vmul.f32 %v3307_v40, %v1688_v24 }
 0x256   : > { %2649 = vmatmul.mubr.msk.f32.gmra.mrb[2].mxu0 %vm433_vm1, %v1693_v41  ;;  %2738 = vmatprep.subr.bf16.mxu1 %v2737_v61 }
 0x257   : > { %2651 = vmatprep.mubr.msk.f32.mxu0 %vm433_vm1, %v1694_v22  ;;  %2772 = vmatpush3.bf16.msra.mxu0 %v2769_v55 }
 0x258   : > { %2569 = vmatmul.mubr.msk.f32.gmra.mrb[6].mxu1 %vm433_vm1, %v1069_v20  ;;  %2774 = vmatprep.subr.bf16.mxu0 %v2773_v4 }
 0x259   : > { %2571 = vmatprep.mubr.msk.f32.mxu1 %vm433_vm1, %v1070_v8  ;;  %2740 = vmatpush3.bf16.msra.mxu1 %v2737_v61 }
 0x25a   : > { %2652 = vmatmul.mubr.msk.f32.gmra.mrb[4].mxu0 %vm433_vm1, %v1695_v51 }
 0x25b   : > { %2654 = vmatprep.mubr.msk.f32.mxu0 %vm433_vm1, %v1696_v34 }
 0x25c   : > { %2572 = vmatmul.mubr.msk.f32.gmra.mrb[8].mxu1 %vm433_vm1, %v1071_v25 }
 0x25d   : > { %2574 = vmatprep.mubr.msk.f32.mxu1 %vm433_vm1, %v1072_v48 }
 0x25e   : > { %2655 = vmatmul.mubr.msk.f32.gmra.mrb[6].mxu0 %vm433_vm1, %v1697_v52 }
 0x25f   : > { %2665 = vmatprep.mubr.msk.f32.mxu0 %vm433_vm1, %v3237_v16  ;;  %v1230_v16 = vmul.f32 %v3307_v40, %v3335_v0 }
 0x260   : > { %2575 = vmatmul.mubr.msk.f32.gmra.mrb[10].mxu1 %vm433_vm1, %v1073_v6 }
 0x261   : > { %2585 = vmatprep.mubr.msk.f32.mxu1 %vm433_vm1, %v1224_v58 }
 0x262   : > { %2666 = vmatmul.mubr.msk.f32.vlgmr.msra.gmra.mrb[0].mxu0 %vm433_vm1, %v3265_v27  ;;  %v1999_v27 = vmul.f32 %v3358_v45, %v3377_v7 }
 0x263   : > { %2776 = vmatpush3.bf16.msra.mxu0 %v2773_v4  ;;  %2668 = vmatprep.mubr.msk.f32.mxu0 %vm433_vm1, %v3285_v33  ;;  %v2002_v33 = vmul.f32 %v3399_v14, %v3431_v15 }
 0x264   : > { %2586 = vmatmul.mubr.msk.f32.vlgmr.msra.gmra.mrb[4].mxu1 %vm433_vm1, %v1225_v39  ;;  %2778 = vmatprep.subr.bf16.mxu0 %v2777_v3 }
 0x265   : > { %2588 = vmatprep.mubr.msk.f32.mxu1 %vm433_vm1, %v1226_v30 }
 0x266   : > { %2669 = vmatmul.mubr.msk.f32.gmra.mrb[2].mxu0 %vm433_vm1, %v3292_v37  ;;  %v1997_v37 = vld [vmem:[#allocation2 + $0x51] sm:$0xff] }
 0x267   : > { %2671 = vmatprep.mubr.msk.f32.mxu0 %vm433_vm1, %v3316_v57  ;;  %2780 = vmatpush3.bf16.msra.mxu0 %v2777_v3  ;;  %v2005_v40 = vmul.f32 %v3452_v9, %v1997_v37 }
 0x268   : > { %2589 = vmatmul.mubr.msk.f32.gmra.mrb[6].mxu1 %vm433_vm1, %v1227_v13 }
 0x269   : > { %2591 = vmatprep.mubr.msk.f32.mxu1 %vm433_vm1, %v1228_v56 }
 0x26a   : > { %2672 = vmatmul.mubr.msk.f32.gmra.mrb[4].mxu0 %vm433_vm1, %v3328_v38 }
 0x26b   : > { %2674 = vmatprep.mubr.msk.f32.mxu0 %vm433_vm1, %v3349_v54  ;;  %v2267_v54 = vld [vmem:[%s3630_s4] ss:$0 sm:$0xff] }
 0x26c   : > { %2592 = vmatmul.mubr.msk.f32.gmra.mrb[8].mxu1 %vm433_vm1, %v1229_v44 }
 0x26d   : > { %2594 = vmatprep.mubr.msk.f32.mxu1 %vm433_vm1, %v1230_v16 }
 0x26e   : > { %2675 = vmatmul.mubr.msk.f32.gmra.mrb[6].mxu0 %vm433_vm1, %v1847_v18 }
 0x26f   : > { %2685 = vmatprep.mubr.msk.f32.mxu0 %vm433_vm1, %v1998_v23 }
 0x270   : > { %2595 = vmatmul.mubr.msk.f32.gmra.mrb[10].mxu1 %vm433_vm1, %v1231_v21 }
 0x272   : > { %2686 = vmatmul.mubr.msk.f32.vlgmr.msra.gmra.mrb[0].mxu0 %vm433_vm1, %v1999_v27 }
 0x273   : > { %2688 = vmatprep.mubr.msk.f32.mxu0 %vm433_vm1, %v2000_v28 }
 0x276   : > { %2689 = vmatmul.mubr.msk.f32.gmra.mrb[2].mxu0 %vm433_vm1, %v2001_v31 }
 0x277   : > { %2691 = vmatprep.mubr.msk.f32.mxu0 %vm433_vm1, %v2002_v33 }
 0x27a   : > { %2692 = vmatmul.mubr.msk.f32.gmra.mrb[4].mxu0 %vm433_vm1, %v2003_v49 }
 0x27b   : > { %2694 = vmatprep.mubr.msk.f32.mxu0 %vm433_vm1, %v2004_v50 }
 0x27e   : > { %2695 = vmatmul.mubr.msk.f32.gmra.mrb[6].mxu0 %vm433_vm1, %v2005_v40  ;;  %vm2166_vm1 = vcmask 146432  }
 0x337   : > { %v2587_v53 = vpop.f32.mrb[4].mxu1 }
 0x338   : > { %v1327_v57 = vpop.f32.mrb[5].mxu1  ;;  %v2781_v60 = vadd.f32 %v2587_v53, %v2267_v54 }
 0x339   : > { %v2783_v7 = vadd.f32 %v2267_v54, %v1327_v57 }
 0x33b   : > { %v2590_v38 = vpop.f32.mrb[6].mxu1 }
 0x33c   : > { %v1337_v63 = vpop.f32.mrb[7].mxu1  ;;  %v2785_v15 = vadd.f32 %v2590_v38, %v2267_v54 }
 0x33d   : > { %v2787_v35 = vadd.f32 %v2267_v54, %v1337_v63 }
 0x33f   : > { %v2593_v0 = vpop.f32.mrb[8].mxu1 }
 0x340   : > { %v1347_v1 = vpop.f32.mrb[9].mxu1  ;;  %v2789_v55 = vadd.f32 %v2593_v0, %v2267_v54 }
 0x341   : > { %v2791_v46 = vadd.f32 %v2267_v54, %v1347_v1 }
 0x343   : > { %v2596_v45 = vpop.f32.mrb[10].mxu1 }
 0x344   : > { %v1357_v43 = vpop.f32.mrb[11].mxu1  ;;  %v2793_v22 = vadd.f32 %v2596_v45, %v2267_v54 }
 0x345   : > { %v2687_v10 = vpop.f32.mrb[0].mxu0  ;;  %v2795_v8 = vadd.f32 %v2267_v54, %v1357_v43 }
 0x346   : > { %v2782_v14 = vadd.f32 %v2781_v60, %v2687_v10  ;;  %v2101_v17 = vpop.f32.mrb[1].mxu0 }
 0x347   : > { %v2784_v12 = vadd.f32 %v2783_v7, %v2101_v17 }
 0x348   : > { %v2159_v26 = vmul.f32 %v2782_v14, %v2156_v11 }
 0x349   : > { %v2158_v9 = vmul.f32 %v2784_v12, %v2156_v11  ;;  %v2690_v32 = vpop.f32.mrb[2].mxu0 }
 0x34a   : > { %2168 = vst.msk [vmem:[%s3605_s11 + $0x8] sm:$0xff] %vm2166_vm1, %v2159_v26  ;;  %v2786_v47 = vadd.f32 %v2785_v15, %v2690_v32  ;;  %v2111_v42 = vpop.f32.mrb[3].mxu0 }
 0x34b   : > { %2167 = vst.msk [vmem:[%s3605_s11] sm:$0xff] %vm2166_vm1, %v2158_v9  ;;  %v2788_v59 = vadd.f32 %v2787_v35, %v2111_v42 }
 0x34c   : > { %v2161_v2 = vmul.f32 %v2786_v47, %v2156_v11 }
 0x34d   : > { %v2160_v61 = vmul.f32 %v2788_v59, %v2156_v11  ;;  %v2693_v5 = vpop.f32.mrb[4].mxu0 }
 0x34e   : > { %2170 = vst.msk [vmem:[%s3605_s11 + $0x18] sm:$0xff] %vm2166_vm1, %v2161_v2  ;;  %v2790_v19 = vadd.f32 %v2789_v55, %v2693_v5  ;;  %v2121_v41 = vpop.f32.mrb[5].mxu0 }
 0x34f   : > { %2169 = vst.msk [vmem:[%s3605_s11 + $0x10] sm:$0xff] %vm2166_vm1, %v2160_v61  ;;  %v2792_v20 = vadd.f32 %v2791_v46, %v2121_v41 }
 0x350   : > { %v2163_v4 = vmul.f32 %v2790_v19, %v2156_v11 }
 0x351   : > { %v2162_v24 = vmul.f32 %v2792_v20, %v2156_v11  ;;  %v2696_v51 = vpop.f32.mrb[6].mxu0 }
 0x352   : > { %2172 = vst.msk [vmem:[%s3605_s11 + $0x28] sm:$0xff] %vm2166_vm1, %v2163_v4  ;;  %v2794_v25 = vadd.f32 %v2793_v22, %v2696_v51  ;;  %v2131_v34 = vpop.f32.mrb[7].mxu0 }
 0x353   : > { %2171 = vst.msk [vmem:[%s3605_s11 + $0x20] sm:$0xff] %vm2166_vm1, %v2162_v24  ;;  %v2796_v36 = vadd.f32 %v2795_v8, %v2131_v34 }
 0x354   : > { %v2165_v48 = vmul.f32 %v2794_v25, %v2156_v11 }
 0x355   : > { %v2164_v52 = vmul.f32 %v2796_v36, %v2156_v11 }
 0x356   : > { %2174 = vst.msk [vmem:[%s3605_s11 + $0x38] sm:$0xff] %vm2166_vm1, %v2165_v48 }
 0x357   : > { %2173 = vst.msk [vmem:[%s3605_s11 + $0x30] sm:$0xff] %vm2166_vm1, %v2164_v52 }
 0x358 PF: > { %s16_s21 = sadd.s32 1, %s2906_s21  }
 0x359   : > { %p13_p4 = scmp.ge.s32.totalorder %s16_s21, 4  }
 0x35b   :  { %15 = sbr.rel (!%p13_p4) target bundleno = 1 (0x1), region = 85 }

// kernel: model_forward_pallas.19
= control target key start
LH: loop header
LB: loop body
LE: loop exit
PB: predicated region body
PF: predicated region fallthrough
CT: control target
= control target key end

     0   :  { %s6304_s29 = smov 0   ;;  %s7691_s0 = inlined_call_operand.vmem [shape: f32[2,64,32], index: 0, kind: input, shape index: {}]   ;;  %s7692_s1 = inlined_call_operand.vmem [shape: f32[2,64,32], index: 1, kind: input, shape index: {}]   ;;  %s7693_s2 = inlined_call_operand.vmem [shape: f32[2,1,128], index: 2, kind: input, shape index: {}]   ;;  %s7694_s3 = inlined_call_operand.vmem [shape: f32[64,64], index: 3, kind: input, shape index: {}]   ;;  %s7695_s4 = inlined_call_operand.vmem [shape: f32[2,64], index: 4, kind: input, shape index: {}]   ;;  %s7696_s5 = inlined_call_operand.vmem [shape: f32[9,64,32], index: 5, kind: input, shape index: {}]   ;;  %s7697_s6 = inlined_call_operand.vmem [shape: f32[1,32], index: 6, kind: input, shape index: {}]   ;;  %s7698_s7 = inlined_call_operand.vmem [shape: f32[128,32], index: 7, kind: input, shape index: {}]   ;;  %s7699_s8 = inlined_call_operand.vmem [shape: f32[32,32], index: 8, kind: input, shape index: {}]   ;;  %s7700_s9 = inlined_call_operand.vmem [shape: f32[2,32], index: 9, kind: input, shape index: {}]   ;;  %s7701_s10 = inlined_call_operand.vmem [shape: f32[9,32,32], index: 10, kind: input, shape index: {}]   ;;  %s7702_s11 = inlined_call_operand.vmem [shape: f32[1,32], index: 11, kind: input, shape index: {}]   ;;  %s7703_s12 = inlined_call_operand.vmem [shape: f32[64,32], index: 12, kind: input, shape index: {}]   ;;  %s7704_s13 = inlined_call_operand.vmem [shape: f32[1,32], index: 13, kind: input, shape index: {}]   ;;  %s7705_s14 = inlined_call_operand.vmem [shape: f32[2,64,32], index: 14, kind: output, shape index: {}]  }
   0x1 LB: > { %s4528_s30 = sadd.s32 4294967295, %s6223_s29   ;;  %p4532_p0 = scmp.ge.s32.totalorder %s6223_s29, 1  ;;  %s6223_s29 = sphi %s6304_s29, %s24_s29  }
   0x2   : > { %p430_p1 = scmp.lt.s32.totalorder %s6223_s29, 3 }
   0x4   : > { %p431_p2 = pnand %p4532_p0, %p430_p1 }
   0x5   : > { %p484_p3 = scmp.lt.s32.totalorder (!%p431_p2), %s4528_s30, 1  ;;  %s6225_s19 = smov (!%p431_p2), 32   ;;  %v6226_v4 = vmov (!%p431_p2), 0.0|0.0   ;;  %v712_v7 = vld [vmem:[%s7694_s3] sm:$0xff] (!%p431_p2)  ;;  %v713_v8 = vld [vmem:[%s7694_s3 + $0x8] sm:$0xff] (!%p431_p2)  ;;  %v714_v10 = vld [vmem:[%s7694_s3 + $0x10] sm:$0xff] (!%p431_p2) }
   0x6   : > { %434 = sbr.rel (%p431_p2) target bundleno = 1975 (0x7b7), region = 76  ;;  %5685 = vmatprep.subr.bf16.mxu0 (!%p431_p2), %v6226_v4  ;;  %5697 = vmatprep.subr.bf16.mxu1 (!%p431_p2), %v6226_v4  ;;  %v5686_v9 = vpack.c.bf16 (!%p431_p2), %v713_v8, %v712_v7  ;;  %v715_v11 = vld [vmem:[%s7694_s3 + $0x18] sm:$0xff] (!%p431_p2)  ;;  %v716_v15 = vld [vmem:[%s7694_s3 + $0x20] sm:$0xff] (!%p431_p2)  ;;  %v717_v16 = vld [vmem:[%s7694_s3 + $0x28] sm:$0xff] (!%p431_p2)  ;;  %vm703_vm0 = vcmask (!%p431_p2), 261120   ;;  %vm722_vm1 = vcmask (!%p431_p2), 523264  }
   0x7   : > { %v5689_v14 = vpack.c.bf16 (!%p431_p2), %v715_v11, %v714_v10  ;;  %v5692_v17 = vpack.c.bf16 (!%p431_p2), %v717_v16, %v716_v15  ;;  %v718_v18 = vld [vmem:[%s7694_s3 + $0x30] sm:$0xff] (!%p431_p2)  ;;  %v719_v19 = vld [vmem:[%s7694_s3 + $0x38] sm:$0xff] (!%p431_p2)  ;;  %vm6227_vm2 = vmmov (!%p431_p2), 0   ;;  %v6228_v20 = vmov (!%p431_p2), 0.0  }
   0x8   : > { %5687 = vmatpush3.bf16.msra.mxu0 (!%p431_p2), %v5686_v9  ;;  %5699 = vmatpush3.bf16.msra.mxu1 (!%p431_p2), %v5686_v9  ;;  %1014 = vst.msk [vmem:[#allocation2] sm:$0xff] (!%p431_p2), %vm722_vm1, %v6228_v20  ;;  %1015 = vst.msk [vmem:[#allocation2 + $0x8] sm:$0xff] (!%p431_p2), %vm722_vm1, %v6228_v20  ;;  %v5695_v21 = vpack.c.bf16 (!%p431_p2), %v719_v19, %v718_v18 }
   0x9   : > { %5688 = vmatprep.subr.bf16.mxu0 (!%p431_p2), %v6226_v4  ;;  %5700 = vmatprep.subr.bf16.mxu1 (!%p431_p2), %v6226_v4  ;;  %1016 = vst.msk [vmem:[#allocation2 + $0x10] sm:$0xff] (!%p431_p2), %vm722_vm1, %v6228_v20  ;;  %1017 = vst.msk [vmem:[#allocation2 + $0x18] sm:$0xff] (!%p431_p2), %vm722_vm1, %v6228_v20 }
   0xa   : > { %5146 = vmatprep.mubr.msk.f32.mxu0 (!%p431_p2), %vm6227_vm2, %v6228_v20  ;;  %1018 = vst.msk [vmem:[#allocation2 + $0x20] sm:$0xff] (!%p431_p2), %vm722_vm1, %v6228_v20  ;;  %1019 = vst.msk [vmem:[#allocation2 + $0x28] sm:$0xff] (!%p431_p2), %vm722_vm1, %v6228_v20  ;;  %5165 = vmatprep.mubr.msk.f32.mxu1 (!%p431_p2), %vm6227_vm2, %v6228_v20 }
   0xb   : > { %1020 = vst.msk [vmem:[#allocation2 + $0x30] sm:$0xff] (!%p431_p2), %vm722_vm1, %v6228_v20  ;;  %1021 = vst.msk [vmem:[#allocation2 + $0x38] sm:$0xff] (!%p431_p2), %vm722_vm1, %v6228_v20 }
   0xc   : > { %5690 = vmatpush3.bf16.msra.mxu0 (!%p431_p2), %v5689_v14  ;;  %5702 = vmatpush3.bf16.msra.mxu1 (!%p431_p2), %v5689_v14  ;;  %1022 = vst.msk [vmem:[#allocation2 + $0x40] sm:$0xff] (!%p431_p2), %vm722_vm1, %v6228_v20  ;;  %1023 = vst.msk [vmem:[#allocation2 + $0x48] sm:$0xff] (!%p431_p2), %vm722_vm1, %v6228_v20 }
   0xd   : > { %s7707_s30 = smov (!%p484_p3, %s4528_s30), 1  ;;  %5691 = vmatprep.subr.bf16.mxu0 %v6226_v4  ;;  %1024 = vst.msk [vmem:[#allocation2 + $0x50] sm:$0xff] %vm722_vm1, %v6228_v20  ;;  %1025 = vst.msk [vmem:[#allocation2 + $0x58] sm:$0xff] %vm722_vm1, %v6228_v20  ;;  %5703 = vmatprep.subr.bf16.mxu1 %v6226_v4 }
   0xe   : > { %s6315_s15 = sshll.u32 %s7707_s30, 6  ;;  %2869 = vst.msk [vmem:[#allocation3] sm:$0xff] %vm703_vm0, %v6228_v20  ;;  %2870 = vst.msk [vmem:[#allocation3 + $0x8] sm:$0xff] %vm703_vm0, %v6228_v20  ;;  %s496_s26 = scalar_lea.vmem %s7693_s2, %s7707_s30 }
   0xf   : > { %s493_s18 = scalar_lea.vmem %s7692_s1, %s6315_s15  ;;  %2871 = vst.msk [vmem:[#allocation3 + $0x10] sm:$0xff] %vm703_vm0, %v6228_v20  ;;  %2872 = vst.msk [vmem:[#allocation3 + $0x18] sm:$0xff] %vm703_vm0, %v6228_v20  ;;  %s488_s25 = scalar_lea.vmem %s7691_s0, %s6315_s15 }
  0x10   : > { %v663_v0 = vld [vmem:[%s493_s18] sm:$0xff]  ;;  %v665_v1 = vld [vmem:[%s493_s18 + $0x10] sm:$0xff]  ;;  %v664_v2 = vld [vmem:[%s493_s18 + $0x8] sm:$0xff]  ;;  %2873 = vst.msk [vmem:[#allocation3 + $0x20] sm:$0xff] %vm703_vm0, %v6228_v20  ;;  %5693 = vmatpush3.bf16.msra.mxu0 %v5692_v17  ;;  %5705 = vmatpush3.bf16.msra.mxu1 %v5692_v17 }
  0x11   : > { %679 = vrot.lane.b32.xlu0 %v663_v0, %s6225_s19  ;;  %683 = vrot.lane.b32.xlu1 %v665_v1, %s6225_s19  ;;  %v666_v3 = vld [vmem:[%s493_s18 + $0x18] sm:$0xff]  ;;  %v667_v5 = vld [vmem:[%s493_s18 + $0x20] sm:$0xff]  ;;  %2874 = vst.msk [vmem:[#allocation3 + $0x28] sm:$0xff] %vm703_vm0, %v6228_v20  ;;  %2875 = vst.msk [vmem:[#allocation3 + $0x30] sm:$0xff] %vm703_vm0, %v6228_v20 }
  0x12   : > { %v668_v6 = vld [vmem:[%s493_s18 + $0x28] sm:$0xff]  ;;  %v669_v12 = vld [vmem:[%s493_s18 + $0x30] sm:$0xff]  ;;  %v670_v13 = vld [vmem:[%s493_s18 + $0x38] sm:$0xff]  ;;  %2876 = vst.msk [vmem:[#allocation3 + $0x38] sm:$0xff] %vm703_vm0, %v6228_v20  ;;  %5694 = vmatprep.subr.bf16.mxu0 %v6226_v4  ;;  %5706 = vmatprep.subr.bf16.mxu1 %v6226_v4 }
  0x13   : > { %2877 = vst.msk [vmem:[#allocation3 + $0x40] sm:$0xff] %vm703_vm0, %v6228_v20  ;;  %2878 = vst.msk [vmem:[#allocation3 + $0x48] sm:$0xff] %vm703_vm0, %v6228_v20  ;;  %v655_v23 = vld [vmem:[%s488_s25] sm:$0xff]  ;;  %v657_v25 = vld [vmem:[%s488_s25 + $0x10] sm:$0xff] }
  0x14   : > { %2879 = vst.msk [vmem:[#allocation3 + $0x50] sm:$0xff] %vm703_vm0, %v6228_v20  ;;  %2880 = vst.msk [vmem:[#allocation3 + $0x58] sm:$0xff] %vm703_vm0, %v6228_v20  ;;  %5696 = vmatpush3.bf16.msra.mxu0 %v5695_v21  ;;  %5708 = vmatpush3.bf16.msra.mxu1 %v5695_v21  ;;  %v656_v26 = vld [vmem:[%s488_s25 + $0x8] sm:$0xff]  ;;  %v658_v27 = vld [vmem:[%s488_s25 + $0x18] sm:$0xff] }
  0x15   : > { %681 = vrot.lane.b32.xlu0 %v664_v2, %s6225_s19  ;;  %685 = vrot.lane.b32.xlu1 %v666_v3, %s6225_s19  ;;  %v659_v36 = vld [vmem:[%s488_s25 + $0x20] sm:$0xff]  ;;  %v660_v37 = vld [vmem:[%s488_s25 + $0x28] sm:$0xff]  ;;  %v502_v3 = vlaneseq }
  0x16   : > { %5877 = vmatprep.subr.bf16.mxu1 %v6226_v4  ;;  %v661_v47 = vld [vmem:[%s488_s25 + $0x30] sm:$0xff]  ;;  %v662_v48 = vld [vmem:[%s488_s25 + $0x38] sm:$0xff] }
  0x19   : > { %687 = vrot.lane.b32.xlu0 %v667_v5, %s6225_s19  ;;  %689 = vrot.lane.b32.xlu1 %v668_v6, %s6225_s19  ;;  %v6451_v5 = vshrl.u32 %v502_v3, 7 }
  0x1b   : > { %v6454_v6 = vsub.s32 0, %v6451_v5 }
  0x1d   : > { %691 = vrot.lane.b32.xlu0 %v669_v12, %s6225_s19  ;;  %693 = vrot.lane.b32.xlu1 %v670_v13, %s6225_s19  ;;  %s501_s19 = scalar_lea.vmem %s7705_s14, %s6315_s15 }
  0x83   : > { %v680_v22 = vpop.permute.xlu0 %679  ;;  %v684_v24 = vpop.permute.xlu1 %683 }
  0x84   : > { %v6411_v28 = vsel %vm703_vm0, %v655_v23, %v680_v22  ;;  %v6414_v31 = vsel %vm703_vm0, %v657_v25, %v684_v24 }
  0x85   : > { %v723_v34 = vsel %vm722_vm1, %v6411_v28, 0.0  ;;  %v726_v39 = vsel %vm722_vm1, %v6414_v31, 0.0 }
  0x87   : > { %v682_v29 = vpop.permute.xlu0 %681  ;;  %v686_v30 = vpop.permute.xlu1 %685 }
  0x88   : > { %v6417_v32 = vsel %vm703_vm0, %v656_v26, %v682_v29  ;;  %v6420_v33 = vsel %vm703_vm0, %v658_v27, %v686_v30 }
  0x89   : > { %v724_v35 = vsel %vm722_vm1, %v6417_v32, 0.0  ;;  %v728_v40 = vsel %vm722_vm1, %v6420_v33, 0.0 }
  0x8a   : > { %v725_v38 = vadd.f32 %v724_v35, %v723_v34 }
  0x8b   : > { %v688_v41 = vpop.permute.xlu0 %687  ;;  %v690_v42 = vpop.permute.xlu1 %689 }
  0x8c   : > { %v727_v43 = vadd.f32 %v726_v39, %v725_v38  ;;  %v6431_v44 = vsel %vm703_vm0, %v659_v36, %v688_v41  ;;  %v6434_v45 = vsel %vm703_vm0, %v660_v37, %v690_v42 }
  0x8d   : > { %v730_v46 = vsel %vm722_vm1, %v6431_v44, 0.0  ;;  %v732_v50 = vsel %vm722_vm1, %v6434_v45, 0.0 }
  0x8e   : > { %v729_v49 = vadd.f32 %v728_v40, %v727_v43 }
  0x8f   : > { %v692_v51 = vpop.permute.xlu0 %691  ;;  %v694_v52 = vpop.permute.xlu1 %693 }
  0x90   : > { %v731_v53 = vadd.f32 %v730_v46, %v729_v49  ;;  %v6441_v54 = vsel %vm703_vm0, %v661_v47, %v692_v51  ;;  %v6444_v55 = vsel %vm703_vm0, %v662_v48, %v694_v52 }
  0x91   : > { %v734_v56 = vsel %vm722_vm1, %v6441_v54, 0.0  ;;  %v736_v58 = vsel %vm722_vm1, %v6444_v55, 0.0 }
  0x92   : > { %v733_v57 = vadd.f32 %v732_v50, %v731_v53 }
  0x94   : > { %v735_v59 = vadd.f32 %v734_v56, %v733_v57  ;;  %v1056_v56 = vld [vmem:[%s7696_s5] sm:$0xff]  ;;  %v1057_v57 = vld [vmem:[%s7696_s5 + $0x8] sm:$0xff] }
  0x96   : > { %v737_v60 = vadd.f32 %v736_v58, %v735_v59  ;;  %v1058_v58 = vld [vmem:[%s7696_s5 + $0x10] sm:$0xff]  ;;  %v515_v59 = vand.u32 7, %v6451_v5 }
  0x98   : > { %v738_v61 = vrot.slane %v737_v60, 4  ;;  %vm607_vm3 = vcmp.ge.s32.totalorder %v515_v59, 1  ;;  %vm631_vm11 = vcmp.le.s32.totalorder %v515_v59, 6 }
  0x99   : > { %v6775_v59 = vsel %vm631_vm11, 1.0, %v6228_v20 }
  0x9a   : > { %v739_v62 = vadd.f32 %v738_v61, %v737_v60  ;;  %v5709_v60 = vpack.c.bf16 %v1057_v57, %v1056_v56  ;;  %v1059_v61 = vld [vmem:[%s7696_s5 + $0x18] sm:$0xff] }
  0x9c   : > { %v740_v63 = vrot.slane %v739_v62, 2  ;;  %5710 = vmatprep.subr.bf16.mxu0 %v5709_v60 }
  0x9e   : > { %v741_v0 = vadd.f32 %v740_v63, %v739_v62  ;;  %v5713_v62 = vpack.c.bf16 %v1059_v61, %v1058_v58  ;;  %v1060_v63 = vld [vmem:[%s7696_s5 + $0x20] sm:$0xff] }
  0xa0   : > { %v742_v1 = vrot.slane %v741_v0, 1 }
  0xa2   : > { %v743_v2 = vadd.f32 %v742_v1, %v741_v0  ;;  %v1061_v0 = vld [vmem:[%s7696_s5 + $0x28] sm:$0xff] }
  0xa3   : > { %v1040_v1 = vld [vmem:[#allocation2 + $0x7] sm:$0xff] }
  0xa4   : > { %5147 = vmatmul.mubr.msk.f32.vlgmr.msra.gmra.mrb[0].mxu0 %vm722_vm1, %v743_v2  ;;  %v6530_v2 = vsel %vm607_vm3, 1.0, %v6228_v20 }
  0xa5   : > { %5712 = vmatpush3.bf16.msra.mxu0 %v5709_v60  ;;  %v1048_v3 = vmul.f32 %v6530_v2, %v1040_v1 }
  0xa6   : > { %5714 = vmatprep.subr.bf16.mxu0 %v5713_v62 }
  0xa7   : > { %5184 = vmatprep.mubr.msk.f32.mxu0 %vm722_vm1, %v1048_v3 }
  0xa9   : > { %5716 = vmatpush3.bf16.msra.mxu0 %v5713_v62 }
 0x177   : > { %v813_v7 = vpop.f32.mrb[0].mxu0 }
 0x178   : > { %v820_v8 = vrot.slane %v813_v7, %v6454_v6  ;;  %v5148_v9 = vpop.f32.mrb[1].mxu0  ;;  %v5717_v7 = vpack.c.bf16 %v1061_v0, %v1060_v63 }
 0x179   : > { %v1063_v9 = vld [vmem:[%s7696_s5 + $0x38] sm:$0xff] }
 0x17a   : > { %v6458_v10 = vsub.f32 %v6411_v28, %v820_v8  ;;  %v6461_v11 = vsub.f32 %v6417_v32, %v820_v8  ;;  %v6464_v12 = vsub.f32 %v6414_v31, %v820_v8  ;;  %v6467_v13 = vsub.f32 %v6420_v33, %v820_v8  ;;  %5718 = vmatprep.subr.bf16.mxu0 %v5717_v7 }
 0x17b   : > { %v6470_v14 = vsub.f32 %v6431_v44, %v820_v8  ;;  %v6479_v18 = vsub.f32 %v6434_v45, %v820_v8  ;;  %v6486_v24 = vsub.f32 %v6441_v54, %v820_v8  ;;  %v6492_v29 = vsub.f32 %v6444_v55, %v820_v8  ;;  %v1062_v8 = vld [vmem:[%s7696_s5 + $0x30] sm:$0xff]  ;;  %5720 = vmatpush3.bf16.msra.mxu0 %v5717_v7 }
 0x17c   : > { %v829_v15 = vmul.f32 %v6458_v10, %v6458_v10  ;;  %v830_v16 = vmul.f32 %v6461_v11, %v6461_v11  ;;  %v831_v17 = vmul.f32 %v6464_v12, %v6464_v12  ;;  %v832_v19 = vmul.f32 %v6467_v13, %v6467_v13 }
 0x17d   : > { %v833_v25 = vmul.f32 %v6470_v14, %v6470_v14  ;;  %v834_v30 = vmul.f32 %v6479_v18, %v6479_v18  ;;  %v835_v36 = vmul.f32 %v6486_v24, %v6486_v24  ;;  %v836_v39 = vmul.f32 %v6492_v29, %v6492_v29 }
 0x17e   : > { %v837_v21 = vsel %vm722_vm1, %v829_v15, 0.0  ;;  %v838_v22 = vsel %vm722_vm1, %v830_v16, 0.0  ;;  %v840_v26 = vsel %vm722_vm1, %v831_v17, 0.0  ;;  %v842_v34 = vsel %vm722_vm1, %v832_v19, 0.0  ;;  %v4567_v16 = vld [vmem:[%s7696_s5 + $0x40] sm:$0xff]  ;;  %v4568_v17 = vld [vmem:[%s7696_s5 + $0x48] sm:$0xff] }
 0x17f   : > { %v839_v23 = vadd.f32 %v838_v22, %v837_v21  ;;  %v844_v37 = vsel %vm722_vm1, %v833_v25, 0.0  ;;  %v846_v40 = vsel %vm722_vm1, %v834_v30, 0.0  ;;  %v848_v42 = vsel %vm722_vm1, %v835_v36, 0.0  ;;  %v720_v25 = vld [vmem:[%s7695_s4] sm:$0x1] }
 0x180   : > { %v850_v46 = vsel %vm722_vm1, %v836_v39, 0.0  ;;  %v5721_v15 = vpack.c.bf16 %v1063_v9, %v1062_v8  ;;  %v6546_v19 = vpack.c.bf16 %v4568_v17, %v4567_v16 }
 0x181   : > { %v841_v27 = vadd.f32 %v840_v26, %v839_v23 }
 0x182   : > { %5722 = vmatprep.subr.bf16.mxu0 %v5721_v15 }
 0x183   : > { %v843_v35 = vadd.f32 %v842_v34, %v841_v27  ;;  %5724 = vmatpush3.bf16.msra.mxu0 %v5721_v15  ;;  %v4557_v34 = vld [vmem:[%s7695_s4 + $0x1] ss:$0 sm:$0xff] }
 0x184   : > { %5726 = vmatprep.subr.bf16.mxu0 %v6546_v19 }
 0x185   : > { %v845_v38 = vadd.f32 %v844_v37, %v843_v35 }
 0x187   : > { %v847_v41 = vadd.f32 %v846_v40, %v845_v38 }
 0x189   : > { %v849_v43 = vadd.f32 %v848_v42, %v847_v41 }
 0x18b   : > { %v851_v47 = vadd.f32 %v850_v46, %v849_v43 }
 0x18d   : > { %v852_v48 = vrot.slane %v851_v47, 4 }
 0x18f   : > { %v853_v49 = vadd.f32 %v852_v48, %v851_v47 }
 0x191   : > { %v854_v50 = vrot.slane %v853_v49, 2 }
 0x193   : > { %v855_v51 = vadd.f32 %v854_v50, %v853_v49 }
 0x195   : > { %v856_v52 = vrot.slane %v855_v51, 1 }
 0x197   : > { %v857_v53 = vadd.f32 %v856_v52, %v855_v51 }
 0x199   : > { %5166 = vmatmul.mubr.msk.f32.vlgmr.msra.gmra.mrb[0].mxu1 %vm722_vm1, %v857_v53 }
 0x19a   : > { %5463 = vmatprep.mubr.msk.f32.mxu1 %vm6227_vm2, %v6228_v20 }
 0x26c   : > { %v927_v21 = vpop.f32.mrb[0].mxu1 }
 0x26d   : > { %v928_v22 = vadd.f32 1e-06, %v927_v21  ;;  %v5167_v23 = vpop.f32.mrb[1].mxu1 }
 0x26f   : > { %6149 = vrsqrt.f32 %v928_v22 }
 0x279   : > { %v6150_v26 = vpop.eup %6149 }
 0x27a   : > { %v932_v27 = vmul.f32 %v6150_v26, %v720_v25 }
 0x27c   : > { %v936_v30 = vrot.slane %v932_v27, %v6454_v6 }
 0x27e   : > { %v937_v35 = vmul.f32 %v936_v30, %v6458_v10  ;;  %v938_v36 = vmul.f32 %v936_v30, %v6461_v11  ;;  %v939_v37 = vmul.f32 %v936_v30, %v6464_v12  ;;  %v940_v38 = vmul.f32 %v936_v30, %v6467_v13 }
 0x27f   : > { %v941_v39 = vmul.f32 %v936_v30, %v6470_v14  ;;  %v942_v40 = vmul.f32 %v936_v30, %v6479_v18  ;;  %v943_v41 = vmul.f32 %v936_v30, %v6486_v24  ;;  %v944_v42 = vmul.f32 %v936_v30, %v6492_v29 }
 0x280   : > { %v949_v43 = vadd.f32 %v4557_v34, %v937_v35  ;;  %v6564_v46 = vadd.f32 %v4557_v34, %v938_v36  ;;  %v6566_v47 = vadd.f32 %v4557_v34, %v939_v37  ;;  %v6568_v10 = vadd.f32 %v4557_v34, %v940_v38 }
 0x281   : > { %v6570_v11 = vadd.f32 %v4557_v34, %v941_v39  ;;  %v6572_v12 = vadd.f32 %v4557_v34, %v942_v40  ;;  %v6574_v13 = vadd.f32 %v4557_v34, %v943_v41  ;;  %v6576_v14 = vadd.f32 %v4557_v34, %v944_v42 }
 0x282   : > { %v957_v18 = vsub.f32 0.0, %v949_v43  ;;  %v958_v24 = vsub.f32 0.0, %v6564_v46  ;;  %v959_v29 = vsub.f32 0.0, %v6566_v47  ;;  %v960_v48 = vsub.f32 0.0, %v6568_v10 }
 0x283   : > { %v961_v49 = vsub.f32 0.0, %v6570_v11  ;;  %v962_v50 = vsub.f32 0.0, %v6572_v12  ;;  %v963_v51 = vsub.f32 0.0, %v6574_v13  ;;  %v964_v58 = vsub.f32 0.0, %v6576_v14 }
 0x284   : > { %v965_v52 = vmul.f32 1.442695, %v957_v18  ;;  %v967_v53 = vmul.f32 1.442695, %v958_v24  ;;  %v969_v56 = vmul.f32 1.442695, %v959_v29 }
 0x285   : > { %v971_v57 = vmul.f32 1.442695, %v960_v48  ;;  %v973_v60 = vmul.f32 1.442695, %v961_v49  ;;  %v975_v61 = vmul.f32 1.442695, %v962_v50 }
 0x286   : > { %6151 = vpow2.f32 %v965_v52  ;;  %v977_v62 = vmul.f32 1.442695, %v963_v51  ;;  %v979_v63 = vmul.f32 1.442695, %v964_v58  ;;  %v6586_v34 = vadd.s32 8, %v6451_v5 }
 0x287   : > { %6153 = vpow2.f32 %v967_v53  ;;  %v6589_v35 = vadd.s32 16, %v6451_v5  ;;  %v6593_v40 = vadd.s32 24, %v6451_v5  ;;  %v6598_v24 = vadd.s32 32, %v6451_v5 }
 0x288   : > { %6155 = vpow2.f32 %v969_v56  ;;  %v522_v38 = vand.u32 7, %v6586_v34  ;;  %v4601_v34 = vld [vmem:[%s7696_s5 + $0xd0] sm:$0xff] }
 0x289   : > { %6157 = vpow2.f32 %v971_v57  ;;  %v529_v42 = vand.u32 7, %v6589_v35  ;;  %v536_v51 = vand.u32 7, %v6593_v40  ;;  %v4602_v35 = vld [vmem:[%s7696_s5 + $0xd8] sm:$0xff]  ;;  %v4603_v40 = vld [vmem:[%s7696_s5 + $0xe0] sm:$0xff] }
 0x28a   : > { %6159 = vpow2.f32 %v973_v60  ;;  %vm608_vm4 = vcmp.ge.s32.totalorder %v522_v38, 1  ;;  %v4569_v60 = vld [vmem:[%s7696_s5 + $0x50] sm:$0xff]  ;;  %vm632_vm12 = vcmp.le.s32.totalorder %v522_v38, 6 }
 0x28b   : > { %6161 = vpow2.f32 %v975_v61  ;;  %vm609_vm5 = vcmp.ge.s32.totalorder %v529_v42, 1  ;;  %v4570_v61 = vld [vmem:[%s7696_s5 + $0x58] sm:$0xff]  ;;  %vm610_vm6 = vcmp.ge.s32.totalorder %v536_v51, 1  ;;  %vm633_vm13 = vcmp.le.s32.totalorder %v529_v42, 6 }
 0x28c   : > { %6163 = vpow2.f32 %v977_v62  ;;  %v6634_v62 = vsel %vm609_vm5, 1.0, %v6228_v20  ;;  %v6798_v42 = vsel %vm633_vm13, 1.0, %v6228_v20  ;;  %vm634_vm14 = vcmp.le.s32.totalorder %v536_v51, 6 }
 0x28d   : > { %6165 = vpow2.f32 %v979_v63  ;;  %v6640_v63 = vadd.s32 56, %v6451_v5 }
 0x290   : > { %v6152_v0 = vpop.eup %6151 }
 0x291   : > { %v6154_v1 = vpop.eup %6153  ;;  %v981_v3 = vadd.f32 1.0, %v6152_v0 }
 0x292   : > { %v6156_v7 = vpop.eup %6155  ;;  %v982_v8 = vadd.f32 1.0, %v6154_v1 }
 0x293   : > { %v6158_v9 = vpop.eup %6157  ;;  %6167 = vrcp.f32 %v981_v3  ;;  %v983_v15 = vadd.f32 1.0, %v6156_v7  ;;  %v5729_v7 = vpack.c.bf16 %v4570_v61, %v4569_v60  ;;  %v4586_v60 = vld [vmem:[%s7696_s5 + $0x98] sm:$0xff] }
 0x294   : > { %v6160_v16 = vpop.eup %6159  ;;  %6169 = vrcp.f32 %v982_v8  ;;  %v984_v17 = vadd.f32 1.0, %v6158_v9  ;;  %v6656_v9 = vsel %vm610_vm6, 1.0, %v6228_v20 }
 0x295   : > { %v6162_v21 = vpop.eup %6161  ;;  %6171 = vrcp.f32 %v983_v15  ;;  %v985_v22 = vadd.f32 1.0, %v6160_v16  ;;  %v4571_v16 = vld [vmem:[%s7696_s5 + $0x60] sm:$0xff] }
 0x296   : > { %v6164_v23 = vpop.eup %6163  ;;  %6173 = vrcp.f32 %v984_v17  ;;  %v986_v25 = vadd.f32 1.0, %v6162_v21  ;;  %v4572_v17 = vld [vmem:[%s7696_s5 + $0x68] sm:$0xff] }
 0x297   : > { %v6166_v26 = vpop.eup %6165  ;;  %6175 = vrcp.f32 %v985_v22  ;;  %v987_v27 = vadd.f32 1.0, %v6164_v23  ;;  %v564_v23 = vand.u32 7, %v6640_v63  ;;  %v4615_v63 = vld [vmem:[%s7696_s5 + $0x100] sm:$0xff] }
 0x298   : > { %6177 = vrcp.f32 %v986_v25  ;;  %v988_v30 = vadd.f32 1.0, %v6166_v26  ;;  %v5733_v26 = vpack.c.bf16 %v4572_v17, %v4571_v16 }
 0x299   : > { %6179 = vrcp.f32 %v987_v27  ;;  %vm614_vm10 = vcmp.ge.s32.totalorder %v564_v23, 1  ;;  %vm638_vm5 = vcmp.le.s32.totalorder %v564_v23, 6  ;;  %v4616_v23 = vld [vmem:[%s7696_s5 + $0x108] sm:$0xff] }
 0x29a   : > { %6181 = vrcp.f32 %v988_v30 }
 0x29d   : > { %v6168_v36 = vpop.eup %6167 }
 0x29e   : > { %v6170_v37 = vpop.eup %6169  ;;  %v1005_v39 = vmul.f32 %v6168_v36, %v949_v43 }
 0x29f   : > { %v6172_v41 = vpop.eup %6171  ;;  %v1006_v18 = vmul.f32 %v6170_v37, %v6564_v46  ;;  %v6609_v46 = vadd.s32 40, %v6451_v5  ;;  %v4574_v37 = vld [vmem:[%s7696_s5 + $0x78] sm:$0xff] }
 0x2a0   : > { %v6174_v29 = vpop.eup %6173  ;;  %1026 = vst.msk [vmem:[#allocation2 + $0x10] sm:$0xff] %vm722_vm1, %v1005_v39  ;;  %v1007_v48 = vmul.f32 %v6172_v41, %v6566_v47  ;;  %v543_v47 = vand.u32 7, %v6598_v24  ;;  %v4604_v24 = vld [vmem:[%s7696_s5 + $0xe8] sm:$0xff] }
 0x2a1   : > { %v6176_v49 = vpop.eup %6175  ;;  %1027 = vst.msk [vmem:[#allocation2 + $0x18] sm:$0xff] %vm722_vm1, %v1006_v18  ;;  %v1008_v43 = vmul.f32 %v6174_v29, %v6568_v10  ;;  %v6617_v10 = vadd.s32 48, %v6451_v5 }
 0x2a2   : > { %v6178_v50 = vpop.eup %6177  ;;  %1028 = vst.msk [vmem:[#allocation2 + $0x20] sm:$0xff] %vm722_vm1, %v1007_v48  ;;  %v1009_v52 = vmul.f32 %v6176_v49, %v6570_v11  ;;  %v6623_v11 = vsel %vm608_vm4, 1.0, %v6228_v20  ;;  %vm611_vm7 = vcmp.ge.s32.totalorder %v543_v47, 1  ;;  %v6708_v49 = vsel %vm614_vm10, 1.0, %v6228_v20 }
 0x2a3   : > { %v6180_v53 = vpop.eup %6179  ;;  %1029 = vst.msk [vmem:[#allocation2 + $0x28] sm:$0xff] %vm722_vm1, %v1008_v43  ;;  %v1010_v56 = vmul.f32 %v6178_v50, %v6572_v12  ;;  %v6668_v21 = vsel %vm611_vm7, 1.0, %v6228_v20  ;;  %v4583_v50 = vld [vmem:[%s7696_s5 + $0x80] sm:$0xff]  ;;  %vm635_vm15 = vcmp.le.s32.totalorder %v543_v47, 6 }
 0x2a4   : > { %v6182_v57 = vpop.eup %6181  ;;  %1030 = vst.msk [vmem:[#allocation2 + $0x30] sm:$0xff] %vm722_vm1, %v1009_v52  ;;  %v1011_v58 = vmul.f32 %v6180_v53, %v6574_v13  ;;  %v550_v13 = vand.u32 7, %v6609_v46  ;;  %v4584_v52 = vld [vmem:[%s7696_s5 + $0x88] sm:$0xff]  ;;  %v6824_v51 = vsel %vm635_vm15, 1.0, %v6228_v20  ;;  %v4605_v46 = vld [vmem:[%s7696_s5 + $0xf0] sm:$0xff] }
 0x2a5   : > { %1031 = vst.msk [vmem:[#allocation2 + $0x38] sm:$0xff] %vm722_vm1, %v1010_v56  ;;  %v1012_v12 = vmul.f32 %v6182_v57, %v6576_v14  ;;  %v557_v14 = vand.u32 7, %v6617_v10  ;;  %v1201_v56 = vld [vmem:[#allocation2 + $0x8] sm:$0xff]  ;;  %v5741_v57 = vpack.c.bf16 %v4584_v52, %v4583_v50  ;;  %v4606_v10 = vld [vmem:[%s7696_s5 + $0xf8] sm:$0xff] }
 0x2a6   : > { %1032 = vst.msk [vmem:[#allocation2 + $0x40] sm:$0xff] %vm722_vm1, %v1011_v58  ;;  %vm612_vm8 = vcmp.ge.s32.totalorder %v550_v13, 1  ;;  %v4585_v58 = vld [vmem:[%s7696_s5 + $0x90] sm:$0xff]  ;;  %vm636_vm3 = vcmp.le.s32.totalorder %v550_v13, 6 }
 0x2a7   : > { %v6643_v0 = vld [vmem:[#allocation2 + $0xf] sm:$0xff]  ;;  %1033 = vst.msk [vmem:[#allocation2 + $0x48] sm:$0xff] %vm722_vm1, %v1012_v12  ;;  %vm613_vm9 = vcmp.ge.s32.totalorder %v557_v14, 1  ;;  %v6684_v30 = vsel %vm612_vm8, 1.0, %v6228_v20  ;;  %v5745_v61 = vpack.c.bf16 %v4586_v60, %v4585_v58  ;;  %v5761_v60 = vpack.c.bf16 %v4602_v35, %v4601_v34 }
 0x2a8   : > { %v1049_v1 = vmul.f32 %v6623_v11, %v6643_v0  ;;  %v6651_v3 = vld [vmem:[#allocation2 + $0x17] sm:$0xff]  ;;  %v6696_v39 = vsel %vm613_vm9, 1.0, %v6228_v20  ;;  %vm637_vm4 = vcmp.le.s32.totalorder %v557_v14, 6  ;;  %v6862_v34 = vsel %vm638_vm5, 1.0, %v6228_v20 }
 0x2a9   : > { %v1050_v8 = vmul.f32 %v6634_v62, %v6651_v3  ;;  %v6658_v15 = vld [vmem:[#allocation2 + $0x1f] sm:$0xff]  ;;  %v6730_v12 = vld [vmem:[#allocation2 + $0x10] sm:$0xff]  ;;  %v6850_v13 = vsel %vm637_vm4, 1.0, %v6228_v20 }
 0x2aa   : > { %5185 = vmatmul.mubr.msk.f32.vlgmr.msra.gmra.mrb[2].mxu0 %vm722_vm1, %v1049_v1  ;;  %v6670_v22 = vld [vmem:[#allocation2 + $0x27] sm:$0xff]  ;;  %v1051_v25 = vmul.f32 %v6656_v9, %v6658_v15 }
 0x2ab   : > { %5728 = vmatpush3.bf16.msra.mxu0 %v6546_v19  ;;  %5187 = vmatprep.mubr.msk.f32.mxu0 %vm722_vm1, %v1050_v8  ;;  %v1052_v27 = vmul.f32 %v6668_v21, %v6670_v22  ;;  %v6686_v36 = vld [vmem:[#allocation2 + $0x2f] sm:$0xff]  ;;  %v4587_v1 = vld [vmem:[%s7696_s5 + $0xa0] sm:$0xff]  ;;  %v6740_v8 = vld [vmem:[#allocation2 + $0x18] sm:$0xff] }
 0x2ac   : > { %5730 = vmatprep.subr.bf16.mxu0 %v5729_v7  ;;  %v4573_v19 = vld [vmem:[%s7696_s5 + $0x70] sm:$0xff]  ;;  %v1053_v18 = vmul.f32 %v6684_v30, %v6686_v36  ;;  %v6744_v17 = vld [vmem:[#allocation2 + $0x20] sm:$0xff]  ;;  %v6772_v5 = vld [vmem:[#allocation2 + $0x38] sm:$0xff] }
 0x2ad   : > { %v6698_v41 = vld [vmem:[#allocation2 + $0x37] sm:$0xff]  ;;  %v5737_v29 = vpack.c.bf16 %v4574_v37, %v4573_v19  ;;  %v6710_v43 = vld [vmem:[#allocation2 + $0x3f] sm:$0xff]  ;;  %v6826_v47 = vld [vmem:[#allocation2 + $0x29] sm:$0xff] }
 0x2ae   : > { %5188 = vmatmul.mubr.msk.f32.gmra.mrb[4].mxu0 %vm722_vm1, %v1051_v25  ;;  %v1054_v48 = vmul.f32 %v6696_v39, %v6698_v41  ;;  %v1055_v53 = vmul.f32 %v6708_v49, %v6710_v43  ;;  %v4589_v25 = vld [vmem:[%s7696_s5 + $0xb0] sm:$0xff]  ;;  %v6784_v38 = vld [vmem:[#allocation2 + $0x40] sm:$0xff] }
 0x2af   : > { %5732 = vmatpush3.bf16.msra.mxu0 %v5729_v7  ;;  %5190 = vmatprep.mubr.msk.f32.mxu0 %vm722_vm1, %v1052_v27  ;;  %v4588_v7 = vld [vmem:[%s7696_s5 + $0xa8] sm:$0xff]  ;;  %v6760_v37 = vld [vmem:[#allocation2 + $0x30] sm:$0xff]  ;;  %v6852_v14 = vld [vmem:[#allocation2 + $0x39] sm:$0xff] }
 0x2b0   : > { %5734 = vmatprep.subr.bf16.mxu0 %v5733_v26  ;;  %v5749_v16 = vpack.c.bf16 %v4588_v7, %v4587_v1  ;;  %v6754_v27 = vld [vmem:[#allocation2 + $0x28] sm:$0xff]  ;;  %v6812_v1 = vsel %vm634_vm14, 1.0, %v6228_v20 }
 0x2b1   : > { %v6814_v7 = vld [vmem:[#allocation2 + $0x21] sm:$0xff] }
 0x2b2   : > { %5191 = vmatmul.mubr.msk.f32.gmra.mrb[6].mxu0 %vm722_vm1, %v1053_v18  ;;  %v4599_v18 = vld [vmem:[%s7696_s5 + $0xc0] sm:$0xff] }
 0x2b3   : > { %5736 = vmatpush3.bf16.msra.mxu0 %v5733_v26  ;;  %5193 = vmatprep.mubr.msk.f32.mxu0 %vm722_vm1, %v1054_v48  ;;  %v4590_v26 = vld [vmem:[%s7696_s5 + $0xb8] sm:$0xff]  ;;  %v1355_v48 = vld [vmem:[#allocation2 + $0x9] sm:$0xff] }
 0x2b4   : > { %5738 = vmatprep.subr.bf16.mxu0 %v5737_v29  ;;  %v5753_v19 = vpack.c.bf16 %v4590_v26, %v4589_v25  ;;  %v1363_v52 = vmul.f32 %v6775_v59, %v1355_v48  ;;  %v5765_v25 = vpack.c.bf16 %v4604_v24, %v4603_v40  ;;  %v1367_v26 = vmul.f32 %v6824_v51, %v6826_v47  ;;  %v4618_v40 = vld [vmem:[%s7696_s5 + $0x118] sm:$0xff] }
 0x2b5   : > { %v5769_v48 = vpack.c.bf16 %v4606_v10, %v4605_v46  ;;  %v1526_v24 = vmul.f32 %v6623_v11, %v6651_v3  ;;  %v1528_v46 = vmul.f32 %v6656_v9, %v6670_v22 }
 0x2b6   : > { %5194 = vmatmul.mubr.msk.f32.gmra.mrb[8].mxu0 %vm722_vm1, %v1055_v53  ;;  %v6788_v53 = vsel %vm632_vm12, 1.0, %v6228_v20 }
 0x2b7   : > { %5740 = vmatpush3.bf16.msra.mxu0 %v5737_v29  ;;  %5212 = vmatprep.mubr.msk.f32.mxu0 %vm722_vm1, %v1201_v56  ;;  %v4600_v29 = vld [vmem:[%s7696_s5 + $0xc8] sm:$0xff]  ;;  %v6790_v56 = vld [vmem:[#allocation2 + $0x11] sm:$0xff] }
 0x2b8   : > { %5742 = vmatprep.subr.bf16.mxu0 %v5741_v57  ;;  %v5757_v50 = vpack.c.bf16 %v4600_v29, %v4599_v18  ;;  %v1364_v58 = vmul.f32 %v6788_v53, %v6790_v56  ;;  %v6840_v18 = vld [vmem:[#allocation2 + $0x31] sm:$0xff] }
 0x2ba   : > { %5213 = vmatmul.mubr.msk.f32.vlgmr.msra.gmra.mrb[2].mxu0 %vm722_vm1, %v6730_v12 }
 0x2bb   : > { %5744 = vmatpush3.bf16.msra.mxu0 %v5741_v57  ;;  %5215 = vmatprep.mubr.msk.f32.mxu0 %vm722_vm1, %v6740_v8  ;;  %v6800_v57 = vld [vmem:[#allocation2 + $0x19] sm:$0xff] }
 0x2bc   : > { %5746 = vmatprep.subr.bf16.mxu0 %v5745_v61 }
 0x2be   : > { %5216 = vmatmul.mubr.msk.f32.gmra.mrb[4].mxu0 %vm722_vm1, %v6744_v17 }
 0x2bf   : > { %5748 = vmatpush3.bf16.msra.mxu0 %v5745_v61  ;;  %5218 = vmatprep.mubr.msk.f32.mxu0 %vm722_vm1, %v6754_v27  ;;  %v1365_v61 = vmul.f32 %v6798_v42, %v6800_v57 }
 0x2c0   : > { %5750 = vmatprep.subr.bf16.mxu0 %v5749_v16 }
 0x2c2   : > { %5219 = vmatmul.mubr.msk.f32.gmra.mrb[6].mxu0 %vm722_vm1, %v6760_v37 }
 0x2c3   : > { %5752 = vmatpush3.bf16.msra.mxu0 %v5749_v16  ;;  %5221 = vmatprep.mubr.msk.f32.mxu0 %vm722_vm1, %v6772_v5  ;;  %v1366_v16 = vmul.f32 %v6812_v1, %v6814_v7 }
 0x2c4   : > { %5754 = vmatprep.subr.bf16.mxu0 %v5753_v19 }
 0x2c6   : > { %5222 = vmatmul.mubr.msk.f32.gmra.mrb[8].mxu0 %vm722_vm1, %v6784_v38 }
 0x2c7   : > { %5756 = vmatpush3.bf16.msra.mxu0 %v5753_v19  ;;  %5240 = vmatprep.mubr.msk.f32.mxu0 %vm722_vm1, %v1363_v52  ;;  %v6838_v19 = vsel %vm636_vm3, 1.0, %v6228_v20  ;;  %v6864_v52 = vld [vmem:[#allocation2 + $0x41] sm:$0xff] }
 0x2c8   : > { %5758 = vmatprep.subr.bf16.mxu0 %v5757_v50  ;;  %v1368_v29 = vmul.f32 %v6838_v19, %v6840_v18  ;;  %v1370_v35 = vmul.f32 %v6862_v34, %v6864_v52 }
 0x2ca   : > { %5241 = vmatmul.mubr.msk.f32.vlgmr.msra.gmra.mrb[2].mxu0 %vm722_vm1, %v1364_v58  ;;  %v5773_v58 = vpack.c.bf16 %v4616_v23, %v4615_v63  ;;  %v1530_v63 = vmul.f32 %v6684_v30, %v6698_v41 }
 0x2cb   : > { %5760 = vmatpush3.bf16.msra.mxu0 %v5757_v50  ;;  %5243 = vmatprep.mubr.msk.f32.mxu0 %vm722_vm1, %v1365_v61  ;;  %v1369_v50 = vmul.f32 %v6850_v13, %v6852_v14  ;;  %v4617_v61 = vld [vmem:[%s7696_s5 + $0x110] sm:$0xff] }
 0x2cc   : > { %5762 = vmatprep.subr.bf16.mxu0 %v5761_v60 }
 0x2ce   : > { %5244 = vmatmul.mubr.msk.f32.gmra.mrb[4].mxu0 %vm722_vm1, %v1366_v16  ;;  %v5777_v16 = vpack.c.bf16 %v4618_v40, %v4617_v61  ;;  %v4632_v61 = vld [vmem:[%s7696_s5 + $0x148] sm:$0xff] }
 0x2cf   : > { %5764 = vmatpush3.bf16.msra.mxu0 %v5761_v60  ;;  %5246 = vmatprep.mubr.msk.f32.mxu0 %vm722_vm1, %v1367_v26  ;;  %v1525_v60 = vmul.f32 %v6530_v2, %v6643_v0  ;;  %v1527_v0 = vmul.f32 %v6634_v62, %v6658_v15  ;;  %v4620_v26 = vld [vmem:[%s7696_s5 + $0x128] sm:$0xff] }
 0x2d0   : > { %5766 = vmatprep.subr.bf16.mxu0 %v5765_v25 }
 0x2d2   : > { %5247 = vmatmul.mubr.msk.f32.gmra.mrb[6].mxu0 %vm722_vm1, %v1368_v29  ;;  %v1529_v29 = vmul.f32 %v6668_v21, %v6686_v36 }
 0x2d3   : > { %5768 = vmatpush3.bf16.msra.mxu0 %v5765_v25  ;;  %5249 = vmatprep.mubr.msk.f32.mxu0 %vm722_vm1, %v1369_v50  ;;  %v4619_v25 = vld [vmem:[%s7696_s5 + $0x120] sm:$0xff]  ;;  %v4622_v50 = vld [vmem:[%s7696_s5 + $0x138] sm:$0xff] }
 0x2d4   : > { %5770 = vmatprep.subr.bf16.mxu0 %v5769_v48  ;;  %v5781_v10 = vpack.c.bf16 %v4620_v26, %v4619_v25  ;;  %v4635_v26 = vld [vmem:[%s7696_s5 + $0x160] sm:$0xff] }
 0x2d6   : > { %5250 = vmatmul.mubr.msk.f32.gmra.mrb[8].mxu0 %vm722_vm1, %v1370_v35  ;;  %v1531_v35 = vmul.f32 %v6696_v39, %v6710_v43 }
 0x2d7   : > { %5772 = vmatpush3.bf16.msra.mxu0 %v5769_v48  ;;  %5268 = vmatprep.mubr.msk.f32.mxu0 %vm722_vm1, %v1525_v60  ;;  %v4621_v48 = vld [vmem:[%s7696_s5 + $0x130] sm:$0xff]  ;;  %v4631_v60 = vld [vmem:[%s7696_s5 + $0x140] sm:$0xff] }
 0x2d8   : > { %5774 = vmatprep.subr.bf16.mxu0 %v5773_v58  ;;  %v5785_v23 = vpack.c.bf16 %v4622_v50, %v4621_v48  ;;  %v4647_v50 = vld [vmem:[%s7696_s5 + $0x180] sm:$0xff] }
 0x2da   : > { %5269 = vmatmul.mubr.msk.f32.vlgmr.msra.gmra.mrb[2].mxu0 %vm722_vm1, %v1526_v24  ;;  %v5789_v24 = vpack.c.bf16 %v4632_v61, %v4631_v60  ;;  %v1841_v60 = vmul.f32 %v6775_v59, %v6790_v56  ;;  %v4649_v61 = vld [vmem:[%s7696_s5 + $0x190] sm:$0xff]  ;;  %v1843_v56 = vmul.f32 %v6798_v42, %v6814_v7 }
 0x2db   : > { %5776 = vmatpush3.bf16.msra.mxu0 %v5773_v58  ;;  %5271 = vmatprep.mubr.msk.f32.mxu0 %vm722_vm1, %v1527_v0  ;;  %v6914_v58 = vld [vmem:[#allocation2 + $0x47] sm:$0xff]  ;;  %v4634_v0 = vld [vmem:[%s7696_s5 + $0x158] sm:$0xff] }
 0x2dc   : > { %5778 = vmatprep.subr.bf16.mxu0 %v5777_v16  ;;  %v1532_v40 = vmul.f32 %v6708_v49, %v6914_v58 }
 0x2de   : > { %5272 = vmatmul.mubr.msk.f32.gmra.mrb[4].mxu0 %vm722_vm1, %v1528_v46  ;;  %v4636_v46 = vld [vmem:[%s7696_s5 + $0x168] sm:$0xff] }
 0x2df   : > { %5780 = vmatpush3.bf16.msra.mxu0 %v5777_v16  ;;  %5274 = vmatprep.mubr.msk.f32.mxu0 %vm722_vm1, %v1529_v29  ;;  %v4633_v16 = vld [vmem:[%s7696_s5 + $0x150] sm:$0xff]  ;;  %v4638_v29 = vld [vmem:[%s7696_s5 + $0x178] sm:$0xff] }
 0x2e0   : > { %5782 = vmatprep.subr.bf16.mxu0 %v5781_v10  ;;  %v5793_v25 = vpack.c.bf16 %v4634_v0, %v4633_v16  ;;  %v4651_v0 = vld [vmem:[%s7696_s5 + $0x1a0] sm:$0xff] }
 0x2e2   : > { %5275 = vmatmul.mubr.msk.f32.gmra.mrb[6].mxu0 %vm722_vm1, %v1530_v63  ;;  %v4648_v63 = vld [vmem:[%s7696_s5 + $0x188] sm:$0xff] }
 0x2e3   : > { %5784 = vmatpush3.bf16.msra.mxu0 %v5781_v10  ;;  %5277 = vmatprep.mubr.msk.f32.mxu0 %vm722_vm1, %v1531_v35  ;;  %v5797_v10 = vpack.c.bf16 %v4636_v46, %v4635_v26  ;;  %v6965_v35 = vld [vmem:[#allocation2 + $0x48] sm:$0xff]  ;;  %v1844_v26 = vmul.f32 %v6812_v1, %v6826_v47 }
 0x2e4   : > { %5786 = vmatprep.subr.bf16.mxu0 %v5785_v23 }
 0x2e6   : > { %5278 = vmatmul.mubr.msk.f32.gmra.mrb[8].mxu0 %vm722_vm1, %v1532_v40  ;;  %v4650_v40 = vld [vmem:[%s7696_s5 + $0x198] sm:$0xff] }
 0x2e7   : > { %5788 = vmatpush3.bf16.msra.mxu0 %v5785_v23  ;;  %5296 = vmatprep.mubr.msk.f32.mxu0 %vm722_vm1, %v6730_v12  ;;  %v4637_v12 = vld [vmem:[%s7696_s5 + $0x170] sm:$0xff]  ;;  %v5805_v23 = vpack.c.bf16 %v4648_v63, %v4647_v50  ;;  %v5809_v16 = vpack.c.bf16 %v4650_v40, %v4649_v61  ;;  %v1847_v63 = vmul.f32 %v6850_v13, %v6864_v52  ;;  %v4664_v61 = vld [vmem:[%s7696_s5 + $0x1c8] sm:$0xff] }
 0x2e8   : > { %5790 = vmatprep.subr.bf16.mxu0 %v5789_v24  ;;  %v5801_v48 = vpack.c.bf16 %v4638_v29, %v4637_v12  ;;  %v4653_v12 = vld [vmem:[%s7696_s5 + $0x1b0] sm:$0xff]  ;;  %v4654_v29 = vld [vmem:[%s7696_s5 + $0x1b8] sm:$0xff] }
 0x2e9   : > { %v5817_v50 = vpack.c.bf16 %v4654_v29, %v4653_v12  ;;  %v4669_v29 = vld [vmem:[%s7696_s5 + $0x1f0] sm:$0xff] }
 0x2ea   : > { %5297 = vmatmul.mubr.msk.f32.vlgmr.msra.gmra.mrb[2].mxu0 %vm722_vm1, %v6740_v8 }
 0x2eb   : > { %5792 = vmatpush3.bf16.msra.mxu0 %v5789_v24  ;;  %5299 = vmatprep.mubr.msk.f32.mxu0 %vm722_vm1, %v6744_v17  ;;  %v1842_v24 = vmul.f32 %v6788_v53, %v6800_v57 }
 0x2ec   : > { %5794 = vmatprep.subr.bf16.mxu0 %v5793_v25 }
 0x2ee   : > { %5300 = vmatmul.mubr.msk.f32.gmra.mrb[4].mxu0 %vm722_vm1, %v6754_v27 }
 0x2ef   : > { %5796 = vmatpush3.bf16.msra.mxu0 %v5793_v25  ;;  %5302 = vmatprep.mubr.msk.f32.mxu0 %vm722_vm1, %v6760_v37  ;;  %v4652_v25 = vld [vmem:[%s7696_s5 + $0x1a8] sm:$0xff] }
 0x2f0   : > { %5798 = vmatprep.subr.bf16.mxu0 %v5797_v10  ;;  %v5813_v46 = vpack.c.bf16 %v4652_v25, %v4651_v0  ;;  %v4666_v0 = vld [vmem:[%s7696_s5 + $0x1d8] sm:$0xff]  ;;  %v2004_v25 = vmul.f32 %v6623_v11, %v6658_v15  ;;  %v2006_v15 = vmul.f32 %v6656_v9, %v6686_v36  ;;  %v2008_v36 = vmul.f32 %v6684_v30, %v6710_v43 }
 0x2f2   : > { %5303 = vmatmul.mubr.msk.f32.gmra.mrb[6].mxu0 %vm722_vm1, %v6772_v5 }
 0x2f3   : > { %5800 = vmatpush3.bf16.msra.mxu0 %v5797_v10  ;;  %5305 = vmatprep.mubr.msk.f32.mxu0 %vm722_vm1, %v6784_v38  ;;  %v1845_v10 = vmul.f32 %v6824_v51, %v6840_v18 }
 0x2f4   : > { %5802 = vmatprep.subr.bf16.mxu0 %v5801_v48 }
 0x2f6   : > { %5306 = vmatmul.mubr.msk.f32.gmra.mrb[8].mxu0 %vm722_vm1, %v6965_v35 }
 0x2f7   : > { %5804 = vmatpush3.bf16.msra.mxu0 %v5801_v48  ;;  %5324 = vmatprep.mubr.msk.f32.mxu0 %vm722_vm1, %v1841_v60  ;;  %v1846_v48 = vmul.f32 %v6838_v19, %v6852_v14  ;;  %v4663_v60 = vld [vmem:[%s7696_s5 + $0x1c0] sm:$0xff] }
 0x2f8   : > { %5806 = vmatprep.subr.bf16.mxu0 %v5805_v23 }
 0x2fa   : > { %5325 = vmatmul.mubr.msk.f32.vlgmr.msra.gmra.mrb[2].mxu0 %vm722_vm1, %v1842_v24  ;;  %v5821_v24 = vpack.c.bf16 %v4664_v61, %v4663_v60  ;;  %v4679_v60 = vld [vmem:[%s7696_s5 + $0x200] sm:$0xff]  ;;  %v4680_v61 = vld [vmem:[%s7696_s5 + $0x208] sm:$0xff] }
 0x2fb   : > { %5808 = vmatpush3.bf16.msra.mxu0 %v5805_v23  ;;  %5327 = vmatprep.mubr.msk.f32.mxu0 %vm722_vm1, %v1843_v56  ;;  %v7006_v23 = vld [vmem:[#allocation2 + $0x49] sm:$0xff] }
 0x2fc   : > { %5810 = vmatprep.subr.bf16.mxu0 %v5809_v16  ;;  %v1848_v40 = vmul.f32 %v6862_v34, %v7006_v23  ;;  %v4665_v56 = vld [vmem:[%s7696_s5 + $0x1d0] sm:$0xff] }
 0x2fe   : > { %5328 = vmatmul.mubr.msk.f32.gmra.mrb[4].mxu0 %vm722_vm1, %v1844_v26  ;;  %v5825_v26 = vpack.c.bf16 %v4666_v0, %v4665_v56  ;;  %v4683_v56 = vld [vmem:[%s7696_s5 + $0x220] sm:$0xff]  ;;  %v4684_v0 = vld [vmem:[%s7696_s5 + $0x228] sm:$0xff] }
 0x2ff   : > { %5812 = vmatpush3.bf16.msra.mxu0 %v5809_v16  ;;  %5330 = vmatprep.mubr.msk.f32.mxu0 %vm722_vm1, %v1845_v10  ;;  %v2003_v16 = vmul.f32 %v6530_v2, %v6651_v3  ;;  %v2005_v3 = vmul.f32 %v6634_v62, %v6670_v22  ;;  %v4668_v10 = vld [vmem:[%s7696_s5 + $0x1e8] sm:$0xff]  ;;  %v2007_v22 = vmul.f32 %v6668_v21, %v6698_v41 }
 0x300   : > { %5814 = vmatprep.subr.bf16.mxu0 %v5813_v46  ;;  %v2009_v41 = vmul.f32 %v6696_v39, %v6914_v58  ;;  %v4681_v58 = vld [vmem:[%s7696_s5 + $0x210] sm:$0xff] }
 0x302   : > { %5331 = vmatmul.mubr.msk.f32.gmra.mrb[6].mxu0 %vm722_vm1, %v1846_v48  ;;  %v4670_v48 = vld [vmem:[%s7696_s5 + $0x1f8] sm:$0xff] }
 0x303   : > { %5816 = vmatpush3.bf16.msra.mxu0 %v5813_v46  ;;  %5333 = vmatprep.mubr.msk.f32.mxu0 %vm722_vm1, %v1847_v63  ;;  %v4667_v46 = vld [vmem:[%s7696_s5 + $0x1e0] sm:$0xff]  ;;  %v2002_v63 = vld [vmem:[#allocation2 + $0x4f] sm:$0xff] }
 0x304   : > { %5818 = vmatprep.subr.bf16.mxu0 %v5817_v50  ;;  %v5829_v12 = vpack.c.bf16 %v4668_v10, %v4667_v46  ;;  %v2010_v43 = vmul.f32 %v6708_v49, %v2002_v63  ;;  %v2476_v46 = vld [vmem:[%s7698_s7 + $0x10] sm:$0xff]  ;;  %v2477_v10 = vld [vmem:[%s7698_s7 + $0x18] sm:$0xff] }
 0x306   : > { %5334 = vmatmul.mubr.msk.f32.gmra.mrb[8].mxu0 %vm722_vm1, %v1848_v40  ;;  %v5837_v40 = vpack.c.bf16 %v4680_v61, %v4679_v60  ;;  %v2483_v60 = vld [vmem:[%s7698_s7 + $0x48] sm:$0xff]  ;;  %v2484_v61 = vld [vmem:[%s7698_s7 + $0x50] sm:$0xff] }
 0x307   : > { %5820 = vmatpush3.bf16.msra.mxu0 %v5817_v50  ;;  %5352 = vmatprep.mubr.msk.f32.mxu0 %vm722_vm1, %v2003_v16  ;;  %v5833_v50 = vpack.c.bf16 %v4670_v48, %v4669_v29  ;;  %v2318_v48 = vld [vmem:[#allocation2 + $0x51] sm:$0xff] }
 0x308   : > { %5822 = vmatprep.subr.bf16.mxu0 %v5821_v24 }
 0x30a   : > { %5353 = vmatmul.mubr.msk.f32.vlgmr.msra.gmra.mrb[2].mxu0 %vm722_vm1, %v2004_v25  ;;  %v5845_v25 = vpack.c.bf16 %v4684_v0, %v4683_v56  ;;  %v2488_v56 = vld [vmem:[%s7698_s7 + $0x70] sm:$0xff]  ;;  %v2489_v0 = vld [vmem:[%s7698_s7 + $0x78] sm:$0xff] }
 0x30b   : > { %5824 = vmatpush3.bf16.msra.mxu0 %v5821_v24  ;;  %5355 = vmatprep.mubr.msk.f32.mxu0 %vm722_vm1, %v2005_v3  ;;  %v4682_v24 = vld [vmem:[%s7696_s5 + $0x218] sm:$0xff]  ;;  %v2474_v3 = vld [vmem:[%s7698_s7] sm:$0xff] }
 0x30c   : > { %5826 = vmatprep.subr.bf16.mxu0 %v5825_v26  ;;  %v5841_v16 = vpack.c.bf16 %v4682_v24, %v4681_v58  ;;  %v2486_v58 = vld [vmem:[%s7698_s7 + $0x60] sm:$0xff]  ;;  %v2487_v24 = vld [vmem:[%s7698_s7 + $0x68] sm:$0xff] }
 0x30e   : > { %5356 = vmatmul.mubr.msk.f32.gmra.mrb[4].mxu0 %vm722_vm1, %v2006_v15  ;;  %v5857_v15 = vpack.c.bf16 %v2477_v10, %v2476_v46 }
 0x30f   : > { %5828 = vmatpush3.bf16.msra.mxu0 %v5825_v26  ;;  %5358 = vmatprep.mubr.msk.f32.mxu0 %vm722_vm1, %v2007_v22  ;;  %v4686_v26 = vld [vmem:[%s7696_s5 + $0x238] sm:$0xff]  ;;  %v2479_v22 = vld [vmem:[%s7698_s7 + $0x28] sm:$0xff] }
 0x310   : > { %5830 = vmatprep.subr.bf16.mxu0 %v5829_v12 }
 0x312   : > { %5359 = vmatmul.mubr.msk.f32.gmra.mrb[6].mxu0 %vm722_vm1, %v2008_v36  ;;  %v2480_v36 = vld [vmem:[%s7698_s7 + $0x30] sm:$0xff] }
 0x313   : > { %5832 = vmatpush3.bf16.msra.mxu0 %v5829_v12  ;;  %5361 = vmatprep.mubr.msk.f32.mxu0 %vm722_vm1, %v2009_v41  ;;  %v2478_v12 = vld [vmem:[%s7698_s7 + $0x20] sm:$0xff]  ;;  %v2326_v41 = vmul.f32 %v6862_v34, %v2318_v48 }
 0x314   : > { %5834 = vmatprep.subr.bf16.mxu0 %v5833_v50  ;;  %v5860_v29 = vpack.c.bf16 %v2479_v22, %v2478_v12  ;;  %v4558_v22 = vld [vmem:[%s7697_s6] ss:$0 sm:$0xff] }
 0x316   : > { %5362 = vmatmul.mubr.msk.f32.gmra.mrb[8].mxu0 %vm722_vm1, %v2010_v43  ;;  %v2485_v43 = vld [vmem:[%s7698_s7 + $0x58] sm:$0xff] }
 0x317   : > { %5836 = vmatpush3.bf16.msra.mxu0 %v5833_v50  ;;  %5380 = vmatprep.mubr.msk.f32.mxu0 %vm722_vm1, %v6740_v8  ;;  %v4685_v8 = vld [vmem:[%s7696_s5 + $0x230] sm:$0xff]  ;;  %v2325_v50 = vmul.f32 %v6850_v13, %v7006_v23 }
 0x318   : > { %5838 = vmatprep.subr.bf16.mxu0 %v5837_v40 }
 0x31a   : > { %5381 = vmatmul.mubr.msk.f32.vlgmr.msra.gmra.mrb[2].mxu0 %vm722_vm1, %v6744_v17  ;;  %v5849_v17 = vpack.c.bf16 %v4686_v26, %v4685_v8  ;;  %v2473_v8 = vld [vmem:[%s496_s26] sm:$0x1] }
 0x31b   : > { %5840 = vmatpush3.bf16.msra.mxu0 %v5837_v40  ;;  %5383 = vmatprep.mubr.msk.f32.mxu0 %vm722_vm1, %v6754_v27  ;;  %v2164_v27 = vld [vmem:[#allocation2 + $0x50] sm:$0xff]  ;;  %v5869_v40 = vpack.c.bf16 %v2485_v43, %v2484_v61  ;;  %v2572_v26 = vld [vmem:[%s7699_s8] sm:$0xff] }
 0x31c   : > { %5842 = vmatprep.subr.bf16.mxu0 %v5841_v16 }
 0x31e   : > { %5384 = vmatmul.mubr.msk.f32.gmra.mrb[4].mxu0 %vm722_vm1, %v6760_v37  ;;  %v2475_v37 = vld [vmem:[%s7698_s7 + $0x8] sm:$0xff] }
 0x31f   : > { %5844 = vmatpush3.bf16.msra.mxu0 %v5841_v16  ;;  %5386 = vmatprep.mubr.msk.f32.mxu0 %vm722_vm1, %v6772_v5  ;;  %v2319_v5 = vmul.f32 %v6775_v59, %v6800_v57  ;;  %v2321_v57 = vmul.f32 %v6798_v42, %v6826_v47  ;;  %v2323_v47 = vmul.f32 %v6824_v51, %v6852_v14  ;;  %v2481_v14 = vld [vmem:[%s7698_s7 + $0x38] sm:$0xff] }
 0x320   : > { %5846 = vmatprep.subr.bf16.mxu0 %v5845_v25  ;;  %v5863_v63 = vpack.c.bf16 %v2481_v14, %v2480_v36  ;;  %v5872_v16 = vpack.c.bf16 %v2487_v24, %v2486_v58 }
 0x322   : > { %5387 = vmatmul.mubr.msk.f32.gmra.mrb[6].mxu0 %vm722_vm1, %v6784_v38  ;;  %v5854_v38 = vpack.c.bf16 %v2475_v37, %v2474_v3  ;;  %v2575_v37 = vld [vmem:[%s7699_s8 + $0x18] sm:$0xff] }
 0x323   : > { %5848 = vmatpush3.bf16.msra.mxu0 %v5845_v25  ;;  %5389 = vmatprep.mubr.msk.f32.mxu0 %vm722_vm1, %v6965_v35  ;;  %v2320_v35 = vmul.f32 %v6788_v53, %v6814_v7  ;;  %v2322_v7 = vmul.f32 %v6812_v1, %v6840_v18  ;;  %v2324_v18 = vmul.f32 %v6838_v19, %v6864_v52  ;;  %v2482_v52 = vld [vmem:[%s7698_s7 + $0x40] sm:$0xff] }
 0x324   : > { %5850 = vmatprep.subr.bf16.mxu0 %v5849_v17  ;;  %v5866_v23 = vpack.c.bf16 %v2483_v60, %v2482_v52  ;;  %v5875_v25 = vpack.c.bf16 %v2489_v0, %v2488_v56 }
 0x326   : > { %5390 = vmatmul.mubr.msk.f32.gmra.mrb[8].mxu0 %vm722_vm1, %v2164_v27  ;;  %v2574_v27 = vld [vmem:[%s7699_s8 + $0x10] sm:$0xff] }
 0x327   : > { %5852 = vmatpush3.bf16.msra.mxu0 %v5849_v17  ;;  %5408 = vmatprep.mubr.msk.f32.mxu0 %vm722_vm1, %v2319_v5  ;;  %v2573_v17 = vld [vmem:[%s7699_s8 + $0x8] sm:$0xff]  ;;  %v5881_v5 = vpack.c.bf16 %v2575_v37, %v2574_v27 }
 0x328   : > { %5853 = vmatprep.subr.bf16.mxu0 %v6226_v4  ;;  %v5878_v3 = vpack.c.bf16 %v2573_v17, %v2572_v26 }
 0x32a   : > { %5409 = vmatmul.mubr.msk.f32.vlgmr.msra.gmra.mrb[2].mxu0 %vm722_vm1, %v2320_v35  ;;  %5879 = vmatpush3.bf16.msra.mxu1 %v5878_v3 }
 0x32b   : > { %5855 = vmatpush3.bf16.msra.mxu0 %v5854_v38  ;;  %5411 = vmatprep.mubr.msk.f32.mxu0 %vm722_vm1, %v2321_v57 }
 0x32c   : > { %5856 = vmatprep.subr.bf16.mxu0 %v6226_v4  ;;  %5880 = vmatprep.subr.bf16.mxu1 %v6226_v4 }
 0x32e   : > { %5412 = vmatmul.mubr.msk.f32.gmra.mrb[4].mxu0 %vm722_vm1, %v2322_v7  ;;  %5882 = vmatpush3.bf16.msra.mxu1 %v5881_v5 }
 0x32f   : > { %5858 = vmatpush3.bf16.msra.mxu0 %v5857_v15  ;;  %5414 = vmatprep.mubr.msk.f32.mxu0 %vm722_vm1, %v2323_v47 }
 0x330   : > { %5859 = vmatprep.subr.bf16.mxu0 %v6226_v4  ;;  %5883 = vmatprep.subr.bf16.mxu1 %v6226_v4 }
 0x332   : > { %5415 = vmatmul.mubr.msk.f32.gmra.mrb[6].mxu0 %vm722_vm1, %v2324_v18 }
 0x333   : > { %5861 = vmatpush3.bf16.msra.mxu0 %v5860_v29  ;;  %5417 = vmatprep.mubr.msk.f32.mxu0 %vm722_vm1, %v2325_v50 }
 0x334   : > { %5862 = vmatprep.subr.bf16.mxu0 %v6226_v4 }
 0x336   : > { %5418 = vmatmul.mubr.msk.f32.gmra.mrb[8].mxu0 %vm722_vm1, %v2326_v41 }
 0x337   : > { %5864 = vmatpush3.bf16.msra.mxu0 %v5863_v63  ;;  %5452 = vmatprep.mubr.msk.f32.mxu0 %vm6227_vm2, %v6228_v20 }
 0x338   : > { %5865 = vmatprep.subr.bf16.mxu0 %v6226_v4 }
 0x33b   : > { %5867 = vmatpush3.bf16.msra.mxu0 %v5866_v23 }
 0x33c   : > { %5868 = vmatprep.subr.bf16.mxu0 %v6226_v4 }
 0x33f   : > { %5870 = vmatpush3.bf16.msra.mxu0 %v5869_v40 }
 0x340   : > { %5871 = vmatprep.subr.bf16.mxu0 %v6226_v4 }
 0x343   : > { %5873 = vmatpush3.bf16.msra.mxu0 %v5872_v16 }
 0x344   : > { %5874 = vmatprep.subr.bf16.mxu0 %v6226_v4 }
 0x347   : > { %5876 = vmatpush3.bf16.msra.mxu0 %v5875_v25 }
 0x34a   : > { %5453 = vmatmul.mubr.f32.vlgmr.msra.gmra.mrb[10].mxu0 %v2473_v8 }
 0x3fd   : > { %v5410_v38 = vpop.f32.mrb[2].mxu0 }
 0x3fe   : > { %v2426_v35 = vpop.f32.mrb[3].mxu0  ;;  %v5977_v47 = vadd.f32 %v5410_v38, %v4558_v22 }
 0x3ff   : > { %v5978_v48 = vadd.f32 %v4558_v22, %v2426_v35 }
 0x401   : > { %v5413_v46 = vpop.f32.mrb[4].mxu0 }
 0x402   : > { %v2436_v10 = vpop.f32.mrb[5].mxu0  ;;  %v5979_v18 = vadd.f32 %v5413_v46, %v4558_v22 }
 0x403   : > { %v5980_v36 = vadd.f32 %v4558_v22, %v2436_v10 }
 0x405   : > { %v5416_v57 = vpop.f32.mrb[6].mxu0 }
 0x406   : > { %v2446_v15 = vpop.f32.mrb[7].mxu0  ;;  %v5981_v41 = vadd.f32 %v5416_v57, %v4558_v22 }
 0x407   : > { %v5982_v63 = vadd.f32 %v4558_v22, %v2446_v15 }
 0x409   : > { %v5419_v7 = vpop.f32.mrb[8].mxu0 }
 0x40a   : > { %v2456_v12 = vpop.f32.mrb[9].mxu0  ;;  %v5983_v52 = vadd.f32 %v5419_v7, %v4558_v22 }
 0x40b   : > { %v5984_v60 = vadd.f32 %v4558_v22, %v2456_v12 }
 0x41d   : > { %v2556_v29 = vpop.f32.mrb[10].mxu0 }
 0x41e   : > { %v2563_v14 = vrot.slane %v2556_v29, %v6454_v6  ;;  %v5454_v50 = vpop.f32.mrb[11].mxu0 }
 0x420   : > { %v2564_v23 = vadd.f32 %v5978_v48, %v2563_v14  ;;  %v2565_v61 = vadd.f32 %v5977_v47, %v2563_v14  ;;  %v2566_v43 = vadd.f32 %v5980_v36, %v2563_v14  ;;  %v2567_v40 = vadd.f32 %v5979_v18, %v2563_v14 }
 0x421   : > { %v2568_v58 = vadd.f32 %v5982_v63, %v2563_v14  ;;  %v2569_v24 = vadd.f32 %v5981_v41, %v2563_v14  ;;  %v2570_v16 = vadd.f32 %v5984_v60, %v2563_v14  ;;  %v2571_v56 = vadd.f32 %v5983_v52, %v2563_v14 }
 0x422   : > { %v2578_v0 = vsel %vm703_vm0, %v2564_v23, 0.0  ;;  %v2579_v25 = vsel %vm703_vm0, %v2565_v61, 0.0  ;;  %v2581_v26 = vsel %vm703_vm0, %v2566_v43, 0.0  ;;  %v2583_v27 = vsel %vm703_vm0, %v2567_v40, 0.0 }
 0x423   : > { %v2580_v8 = vadd.f32 %v2579_v25, %v2578_v0  ;;  %v2585_v38 = vsel %vm703_vm0, %v2568_v58, 0.0  ;;  %v2587_v46 = vsel %vm703_vm0, %v2569_v24, 0.0  ;;  %v2589_v57 = vsel %vm703_vm0, %v2570_v16, 0.0 }
 0x424   : > { %v2591_v7 = vsel %vm703_vm0, %v2571_v56, 0.0 }
 0x425   : > { %v2582_v17 = vadd.f32 %v2581_v26, %v2580_v8 }
 0x427   : > { %v2584_v37 = vadd.f32 %v2583_v27, %v2582_v17 }
 0x429   : > { %v2586_v35 = vadd.f32 %v2585_v38, %v2584_v37 }
 0x42b   : > { %v2588_v10 = vadd.f32 %v2587_v46, %v2586_v35 }
 0x42d   : > { %v2590_v15 = vadd.f32 %v2589_v57, %v2588_v10 }
 0x42f   : > { %v2592_v12 = vadd.f32 %v2591_v7, %v2590_v15 }
 0x431   : > { %v2593_v22 = vrot.slane %v2592_v12, 4 }
 0x433   : > { %v2594_v47 = vadd.f32 %v2593_v22, %v2592_v12 }
 0x435   : > { %v2595_v29 = vrot.slane %v2594_v47, 2 }
 0x437   : > { %v2596_v48 = vadd.f32 %v2595_v29, %v2594_v47 }
 0x439   : > { %v2597_v18 = vrot.slane %v2596_v48, 1 }
 0x43b   : > { %v2598_v36 = vadd.f32 %v2597_v18, %v2596_v48 }
 0x43d   : > { %5464 = vmatmul.mubr.msk.f32.vlgmr.msra.gmra.mrb[2].mxu1 %vm703_vm0, %v2598_v36 }
 0x43e   : > { %5885 = vmatpush3.bf16.msra.mxu1 %v5878_v3  ;;  %5474 = vmatprep.mubr.msk.f32.mxu1 %vm6227_vm2, %v6228_v20 }
 0x43f   : > { %5886 = vmatprep.subr.bf16.mxu1 %v6226_v4 }
 0x442   : > { %5888 = vmatpush3.bf16.msra.mxu1 %v5881_v5 }
 0x510   : > { %v2668_v14 = vpop.f32.mrb[2].mxu1 }
 0x511   : > { %v2675_v50 = vrot.slane %v2668_v14, %v6454_v6  ;;  %v5465_v41 = vpop.f32.mrb[3].mxu1 }
 0x512   : > { %v2912_v41 = vld [vmem:[%s7701_s10 + $0x8] sm:$0xff] }
 0x513   : > { %v7215_v63 = vsub.f32 %v2564_v23, %v2675_v50  ;;  %v7217_v52 = vsub.f32 %v2565_v61, %v2675_v50  ;;  %v7219_v60 = vsub.f32 %v2566_v43, %v2675_v50  ;;  %v7221_v0 = vsub.f32 %v2567_v40, %v2675_v50 }
 0x514   : > { %v7223_v25 = vsub.f32 %v2568_v58, %v2675_v50  ;;  %v2681_v5 = vsub.f32 %v2569_v24, %v2675_v50  ;;  %v2682_v58 = vsub.f32 %v2570_v16, %v2675_v50  ;;  %v2683_v27 = vsub.f32 %v2571_v56, %v2675_v50  ;;  %v2911_v50 = vld [vmem:[%s7701_s10] sm:$0xff] }
 0x515   : > { %v2684_v20 = vmul.f32 %v7215_v63, %v7215_v63  ;;  %v2685_v4 = vmul.f32 %v7217_v52, %v7217_v52  ;;  %v2686_v3 = vmul.f32 %v7219_v60, %v7219_v60  ;;  %v2687_v23 = vmul.f32 %v7221_v0, %v7221_v0 }
 0x516   : > { %v2688_v8 = vmul.f32 %v7223_v25, %v7223_v25  ;;  %v2689_v37 = vmul.f32 %v2681_v5, %v2681_v5  ;;  %v2690_v35 = vmul.f32 %v2682_v58, %v2682_v58  ;;  %v2691_v57 = vmul.f32 %v2683_v27, %v2683_v27 }
 0x517   : > { %v2692_v61 = vsel %vm703_vm0, %v2684_v20, 0.0  ;;  %v2693_v43 = vsel %vm703_vm0, %v2685_v4, 0.0  ;;  %v2695_v26 = vsel %vm703_vm0, %v2686_v3, 0.0  ;;  %v2697_v38 = vsel %vm703_vm0, %v2687_v23, 0.0  ;;  %v2913_v20 = vld [vmem:[%s7701_s10 + $0x10] sm:$0xff]  ;;  %v2914_v3 = vld [vmem:[%s7701_s10 + $0x18] sm:$0xff] }
 0x518   : > { %v2694_v40 = vadd.f32 %v2693_v43, %v2692_v61  ;;  %v2699_v46 = vsel %vm703_vm0, %v2688_v8, 0.0  ;;  %v2701_v15 = vsel %vm703_vm0, %v2689_v37, 0.0  ;;  %v2703_v16 = vsel %vm703_vm0, %v2690_v35, 0.0  ;;  %v2895_v23 = vld [vmem:[#allocation3 + $0x7] sm:$0xff] }
 0x519   : > { %v2705_v22 = vsel %vm703_vm0, %v2691_v57, 0.0  ;;  %v5889_v4 = vpack.c.bf16 %v2912_v41, %v2911_v50  ;;  %v5893_v61 = vpack.c.bf16 %v2914_v3, %v2913_v20  ;;  %v2903_v43 = vmul.f32 %v6530_v2, %v2895_v23  ;;  %v4708_v8 = vld [vmem:[%s7701_s10 + $0x28] sm:$0xff]  ;;  %v4697_v57 = vld [vmem:[%s7700_s9 + $0x1] ss:$0 sm:$0xff] }
 0x51a   : > { %v2696_v17 = vadd.f32 %v2695_v26, %v2694_v40  ;;  %v4707_v40 = vld [vmem:[%s7701_s10 + $0x20] sm:$0xff] }
 0x51b   : > { %5890 = vmatprep.subr.bf16.mxu1 %v5889_v4  ;;  %v7264_v26 = vpack.c.bf16 %v4708_v8, %v4707_v40 }
 0x51c   : > { %v2698_v24 = vadd.f32 %v2697_v38, %v2696_v17 }
 0x51e   : > { %v2700_v10 = vadd.f32 %v2699_v46, %v2698_v24  ;;  %v2576_v24 = vld [vmem:[%s7700_s9] sm:$0x1] }
 0x520   : > { %v2702_v7 = vadd.f32 %v2701_v15, %v2700_v10 }
 0x522   : > { %v2704_v12 = vadd.f32 %v2703_v16, %v2702_v7 }
 0x524   : > { %v2706_v47 = vadd.f32 %v2705_v22, %v2704_v12 }
 0x526   : > { %v2707_v29 = vrot.slane %v2706_v47, 4 }
 0x528   : > { %v2708_v56 = vadd.f32 %v2707_v29, %v2706_v47 }
 0x52a   : > { %v2709_v48 = vrot.slane %v2708_v56, 2 }
 0x52c   : > { %v2710_v18 = vadd.f32 %v2709_v48, %v2708_v56 }
 0x52e   : > { %v2711_v36 = vrot.slane %v2710_v18, 1 }
 0x530   : > { %v2712_v14 = vadd.f32 %v2711_v36, %v2710_v18 }
 0x532   : > { %5475 = vmatmul.mubr.msk.f32.vlgmr.msra.gmra.mrb[4].mxu1 %vm703_vm0, %v2712_v14 }
 0x533   : > { %5892 = vmatpush3.bf16.msra.mxu1 %v5889_v4  ;;  %5485 = vmatprep.mubr.msk.f32.mxu1 %vm703_vm0, %v2903_v43 }
 0x534   : > { %5894 = vmatprep.subr.bf16.mxu1 %v5893_v61 }
 0x537   : > { %5896 = vmatpush3.bf16.msra.mxu1 %v5893_v61 }
 0x538   : > { %5898 = vmatprep.subr.bf16.mxu1 %v7264_v26 }
 0x605   : > { %v2782_v17 = vpop.f32.mrb[4].mxu1 }
 0x606   : > { %v2783_v37 = vadd.f32 1e-06, %v2782_v17  ;;  %v5476_v38 = vpop.f32.mrb[5].mxu1 }
 0x608   : > { %6183 = vrsqrt.f32 %v2783_v37 }
 0x612   : > { %v6184_v35 = vpop.eup %6183 }
 0x613   : > { %v2787_v46 = vmul.f32 %v6184_v35, %v2576_v24 }
 0x615   : > { %v2791_v10 = vrot.slane %v2787_v46, %v6454_v6 }
 0x617   : > { %v2792_v15 = vmul.f32 %v2791_v10, %v7215_v63  ;;  %v2793_v7 = vmul.f32 %v2791_v10, %v7217_v52  ;;  %v2794_v16 = vmul.f32 %v2791_v10, %v7219_v60  ;;  %v2795_v12 = vmul.f32 %v2791_v10, %v7221_v0 }
 0x618   : > { %v2796_v22 = vmul.f32 %v2791_v10, %v7223_v25  ;;  %v2797_v47 = vmul.f32 %v2791_v10, %v2681_v5  ;;  %v2798_v29 = vmul.f32 %v2791_v10, %v2682_v58  ;;  %v2799_v56 = vmul.f32 %v2791_v10, %v2683_v27 }
 0x619   : > { %v2804_v48 = vadd.f32 %v4697_v57, %v2792_v15  ;;  %v2805_v18 = vadd.f32 %v4697_v57, %v2793_v7  ;;  %v2806_v6 = vadd.f32 %v4697_v57, %v2794_v16  ;;  %v7279_v36 = vadd.f32 %v4697_v57, %v2795_v12 }
 0x61a   : > { %v7281_v14 = vadd.f32 %v4697_v57, %v2796_v22  ;;  %v7283_v50 = vadd.f32 %v4697_v57, %v2797_v47  ;;  %v7285_v63 = vadd.f32 %v4697_v57, %v2798_v29  ;;  %v7287_v52 = vadd.f32 %v4697_v57, %v2799_v56 }
 0x61b   : > { %v2812_v60 = vsub.f32 0.0, %v2804_v48  ;;  %v2813_v0 = vsub.f32 0.0, %v2805_v18  ;;  %v2814_v41 = vsub.f32 0.0, %v2806_v6  ;;  %v2815_v25 = vsub.f32 0.0, %v7279_v36 }
 0x61c   : > { %v2816_v5 = vsub.f32 0.0, %v7281_v14  ;;  %v2817_v58 = vsub.f32 0.0, %v7283_v50  ;;  %v2818_v27 = vsub.f32 0.0, %v7285_v63  ;;  %v2819_v61 = vsub.f32 0.0, %v7287_v52 }
 0x61d   : > { %v2820_v20 = vmul.f32 1.442695, %v2812_v60  ;;  %v2822_v4 = vmul.f32 1.442695, %v2813_v0  ;;  %v2824_v3 = vmul.f32 1.442695, %v2814_v41 }
 0x61e   : > { %v2826_v23 = vmul.f32 1.442695, %v2815_v25  ;;  %v2828_v43 = vmul.f32 1.442695, %v2816_v5  ;;  %v2830_v40 = vmul.f32 1.442695, %v2817_v58 }
 0x61f   : > { %6185 = vpow2.f32 %v2820_v20  ;;  %v2832_v8 = vmul.f32 1.442695, %v2818_v27  ;;  %v2834_v17 = vmul.f32 1.442695, %v2819_v61 }
 0x620   : > { %6187 = vpow2.f32 %v2822_v4 }
 0x621   : > { %6189 = vpow2.f32 %v2824_v3 }
 0x622   : > { %6191 = vpow2.f32 %v2826_v23 }
 0x623   : > { %6193 = vpow2.f32 %v2828_v43 }
 0x624   : > { %6195 = vpow2.f32 %v2830_v40  ;;  %v4709_v40 = vld [vmem:[%s7701_s10 + $0x30] sm:$0xff] }
 0x625   : > { %6197 = vpow2.f32 %v2832_v8 }
 0x626   : > { %6199 = vpow2.f32 %v2834_v17 }
 0x629   : > { %v6186_v37 = vpop.eup %6185 }
 0x62a   : > { %v6188_v38 = vpop.eup %6187  ;;  %v2836_v24 = vadd.f32 1.0, %v6186_v37 }
 0x62b   : > { %v6190_v35 = vpop.eup %6189  ;;  %v2837_v46 = vadd.f32 1.0, %v6188_v38 }
 0x62c   : > { %v6192_v10 = vpop.eup %6191  ;;  %6201 = vrcp.f32 %v2836_v24  ;;  %v2838_v57 = vadd.f32 1.0, %v6190_v35  ;;  %v4720_v24 = vld [vmem:[%s7701_s10 + $0x48] sm:$0xff] }
 0x62d   : > { %v6194_v15 = vpop.eup %6193  ;;  %6203 = vrcp.f32 %v2837_v46  ;;  %v2839_v7 = vadd.f32 1.0, %v6192_v10 }
 0x62e   : > { %v6196_v16 = vpop.eup %6195  ;;  %6205 = vrcp.f32 %v2838_v57  ;;  %v2840_v12 = vadd.f32 1.0, %v6194_v15 }
 0x62f   : > { %v6198_v22 = vpop.eup %6197  ;;  %6207 = vrcp.f32 %v2839_v7  ;;  %v2841_v47 = vadd.f32 1.0, %v6196_v16 }
 0x630   : > { %v6200_v29 = vpop.eup %6199  ;;  %6209 = vrcp.f32 %v2840_v12  ;;  %v2842_v56 = vadd.f32 1.0, %v6198_v22 }
 0x631   : > { %6211 = vrcp.f32 %v2841_v47  ;;  %v2843_v60 = vadd.f32 1.0, %v6200_v29  ;;  %v3052_v47 = vld [vmem:[#allocation3 + $0x8] sm:$0xff]  ;;  %v4721_v29 = vld [vmem:[%s7701_s10 + $0x50] sm:$0xff] }
 0x632   : > { %6213 = vrcp.f32 %v2842_v56  ;;  %v4722_v56 = vld [vmem:[%s7701_s10 + $0x58] sm:$0xff] }
 0x633   : > { %6215 = vrcp.f32 %v2843_v60  ;;  %v5909_v60 = vpack.c.bf16 %v4722_v56, %v4721_v29 }
 0x636   : > { %v6202_v0 = vpop.eup %6201 }
 0x637   : > { %v6204_v41 = vpop.eup %6203  ;;  %v2860_v25 = vmul.f32 %v6202_v0, %v2804_v48 }
 0x638   : > { %v6206_v5 = vpop.eup %6205  ;;  %v2861_v58 = vmul.f32 %v6204_v41, %v2805_v18  ;;  %v4731_v41 = vld [vmem:[%s7701_s10 + $0x60] sm:$0xff] }
 0x639   : > { %v6208_v27 = vpop.eup %6207  ;;  %2881 = vst.msk [vmem:[#allocation3 + $0x10] sm:$0xff] %vm703_vm0, %v2860_v25  ;;  %v2862_v20 = vmul.f32 %v6206_v5, %v2806_v6  ;;  %v4732_v25 = vld [vmem:[%s7701_s10 + $0x68] sm:$0xff] }
 0x63a   : > { %v6210_v4 = vpop.eup %6209  ;;  %2882 = vst.msk [vmem:[#allocation3 + $0x18] sm:$0xff] %vm703_vm0, %v2861_v58  ;;  %v2863_v3 = vmul.f32 %v6208_v27, %v7279_v36  ;;  %v4710_v36 = vld [vmem:[%s7701_s10 + $0x38] sm:$0xff]  ;;  %v5913_v58 = vpack.c.bf16 %v4732_v25, %v4731_v41  ;;  %v4745_v41 = vld [vmem:[%s7701_s10 + $0x90] sm:$0xff] }
 0x63b   : > { %v6212_v23 = vpop.eup %6211  ;;  %2883 = vst.msk [vmem:[#allocation3 + $0x20] sm:$0xff] %vm703_vm0, %v2862_v20  ;;  %v2864_v61 = vmul.f32 %v6210_v4, %v7281_v14  ;;  %v5901_v17 = vpack.c.bf16 %v4710_v36, %v4709_v40  ;;  %v4746_v25 = vld [vmem:[%s7701_s10 + $0x98] sm:$0xff] }
 0x63c   : > { %v6214_v43 = vpop.eup %6213  ;;  %2884 = vst.msk [vmem:[#allocation3 + $0x28] sm:$0xff] %vm703_vm0, %v2863_v3  ;;  %v2865_v48 = vmul.f32 %v6212_v23, %v7283_v50 }
 0x63d   : > { %v6216_v18 = vpop.eup %6215  ;;  %2885 = vst.msk [vmem:[#allocation3 + $0x30] sm:$0xff] %vm703_vm0, %v2864_v61  ;;  %v2866_v6 = vmul.f32 %v6214_v43, %v7285_v63  ;;  %v4733_v61 = vld [vmem:[%s7701_s10 + $0x70] sm:$0xff] }
 0x63e   : > { %2886 = vst.msk [vmem:[#allocation3 + $0x38] sm:$0xff] %vm703_vm0, %v2865_v48  ;;  %v2867_v14 = vmul.f32 %v6216_v18, %v7287_v52  ;;  %v4719_v52 = vld [vmem:[%s7701_s10 + $0x40] sm:$0xff] }
 0x63f   : > { %2887 = vst.msk [vmem:[#allocation3 + $0x40] sm:$0xff] %vm703_vm0, %v2866_v6  ;;  %v5905_v10 = vpack.c.bf16 %v4720_v24, %v4719_v52  ;;  %v4734_v6 = vld [vmem:[%s7701_s10 + $0x78] sm:$0xff]  ;;  %v4744_v52 = vld [vmem:[%s7701_s10 + $0x88] sm:$0xff] }
 0x640   : > { %v7312_v50 = vld [vmem:[#allocation3 + $0xf] sm:$0xff]  ;;  %2888 = vst.msk [vmem:[#allocation3 + $0x48] sm:$0xff] %vm703_vm0, %v2867_v14  ;;  %v5917_v14 = vpack.c.bf16 %v4734_v6, %v4733_v61 }
 0x641   : > { %v2904_v63 = vmul.f32 %v6623_v11, %v7312_v50  ;;  %v7317_v8 = vld [vmem:[#allocation3 + $0x17] sm:$0xff]  ;;  %v3202_v23 = vld [vmem:[#allocation3 + $0x9] sm:$0xff] }
 0x642   : > { %v2905_v37 = vmul.f32 %v6634_v62, %v7317_v8  ;;  %v7321_v38 = vld [vmem:[#allocation3 + $0x1f] sm:$0xff]  ;;  %v7362_v0 = vld [vmem:[#allocation3 + $0x10] sm:$0xff]  ;;  %v3210_v48 = vmul.f32 %v6775_v59, %v3202_v23  ;;  %v5925_v23 = vpack.c.bf16 %v4746_v25, %v4745_v41 }
 0x643   : > { %5486 = vmatmul.mubr.msk.f32.vlgmr.msra.gmra.mrb[6].mxu1 %vm703_vm0, %v2904_v63  ;;  %v7330_v35 = vld [vmem:[#allocation3 + $0x27] sm:$0xff]  ;;  %v2906_v46 = vmul.f32 %v6656_v9, %v7321_v38  ;;  %v7372_v5 = vld [vmem:[#allocation3 + $0x18] sm:$0xff]  ;;  %v3370_v61 = vmul.f32 %v6634_v62, %v7321_v38  ;;  %v4769_v25 = vld [vmem:[%s7701_s10 + $0xd0] sm:$0xff] }
 0x644   : > { %5900 = vmatpush3.bf16.msra.mxu1 %v7264_v26  ;;  %5488 = vmatprep.mubr.msk.f32.mxu1 %vm703_vm0, %v2905_v37  ;;  %v2907_v57 = vmul.f32 %v6668_v21, %v7330_v35  ;;  %v7338_v15 = vld [vmem:[#allocation3 + $0x2f] sm:$0xff]  ;;  %v7376_v27 = vld [vmem:[#allocation3 + $0x20] sm:$0xff]  ;;  %v3371_v6 = vmul.f32 %v6656_v9, %v7330_v35 }
 0x645   : > { %5902 = vmatprep.subr.bf16.mxu1 %v5901_v17  ;;  %v7341_v7 = vld [vmem:[#allocation3 + $0x37] sm:$0xff]  ;;  %v2908_v26 = vmul.f32 %v6684_v30, %v7338_v15  ;;  %v7380_v20 = vld [vmem:[#allocation3 + $0x28] sm:$0xff]  ;;  %v4743_v37 = vld [vmem:[%s7701_s10 + $0x80] sm:$0xff] }
 0x646   : > { %v2909_v16 = vmul.f32 %v6696_v39, %v7341_v7  ;;  %v7348_v12 = vld [vmem:[#allocation3 + $0x3f] sm:$0xff]  ;;  %v7384_v4 = vld [vmem:[#allocation3 + $0x30] sm:$0xff] }
 0x647   : > { %5489 = vmatmul.mubr.msk.f32.gmra.mrb[8].mxu1 %vm703_vm0, %v2906_v46  ;;  %v2910_v22 = vmul.f32 %v6708_v49, %v7348_v12  ;;  %v7388_v3 = vld [vmem:[#allocation3 + $0x38] sm:$0xff]  ;;  %v7395_v43 = vld [vmem:[#allocation3 + $0x40] sm:$0xff]  ;;  %v7421_v24 = vld [vmem:[#allocation3 + $0x29] sm:$0xff] }
 0x648   : > { %5491 = vmatprep.mubr.msk.f32.mxu1 %vm703_vm0, %v2907_v57  ;;  %5904 = vmatpush3.bf16.msra.mxu1 %v5901_v17  ;;  %v7398_v18 = vld [vmem:[#allocation3 + $0x11] sm:$0xff]  ;;  %v7405_v40 = vld [vmem:[#allocation3 + $0x19] sm:$0xff]  ;;  %v7412_v17 = vld [vmem:[#allocation3 + $0x21] sm:$0xff]  ;;  %v3214_v57 = vmul.f32 %v6824_v51, %v7421_v24 }
 0x649   : > { %5906 = vmatprep.subr.bf16.mxu1 %v5905_v10  ;;  %v3211_v36 = vmul.f32 %v6788_v53, %v7398_v18  ;;  %v3212_v63 = vmul.f32 %v6798_v42, %v7405_v40  ;;  %v3213_v46 = vmul.f32 %v6812_v1, %v7412_v17  ;;  %v7438_v29 = vld [vmem:[#allocation3 + $0x41] sm:$0xff]  ;;  %v3676_v41 = vmul.f32 %v6775_v59, %v7398_v18 }
 0x64a   : > { %v3217_v56 = vmul.f32 %v6862_v34, %v7438_v29  ;;  %v3678_v18 = vmul.f32 %v6798_v42, %v7412_v17 }
 0x64b   : > { %5492 = vmatmul.mubr.msk.f32.gmra.mrb[10].mxu1 %vm703_vm0, %v2908_v26  ;;  %v7428_v26 = vld [vmem:[#allocation3 + $0x31] sm:$0xff] }
 0x64c   : > { %5494 = vmatprep.mubr.msk.f32.mxu1 %vm703_vm0, %v2909_v16  ;;  %v7431_v16 = vld [vmem:[#allocation3 + $0x39] sm:$0xff] }
 0x64f   : > { %5495 = vmatmul.mubr.msk.f32.gmra.mrb[12].mxu1 %vm703_vm0, %v2910_v22  ;;  %v3215_v22 = vmul.f32 %v6838_v19, %v7428_v26 }
 0x650   : > { %5505 = vmatprep.mubr.msk.f32.mxu1 %vm703_vm0, %v3052_v47  ;;  %v3216_v47 = vmul.f32 %v6850_v13, %v7431_v16 }
 0x653   : > { %5506 = vmatmul.mubr.msk.f32.vlgmr.msra.gmra.mrb[6].mxu1 %vm703_vm0, %v7362_v0 }
 0x654   : > { %5908 = vmatpush3.bf16.msra.mxu1 %v5905_v10  ;;  %5508 = vmatprep.mubr.msk.f32.mxu1 %vm703_vm0, %v7372_v5  ;;  %v5921_v10 = vpack.c.bf16 %v4744_v52, %v4743_v37  ;;  %v3374_v37 = vmul.f32 %v6696_v39, %v7348_v12  ;;  %v7476_v52 = vld [vmem:[#allocation3 + $0x47] sm:$0xff] }
 0x655   : > { %5910 = vmatprep.subr.bf16.mxu1 %v5909_v60 }
 0x657   : > { %5509 = vmatmul.mubr.msk.f32.gmra.mrb[8].mxu1 %vm703_vm0, %v7376_v27 }
 0x658   : > { %5511 = vmatprep.mubr.msk.f32.mxu1 %vm703_vm0, %v7380_v20  ;;  %5912 = vmatpush3.bf16.msra.mxu1 %v5909_v60  ;;  %v3368_v60 = vmul.f32 %v6530_v2, %v7312_v50  ;;  %v4755_v50 = vld [vmem:[%s7701_s10 + $0xa0] sm:$0xff] }
 0x659   : > { %5914 = vmatprep.subr.bf16.mxu1 %v5913_v58 }
 0x65b   : > { %5512 = vmatmul.mubr.msk.f32.gmra.mrb[10].mxu1 %vm703_vm0, %v7384_v4 }
 0x65c   : > { %5514 = vmatprep.mubr.msk.f32.mxu1 %vm703_vm0, %v7388_v3 }
 0x65f   : > { %5515 = vmatmul.mubr.msk.f32.gmra.mrb[12].mxu1 %vm703_vm0, %v7395_v43 }
 0x660   : > { %5525 = vmatprep.mubr.msk.f32.mxu1 %vm703_vm0, %v3210_v48  ;;  %v4756_v48 = vld [vmem:[%s7701_s10 + $0xa8] sm:$0xff] }
 0x663   : > { %5526 = vmatmul.mubr.msk.f32.vlgmr.msra.gmra.mrb[6].mxu1 %vm703_vm0, %v3211_v36  ;;  %v5929_v36 = vpack.c.bf16 %v4756_v48, %v4755_v50  ;;  %v4779_v50 = vld [vmem:[%s7701_s10 + $0xe0] sm:$0xff]  ;;  %v4780_v48 = vld [vmem:[%s7701_s10 + $0xe8] sm:$0xff] }
 0x664   : > { %5916 = vmatpush3.bf16.msra.mxu1 %v5913_v58  ;;  %5528 = vmatprep.mubr.msk.f32.mxu1 %vm703_vm0, %v3212_v63  ;;  %v3369_v58 = vmul.f32 %v6623_v11, %v7317_v8  ;;  %v3373_v63 = vmul.f32 %v6684_v30, %v7341_v7 }
 0x665   : > { %5918 = vmatprep.subr.bf16.mxu1 %v5917_v14 }
 0x667   : > { %5529 = vmatmul.mubr.msk.f32.gmra.mrb[8].mxu1 %vm703_vm0, %v3213_v46  ;;  %v3375_v46 = vmul.f32 %v6708_v49, %v7476_v52 }
 0x668   : > { %5531 = vmatprep.mubr.msk.f32.mxu1 %vm703_vm0, %v3214_v57  ;;  %5920 = vmatpush3.bf16.msra.mxu1 %v5917_v14  ;;  %v3372_v14 = vmul.f32 %v6668_v21, %v7338_v15  ;;  %v4758_v57 = vld [vmem:[%s7701_s10 + $0xb8] sm:$0xff] }
 0x669   : > { %5922 = vmatprep.subr.bf16.mxu1 %v5921_v10 }
 0x66b   : > { %5532 = vmatmul.mubr.msk.f32.gmra.mrb[10].mxu1 %vm703_vm0, %v3215_v22 }
 0x66c   : > { %5534 = vmatprep.mubr.msk.f32.mxu1 %vm703_vm0, %v3216_v47  ;;  %v4767_v47 = vld [vmem:[%s7701_s10 + $0xc0] sm:$0xff] }
 0x66f   : > { %5535 = vmatmul.mubr.msk.f32.gmra.mrb[12].mxu1 %vm703_vm0, %v3217_v56  ;;  %v4768_v56 = vld [vmem:[%s7701_s10 + $0xc8] sm:$0xff] }
 0x670   : > { %5545 = vmatprep.mubr.msk.f32.mxu1 %vm703_vm0, %v3368_v60  ;;  %v5937_v60 = vpack.c.bf16 %v4768_v56, %v4767_v47  ;;  %v4782_v47 = vld [vmem:[%s7701_s10 + $0xf8] sm:$0xff]  ;;  %v3835_v56 = vmul.f32 %v6623_v11, %v7321_v38  ;;  %v3837_v11 = vmul.f32 %v6656_v9, %v7338_v15 }
 0x671   : > { %v4794_v15 = vld [vmem:[%s7701_s10 + $0x118] sm:$0xff] }
 0x673   : > { %5546 = vmatmul.mubr.msk.f32.vlgmr.msra.gmra.mrb[6].mxu1 %vm703_vm0, %v3369_v58  ;;  %v4770_v58 = vld [vmem:[%s7701_s10 + $0xd8] sm:$0xff] }
 0x674   : > { %5924 = vmatpush3.bf16.msra.mxu1 %v5921_v10  ;;  %5548 = vmatprep.mubr.msk.f32.mxu1 %vm703_vm0, %v3370_v61  ;;  %v4757_v10 = vld [vmem:[%s7701_s10 + $0xb0] sm:$0xff]  ;;  %v5941_v61 = vpack.c.bf16 %v4770_v58, %v4769_v25  ;;  %v3840_v25 = vmul.f32 %v6696_v39, %v7476_v52  ;;  %v4292_v39 = vld [vmem:[%s7703_s12] sm:$0xff]  ;;  %v4299_v52 = vld [vmem:[%s7703_s12 + $0x38] sm:$0xff] }
 0x675   : > { %5926 = vmatprep.subr.bf16.mxu1 %v5925_v23  ;;  %v5933_v22 = vpack.c.bf16 %v4758_v57, %v4757_v10  ;;  %v3834_v57 = vmul.f32 %v6530_v2, %v7317_v8  ;;  %v4791_v2 = vld [vmem:[%s7701_s10 + $0x100] sm:$0xff]  ;;  %v4792_v8 = vld [vmem:[%s7701_s10 + $0x108] sm:$0xff] }
 0x676   : > { %v5953_v38 = vpack.c.bf16 %v4792_v8, %v4791_v2  ;;  %v3833_v58 = vld [vmem:[#allocation3 + $0x4f] sm:$0xff] }
 0x677   : > { %5549 = vmatmul.mubr.msk.f32.gmra.mrb[8].mxu1 %vm703_vm0, %v3371_v6  ;;  %v3679_v6 = vmul.f32 %v6812_v1, %v7421_v24  ;;  %v3841_v9 = vmul.f32 %v6708_v49, %v3833_v58  ;;  %v4293_v49 = vld [vmem:[%s7703_s12 + $0x8] sm:$0xff] }
 0x678   : > { %5551 = vmatprep.mubr.msk.f32.mxu1 %vm703_vm0, %v3372_v14  ;;  %5928 = vmatpush3.bf16.msra.mxu1 %v5925_v23  ;;  %v3677_v23 = vmul.f32 %v6788_v53, %v7405_v40  ;;  %v3680_v14 = vmul.f32 %v6824_v51, %v7428_v26 }
 0x679   : > { %5930 = vmatprep.subr.bf16.mxu1 %v5929_v36 }
 0x67b   : > { %5552 = vmatmul.mubr.msk.f32.gmra.mrb[10].mxu1 %vm703_vm0, %v3373_v63  ;;  %v3681_v63 = vmul.f32 %v6838_v19, %v7431_v16 }
 0x67c   : > { %5554 = vmatprep.mubr.msk.f32.mxu1 %vm703_vm0, %v3374_v37  ;;  %v3682_v37 = vmul.f32 %v6850_v13, %v7438_v29 }
 0x67f   : > { %5555 = vmatmul.mubr.msk.f32.gmra.mrb[12].mxu1 %vm703_vm0, %v3375_v46  ;;  %v7544_v46 = vld [vmem:[#allocation3 + $0x49] sm:$0xff] }
 0x680   : > { %5565 = vmatprep.mubr.msk.f32.mxu1 %vm703_vm0, %v7362_v0  ;;  %v7509_v0 = vld [vmem:[#allocation3 + $0x48] sm:$0xff]  ;;  %v3683_v10 = vmul.f32 %v6862_v34, %v7544_v46 }
 0x683   : > { %5566 = vmatmul.mubr.msk.f32.vlgmr.msra.gmra.mrb[6].mxu1 %vm703_vm0, %v7372_v5 }
 0x684   : > { %5932 = vmatpush3.bf16.msra.mxu1 %v5929_v36  ;;  %5568 = vmatprep.mubr.msk.f32.mxu1 %vm703_vm0, %v7376_v27  ;;  %v5945_v36 = vpack.c.bf16 %v4780_v48, %v4779_v50 }
 0x685   : > { %5934 = vmatprep.subr.bf16.mxu1 %v5933_v22 }
 0x687   : > { %5569 = vmatmul.mubr.msk.f32.gmra.mrb[8].mxu1 %vm703_vm0, %v7380_v20 }
 0x688   : > { %5571 = vmatprep.mubr.msk.f32.mxu1 %vm703_vm0, %v7384_v4  ;;  %5936 = vmatpush3.bf16.msra.mxu1 %v5933_v22  ;;  %v4781_v22 = vld [vmem:[%s7701_s10 + $0xf0] sm:$0xff] }
 0x689   : > { %5938 = vmatprep.subr.bf16.mxu1 %v5937_v60 }
 0x68b   : > { %5572 = vmatmul.mubr.msk.f32.gmra.mrb[10].mxu1 %vm703_vm0, %v7388_v3 }
 0x68c   : > { %5574 = vmatprep.mubr.msk.f32.mxu1 %vm703_vm0, %v7395_v43 }
 0x68f   : > { %5575 = vmatmul.mubr.msk.f32.gmra.mrb[12].mxu1 %vm703_vm0, %v7509_v0 }
 0x690   : > { %5585 = vmatprep.mubr.msk.f32.mxu1 %vm703_vm0, %v3676_v41  ;;  %v3836_v41 = vmul.f32 %v6634_v62, %v7330_v35  ;;  %v3838_v62 = vmul.f32 %v6668_v21, %v7341_v7  ;;  %v3839_v35 = vmul.f32 %v6684_v30, %v7348_v12  ;;  %v4793_v21 = vld [vmem:[%s7701_s10 + $0x110] sm:$0xff]  ;;  %v5961_v7 = vpack.c.bf16 %v4293_v49, %v4292_v39 }
 0x691   : > { %v5957_v30 = vpack.c.bf16 %v4794_v15, %v4793_v21  ;;  %v3991_v12 = vld [vmem:[#allocation3 + $0x50] sm:$0xff] }
 0x693   : > { %5586 = vmatmul.mubr.msk.f32.vlgmr.msra.gmra.mrb[6].mxu1 %vm703_vm0, %v3677_v23 }
 0x694   : > { %5940 = vmatpush3.bf16.msra.mxu1 %v5937_v60  ;;  %5588 = vmatprep.mubr.msk.f32.mxu1 %vm703_vm0, %v3678_v18  ;;  %v5949_v60 = vpack.c.bf16 %v4782_v47, %v4781_v22 }
 0x695   : > { %5942 = vmatprep.subr.bf16.mxu1 %v5941_v61 }
 0x697   : > { %5589 = vmatmul.mubr.msk.f32.gmra.mrb[8].mxu1 %vm703_vm0, %v3679_v6 }
 0x698   : > { %5591 = vmatprep.mubr.msk.f32.mxu1 %vm703_vm0, %v3680_v14  ;;  %5944 = vmatpush3.bf16.msra.mxu1 %v5941_v61 }
 0x699   : > { %5946 = vmatprep.subr.bf16.mxu1 %v5945_v36 }
 0x69b   : > { %5592 = vmatmul.mubr.msk.f32.gmra.mrb[10].mxu1 %vm703_vm0, %v3681_v63 }
 0x69c   : > { %5594 = vmatprep.mubr.msk.f32.mxu1 %vm703_vm0, %v3682_v37 }
 0x69f   : > { %5595 = vmatmul.mubr.msk.f32.gmra.mrb[12].mxu1 %vm703_vm0, %v3683_v10 }
 0x6a0   : > { %5605 = vmatprep.mubr.msk.f32.mxu1 %vm703_vm0, %v3834_v57 }
 0x6a3   : > { %5606 = vmatmul.mubr.msk.f32.vlgmr.msra.gmra.mrb[6].mxu1 %vm703_vm0, %v3835_v56 }
 0x6a4   : > { %5948 = vmatpush3.bf16.msra.mxu1 %v5945_v36  ;;  %5608 = vmatprep.mubr.msk.f32.mxu1 %vm703_vm0, %v3836_v41 }
 0x6a5   : > { %5950 = vmatprep.subr.bf16.mxu1 %v5949_v60 }
 0x6a7   : > { %5609 = vmatmul.mubr.msk.f32.gmra.mrb[8].mxu1 %vm703_vm0, %v3837_v11 }
 0x6a8   : > { %5611 = vmatprep.mubr.msk.f32.mxu1 %vm703_vm0, %v3838_v62  ;;  %5952 = vmatpush3.bf16.msra.mxu1 %v5949_v60 }
 0x6a9   : > { %5954 = vmatprep.subr.bf16.mxu1 %v5953_v38 }
 0x6ab   : > { %5612 = vmatmul.mubr.msk.f32.gmra.mrb[10].mxu1 %vm703_vm0, %v3839_v35 }
 0x6ac   : > { %5614 = vmatprep.mubr.msk.f32.mxu1 %vm703_vm0, %v3840_v25 }
 0x6af   : > { %5615 = vmatmul.mubr.msk.f32.gmra.mrb[12].mxu1 %vm703_vm0, %v3841_v9 }
 0x6b0   : > { %5625 = vmatprep.mubr.msk.f32.mxu1 %vm703_vm0, %v7372_v5  ;;  %v4142_v5 = vmul.f32 %v6775_v59, %v7405_v40  ;;  %v4296_v59 = vld [vmem:[%s7703_s12 + $0x20] sm:$0xff]  ;;  %v4297_v40 = vld [vmem:[%s7703_s12 + $0x28] sm:$0xff] }
 0x6b3   : > { %5626 = vmatmul.mubr.msk.f32.vlgmr.msra.gmra.mrb[6].mxu1 %vm703_vm0, %v7376_v27  ;;  %v4294_v27 = vld [vmem:[%s7703_s12 + $0x10] sm:$0xff] }
 0x6b4   : > { %5956 = vmatpush3.bf16.msra.mxu1 %v5953_v38  ;;  %5628 = vmatprep.mubr.msk.f32.mxu1 %vm703_vm0, %v7380_v20  ;;  %v4295_v20 = vld [vmem:[%s7703_s12 + $0x18] sm:$0xff] }
 0x6b5   : > { %5958 = vmatprep.subr.bf16.mxu1 %v5957_v30 }
 0x6b7   : > { %5629 = vmatmul.mubr.msk.f32.gmra.mrb[8].mxu1 %vm703_vm0, %v7384_v4  ;;  %v4143_v4 = vmul.f32 %v6788_v53, %v7412_v17  ;;  %v4145_v53 = vmul.f32 %v6812_v1, %v7428_v26  ;;  %v5969_v17 = vpack.c.bf16 %v4297_v40, %v4296_v59  ;;  %v4147_v1 = vmul.f32 %v6838_v19, %v7438_v29 }
 0x6b8   : > { %5631 = vmatprep.mubr.msk.f32.mxu1 %vm703_vm0, %v7388_v3  ;;  %5960 = vmatpush3.bf16.msra.mxu1 %v5957_v30  ;;  %v5965_v3 = vpack.c.bf16 %v4295_v20, %v4294_v27 }
 0x6b9   : > { %5962 = vmatprep.subr.bf16.mxu1 %v5961_v7 }
 0x6bb   : > { %5632 = vmatmul.mubr.msk.f32.gmra.mrb[10].mxu1 %vm703_vm0, %v7395_v43  ;;  %v4144_v43 = vmul.f32 %v6798_v42, %v7421_v24  ;;  %v4146_v42 = vmul.f32 %v6824_v51, %v7431_v16  ;;  %v4298_v24 = vld [vmem:[%s7703_s12 + $0x30] sm:$0xff]  ;;  %v4148_v51 = vmul.f32 %v6850_v13, %v7544_v46 }
 0x6bc   : > { %5634 = vmatprep.mubr.msk.f32.mxu1 %vm703_vm0, %v7509_v0  ;;  %v4141_v0 = vld [vmem:[#allocation3 + $0x51] sm:$0xff]  ;;  %v5973_v26 = vpack.c.bf16 %v4299_v52, %v4298_v24 }
 0x6bd   : > { %v4149_v16 = vmul.f32 %v6862_v34, %v4141_v0 }
 0x6bf   : > { %5635 = vmatmul.mubr.msk.f32.gmra.mrb[12].mxu1 %vm703_vm0, %v3991_v12 }
 0x6c0   : > { %5645 = vmatprep.mubr.msk.f32.mxu1 %vm703_vm0, %v4142_v5 }
 0x6c3   : > { %5646 = vmatmul.mubr.msk.f32.vlgmr.msra.gmra.mrb[6].mxu1 %vm703_vm0, %v4143_v4 }
 0x6c4   : > { %5964 = vmatpush3.bf16.msra.mxu1 %v5961_v7  ;;  %5648 = vmatprep.mubr.msk.f32.mxu1 %vm703_vm0, %v4144_v43 }
 0x6c5   : > { %5966 = vmatprep.subr.bf16.mxu1 %v5965_v3 }
 0x6c7   : > { %5649 = vmatmul.mubr.msk.f32.gmra.mrb[8].mxu1 %vm703_vm0, %v4145_v53 }
 0x6c8   : > { %5968 = vmatpush3.bf16.msra.mxu1 %v5965_v3  ;;  %5651 = vmatprep.mubr.msk.f32.mxu1 %vm703_vm0, %v4146_v42 }
 0x6c9   : > { %5970 = vmatprep.subr.bf16.mxu1 %v5969_v17 }
 0x6cb   : > { %5652 = vmatmul.mubr.msk.f32.gmra.mrb[10].mxu1 %vm703_vm0, %v4147_v1 }
 0x6cc   : > { %5972 = vmatpush3.bf16.msra.mxu1 %v5969_v17  ;;  %5654 = vmatprep.mubr.msk.f32.mxu1 %vm703_vm0, %v4148_v51 }
 0x6cd   : > { %5974 = vmatprep.subr.bf16.mxu1 %v5973_v26 }
 0x6cf   : > { %5655 = vmatmul.mubr.msk.f32.gmra.mrb[12].mxu1 %vm703_vm0, %v4149_v16 }
 0x6d0   : > { %5976 = vmatpush3.bf16.msra.mxu1 %v5973_v26  ;;  %5673 = vmatprep.mubr.msk.f32.mxu1 %vm722_vm1, %v6411_v28  ;;  %v4698_v28 = vld [vmem:[%s7702_s11] ss:$0 sm:$0xff] }
 0x6d3   : > { %5674 = vmatmul.mubr.msk.f32.vlgmr.msra.gmra.mrb[6].mxu1 %vm722_vm1, %v6417_v32 }
 0x6d4   : > { %5676 = vmatprep.mubr.msk.f32.mxu1 %vm722_vm1, %v6414_v31  ;;  %v4803_v31 = vld [vmem:[%s7704_s13] ss:$0 sm:$0xff] }
 0x6d7   : > { %5677 = vmatmul.mubr.msk.f32.gmra.mrb[8].mxu1 %vm722_vm1, %v6420_v33 }
 0x6d8   : > { %5679 = vmatprep.mubr.msk.f32.mxu1 %vm722_vm1, %v6431_v44  ;;  %v5991_v44 = vadd.f32 %v4803_v31, %v4698_v28 }
 0x6db   : > { %5680 = vmatmul.mubr.msk.f32.gmra.mrb[10].mxu1 %vm722_vm1, %v6434_v45 }
 0x6dc   : > { %5682 = vmatprep.mubr.msk.f32.mxu1 %vm722_vm1, %v6441_v54 }
 0x6df   : > { %5683 = vmatmul.mubr.msk.f32.gmra.mrb[12].mxu1 %vm722_vm1, %v6444_v55 }
 0x7a6   : > { %v5675_v32 = vpop.f32.mrb[6].mxu1 }
 0x7a7   : > { %v5985_v33 = vadd.f32 %v5675_v32, %v4698_v28  ;;  %v4397_v19 = vpop.f32.mrb[7].mxu1 }
 0x7a8   : > { %v5987_v45 = vadd.f32 %v4698_v28, %v4397_v19 }
 0x7a9   : > { %v5986_v54 = vadd.f32 %v5985_v33, %v4803_v31 }
 0x7aa   : > { %v5988_v13 = vadd.f32 %v5987_v45, %v4803_v31  ;;  %v5678_v55 = vpop.f32.mrb[8].mxu1 }
 0x7ab   : > { %4445 = vst.msk [vmem:[%s501_s19 + $0x8] sm:$0xff] %vm703_vm0, %v5986_v54  ;;  %v5990_v34 = vadd.f32 %v5991_v44, %v5678_v55  ;;  %v4407_v29 = vpop.f32.mrb[9].mxu1 }
 0x7ac   : > { %4444 = vst.msk [vmem:[%s501_s19] sm:$0xff] %vm703_vm0, %v5988_v13  ;;  %v5992_v23 = vadd.f32 %v5991_v44, %v4407_v29 }
 0x7ad   : > { %4447 = vst.msk [vmem:[%s501_s19 + $0x18] sm:$0xff] %vm703_vm0, %v5990_v34 }
 0x7ae   : > { %4446 = vst.msk [vmem:[%s501_s19 + $0x10] sm:$0xff] %vm703_vm0, %v5992_v23  ;;  %v5681_v61 = vpop.f32.mrb[10].mxu1 }
 0x7af   : > { %v5994_v18 = vadd.f32 %v5991_v44, %v5681_v61  ;;  %v4417_v50 = vpop.f32.mrb[11].mxu1 }
 0x7b0   : > { %v5996_v48 = vadd.f32 %v5991_v44, %v4417_v50 }
 0x7b1   : > { %4449 = vst.msk [vmem:[%s501_s19 + $0x28] sm:$0xff] %vm703_vm0, %v5994_v18 }
 0x7b2   : > { %4448 = vst.msk [vmem:[%s501_s19 + $0x20] sm:$0xff] %vm703_vm0, %v5996_v48  ;;  %v5684_v6 = vpop.f32.mrb[12].mxu1 }
 0x7b3   : > { %v5998_v36 = vadd.f32 %v5991_v44, %v5684_v6  ;;  %v4427_v14 = vpop.f32.mrb[13].mxu1 }
 0x7b4   : > { %v6000_v63 = vadd.f32 %v5991_v44, %v4427_v14 }
 0x7b5   : > { %4451 = vst.msk [vmem:[%s501_s19 + $0x38] sm:$0xff] %vm703_vm0, %v5998_v36 }
 0x7b6   : > { %4450 = vst.msk [vmem:[%s501_s19 + $0x30] sm:$0xff] %vm703_vm0, %v6000_v63 }
 0x7b7 PF: > { %s24_s29 = sadd.s32 1, %s6223_s29  }
 0x7b8   : > { %p21_p4 = scmp.ge.s32.totalorder %s24_s29, 4  }
 0x7ba   :  { %23 = sbr.rel (!%p21_p4) target bundleno = 1 (0x1), region = 128 }

</bundles_post_ra>
